<compile_context>
chip_gen: v5e
topology: v5e:2x2
jax: 0.10.0
libtpu: 0.0.40
codegen_flags: <defaults>
</compile_context>

<pallas_src>
import jax
import jax.numpy as jnp
from jax.experimental import pallas as pl
from jax.experimental.pallas import tpu as pltpu


# ----------------------------------------------------------------------------
# Kernel 1: fused conv1 -> relu -> conv2 -> relu (everything stays in VMEM)
# ----------------------------------------------------------------------------
def _conv_stack_kernel(x_ref, w1_ref, w2_ref, o_ref):
    # x : (B, Cin=2, L=64)
    # w1: (K=3, Cin=2, Cout1=128)   (kernel-tap major layout, see convert_params)
    # w2: (K=3, Cin=128, Cout2=256)
    # o : (B, L2=60, Cout2=256)     (position-major so fc1 can consume a reshape)
    x = x_ref[...]
    w1 = w1_ref[...]
    w2 = w2_ref[...]
    B, Cin, L = x.shape
    K, _, O1 = w1.shape
    O2 = w2.shape[2]
    L1 = L - K + 1       # 62
    L2 = L1 - K + 1      # 60

    # conv1 + relu: Cin*K = 6 broadcast multiply-adds on the VPU (the
    # contraction dim of 2 is far too small for the MXU to be worthwhile).
    y1 = jnp.zeros((B, L1, O1), jnp.float32)
    for k in range(K):
        for c in range(Cin):
            w1_vec = w1[k, c:c + 1, :]                               # (1, O1)
            y1 = y1 + x[:, c, k:k + L1][:, :, None] * w1_vec[None, :, :]
    y1 = jnp.maximum(y1, 0.0)

    # conv2 + relu: contraction over 128 channels -> 3 small MXU matmuls per
    # batch row, accumulated in f32.
    for b in range(B):
        acc = jnp.zeros((L2, O2), jnp.float32)
        for k in range(K):
            acc = acc + jnp.dot(y1[b, k:k + L2, :], w2[k],
                                preferred_element_type=jnp.float32)
        o_ref[b] = jnp.maximum(acc, 0.0)


def conv_stack_relu(x, w1_k, w2_k):
    """x: (B, 2, L)  ->  relu(conv2(relu(conv1(x)))) in (B, Lout, Cout2) layout."""
    B, _, L = x.shape
    K = w1_k.shape[0]
    L2 = L - 2 * (K - 1)
    O2 = w2_k.shape[2]
    # Whole operands fit trivially in VMEM -> grid-less pallas_call, full blocks.
    return pl.pallas_call(
        _conv_stack_kernel,
        out_shape=jax.ShapeDtypeStruct((B, L2, O2), jnp.float32),
    )(x, w1_k, w2_k)


# ----------------------------------------------------------------------------
# Kernel 2: fused  relu(fc1)  +  partial fc2  (weight-streaming matmul)
# ----------------------------------------------------------------------------
def _fc1_fc2_kernel(a_ref, w1_ref, b1_ref, w2_ref, out_ref, acc_ref):
    # grid = (gn, gk); the K (reduction) axis is last.
    k = pl.program_id(1)

    @pl.when(k == 0)
    def _():
        acc_ref[...] = jnp.zeros_like(acc_ref)

    acc_ref[...] += jnp.dot(a_ref[...], w1_ref[...],
                            preferred_element_type=jnp.float32)

    @pl.when(k == pl.num_programs(1) - 1)
    def _():
        h = jnp.maximum(acc_ref[...] + b1_ref[...], 0.0)      # relu(fc1) block (tm, tn)
        # Partial fc2 contribution of this N-block; the (B,1024) hidden never
        # leaves VMEM.
        out_ref[...] = jnp.dot(h, w2_ref[...],
                               preferred_element_type=jnp.float32)


def fc1_fc2_relu(x2d, fc1_w, fc1_b, fc2_w, fc2_b, *, tn, tk):
    """relu( relu(x2d @ fc1_w + fc1_b) @ fc2_w + fc2_b ).

    x2d: (M, K), fc1_w: (K, N) pre-transposed & row-permuted, fc2_w: (N, O)."""
    M, K = x2d.shape
    Kw, N = fc1_w.shape
    Nw, O = fc2_w.shape
    assert K == Kw and N == Nw
    assert K % tk == 0 and N % tn == 0
    gn, gk = N // tn, K // tk
    tm = M  # full-dim M block (batch is tiny) -> no padding, bypasses 8-row rule

    # Double-buffered inputs + output block + accumulator scratch, with headroom.
    vmem_limit = int(2 * 4 * (tm * tk + tk * tn + tn + tn * O + tm * O)
                     + 4 * tm * tn + (4 << 20))

    partials = pl.pallas_call(
        _fc1_fc2_kernel,
        out_shape=jax.ShapeDtypeStruct((gn, M, O), jnp.float32),
        grid_spec=pltpu.PrefetchScalarGridSpec(
            num_scalar_prefetch=0,
            grid=(gn, gk),
            in_specs=[
                pl.BlockSpec((tm, tk), lambda j, k: (0, k)),   # activations
                pl.BlockSpec((tk, tn), lambda j, k: (k, j)),   # fc1 weight stream
                pl.BlockSpec((1, tn), lambda j, k: (0, j)),    # fc1 bias (resident over k)
                pl.BlockSpec((tn, O), lambda j, k: (j, 0)),    # fc2 weight slab (resident over k)
            ],
            out_specs=pl.BlockSpec((None, tm, O), lambda j, k: (j, 0, 0)),
            scratch_shapes=[pltpu.VMEM((tm, tn), jnp.float32)],
        ),
        compiler_params=pltpu.CompilerParams(
            dimension_semantics=("parallel", "arbitrary"),
            vmem_limit_bytes=vmem_limit,
        ),
        cost_estimate=pl.CostEstimate(
            flops=2 * M * K * N + 2 * M * N * O,
            transcendentals=0,
            bytes_accessed=4 * (M * K + K * N + N + N * O + gn * M * O),
        ),
    )(x2d, fc1_w, fc1_b.reshape(1, N), fc2_w)

    # Tiny cross-N-block combine for fc2 ((gn, M, 4) elements) + bias + relu.
    return jnp.maximum(jnp.sum(partials, axis=0) + fc2_b[None, :], 0.0)


def _fc1_tiles():
    """Per-generation (tn, tk) for the fc1 weight stream (K=15360, N=1024)."""
    try:
        kind = jax.devices()[0].device_kind.lower()
    except Exception:
        kind = ""
    if "v5" in kind or "v6" in kind:
        # Single TensorCore: one full-N lane-dense output block, 5 K-steps of
        # 12 MiB weight tiles (24 MiB double-buffered -> vmem_limit raised).
        return 1024, 3072
    # v7x (2 TCs/chip) and default: keep gn=2 so the "parallel" N axis splits
    # across both cores; 3 K-steps of 10 MiB weight tiles per core.
    return 512, 5120


# ----------------------------------------------------------------------------
# Parameters (PyTorch layouts) + one-time conversion to kernel layouts
# ----------------------------------------------------------------------------
def init_torch_params(key):
    """Same tensor layouts as the PyTorch module's state_dict (convs bias=False)."""
    k1, k2, k3, k4, k5, k6 = jax.random.split(key, 6)
    return {
        "conv1_w": 0.1 * jax.random.normal(k1, (128, 2, 3), jnp.float32),
        "conv2_w": 0.05 * jax.random.normal(k2, (256, 128, 3), jnp.float32),
        "fc1_w": 0.01 * jax.random.normal(k3, (1024, 15360), jnp.float32),
        "fc1_b": 0.01 * jax.random.normal(k4, (1024,), jnp.float32),
        "fc2_w": 0.05 * jax.random.normal(k5, (4, 1024), jnp.float32),
        "fc2_b": 0.01 * jax.random.normal(k6, (4,), jnp.float32),
    }


def convert_params(tp, *, L2=60, O2=256):
    """One-time layout conversion (done once at init, never in the forward):
       * conv weights -> (K, Cin, Cout) kernel-tap-major,
       * fc weights pre-transposed to (K, N),
       * fc1 rows permuted from torch's .view(-1, 15360) order (o*60 + l) to the
         conv kernel's native (l*256 + o) order, killing the post-conv transpose."""
    perm = (jnp.arange(O2)[None, :] * L2 + jnp.arange(L2)[:, None]).reshape(-1)
    return {
        "conv1_w": jnp.transpose(tp["conv1_w"], (2, 1, 0)),   # (3, 2, 128)
        "conv2_w": jnp.transpose(tp["conv2_w"], (2, 1, 0)),   # (3, 128, 256)
        "fc1_w": tp["fc1_w"].T[perm, :],                      # (15360, 1024)
        "fc1_b": tp["fc1_b"],
        "fc2_w": tp["fc2_w"].T,                               # (1024, 4)
        "fc2_b": tp["fc2_b"],
    }


# ----------------------------------------------------------------------------
# Forward
# ----------------------------------------------------------------------------
@jax.jit
def baseline_net_forward(params, x):
    B = x.shape[0]
    y = conv_stack_relu(x, params["conv1_w"], params["conv2_w"])   # (B, 60, 256)
    h = y.reshape(B, -1)                                           # (B, 15360), (l, o)-major
    tn, tk = _fc1_tiles()
    return fc1_fc2_relu(h, params["fc1_w"], params["fc1_b"],
                        params["fc2_w"], params["fc2_b"], tn=tn, tk=tk)


# ----------------------------------------------------------------------------
# Pure-JAX reference in PyTorch layouts / semantics (for the correctness check)
# ----------------------------------------------------------------------------
def reference_forward(tp, x):
    B = x.shape[0]
    w1, w2 = tp["conv1_w"], tp["conv2_w"]
    K = w1.shape[-1]
    L1 = x.shape[-1] - K + 1
    y1 = jnp.zeros((B, w1.shape[0], L1), jnp.float32)
    for k in range(K):
        y1 = y1 + jnp.einsum("bcl,oc->bol", x[:, :, k:k + L1], w1[:, :, k])
    y1 = jnp.maximum(y1, 0.0)
    L2 = L1 - K + 1
    y2 = jnp.zeros((B, w2.shape[0], L2), jnp.float32)
    for k in range(K):
        y2 = y2 + jnp.einsum("bcl,oc->bol", y1[:, :, k:k + L2], w2[:, :, k])
    y2 = jnp.maximum(y2, 0.0)
    h = y2.reshape(B, -1)                                   # torch .view(-1, 15360)
    h = jnp.maximum(h @ tp["fc1_w"].T + tp["fc1_b"], 0.0)
    return jnp.maximum(h @ tp["fc2_w"].T + tp["fc2_b"], 0.0)


if __name__ == "__main__":
    key = jax.random.PRNGKey(0)
    pkey, xkey = jax.random.split(key)

    torch_params = init_torch_params(pkey)
    params = convert_params(torch_params)
    # Input length 64 is implied by view(-1, 15360): 15360 = 256 * (64 - 2 - 2).
    x = jax.random.normal(xkey, (2, 2, 64), jnp.float32)

    out = jax.block_until_ready(baseline_net_forward(params, x))
    assert out.shape == (2, 4), out.shape
    assert bool(jnp.all(jnp.isfinite(out)))

    ref = jax.block_until_ready(reference_forward(torch_params, x))
    assert bool(jnp.allclose(out, ref, rtol=3e-2, atol=3e-3)), (out, ref)

    print("KERNEL_OK")
</pallas_src>

<mosaic_0001>
module attributes {stable_mosaic.version = 11 : i64} {
  func.func @_conv_stack_kernel(%arg0: memref<2x2x64xf32, #tpu.memory_space<vmem>>, %arg1: memref<3x2x128xf32, #tpu.memory_space<vmem>>, %arg2: memref<3x128x256xf32, #tpu.memory_space<vmem>>, %arg3: memref<2x60x256xf32, #tpu.memory_space<vmem>>) attributes {dimension_semantics = [], scalar_prefetch = 0 : i64, scratch_operands = 0 : i64, tpu.core_type = #tpu.core_type<tc>} {
    %c0 = arith.constant 0 : index
    %c0_0 = arith.constant 0 : index
    %c0_1 = arith.constant 0 : index
    %0 = vector.load %arg0[%c0, %c0_0, %c0_1] : memref<2x2x64xf32, #tpu.memory_space<vmem>>, vector<2x2x64xf32>
    %c0_2 = arith.constant 0 : index
    %c0_3 = arith.constant 0 : index
    %c0_4 = arith.constant 0 : index
    %1 = vector.load %arg1[%c0_2, %c0_3, %c0_4] : memref<3x2x128xf32, #tpu.memory_space<vmem>>, vector<3x2x128xf32>
    %c0_5 = arith.constant 0 : index
    %c0_6 = arith.constant 0 : index
    %c0_7 = arith.constant 0 : index
    %2 = vector.load %arg2[%c0_5, %c0_6, %c0_7] : memref<3x128x256xf32, #tpu.memory_space<vmem>>, vector<3x128x256xf32>
    %cst = arith.constant 0.000000e+00 : f32
    %3 = vector.broadcast %cst : f32 to vector<2x62x128xf32>
    %4 = vector.extract_strided_slice %1 {offsets = [0, 0, 0], sizes = [1, 1, 128], strides = [1, 1, 1]} : vector<3x2x128xf32> to vector<1x1x128xf32>
    %5 = vector.shape_cast %4 : vector<1x1x128xf32> to vector<1x128xf32>
    %6 = vector.extract_strided_slice %0 {offsets = [0, 0, 0], sizes = [2, 1, 62], strides = [1, 1, 1]} : vector<2x2x64xf32> to vector<2x1x62xf32>
    %7 = vector.shape_cast %6 : vector<2x1x62xf32> to vector<2x62xf32>
    %8 = vector.shape_cast %7 : vector<2x62xf32> to vector<2x62x1xf32>
    %9 = vector.shape_cast %5 : vector<1x128xf32> to vector<1x1x128xf32>
    %10 = vector.broadcast %8 : vector<2x62x1xf32> to vector<2x62x128xf32>
    %11 = vector.broadcast %9 : vector<1x1x128xf32> to vector<2x62x128xf32>
    %12 = arith.mulf %10, %11 : vector<2x62x128xf32>
    %13 = arith.addf %3, %12 : vector<2x62x128xf32>
    %14 = vector.extract_strided_slice %1 {offsets = [0, 1, 0], sizes = [1, 1, 128], strides = [1, 1, 1]} : vector<3x2x128xf32> to vector<1x1x128xf32>
    %15 = vector.shape_cast %14 : vector<1x1x128xf32> to vector<1x128xf32>
    %16 = vector.extract_strided_slice %0 {offsets = [0, 1, 0], sizes = [2, 1, 62], strides = [1, 1, 1]} : vector<2x2x64xf32> to vector<2x1x62xf32>
    %17 = vector.shape_cast %16 : vector<2x1x62xf32> to vector<2x62xf32>
    %18 = vector.shape_cast %17 : vector<2x62xf32> to vector<2x62x1xf32>
    %19 = vector.shape_cast %15 : vector<1x128xf32> to vector<1x1x128xf32>
    %20 = vector.broadcast %18 : vector<2x62x1xf32> to vector<2x62x128xf32>
    %21 = vector.broadcast %19 : vector<1x1x128xf32> to vector<2x62x128xf32>
    %22 = arith.mulf %20, %21 : vector<2x62x128xf32>
    %23 = arith.addf %13, %22 : vector<2x62x128xf32>
    %24 = vector.extract_strided_slice %1 {offsets = [1, 0, 0], sizes = [1, 1, 128], strides = [1, 1, 1]} : vector<3x2x128xf32> to vector<1x1x128xf32>
    %25 = vector.shape_cast %24 : vector<1x1x128xf32> to vector<1x128xf32>
    %26 = vector.extract_strided_slice %0 {offsets = [0, 0, 1], sizes = [2, 1, 62], strides = [1, 1, 1]} : vector<2x2x64xf32> to vector<2x1x62xf32>
    %27 = vector.shape_cast %26 : vector<2x1x62xf32> to vector<2x62xf32>
    %28 = vector.shape_cast %27 : vector<2x62xf32> to vector<2x62x1xf32>
    %29 = vector.shape_cast %25 : vector<1x128xf32> to vector<1x1x128xf32>
    %30 = vector.broadcast %28 : vector<2x62x1xf32> to vector<2x62x128xf32>
    %31 = vector.broadcast %29 : vector<1x1x128xf32> to vector<2x62x128xf32>
    %32 = arith.mulf %30, %31 : vector<2x62x128xf32>
    %33 = arith.addf %23, %32 : vector<2x62x128xf32>
    %34 = vector.extract_strided_slice %1 {offsets = [1, 1, 0], sizes = [1, 1, 128], strides = [1, 1, 1]} : vector<3x2x128xf32> to vector<1x1x128xf32>
    %35 = vector.shape_cast %34 : vector<1x1x128xf32> to vector<1x128xf32>
    %36 = vector.extract_strided_slice %0 {offsets = [0, 1, 1], sizes = [2, 1, 62], strides = [1, 1, 1]} : vector<2x2x64xf32> to vector<2x1x62xf32>
    %37 = vector.shape_cast %36 : vector<2x1x62xf32> to vector<2x62xf32>
    %38 = vector.shape_cast %37 : vector<2x62xf32> to vector<2x62x1xf32>
    %39 = vector.shape_cast %35 : vector<1x128xf32> to vector<1x1x128xf32>
    %40 = vector.broadcast %38 : vector<2x62x1xf32> to vector<2x62x128xf32>
    %41 = vector.broadcast %39 : vector<1x1x128xf32> to vector<2x62x128xf32>
    %42 = arith.mulf %40, %41 : vector<2x62x128xf32>
    %43 = arith.addf %33, %42 : vector<2x62x128xf32>
    %44 = vector.extract_strided_slice %1 {offsets = [2, 0, 0], sizes = [1, 1, 128], strides = [1, 1, 1]} : vector<3x2x128xf32> to vector<1x1x128xf32>
    %45 = vector.shape_cast %44 : vector<1x1x128xf32> to vector<1x128xf32>
    %46 = vector.extract_strided_slice %0 {offsets = [0, 0, 2], sizes = [2, 1, 62], strides = [1, 1, 1]} : vector<2x2x64xf32> to vector<2x1x62xf32>
    %47 = vector.shape_cast %46 : vector<2x1x62xf32> to vector<2x62xf32>
    %48 = vector.shape_cast %47 : vector<2x62xf32> to vector<2x62x1xf32>
    %49 = vector.shape_cast %45 : vector<1x128xf32> to vector<1x1x128xf32>
    %50 = vector.broadcast %48 : vector<2x62x1xf32> to vector<2x62x128xf32>
    %51 = vector.broadcast %49 : vector<1x1x128xf32> to vector<2x62x128xf32>
    %52 = arith.mulf %50, %51 : vector<2x62x128xf32>
    %53 = arith.addf %43, %52 : vector<2x62x128xf32>
    %54 = vector.extract_strided_slice %1 {offsets = [2, 1, 0], sizes = [1, 1, 128], strides = [1, 1, 1]} : vector<3x2x128xf32> to vector<1x1x128xf32>
    %55 = vector.shape_cast %54 : vector<1x1x128xf32> to vector<1x128xf32>
    %56 = vector.extract_strided_slice %0 {offsets = [0, 1, 2], sizes = [2, 1, 62], strides = [1, 1, 1]} : vector<2x2x64xf32> to vector<2x1x62xf32>
    %57 = vector.shape_cast %56 : vector<2x1x62xf32> to vector<2x62xf32>
    %58 = vector.shape_cast %57 : vector<2x62xf32> to vector<2x62x1xf32>
    %59 = vector.shape_cast %55 : vector<1x128xf32> to vector<1x1x128xf32>
    %60 = vector.broadcast %58 : vector<2x62x1xf32> to vector<2x62x128xf32>
    %61 = vector.broadcast %59 : vector<1x1x128xf32> to vector<2x62x128xf32>
    %62 = arith.mulf %60, %61 : vector<2x62x128xf32>
    %63 = arith.addf %53, %62 : vector<2x62x128xf32>
    %cst_8 = arith.constant 0.000000e+00 : f32
    %64 = vector.broadcast %cst_8 : f32 to vector<2x62x128xf32>
    %65 = arith.maximumf %63, %64 : vector<2x62x128xf32>
    %cst_9 = arith.constant 0.000000e+00 : f32
    %66 = vector.broadcast %cst_9 : f32 to vector<60x256xf32>
    %67 = vector.extract_strided_slice %65 {offsets = [0, 0, 0], sizes = [1, 60, 128], strides = [1, 1, 1]} : vector<2x62x128xf32> to vector<1x60x128xf32>
    %68 = vector.shape_cast %67 : vector<1x60x128xf32> to vector<60x128xf32>
    %69 = vector.extract_strided_slice %2 {offsets = [0, 0, 0], sizes = [1, 128, 256], strides = [1, 1, 1]} : vector<3x128x256xf32> to vector<1x128x256xf32>
    %70 = vector.shape_cast %69 : vector<1x128x256xf32> to vector<128x256xf32>
    %cst_10 = arith.constant dense<0.000000e+00> : vector<60x256xf32>
    %71 = tpu.matmul %68, %70, %cst_10 {dimension_numbers = #tpu.dot_dimension_numbers<[1], [0], [0], [1], [0, 0, 1, 1], [], []>} : vector<60x128xf32>, vector<128x256xf32>, vector<60x256xf32> -> vector<60x256xf32>
    %72 = arith.addf %66, %71 : vector<60x256xf32>
    %73 = vector.extract_strided_slice %65 {offsets = [0, 1, 0], sizes = [1, 60, 128], strides = [1, 1, 1]} : vector<2x62x128xf32> to vector<1x60x128xf32>
    %74 = vector.shape_cast %73 : vector<1x60x128xf32> to vector<60x128xf32>
    %75 = vector.extract_strided_slice %2 {offsets = [1, 0, 0], sizes = [1, 128, 256], strides = [1, 1, 1]} : vector<3x128x256xf32> to vector<1x128x256xf32>
    %76 = vector.shape_cast %75 : vector<1x128x256xf32> to vector<128x256xf32>
    %cst_11 = arith.constant dense<0.000000e+00> : vector<60x256xf32>
    %77 = tpu.matmul %74, %76, %cst_11 {dimension_numbers = #tpu.dot_dimension_numbers<[1], [0], [0], [1], [0, 0, 1, 1], [], []>} : vector<60x128xf32>, vector<128x256xf32>, vector<60x256xf32> -> vector<60x256xf32>
    %78 = arith.addf %72, %77 : vector<60x256xf32>
    %79 = vector.extract_strided_slice %65 {offsets = [0, 2, 0], sizes = [1, 60, 128], strides = [1, 1, 1]} : vector<2x62x128xf32> to vector<1x60x128xf32>
    %80 = vector.shape_cast %79 : vector<1x60x128xf32> to vector<60x128xf32>
    %81 = vector.extract_strided_slice %2 {offsets = [2, 0, 0], sizes = [1, 128, 256], strides = [1, 1, 1]} : vector<3x128x256xf32> to vector<1x128x256xf32>
    %82 = vector.shape_cast %81 : vector<1x128x256xf32> to vector<128x256xf32>
    %cst_12 = arith.constant dense<0.000000e+00> : vector<60x256xf32>
    %83 = tpu.matmul %80, %82, %cst_12 {dimension_numbers = #tpu.dot_dimension_numbers<[1], [0], [0], [1], [0, 0, 1, 1], [], []>} : vector<60x128xf32>, vector<128x256xf32>, vector<60x256xf32> -> vector<60x256xf32>
    %84 = arith.addf %78, %83 : vector<60x256xf32>
    %cst_13 = arith.constant 0.000000e+00 : f32
    %85 = vector.broadcast %cst_13 : f32 to vector<60x256xf32>
    %86 = arith.maximumf %84, %85 : vector<60x256xf32>
    %c0_14 = arith.constant 0 : index
    %c0_15 = arith.constant 0 : index
    %c0_16 = arith.constant 0 : index
    %87 = vector.load %arg3[%c0_14, %c0_15, %c0_16] : memref<2x60x256xf32, #tpu.memory_space<vmem>>, vector<1x60x256xf32>
    %88 = vector.shape_cast %87 : vector<1x60x256xf32> to vector<60x256xf32>
    %89 = vector.shape_cast %86 : vector<60x256xf32> to vector<1x60x256xf32>
    tpu.vector_store %arg3[%c0_14, %c0_15, %c0_16], %89 {strides = array<i32>} : memref<2x60x256xf32, #tpu.memory_space<vmem>>, vector<1x60x256xf32>,
    %cst_17 = arith.constant 0.000000e+00 : f32
    %90 = vector.broadcast %cst_17 : f32 to vector<60x256xf32>
    %91 = vector.extract_strided_slice %65 {offsets = [1, 0, 0], sizes = [1, 60, 128], strides = [1, 1, 1]} : vector<2x62x128xf32> to vector<1x60x128xf32>
    %92 = vector.shape_cast %91 : vector<1x60x128xf32> to vector<60x128xf32>
    %93 = vector.extract_strided_slice %2 {offsets = [0, 0, 0], sizes = [1, 128, 256], strides = [1, 1, 1]} : vector<3x128x256xf32> to vector<1x128x256xf32>
    %94 = vector.shape_cast %93 : vector<1x128x256xf32> to vector<128x256xf32>
    %cst_18 = arith.constant dense<0.000000e+00> : vector<60x256xf32>
    %95 = tpu.matmul %92, %94, %cst_18 {dimension_numbers = #tpu.dot_dimension_numbers<[1], [0], [0], [1], [0, 0, 1, 1], [], []>} : vector<60x128xf32>, vector<128x256xf32>, vector<60x256xf32> -> vector<60x256xf32>
    %96 = arith.addf %90, %95 : vector<60x256xf32>
    %97 = vector.extract_strided_slice %65 {offsets = [1, 1, 0], sizes = [1, 60, 128], strides = [1, 1, 1]} : vector<2x62x128xf32> to vector<1x60x128xf32>
    %98 = vector.shape_cast %97 : vector<1x60x128xf32> to vector<60x128xf32>
    %99 = vector.extract_strided_slice %2 {offsets = [1, 0, 0], sizes = [1, 128, 256], strides = [1, 1, 1]} : vector<3x128x256xf32> to vector<1x128x256xf32>
    %100 = vector.shape_cast %99 : vector<1x128x256xf32> to vector<128x256xf32>
    %cst_19 = arith.constant dense<0.000000e+00> : vector<60x256xf32>
    %101 = tpu.matmul %98, %100, %cst_19 {dimension_numbers = #tpu.dot_dimension_numbers<[1], [0], [0], [1], [0, 0, 1, 1], [], []>} : vector<60x128xf32>, vector<128x256xf32>, vector<60x256xf32> -> vector<60x256xf32>
    %102 = arith.addf %96, %101 : vector<60x256xf32>
    %103 = vector.extract_strided_slice %65 {offsets = [1, 2, 0], sizes = [1, 60, 128], strides = [1, 1, 1]} : vector<2x62x128xf32> to vector<1x60x128xf32>
    %104 = vector.shape_cast %103 : vector<1x60x128xf32> to vector<60x128xf32>
    %105 = vector.extract_strided_slice %2 {offsets = [2, 0, 0], sizes = [1, 128, 256], strides = [1, 1, 1]} : vector<3x128x256xf32> to vector<1x128x256xf32>
    %106 = vector.shape_cast %105 : vector<1x128x256xf32> to vector<128x256xf32>
    %cst_20 = arith.constant dense<0.000000e+00> : vector<60x256xf32>
    %107 = tpu.matmul %104, %106, %cst_20 {dimension_numbers = #tpu.dot_dimension_numbers<[1], [0], [0], [1], [0, 0, 1, 1], [], []>} : vector<60x128xf32>, vector<128x256xf32>, vector<60x256xf32> -> vector<60x256xf32>
    %108 = arith.addf %102, %107 : vector<60x256xf32>
    %cst_21 = arith.constant 0.000000e+00 : f32
    %109 = vector.broadcast %cst_21 : f32 to vector<60x256xf32>
    %110 = arith.maximumf %108, %109 : vector<60x256xf32>
    %c1 = arith.constant 1 : index
    %c0_22 = arith.constant 0 : index
    %c0_23 = arith.constant 0 : index
    %111 = vector.load %arg3[%c1, %c0_22, %c0_23] : memref<2x60x256xf32, #tpu.memory_space<vmem>>, vector<1x60x256xf32>
    %112 = vector.shape_cast %111 : vector<1x60x256xf32> to vector<60x256xf32>
    %113 = vector.shape_cast %110 : vector<60x256xf32> to vector<1x60x256xf32>
    tpu.vector_store %arg3[%c1, %c0_22, %c0_23], %113 {strides = array<i32>} : memref<2x60x256xf32, #tpu.memory_space<vmem>>, vector<1x60x256xf32>,
    return
  }
}

module attributes {stable_mosaic.version = 11 : i64} {
  func.func @_fc1_fc2_kernel(%arg0: i32, %arg1: i32, %arg2: memref<2x5120xf32, #tpu.memory_space<vmem>>, %arg3: memref<5120x512xf32, #tpu.memory_space<vmem>>, %arg4: memref<1x512xf32, #tpu.memory_space<vmem>>, %arg5: memref<512x4xf32, #tpu.memory_space<vmem>>, %arg6: memref<1x2x4xf32, #tpu.memory_space<vmem>>, %arg7: memref<2x512xf32, #tpu.memory_space<vmem>>) attributes {dimension_semantics = [#tpu.dimension_semantics<parallel>, #tpu.dimension_semantics<arbitrary>], iteration_bounds = array<i64: 2, 3>, scalar_prefetch = 0 : i64, scratch_operands = 1 : i64, tpu.core_type = #tpu.core_type<tc>, window_params = [{transform_indices = @transform_0, window_bounds = array<i64: 2, 5120>}, {transform_indices = @transform_1, window_bounds = array<i64: 5120, 512>}, {transform_indices = @transform_2, window_bounds = array<i64: 1, 512>}, {transform_indices = @transform_3, window_bounds = array<i64: 512, 4>}, {transform_indices = @transform_4, window_bounds = array<i64: 1, 2, 4>}]} {
    %c0_i32 = arith.constant 0 : i32
    %0 = arith.cmpi eq, %arg1, %c0_i32 : i32
    %1 = arith.extui %0 : i1 to i32
    %c0_i32_0 = arith.constant 0 : i32
    %2 = arith.cmpi ne, %1, %c0_i32_0 : i32
    scf.if %2 {
      %cst_9 = arith.constant 0.000000e+00 : f32
      %12 = vector.broadcast %cst_9 : f32 to vector<2x512xf32>
      %c0_10 = arith.constant 0 : index
      %c0_11 = arith.constant 0 : index
      %13 = vector.load %arg7[%c0_10, %c0_11] : memref<2x512xf32, #tpu.memory_space<vmem>>, vector<2x512xf32>
      tpu.vector_store %arg7[%c0_10, %c0_11], %12 {strides = array<i32>} : memref<2x512xf32, #tpu.memory_space<vmem>>, vector<2x512xf32>,
    } else {
    }
    %c0 = arith.constant 0 : index
    %c0_1 = arith.constant 0 : index
    %3 = vector.load %arg7[%c0, %c0_1] : memref<2x512xf32, #tpu.memory_space<vmem>>, vector<2x512xf32>
    %c0_2 = arith.constant 0 : index
    %c0_3 = arith.constant 0 : index
    %4 = vector.load %arg2[%c0_2, %c0_3] : memref<2x5120xf32, #tpu.memory_space<vmem>>, vector<2x5120xf32>
    %c0_4 = arith.constant 0 : index
    %c0_5 = arith.constant 0 : index
    %5 = vector.load %arg3[%c0_4, %c0_5] : memref<5120x512xf32, #tpu.memory_space<vmem>>, vector<5120x512xf32>
    %cst = arith.constant dense<0.000000e+00> : vector<2x512xf32>
    %6 = tpu.matmul %4, %5, %cst {dimension_numbers = #tpu.dot_dimension_numbers<[1], [0], [0], [1], [0, 0, 1, 1], [], []>} : vector<2x5120xf32>, vector<5120x512xf32>, vector<2x512xf32> -> vector<2x512xf32>
    %7 = arith.addf %3, %6 : vector<2x512xf32>
    %c0_6 = arith.constant 0 : index
    %c0_7 = arith.constant 0 : index
    %8 = vector.load %arg7[%c0_6, %c0_7] : memref<2x512xf32, #tpu.memory_space<vmem>>, vector<2x512xf32>
    tpu.vector_store %arg7[%c0_6, %c0_7], %7 {strides = array<i32>} : memref<2x512xf32, #tpu.memory_space<vmem>>, vector<2x512xf32>,
    %c2_i32 = arith.constant 2 : i32
    %9 = arith.cmpi eq, %arg1, %c2_i32 : i32
    %10 = arith.extui %9 : i1 to i32
    %c0_i32_8 = arith.constant 0 : i32
    %11 = arith.cmpi ne, %10, %c0_i32_8 : i32
    scf.if %11 {
      %c0_9 = arith.constant 0 : index
      %c0_10 = arith.constant 0 : index
      %12 = vector.load %arg7[%c0_9, %c0_10] : memref<2x512xf32, #tpu.memory_space<vmem>>, vector<2x512xf32>
      %c0_11 = arith.constant 0 : index
      %c0_12 = arith.constant 0 : index
      %13 = vector.load %arg4[%c0_11, %c0_12] : memref<1x512xf32, #tpu.memory_space<vmem>>, vector<1x512xf32>
      %14 = vector.broadcast %13 : vector<1x512xf32> to vector<2x512xf32>
      %15 = arith.addf %12, %14 : vector<2x512xf32>
      %cst_13 = arith.constant 0.000000e+00 : f32
      %16 = vector.broadcast %cst_13 : f32 to vector<2x512xf32>
      %17 = arith.maximumf %15, %16 : vector<2x512xf32>
      %c0_14 = arith.constant 0 : index
      %c0_15 = arith.constant 0 : index
      %18 = vector.load %arg5[%c0_14, %c0_15] : memref<512x4xf32, #tpu.memory_space<vmem>>, vector<512x4xf32>
      %cst_16 = arith.constant dense<0.000000e+00> : vector<2x4xf32>
      %19 = tpu.matmul %17, %18, %cst_16 {dimension_numbers = #tpu.dot_dimension_numbers<[1], [0], [0], [1], [0, 0, 1, 1], [], []>} : vector<2x512xf32>, vector<512x4xf32>, vector<2x4xf32> -> vector<2x4xf32>
      %c0_17 = arith.constant 0 : index
      %c0_18 = arith.constant 0 : index
      %c0_19 = arith.constant 0 : index
      %20 = vector.load %arg6[%c0_17, %c0_18, %c0_19] : memref<1x2x4xf32, #tpu.memory_space<vmem>>, vector<1x2x4xf32>
      %21 = vector.shape_cast %20 : vector<1x2x4xf32> to vector<2x4xf32>
      %22 = vector.shape_cast %19 : vector<2x4xf32> to vector<1x2x4xf32>
      tpu.vector_store %arg6[%c0_17, %c0_18, %c0_19], %22 {strides = array<i32>} : memref<1x2x4xf32, #tpu.memory_space<vmem>>, vector<1x2x4xf32>,
    } else {
    }
    return
  }
  func.func @transform_0(%arg0: i32, %arg1: i32) -> (i32, i32) {
    %c0_i32 = arith.constant 0 : i32
    %c0_i32_0 = arith.constant 0 : i32
    return %c0_i32, %arg1 : i32, i32
  }
  func.func @transform_1(%arg0: i32, %arg1: i32) -> (i32, i32) {
    %c0_i32 = arith.constant 0 : i32
    return %arg1, %arg0 : i32, i32
  }
  func.func @transform_2(%arg0: i32, %arg1: i32) -> (i32, i32) {
    %c0_i32 = arith.constant 0 : i32
    %c0_i32_0 = arith.constant 0 : i32
    return %c0_i32, %arg0 : i32, i32
  }
  func.func @transform_3(%arg0: i32, %arg1: i32) -> (i32, i32) {
    %c0_i32 = arith.constant 0 : i32
    %c0_i32_0 = arith.constant 0 : i32
    return %arg0, %c0_i32 : i32, i32
  }
  func.func @transform_4(%arg0: i32, %arg1: i32) -> (i32, i32, i32) {
    %c0_i32 = arith.constant 0 : i32
    %c0_i32_0 = arith.constant 0 : i32
    %c0_i32_1 = arith.constant 0 : i32
    return %arg0, %c0_i32, %c0_i32_0 : i32, i32, i32
  }
}

</mosaic_0001>

<bundles_post_ra>
// kernel: baseline_net_forward.2
= control target key start
LH: loop header
LB: loop body
LE: loop exit
PB: predicated region body
PF: predicated region fallthrough
CT: control target
= control target key end

     0   :  { %8 = vsyncpa [#allocation3], 0  ;;  %s2892_s0 = inlined_call_operand.hbm [shape: f32[2,2,64], index: 0, kind: input, shape index: {}]   ;;  %s2893_s1 = inlined_call_operand.hbm [shape: f32[3,2,128], index: 1, kind: input, shape index: {}]   ;;  %s2894_s2 = inlined_call_operand.hbm [shape: f32[3,128,256], index: 2, kind: input, shape index: {}]   ;;  %s2895_s3 = inlined_call_operand.vmem [shape: f32[2,60,256], index: 3, kind: output, shape index: {}]  }
   0x1   :  { %9 = vsyncpa [#allocation5], 0  ;;  %s27_s14 = sshll.u32 %s2893_s1, 4  ;;  %s1852_s15 = smov [#allocation4]   ;;  %s28_s14 = int_to_ptr.hbm [resolvable:$true] %s27_s14 }
   0x2   :  { %s29_s16 = sshll.u32 %s1852_s15, 4  ;;  %s14_s19 = sshll.u32 %s2892_s0, 4  ;;  %s30_s16 = int_to_ptr.vmem [resolvable:$true] %s29_s16  ;;  %s15_s19 = int_to_ptr.hbm [resolvable:$true] %s14_s19 }
   0x3   :  { %s1853_s20 = smov 32   ;;  %s1854_s21 = smov 2  }
   0x4   :  { %35 = dma.hbm_to_vmem [thread:$0]  %s28_s14, 96, %s30_s16, [#allocation5], %s1853_s20, %s1853_s20, %s1854_s21  }
   0x5   :  { %s1855_s22 = smov [#allocation2]   ;;  %s40_s26 = sshll.u32 %s2894_s2, 4  ;;  %s41_s26 = int_to_ptr.hbm [resolvable:$true] %s40_s26 }
   0x6   :  { %s16_s23 = sshll.u32 %s1855_s22, 4  ;;  %s1856_s1 = smov [#allocation6]   ;;  %s17_s23 = int_to_ptr.vmem [resolvable:$true] %s16_s23 }
   0x7   :  { %22 = dma.hbm_to_vmem [thread:$0]  %s15_s19, 64, %s17_s23, [#allocation3], %s1853_s20, %s1853_s20, %s1854_s21  }
   0x8   :  { %s42_s27 = sshll.u32 %s1856_s1, 4  ;;  %s1857_s28 = smov 256   ;;  %s43_s27 = int_to_ptr.vmem [resolvable:$true] %s42_s27 }
   0x9   :  { %s1858_s29 = smov 16  }
   0xa   :  { %48 = dma.hbm_to_vmem [thread:$0]  %s41_s26, 12288, %s43_s27, [#allocation5], %s1857_s28, %s1857_s28, %s1858_s29  }
   0xb   :  { %1848 = dma.done.wait [#allocation3], 64  }
   0xc   :  { %1849 = vsyncadd [#allocation3], 4294967232 }
   0xd   :  { %1850 = dma.done.wait [#allocation5], 12384  }
   0xe   :  { %1851 = vsyncadd [#allocation5], 4294954912  ;;  %v163_v0 = vlaneseq  ;;  %v61_v5 = vld [vmem:[#allocation2] sm:$0x3]  ;;  %v62_v9 = vld [vmem:[#allocation2 + $0x2] sm:$0x3] }
   0xf   :  { %v1899_v6 = vperm.slane %v61_v5, 0  ;;  %v1922_v12 = vperm.slane %v62_v9, 0  ;;  %v1936_v13 = vperm.slane %v61_v5, 1  ;;  %v1948_v14 = vperm.slane %v62_v9, 1  ;;  %v63_v35 = vld [vmem:[#allocation4] sm:$0x3] }
  0x10   :  { %v1888_v1 = vshrl.u32 %v163_v0, 7  ;;  %v2027_v36 = vperm.slane %v63_v35, 0  ;;  %v2029_v38 = vperm.slane %v63_v35, 1  ;;  %vm964_vm0 = vcmask 1046528  }
  0x11   :  { %vm1152_vm1 = vcmask 1045504  }
  0x12   :  { %v189_v2 = vadd.s32 32, %v1888_v1  ;;  %v1892_v3 = vadd.s32 16, %v1888_v1  ;;  %v1895_v4 = vadd.s32 8, %v1888_v1  ;;  %v1905_v7 = vadd.s32 40, %v1888_v1 }
  0x13   :  { %v1908_v8 = vadd.s32 24, %v1888_v1  ;;  %v1917_v10 = vadd.s32 56, %v1888_v1  ;;  %v1920_v11 = vadd.s32 48, %v1888_v1  ;;  %v1954_v15 = vadd.s32 9, %v1888_v1 }
  0x14   :  { %1688 = vset.pattern.permute.xlu2 %v189_v2  ;;  %1686 = vset.pattern.permute.xlu1 %v1892_v3  ;;  %v1962_v16 = vadd.s32 10, %v1888_v1  ;;  %v1971_v17 = vadd.s32 18, %v1888_v1  ;;  %v1982_v20 = vadd.s32 33, %v1888_v1  ;;  %v1995_v24 = vadd.s32 41, %v1888_v1 }
  0x15   :  { %1684 = vset.pattern.permute.xlu0 %v1895_v4  ;;  %v2012_v30 = vadd.s32 50, %v1888_v1  ;;  %v2020_v33 = vadd.s32 1, %v1888_v1  ;;  %v2034_v42 = vadd.s32 58, %v1888_v1  ;;  %v2044_v46 = vadd.s32 17, %v1888_v1 }
  0x16   :  { %2941 = vst [vmem:[#allocation9_spill] sm:$0xff] %v1971_v17  ;;  %v2054_v54 = vadd.s32 2, %v1888_v1  ;;  %v2087_v9 = vadd.s32 26, %v1888_v1 }
  0x17   :  { %2942 = vst [vmem:[#allocation10_spill] sm:$0xff] %v1982_v20 }
  0x18   :  { %2943 = vst [vmem:[#allocation11_spill] sm:$0xff] %v1995_v24 }
  0x19   :  { %2945 = vst [vmem:[#allocation13_spill] sm:$0xff] %v2044_v46 }
  0x1a   :  { %2950 = vst [vmem:[#allocation18_spill] sm:$0xff] %v2087_v9 }
  0x1c   :  { %191 = vperm.xlu2 %1688, %v1899_v6   ;;  %179 = vperm.xlu1 %1686, %v1899_v6  }
  0x1d   :  { %173 = vperm.xlu0 %1684, %v1899_v6  }
  0x24   :  { %1689 = vset.pattern.permute.xlu2 %v1905_v7  ;;  %1687 = vset.pattern.permute.xlu1 %v1908_v8 }
  0x25   :  { %1685 = vset.pattern.permute.xlu0 %v1888_v1 }
  0x2c   :  { %197 = vperm.xlu2 %1689, %v1899_v6   ;;  %185 = vperm.xlu1 %1687, %v1899_v6  }
  0x2d   :  { %167 = vperm.xlu0 %1685, %v1899_v6  }
  0x34   :  { %1691 = vset.pattern.permute.xlu2 %v1917_v10  ;;  %1690 = vset.pattern.permute.xlu1 %v1920_v11 }
  0x35   :  { %216 = vperm.xlu0 %1685, %v1922_v12  }
  0x3c   :  { %209 = vperm.xlu2 %1691, %v1899_v6   ;;  %203 = vperm.xlu1 %1690, %v1899_v6  }
  0x3d   :  { %1696 = vset.pattern.permute.xlu0 %v1905_v7 }
  0x44   :  { %1693 = vset.pattern.permute.xlu2 %v1892_v3  ;;  %1692 = vset.pattern.permute.xlu1 %v1895_v4 }
  0x45   :  { %246 = vperm.xlu0 %1696, %v1922_v12  }
  0x4c   :  { %228 = vperm.xlu2 %1693, %v1922_v12   ;;  %222 = vperm.xlu1 %1692, %v1922_v12  }
  0x4d   :  { %1701 = vset.pattern.permute.xlu0 %v1892_v3 }
  0x54   :  { %1695 = vset.pattern.permute.xlu2 %v189_v2  ;;  %1694 = vset.pattern.permute.xlu1 %v1908_v8 }
  0x55   :  { %310 = vperm.xlu0 %1701, %v1936_v13  }
  0x5c   :  { %240 = vperm.xlu2 %1695, %v1922_v12   ;;  %234 = vperm.xlu1 %1694, %v1922_v12  }
  0x5d   :  { %1706 = vset.pattern.permute.xlu0 %v1917_v10 }
  0x64   :  { %1698 = vset.pattern.permute.xlu2 %v1917_v10  ;;  %1697 = vset.pattern.permute.xlu1 %v1920_v11 }
  0x65   :  { %340 = vperm.xlu0 %1706, %v1936_v13  }
  0x6c   :  { %258 = vperm.xlu2 %1698, %v1922_v12   ;;  %252 = vperm.xlu1 %1697, %v1922_v12  }
  0x6d   :  { %1711 = vset.pattern.permute.xlu0 %v189_v2 }
  0x74   :  { %1700 = vset.pattern.permute.xlu2 %v1895_v4  ;;  %1699 = vset.pattern.permute.xlu1 %v1888_v1 }
  0x75   :  { %371 = vperm.xlu0 %1711, %v1948_v14  }
  0x76   :  { %v192_v19 = vpop.permute.xlu2 %191 }
  0x77   :  { %v265_v49 = vmul.f32 %v2027_v36, %v192_v19 }
  0x7c   :  { %304 = vperm.xlu2 %1700, %v1936_v13   ;;  %298 = vperm.xlu1 %1699, %v1936_v13  }
  0x7d   :  { %1716 = vset.pattern.permute.xlu0 %v1954_v15 }
  0x84   :  { %1703 = vset.pattern.permute.xlu2 %v189_v2  ;;  %1702 = vset.pattern.permute.xlu1 %v1908_v8 }
  0x85   :  { %434 = vperm.xlu0 %1716, %v1899_v6  }
  0x86   :  { %v1987_v21 = vpop.permute.xlu2 %197 }
  0x8c   :  { %322 = vperm.xlu2 %1703, %v1936_v13   ;;  %316 = vperm.xlu1 %1702, %v1936_v13  }
  0x8d   :  { %1720 = vset.pattern.permute.xlu0 %v1962_v16 }
  0x8e   :  { %v2009_v28 = vpop.permute.xlu1 %179 }
  0x8f   :  { %v1979_v18 = vpop.permute.xlu0 %173 }
  0x94   :  { %1705 = vset.pattern.permute.xlu2 %v1920_v11  ;;  %1704 = vset.pattern.permute.xlu1 %v1905_v7 }
  0x95   :  { %692 = vperm.xlu0 %1720, %v1899_v6  }
  0x96   :  { %v210_v23 = vpop.permute.xlu2 %209 }
  0x97   :  { %v268_v40 = vmul.f32 %v2027_v36, %v210_v23 }
  0x9c   :  { %334 = vperm.xlu2 %1705, %v1936_v13   ;;  %328 = vperm.xlu1 %1704, %v1936_v13  }
  0x9d   :  { %1725 = vset.pattern.permute.xlu0 %v1971_v17 }
  0x9e   :  { %v186_v31 = vpop.permute.xlu1 %185 }
  0x9f   :  { %v1989_v22 = vpop.permute.xlu0 %167  ;;  %v264_v0 = vmul.f32 %v2027_v36, %v186_v31 }
  0xa4   :  { %1708 = vset.pattern.permute.xlu2 %v1895_v4  ;;  %1707 = vset.pattern.permute.xlu1 %v1888_v1 }
  0xa5   :  { %827 = vperm.xlu0 %1725, %v1936_v13  }
  0xa6   :  { %v2002_v26 = vpop.permute.xlu2 %228 }
  0xa7   :  { %v1997_v25 = vpop.permute.xlu0 %216 }
  0xac   :  { %353 = vperm.xlu2 %1708, %v1948_v14   ;;  %347 = vperm.xlu1 %1707, %v1948_v14  }
  0xad   :  { %1730 = vset.pattern.permute.xlu0 %v1982_v20 }
  0xae   :  { %v204_v37 = vpop.permute.xlu1 %203 }
  0xaf   :  { %v267_v60 = vmul.f32 %v2027_v36, %v204_v37  ;;  %v2103_v37 = vadd.s32 25, %v1888_v1 }
  0xb1   :  { %2952 = vst [vmem:[#allocation20_spill] sm:$0xff] %v2103_v37 }
  0xb4   :  { %1710 = vset.pattern.permute.xlu2 %v1908_v8  ;;  %1709 = vset.pattern.permute.xlu1 %v1892_v3 }
  0xb5   :  { %452 = vperm.xlu0 %1730, %v1899_v6  }
  0xb6   :  { %v241_v29 = vpop.permute.xlu2 %240 }
  0xb7   :  { %v2006_v27 = vpop.permute.xlu0 %246  ;;  %v273_v52 = vmul.f32 %v2027_v36, %v241_v29 }
  0xbc   :  { %365 = vperm.xlu2 %1710, %v1948_v14   ;;  %359 = vperm.xlu1 %1709, %v1948_v14  }
  0xbd   :  { %1735 = vset.pattern.permute.xlu0 %v1995_v24 }
  0xbe   :  { %v223_v45 = vpop.permute.xlu1 %222 }
  0xbf   :  { %v270_v5 = vmul.f32 %v2027_v36, %v223_v45 }
  0xc4   :  { %1713 = vset.pattern.permute.xlu2 %v1920_v11  ;;  %1712 = vset.pattern.permute.xlu1 %v1905_v7  ;;  %v266_v11 = vmul.f32 %v2027_v36, %v1987_v21  ;;  %v2108_v21 = vadd.s32 34, %v1888_v1 }
  0xc5   :  { %587 = vperm.xlu0 %1735, %v1936_v13  }
  0xc6   :  { %v2022_v34 = vpop.permute.xlu2 %258  ;;  %2954 = vst [vmem:[#allocation22_spill] sm:$0xff] %v2108_v21 }
  0xc7   :  { %v2017_v32 = vpop.permute.xlu0 %310 }
  0xcc   :  { %383 = vperm.xlu2 %1713, %v1948_v14   ;;  %377 = vperm.xlu1 %1712, %v1948_v14  }
  0xcd   :  { %1740 = vset.pattern.permute.xlu0 %v2012_v30 }
  0xce   :  { %v235_v47 = vpop.permute.xlu1 %234 }
  0xcf   :  { %v272_v31 = vmul.f32 %v2027_v36, %v235_v47 }
  0xd4   :  { %1715 = vset.pattern.permute.xlu2 %v2020_v33  ;;  %1714 = vset.pattern.permute.xlu1 %v1917_v10 }
  0xd5   :  { %722 = vperm.xlu0 %1740, %v1899_v6  }
  0xd6   :  { %v2040_v44 = vpop.permute.xlu2 %304 }
  0xd7   :  { %v341_v39 = vpop.permute.xlu0 %340 }
  0xd8   :  { %v399_v41 = vmul.f32 %v2029_v38, %v341_v39 }
  0xda   :  { %v2036_v43 = vadd.f32 %v399_v41, %v268_v40  ;;  %v269_v40 = vmul.f32 %v2027_v36, %v1997_v25  ;;  %v2126_v25 = vadd.s32 49, %v1888_v1 }
  0xdc   :  { %2944 = vst [vmem:[#allocation12_spill] sm:$0xff] %v2036_v43  ;;  %428 = vperm.xlu2 %1715, %v1899_v6   ;;  %389 = vperm.xlu1 %1714, %v1948_v14   ;;  %v2326_v43 = vld [vmem:[#allocation6 + $0x18] sm:$0xff] }
  0xdd   :  { %1745 = vset.pattern.permute.xlu0 %v2034_v42  ;;  %2990 = vst [vmem:[#allocation58_spill] sm:$0xff] %v2326_v43 }
  0xde   :  { %v253_v57 = vpop.permute.xlu1 %252 }
  0xe4   :  { %557 = vperm.xlu2 %1715, %v1936_v13   ;;  %1717 = vset.pattern.permute.xlu1 %v2044_v46 }
  0xe5   :  { %857 = vperm.xlu0 %1745, %v1936_v13  }
  0xe6   :  { %v323_v48 = vpop.permute.xlu2 %322 }
  0xe7   :  { %v396_v50 = vmul.f32 %v2029_v38, %v323_v48  ;;  %v372_v51 = vpop.permute.xlu0 %371 }
  0xe8   :  { %v404_v53 = vmul.f32 %v2029_v38, %v372_v51 }
  0xe9   :  { %v2056_v55 = vadd.f32 %v396_v50, %v265_v49  ;;  %v275_v49 = vmul.f32 %v2027_v36, %v253_v57 }
  0xea   :  { %v2058_v56 = vadd.f32 %v404_v53, %v273_v52  ;;  %v271_v53 = vmul.f32 %v2027_v36, %v2002_v26 }
  0xeb   :  { %2946 = vst [vmem:[#allocation14_spill] sm:$0xff] %v2056_v55 }
  0xec   :  { %2947 = vst [vmem:[#allocation15_spill] sm:$0xff] %v2058_v56  ;;  %1719 = vset.pattern.permute.xlu2 %v2054_v54  ;;  %440 = vperm.xlu1 %1717, %v1899_v6   ;;  %v2235_v56 = vld [vmem:[#allocation6 + $0x88] sm:$0xff] }
  0xed   :  { %1748 = vset.pattern.permute.xlu0 %v2054_v54  ;;  %2975 = vst [vmem:[#allocation43_spill] sm:$0xff] %v2235_v56 }
  0xee   :  { %v2066_v58 = vpop.permute.xlu1 %298 }
  0xf4   :  { %686 = vperm.xlu2 %1719, %v1899_v6   ;;  %1718 = vset.pattern.permute.xlu1 %v1954_v15 }
  0xf5   :  { %734 = vperm.xlu0 %1748, %v1922_v12  }
  0xf6   :  { %v335_v59 = vpop.permute.xlu2 %334 }
  0xf7   :  { %v398_v61 = vmul.f32 %v2029_v38, %v335_v59 }
  0xf9   :  { %v2070_v62 = vadd.f32 %v398_v61, %v267_v60  ;;  %v274_v60 = vmul.f32 %v2027_v36, %v2006_v27  ;;  %v2156_v27 = vld [vmem:[#allocation6 + $0xe8] sm:$0xff] }
  0xfa   :  { %2962 = vst [vmem:[#allocation30_spill] sm:$0xff] %v2156_v27 }
  0xfb   :  { %2948 = vst [vmem:[#allocation16_spill] sm:$0xff] %v2070_v62 }
  0xfc   :  { %1722 = vset.pattern.permute.xlu2 %v1962_v16  ;;  %563 = vperm.xlu1 %1718, %v1936_v13  }
  0xfd   :  { %1752 = vset.pattern.permute.xlu0 %v2044_v46 }
  0xfe   :  { %v317_v63 = vpop.permute.xlu1 %316 }
  0xff   :  { %v395_v2 = vmul.f32 %v2029_v38, %v317_v63 }
 0x101   :  { %v2077_v3 = vadd.f32 %v395_v2, %v264_v0  ;;  %v2148_v0 = vld [vmem:[#allocation6 + $0xf0] sm:$0xff]  ;;  %v2150_v2 = vld [vmem:[#allocation6 + $0xf8] sm:$0xff] }
 0x102   :  { %2959 = vst [vmem:[#allocation27_spill] sm:$0xff] %v2148_v0  ;;  %1070 = vmatpush.msra.mxu2 %v2148_v0  ;;  %1111 = vmatpush.msra.mxu3 %v2150_v2  ;;  %v2324_v0 = vld [vmem:[#allocation6 + $0x10] sm:$0xff] }
 0x103   :  { %2960 = vst [vmem:[#allocation28_spill] sm:$0xff] %v2150_v2  ;;  %v2312_v2 = vld [vmem:[#allocation6 + $0x28] sm:$0xff] }
 0x104   :  { %821 = vperm.xlu2 %1722, %v1936_v13   ;;  %1721 = vset.pattern.permute.xlu1 %v2054_v54  ;;  %2988 = vst [vmem:[#allocation56_spill] sm:$0xff] %v2312_v2 }
 0x105   :  { %617 = vperm.xlu0 %1752, %v1948_v14   ;;  %1112 = vmatpush.msra.mxu3 %v2156_v27  ;;  %v2300_v27 = vld [vmem:[#allocation6 + $0x38] sm:$0xff]  ;;  %2989 = vst [vmem:[#allocation57_spill] sm:$0xff] %v2324_v0 }
 0x106   :  { %v354_v4 = vpop.permute.xlu2 %353  ;;  %2986 = vst [vmem:[#allocation54_spill] sm:$0xff] %v2300_v27 }
 0x107   :  { %v401_v7 = vmul.f32 %v2029_v38, %v354_v4  ;;  %v2152_v4 = vld [vmem:[#allocation6 + $0xe0] sm:$0xff] }
 0x108   :  { %2961 = vst [vmem:[#allocation29_spill] sm:$0xff] %v2152_v4  ;;  %1071 = vmatpush.msra.mxu2 %v2152_v4  ;;  %v2304_v4 = vld [vmem:[#allocation6 + $0x140] sm:$0xff] }
 0x109   :  { %v2084_v8 = vadd.f32 %v401_v7, %v270_v5  ;;  %v2158_v5 = vld [vmem:[#allocation6 + $0x1f0] sm:$0xff]  ;;  %v2160_v7 = vld [vmem:[#allocation6 + $0x1f8] sm:$0xff] }
 0x10a   :  { %988 = vmatpush.msra.mxu0 %v2158_v5  ;;  %1029 = vmatpush.msra.mxu1 %v2160_v7 }
 0x10b   :  { %2949 = vst [vmem:[#allocation17_spill] sm:$0xff] %v2084_v8  ;;  %v2245_v8 = vld [vmem:[#allocation6 + $0x70] sm:$0xff] }
 0x10c   :  { %1724 = vset.pattern.permute.xlu2 %v1971_v17  ;;  %815 = vperm.xlu1 %1721, %v1936_v13   ;;  %2976 = vst [vmem:[#allocation44_spill] sm:$0xff] %v2245_v8 }
 0x10d   :  { %1757 = vset.pattern.permute.xlu0 %v2087_v9 }
 0x10e   :  { %v329_v10 = vpop.permute.xlu1 %328 }
 0x10f   :  { %v397_v19 = vmul.f32 %v2029_v38, %v329_v10  ;;  %v2164_v10 = vld [vmem:[#allocation6 + $0xd0] sm:$0xff] }
 0x110   :  { %2963 = vst [vmem:[#allocation31_spill] sm:$0xff] %v2164_v10  ;;  %1072 = vmatpush.msra.mxu2 %v2164_v10  ;;  %v2294_v10 = vld [vmem:[#allocation6 + $0x158] sm:$0xff] }
 0x111   :  { %v2095_v23 = vadd.f32 %v397_v19, %v266_v11  ;;  %v2166_v11 = vld [vmem:[#allocation6 + $0xd8] sm:$0xff]  ;;  %v2168_v19 = vld [vmem:[#allocation6 + $0x1e0] sm:$0xff] }
 0x112   :  { %2964 = vst [vmem:[#allocation32_spill] sm:$0xff] %v2166_v11  ;;  %989 = vmatpush.msra.mxu0 %v2168_v19  ;;  %1113 = vmatpush.msra.mxu3 %v2166_v11  ;;  %v2292_v11 = vld [vmem:[#allocation6 + $0x150] sm:$0xff] }
 0x113   :  { %2951 = vst [vmem:[#allocation19_spill] sm:$0xff] %v2095_v23  ;;  %v2354_v23 = vld [vmem:[#allocation6 + $0x108] sm:$0xff] }
 0x114   :  { %698 = vperm.xlu2 %1724, %v1899_v6   ;;  %1723 = vset.pattern.permute.xlu1 %v2044_v46 }
 0x115   :  { %752 = vperm.xlu0 %1757, %v1922_v12  }
 0x116   :  { %v366_v29 = vpop.permute.xlu2 %365 }
 0x117   :  { %v403_v35 = vmul.f32 %v2029_v38, %v366_v29  ;;  %v2172_v29 = vld [vmem:[#allocation6 + $0x1e8] sm:$0xff] }
 0x118   :  { %1030 = vmatpush.msra.mxu1 %v2172_v29 }
 0x119   :  { %v2105_v39 = vadd.f32 %v403_v35, %v272_v31  ;;  %v2176_v31 = vld [vmem:[#allocation6 + $0xc0] sm:$0xff]  ;;  %v2178_v35 = vld [vmem:[#allocation6 + $0xc8] sm:$0xff] }
 0x11a   :  { %2965 = vst [vmem:[#allocation33_spill] sm:$0xff] %v2176_v31  ;;  %1073 = vmatpush.msra.mxu2 %v2176_v31  ;;  %1114 = vmatpush.msra.mxu3 %v2178_v35 }
 0x11b   :  { %2953 = vst [vmem:[#allocation21_spill] sm:$0xff] %v2105_v39  ;;  %v2239_v39 = vld [vmem:[#allocation6 + $0x190] sm:$0xff] }
 0x11c   :  { %1727 = vset.pattern.permute.xlu2 %v2103_v37  ;;  %569 = vperm.xlu1 %1723, %v1936_v13   ;;  %2966 = vst [vmem:[#allocation34_spill] sm:$0xff] %v2178_v35  ;;  %v2274_v35 = vld [vmem:[#allocation6 + $0x58] sm:$0xff] }
 0x11d   :  { %1762 = vset.pattern.permute.xlu0 %v2108_v21  ;;  %2982 = vst [vmem:[#allocation50_spill] sm:$0xff] %v2274_v35 }
 0x11e   :  { %v348_v41 = vpop.permute.xlu1 %347 }
 0x11f   :  { %v400_v45 = vmul.f32 %v2029_v38, %v348_v41  ;;  %v2188_v41 = vld [vmem:[#allocation6 + $0x1d8] sm:$0xff] }
 0x120   :  { %1031 = vmatpush.msra.mxu1 %v2188_v41 }
 0x121   :  { %v2116_v47 = vadd.f32 %v400_v45, %v269_v40  ;;  %v2186_v40 = vld [vmem:[#allocation6 + $0x1d0] sm:$0xff] }
 0x122   :  { %v2190_v45 = vld [vmem:[#allocation6 + $0xb0] sm:$0xff]  ;;  %990 = vmatpush.msra.mxu0 %v2186_v40 }
 0x123   :  { %2955 = vst [vmem:[#allocation23_spill] sm:$0xff] %v2116_v47  ;;  %1074 = vmatpush.msra.mxu2 %v2190_v45  ;;  %v2247_v47 = vld [vmem:[#allocation6 + $0x78] sm:$0xff] }
 0x124   :  { %575 = vperm.xlu2 %1727, %v1936_v13   ;;  %1726 = vset.pattern.permute.xlu1 %v2103_v37  ;;  %2967 = vst [vmem:[#allocation35_spill] sm:$0xff] %v2190_v45  ;;  %v2272_v45 = vld [vmem:[#allocation6 + $0x50] sm:$0xff]  ;;  %v2352_v37 = vld [vmem:[#allocation6 + $0x100] sm:$0xff] }
 0x125   :  { %887 = vperm.xlu0 %1762, %v1948_v14   ;;  %2977 = vst [vmem:[#allocation45_spill] sm:$0xff] %v2247_v47 }
 0x126   :  { %v384_v48 = vpop.permute.xlu2 %383  ;;  %2981 = vst [vmem:[#allocation49_spill] sm:$0xff] %v2272_v45 }
 0x127   :  { %v406_v50 = vmul.f32 %v2029_v38, %v384_v48  ;;  %v2194_v48 = vld [vmem:[#allocation6 + $0xb8] sm:$0xff] }
 0x128   :  { %2968 = vst [vmem:[#allocation36_spill] sm:$0xff] %v2194_v48  ;;  %1115 = vmatpush.msra.mxu3 %v2194_v48  ;;  %v2266_v48 = vld [vmem:[#allocation6 + $0x178] sm:$0xff] }
 0x129   :  { %v2123_v51 = vadd.f32 %v406_v50, %v275_v49  ;;  %v276_v50 = vmul.f32 %v2027_v36, %v2022_v34  ;;  %v2215_v34 = vld [vmem:[#allocation6 + $0x1b0] sm:$0xff] }
 0x12b   :  { %2956 = vst [vmem:[#allocation24_spill] sm:$0xff] %v2123_v51  ;;  %v2219_v51 = vld [vmem:[#allocation6 + $0x90] sm:$0xff] }
 0x12c   :  { %1729 = vset.pattern.permute.xlu2 %v2087_v9  ;;  %446 = vperm.xlu1 %1726, %v1899_v6   ;;  %2972 = vst [vmem:[#allocation40_spill] sm:$0xff] %v2219_v51 }
 0x12d   :  { %1767 = vset.pattern.permute.xlu0 %v2126_v25 }
 0x12e   :  { %v360_v52 = vpop.permute.xlu1 %359 }
 0x12f   :  { %v402_v59 = vmul.f32 %v2029_v38, %v360_v52 }
 0x131   :  { %v2134_v57 = vadd.f32 %v402_v59, %v271_v53  ;;  %v2201_v53 = vld [vmem:[#allocation6 + $0x1c0] sm:$0xff]  ;;  %v2203_v59 = vld [vmem:[#allocation6 + $0x1c8] sm:$0xff] }
 0x132   :  { %991 = vmatpush.msra.mxu0 %v2201_v53  ;;  %1032 = vmatpush.msra.mxu1 %v2203_v59 }
 0x133   :  { %2957 = vst [vmem:[#allocation25_spill] sm:$0xff] %v2134_v57  ;;  %v2241_v57 = vld [vmem:[#allocation6 + $0x198] sm:$0xff] }
 0x134   :  { %833 = vperm.xlu2 %1729, %v1936_v13   ;;  %1728 = vset.pattern.permute.xlu1 %v2087_v9  ;;  %v2346_v9 = vld [vmem:[#allocation6 + $0x118] sm:$0xff] }
 0x135   :  { %512 = vperm.xlu0 %1767, %v1922_v12   ;;  %992 = vmatpush.msra.mxu0 %v2215_v34 }
 0x136   :  { %v2282_v31 = vpop.permute.xlu2 %428 }
 0x13c   :  { %1732 = vset.pattern.permute.xlu2 %v2108_v21  ;;  %704 = vperm.xlu1 %1728, %v1899_v6  }
 0x13e   :  { %v378_v61 = vpop.permute.xlu1 %377 }
 0x13f   :  { %v405_v26 = vmul.f32 %v2029_v38, %v378_v61  ;;  %v2209_v61 = vld [vmem:[#allocation6 + $0xa8] sm:$0xff] }
 0x140   :  { %2970 = vst [vmem:[#allocation38_spill] sm:$0xff] %v2209_v61  ;;  %1116 = vmatpush.msra.mxu3 %v2209_v61  ;;  %v2255_v61 = vld [vmem:[#allocation6 + $0x60] sm:$0xff] }
 0x141   :  { %v2144_v63 = vadd.f32 %v405_v26, %v274_v60  ;;  %v2207_v60 = vld [vmem:[#allocation6 + $0xa0] sm:$0xff]  ;;  %2978 = vst [vmem:[#allocation46_spill] sm:$0xff] %v2255_v61 }
 0x142   :  { %2969 = vst [vmem:[#allocation37_spill] sm:$0xff] %v2207_v60  ;;  %1075 = vmatpush.msra.mxu2 %v2207_v60  ;;  %v2258_v60 = vadd.s32 42, %v1888_v1 }
 0x143   :  { %2958 = vst [vmem:[#allocation26_spill] sm:$0xff] %v2144_v63  ;;  %v2223_v63 = vld [vmem:[#allocation6 + $0x98] sm:$0xff] }
 0x144   :  { %710 = vperm.xlu2 %1732, %v1899_v6   ;;  %1731 = vset.pattern.permute.xlu1 %v1982_v20  ;;  %2973 = vst [vmem:[#allocation41_spill] sm:$0xff] %v2223_v63  ;;  %v64_v20 = vld [vmem:[#allocation4 + $0x2] sm:$0x3] }
 0x145   :  { %1076 = vmatpush.msra.mxu2 %v2219_v51  ;;  %1117 = vmatpush.msra.mxu3 %v2223_v63  ;;  %v2251_v63 = vld [vmem:[#allocation6 + $0x180] sm:$0xff]  ;;  %v2253_v51 = vld [vmem:[#allocation6 + $0x188] sm:$0xff]  ;;  %2979 = vst [vmem:[#allocation47_spill] sm:$0xff] %v2258_v60  ;;  %v2377_v46 = vperm.slane %v64_v20, 1 }
 0x147   :  { %1118 = vmatpush.msra.mxu3 %v2235_v56  ;;  %v2262_v56 = vld [vmem:[#allocation6 + $0x68] sm:$0xff] }
 0x148   :  { %2980 = vst [vmem:[#allocation48_spill] sm:$0xff] %v2262_v56 }
 0x149   :  { %1119 = vmatpush.msra.mxu3 %v2247_v47  ;;  %v2278_v47 = vld [vmem:[#allocation6 + $0x160] sm:$0xff] }
 0x14b   :  { %1120 = vmatpush.msra.mxu3 %v2262_v56  ;;  %v2288_v56 = vld [vmem:[#allocation6 + $0x48] sm:$0xff] }
 0x14c   :  { %1734 = vset.pattern.permute.xlu2 %v1995_v24  ;;  %581 = vperm.xlu1 %1731, %v1936_v13   ;;  %2984 = vst [vmem:[#allocation52_spill] sm:$0xff] %v2288_v56  ;;  %v2298_v24 = vld [vmem:[#allocation6 + $0x30] sm:$0xff] }
 0x14d   :  { %1121 = vmatpush.msra.mxu3 %v2274_v35  ;;  %2985 = vst [vmem:[#allocation53_spill] sm:$0xff] %v2298_v24  ;;  %v2310_v35 = vld [vmem:[#allocation6 + $0x20] sm:$0xff] }
 0x14e   :  { %v390_v49 = vpop.permute.xlu1 %389  ;;  %2987 = vst [vmem:[#allocation55_spill] sm:$0xff] %v2310_v35 }
 0x14f   :  { %v407_v52 = vmul.f32 %v2029_v38, %v390_v49  ;;  %v2217_v49 = vld [vmem:[#allocation6 + $0x1b8] sm:$0xff]  ;;  %1122 = vmatpush.msra.mxu3 %v2288_v56  ;;  %v2318_v56 = vld [vmem:[#allocation6 + $0x130] sm:$0xff] }
 0x150   :  { %1033 = vmatpush.msra.mxu1 %v2217_v49 }
 0x151   :  { %v2211_v26 = vadd.f32 %v407_v52, %v276_v50  ;;  %v2227_v50 = vld [vmem:[#allocation6 + $0x1a0] sm:$0xff]  ;;  %v2229_v52 = vld [vmem:[#allocation6 + $0x1a8] sm:$0xff]  ;;  %1123 = vmatpush.msra.mxu3 %v2300_v27 }
 0x152   :  { %993 = vmatpush.msra.mxu0 %v2227_v50  ;;  %1034 = vmatpush.msra.mxu1 %v2229_v52  ;;  %v2330_v27 = vld [vmem:[#allocation6 + $0x120] sm:$0xff] }
 0x153   :  { %2971 = vst [vmem:[#allocation39_spill] sm:$0xff] %v2211_v26  ;;  %v2233_v26 = vld [vmem:[#allocation6 + $0x80] sm:$0xff]  ;;  %1124 = vmatpush.msra.mxu3 %v2312_v2  ;;  %v558_v2 = vpop.permute.xlu2 %557 }
 0x154   :  { %458 = vperm.xlu2 %1734, %v1899_v6   ;;  %1733 = vset.pattern.permute.xlu1 %v2108_v21  ;;  %2974 = vst [vmem:[#allocation42_spill] sm:$0xff] %v2233_v26  ;;  %v2336_v21 = vld [vmem:[#allocation6] sm:$0xff] }
 0x155   :  { %1077 = vmatpush.msra.mxu2 %v2233_v26  ;;  %994 = vmatpush.msra.mxu0 %v2239_v39  ;;  %v2264_v26 = vld [vmem:[#allocation6 + $0x170] sm:$0xff]  ;;  %2991 = vst [vmem:[#allocation59_spill] sm:$0xff] %v2336_v21 }
 0x156   :  { %1035 = vmatpush.msra.mxu1 %v2241_v57  ;;  %1125 = vmatpush.msra.mxu3 %v2326_v43  ;;  %v2360_v43 = vperm.slane %v64_v20, 0  ;;  %v261_v20 = vmul.f32 %v2027_v36, %v1989_v22 }
 0x157   :  { %1078 = vmatpush.msra.mxu2 %v2245_v8  ;;  %995 = vmatpush.msra.mxu0 %v2251_v63  ;;  %v2280_v8 = vld [vmem:[#allocation6 + $0x168] sm:$0xff] }
 0x158   :  { %1036 = vmatpush.msra.mxu1 %v2253_v51  ;;  %v521_v22 = vmul.f32 %v2360_v43, %v2282_v31 }
 0x159   :  { %1079 = vmatpush.msra.mxu2 %v2255_v61  ;;  %996 = vmatpush.msra.mxu0 %v2264_v26  ;;  %v2286_v61 = vld [vmem:[#allocation6 + $0x40] sm:$0xff] }
 0x15a   :  { %1037 = vmatpush.msra.mxu1 %v2266_v48  ;;  %2983 = vst [vmem:[#allocation51_spill] sm:$0xff] %v2286_v61 }
 0x15b   :  { %1080 = vmatpush.msra.mxu2 %v2272_v45  ;;  %997 = vmatpush.msra.mxu0 %v2278_v47  ;;  %v2306_v45 = vld [vmem:[#allocation6 + $0x148] sm:$0xff] }
 0x15c   :  { %1737 = vset.pattern.permute.xlu2 %v2258_v60  ;;  %839 = vperm.xlu1 %1733, %v1936_v13  }
 0x15d   :  { %1038 = vmatpush.msra.mxu1 %v2280_v8  ;;  %1081 = vmatpush.msra.mxu2 %v2286_v61  ;;  %v2320_v61 = vld [vmem:[#allocation6 + $0x138] sm:$0xff] }
 0x15e   :  { %998 = vmatpush.msra.mxu0 %v2292_v11  ;;  %v2340_v62 = vpop.permute.xlu1 %440 }
 0x15f   :  { %1039 = vmatpush.msra.mxu1 %v2294_v10  ;;  %1082 = vmatpush.msra.mxu2 %v2298_v24  ;;  %v2332_v24 = vld [vmem:[#allocation6 + $0x128] sm:$0xff] }
 0x160   :  { %999 = vmatpush.msra.mxu0 %v2304_v4 }
 0x161   :  { %1040 = vmatpush.msra.mxu1 %v2306_v45  ;;  %1083 = vmatpush.msra.mxu2 %v2310_v35  ;;  %v2338_v35 = vld [vmem:[#allocation6 + $0x8] sm:$0xff] }
 0x162   :  { %1000 = vmatpush.msra.mxu0 %v2318_v56  ;;  %2992 = vst [vmem:[#allocation60_spill] sm:$0xff] %v2338_v35  ;;  %1126 = vmatpush.msra.mxu3 %v2338_v35  ;;  %v2367_v35 = vadd.s32 57, %v1888_v1  ;;  %v65_v1 = vld [vmem:[#allocation4 + $0x4] sm:$0x3] }
 0x163   :  { %1041 = vmatpush.msra.mxu1 %v2320_v61  ;;  %1084 = vmatpush.msra.mxu2 %v2324_v0  ;;  %v262_v0 = vmul.f32 %v2027_v36, %v1979_v18 }
 0x164   :  { %845 = vperm.xlu2 %1737, %v1936_v13   ;;  %1736 = vset.pattern.permute.xlu1 %v2258_v60  ;;  %v2344_v60 = vld [vmem:[#allocation6 + $0x110] sm:$0xff] }
 0x165   :  { %1001 = vmatpush.msra.mxu0 %v2330_v27  ;;  %1042 = vmatpush.msra.mxu1 %v2332_v24 }
 0x166   :  { %1085 = vmatpush.msra.mxu2 %v2336_v21  ;;  %1378 = vmatpush.msrb.mxu3 %v2160_v7  ;;  %v435_v21 = vpop.permute.xlu0 %434  ;;  %v687_v7 = vpop.permute.xlu2 %686 }
 0x167   :  { %1002 = vmatpush.msra.mxu0 %v2344_v60  ;;  %1043 = vmatpush.msra.mxu1 %v2346_v9  ;;  %v522_v55 = vmul.f32 %v2360_v43, %v435_v21  ;;  %v392_v21 = vmul.f32 %v2029_v38, %v2066_v58 }
 0x168   :  { %1337 = vmatpush.msrb.mxu2 %v2158_v5  ;;  %v393_v5 = vmul.f32 %v2029_v38, %v2040_v44  ;;  %1379 = vmatpush.msrb.mxu3 %v2172_v29  ;;  %v2384_v29 = vperm.slane %v65_v1, 0 }
 0x169   :  { %1003 = vmatpush.msra.mxu0 %v2352_v37  ;;  %1044 = vmatpush.msra.mxu1 %v2354_v23  ;;  %v408_v58 = vadd.f32 %v392_v21, %v261_v20 }
 0x16a   :  { %1338 = vmatpush.msrb.mxu2 %v2168_v19  ;;  %1772 = vset.pattern.permute.xlu0 %v2367_v35  ;;  %v409_v18 = vadd.f32 %v393_v5, %v262_v0 }
 0x16b   :  { %1380 = vmatpush.msrb.mxu3 %v2188_v41 }
 0x16c   :  { %1739 = vset.pattern.permute.xlu2 %v2126_v25  ;;  %716 = vperm.xlu1 %1736, %v1899_v6   ;;  %v538_v19 = vadd.f32 %v522_v55, %v409_v18  ;;  %v2395_v55 = vperm.slane %v65_v1, 1 }
 0x16d   :  { %1339 = vmatpush.msrb.mxu2 %v2186_v40  ;;  %1381 = vmatpush.msrb.mxu3 %v2203_v59 }
 0x16e   :  { %v564_v17 = vpop.permute.xlu1 %563  ;;  %v693_v0 = vpop.permute.xlu0 %692 }
 0x16f   :  { %v651_v44 = vmul.f32 %v2377_v46, %v564_v17  ;;  %1340 = vmatpush.msrb.mxu2 %v2201_v53  ;;  %1382 = vmatpush.msrb.mxu3 %v2217_v49  ;;  %v780_v17 = vmul.f32 %v2384_v29, %v693_v0  ;;  %v822_v41 = vpop.permute.xlu2 %821  ;;  %v650_v53 = vmul.f32 %v2377_v46, %v558_v2 }
 0x170   :  { %v537_v49 = vadd.f32 %v521_v22, %v408_v58 }
 0x171   :  { %1341 = vmatpush.msrb.mxu2 %v2215_v34  ;;  %v667_v40 = vadd.f32 %v651_v44, %v538_v19  ;;  %1383 = vmatpush.msrb.mxu3 %v2229_v52  ;;  %v909_v34 = vmul.f32 %v2395_v55, %v822_v41 }
 0x172   :  { %647 = vperm.xlu0 %1772, %v1948_v14  }
 0x173   :  { %1342 = vmatpush.msrb.mxu2 %v2227_v50  ;;  %1384 = vmatpush.msrb.mxu3 %v2241_v57  ;;  %v796_v59 = vadd.f32 %v780_v17, %v667_v40  ;;  %v779_v50 = vmul.f32 %v2384_v29, %v687_v7 }
 0x174   :  { %593 = vperm.xlu2 %1739, %v1936_v13   ;;  %1738 = vset.pattern.permute.xlu1 %v2126_v25 }
 0x175   :  { %1343 = vmatpush.msrb.mxu2 %v2239_v39  ;;  %1385 = vmatpush.msrb.mxu3 %v2253_v51  ;;  %v666_v39 = vadd.f32 %v650_v53, %v537_v49  ;;  %v925_v57 = vadd.f32 %v909_v34, %v796_v59 }
 0x177   :  { %1344 = vmatpush.msrb.mxu2 %v2251_v63  ;;  %1386 = vmatpush.msrb.mxu3 %v2266_v48  ;;  %v795_v51 = vadd.f32 %v779_v50, %v666_v39  ;;  %v941_v31 = vmax.f32 %v925_v57, 0.0  ;;  %v2993_v50 = vld [vmem:[#allocation13_spill] sm:$0xff] }
 0x179   :  { %1345 = vmatpush.msrb.mxu2 %v2264_v26  ;;  %1387 = vmatpush.msrb.mxu3 %v2280_v8 }
 0x17a   :  { %1775 = vset.pattern.permute.xlu0 %v2034_v42 }
 0x17b   :  { %1346 = vmatpush.msrb.mxu2 %v2278_v47  ;;  %1388 = vmatpush.msrb.mxu3 %v2294_v10  ;;  %v966_v47 = vrot.slane %v941_v31, 1 }
 0x17c   :  { %1742 = vset.pattern.permute.xlu2 %v2367_v35  ;;  %464 = vperm.xlu1 %1738, %v1899_v6  }
 0x17d   :  { %1347 = vmatpush.msrb.mxu2 %v2292_v11  ;;  %1389 = vmatpush.msrb.mxu3 %v2306_v45  ;;  %v1154_v11 = vrot.slane %v941_v31, 2  ;;  %v394_v45 = vmul.f32 %v2029_v38, %v2017_v32  ;;  %v699_v32 = vpop.permute.xlu2 %698 }
 0x17e   :  { %v816_v63 = vpop.permute.xlu1 %815 }
 0x17f   :  { %v908_v2 = vmul.f32 %v2395_v55, %v816_v63  ;;  %1348 = vmatpush.msrb.mxu2 %v2304_v4  ;;  %1390 = vmatpush.msrb.mxu3 %v2320_v61  ;;  %v263_v61 = vmul.f32 %v2027_v36, %v2009_v28  ;;  %v828_v28 = vpop.permute.xlu0 %827  ;;  %v2994_v63 = vld [vmem:[#allocation14_spill] sm:$0xff] }
 0x180   :  { %v910_v36 = vmul.f32 %v2395_v55, %v828_v28 }
 0x181   :  { %v924_v48 = vadd.f32 %v908_v2, %v795_v51  ;;  %1349 = vmatpush.msrb.mxu2 %v2318_v56  ;;  %1391 = vmatpush.msrb.mxu3 %v2332_v24  ;;  %v523_v24 = vmul.f32 %v2360_v43, %v2340_v62  ;;  %v781_v62 = vmul.f32 %v2384_v29, %v699_v32 }
 0x183   :  { %v940_v26 = vmax.f32 %v924_v48, 0.0  ;;  %1350 = vmatpush.msrb.mxu2 %v2330_v27  ;;  %1392 = vmatpush.msrb.mxu3 %v2346_v9  ;;  %v410_v27 = vadd.f32 %v394_v45, %v263_v61 }
 0x184   :  { %470 = vperm.xlu2 %1742, %v1899_v6   ;;  %1741 = vset.pattern.permute.xlu1 %v2012_v30 }
 0x185   :  { %1086 = vmatmul.f32.vlgmr.msra.gmra.mxu2 %v940_v26  ;;  %1127 = vmatmul.f32.vlgmr.msra.gmra.mxu3 %v940_v26  ;;  %v965_v8 = vrot.slane %v940_v26, 1  ;;  %v1153_v10 = vrot.slane %v940_v26, 2  ;;  %v539_v9 = vadd.f32 %v523_v24, %v410_v27  ;;  %v576_v19 = vpop.permute.xlu2 %575 }
 0x186   :  { %1351 = vmatpush.msrb.mxu2 %v2344_v60  ;;  %1393 = vmatpush.msrb.mxu3 %v2354_v23 }
 0x187   :  { %v967_v56 = vsel %vm964_vm0, %v965_v8, %v966_v47  ;;  %v2429_v4 = vsel %vm1152_vm1, %v1153_v10, %v1154_v11  ;;  %v453_v49 = vpop.permute.xlu0 %452 }
 0x188   :  { %1004 = vmatmul.f32.vlgmr.msra.gmra.mxu0 %v967_v56  ;;  %1045 = vmatmul.f32.vlgmr.msra.gmra.mxu1 %v967_v56  ;;  %v525_v39 = vmul.f32 %v2360_v43, %v453_v49  ;;  %v2995_v56 = vld [vmem:[#allocation9_spill] sm:$0xff]  ;;  %v152_v49 = vld [vmem:[#allocation6 + $0x2b0] sm:$0xff] }
 0x189   :  { %1352 = vmatpush.msrb.mxu2 %v2352_v37 }
 0x18a   :  { %v541_v51 = vadd.f32 %v525_v39, %v2994_v63  ;;  %v151_v63 = vld [vmem:[#allocation6 + $0x2a8] sm:$0xff] }
 0x18c   :  { %1744 = vset.pattern.permute.xlu2 %v2034_v42  ;;  %851 = vperm.xlu1 %1741, %v1936_v13  }
 0x18d   :  { %1089 = vmatmul.f32.gmra.mxu2 %v941_v31  ;;  %1130 = vmatmul.f32.gmra.mxu3 %v941_v31 }
 0x18e   :  { %v570_v38 = vpop.permute.xlu1 %569  ;;  %v834_v40 = vpop.permute.xlu2 %833 }
 0x18f   :  { %v652_v60 = vmul.f32 %v2377_v46, %v570_v38  ;;  %v911_v41 = vmul.f32 %v2395_v55, %v834_v40  ;;  %v588_v38 = vpop.permute.xlu0 %587 }
 0x191   :  { %v668_v37 = vadd.f32 %v652_v60, %v539_v9  ;;  %v655_v9 = vmul.f32 %v2377_v46, %v588_v38  ;;  %v2996_v60 = vld [vmem:[#allocation19_spill] sm:$0xff]  ;;  %v143_v38 = vld [vmem:[#allocation6 + $0x268] sm:$0xff] }
 0x193   :  { %v797_v52 = vadd.f32 %v781_v62, %v668_v37 }
 0x194   :  { %728 = vperm.xlu2 %1744, %v1899_v6   ;;  %1743 = vset.pattern.permute.xlu1 %v2367_v35 }
 0x195   :  { %v926_v23 = vadd.f32 %v910_v36, %v797_v52 }
 0x197   :  { %v942_v5 = vmax.f32 %v926_v23, 0.0 }
 0x199   :  { %1092 = vmatmul.f32.gmra.mxu2 %v942_v5  ;;  %1133 = vmatmul.f32.gmra.mxu3 %v942_v5  ;;  %v968_v7 = vrot.slane %v942_v5, 1  ;;  %v1156_v1 = vrot.slane %v942_v5, 2 }
 0x19b   :  { %v969_v18 = vsel %vm964_vm0, %v966_v47, %v968_v7  ;;  %v2450_v44 = vsel %vm1152_vm1, %v1154_v11, %v1156_v1 }
 0x19c   :  { %1747 = vset.pattern.permute.xlu2 %v1954_v15  ;;  %599 = vperm.xlu1 %1743, %v1936_v13   ;;  %v653_v15 = vmul.f32 %v2377_v46, %v576_v19 }
 0x19d   :  { %1007 = vmatmul.f32.gmra.mxu0 %v969_v18  ;;  %1048 = vmatmul.f32.gmra.mxu1 %v969_v18 }
 0x19e   :  { %v447_v6 = vpop.permute.xlu1 %446  ;;  %v711_v2 = vpop.permute.xlu2 %710 }
 0x19f   :  { %v524_v20 = vmul.f32 %v2360_v43, %v447_v6 }
 0x1a1   :  { %v540_v21 = vadd.f32 %v524_v20, %v2077_v3 }
 0x1a3   :  { %v669_v13 = vadd.f32 %v653_v15, %v540_v21  ;;  %v160_v15 = vld [vmem:[#allocation6 + $0x2f0] sm:$0xff] }
 0x1a4   :  { %482 = vperm.xlu2 %1747, %v1922_v12   ;;  %1746 = vset.pattern.permute.xlu1 %v2020_v33 }
 0x1a5   :  { %1176 = vmatpush.msrb.mxu0 %v160_v15  ;;  %1524 = vmatpush.msra.mxu2 %v160_v15 }
 0x1ac   :  { %611 = vperm.xlu2 %1747, %v1948_v14   ;;  %476 = vperm.xlu1 %1746, %v1922_v12  }
 0x1ae   :  { %v705_v0 = vpop.permute.xlu1 %704  ;;  %v459_v11 = vpop.permute.xlu2 %458 }
 0x1af   :  { %v782_v17 = vmul.f32 %v2384_v29, %v705_v0  ;;  %v526_v24 = vmul.f32 %v2360_v43, %v459_v11  ;;  %v161_v0 = vld [vmem:[#allocation6 + $0x2f8] sm:$0xff]  ;;  %v144_v11 = vld [vmem:[#allocation6 + $0x270] sm:$0xff] }
 0x1b0   :  { %1217 = vmatpush.msrb.mxu1 %v161_v0  ;;  %1565 = vmatpush.msra.mxu3 %v161_v0 }
 0x1b1   :  { %v798_v22 = vadd.f32 %v782_v17, %v669_v13  ;;  %v542_v28 = vadd.f32 %v526_v24, %v2996_v60  ;;  %v158_v13 = vld [vmem:[#allocation6 + $0x2e0] sm:$0xff]  ;;  %v159_v17 = vld [vmem:[#allocation6 + $0x2e8] sm:$0xff]  ;;  %v140_v60 = vld [vmem:[#allocation6 + $0x250] sm:$0xff] }
 0x1b2   :  { %1177 = vmatpush.msrb.mxu0 %v158_v13  ;;  %1218 = vmatpush.msrb.mxu1 %v159_v17 }
 0x1b3   :  { %v927_v33 = vadd.f32 %v911_v41, %v798_v22  ;;  %v671_v62 = vadd.f32 %v655_v9, %v542_v28  ;;  %v156_v41 = vld [vmem:[#allocation6 + $0x2d0] sm:$0xff]  ;;  %v157_v22 = vld [vmem:[#allocation6 + $0x2d8] sm:$0xff]  ;;  %1525 = vmatpush.msra.mxu2 %v158_v13  ;;  %1566 = vmatpush.msra.mxu3 %v159_v17  ;;  %v134_v13 = vld [vmem:[#allocation6 + $0x220] sm:$0xff] }
 0x1b4   :  { %1750 = vset.pattern.permute.xlu2 %v2054_v54  ;;  %605 = vperm.xlu1 %1746, %v1948_v14   ;;  %v141_v28 = vld [vmem:[#allocation6 + $0x258] sm:$0xff]  ;;  %v135_v17 = vld [vmem:[#allocation6 + $0x228] sm:$0xff] }
 0x1b5   :  { %v943_v3 = vmax.f32 %v927_v33, 0.0  ;;  %1178 = vmatpush.msrb.mxu0 %v156_v41  ;;  %1219 = vmatpush.msrb.mxu1 %v157_v22 }
 0x1b6   :  { %1526 = vmatpush.msra.mxu2 %v156_v41  ;;  %1567 = vmatpush.msra.mxu3 %v157_v22  ;;  %v133_v41 = vld [vmem:[#allocation6 + $0x218] sm:$0xff] }
 0x1b7   :  { %1095 = vmatmul.f32.gmra.mxu2 %v943_v3  ;;  %1136 = vmatmul.f32.gmra.mxu3 %v943_v3  ;;  %v970_v58 = vrot.slane %v943_v3, 1  ;;  %v1158_v53 = vrot.slane %v943_v3, 2  ;;  %v154_v3 = vld [vmem:[#allocation6 + $0x2c0] sm:$0xff] }
 0x1b8   :  { %1179 = vmatpush.msrb.mxu0 %v154_v3  ;;  %1527 = vmatpush.msra.mxu2 %v154_v3 }
 0x1b9   :  { %v971_v59 = vsel %vm964_vm0, %v968_v7, %v970_v58  ;;  %v2467_v34 = vsel %vm1152_vm1, %v1156_v1, %v1158_v53  ;;  %v2997_v1 = vld [vmem:[#allocation20_spill] sm:$0xff] }
 0x1ba   :  { %1010 = vmatmul.f32.gmra.mxu0 %v971_v59  ;;  %1051 = vmatmul.f32.gmra.mxu1 %v971_v59  ;;  %v2999_v59 = vld [vmem:[#allocation18_spill] sm:$0xff] }
 0x1bb   :  { %1180 = vmatpush.msrb.mxu0 %v152_v49  ;;  %1528 = vmatpush.msra.mxu2 %v152_v49  ;;  %v3003_v49 = vld [vmem:[#allocation27_spill] sm:$0xff] }
 0x1bc   :  { %863 = vperm.xlu2 %1750, %v1948_v14   ;;  %1749 = vset.pattern.permute.xlu1 %v1962_v16  ;;  %v783_v16 = vmul.f32 %v2384_v29, %v711_v2 }
 0x1be   :  { %v582_v54 = vpop.permute.xlu1 %581  ;;  %v846_v52 = vpop.permute.xlu2 %845 }
 0x1bf   :  { %v654_v57 = vmul.f32 %v2377_v46, %v582_v54  ;;  %v913_v23 = vmul.f32 %v2395_v55, %v846_v52  ;;  %v153_v54 = vld [vmem:[#allocation6 + $0x2b8] sm:$0xff]  ;;  %v3001_v52 = vld [vmem:[#allocation22_spill] sm:$0xff] }
 0x1c1   :  { %v670_v31 = vadd.f32 %v654_v57, %v541_v51  ;;  %v150_v57 = vld [vmem:[#allocation6 + $0x2a0] sm:$0xff] }
 0x1c2   :  { %1181 = vmatpush.msrb.mxu0 %v150_v57  ;;  %1529 = vmatpush.msra.mxu2 %v150_v57 }
 0x1c3   :  { %v799_v26 = vadd.f32 %v783_v16, %v670_v31  ;;  %v148_v31 = vld [vmem:[#allocation6 + $0x290] sm:$0xff]  ;;  %v149_v16 = vld [vmem:[#allocation6 + $0x298] sm:$0xff] }
 0x1c4   :  { %1751 = vset.pattern.permute.xlu2 %v2993_v50  ;;  %740 = vperm.xlu1 %1749, %v1922_v12   ;;  %v3000_v50 = vld [vmem:[#allocation16_spill] sm:$0xff] }
 0x1c5   :  { %1182 = vmatpush.msrb.mxu0 %v148_v31  ;;  %1530 = vmatpush.msra.mxu2 %v148_v31  ;;  %v3007_v31 = vld [vmem:[#allocation11_spill] sm:$0xff] }
 0x1cc   :  { %488 = vperm.xlu2 %1751, %v1922_v12   ;;  %869 = vperm.xlu1 %1749, %v1948_v14  }
 0x1ce   :  { %v840_v48 = vpop.permute.xlu1 %839  ;;  %v594_v51 = vpop.permute.xlu2 %593 }
 0x1cf   :  { %v912_v8 = vmul.f32 %v2395_v55, %v840_v48  ;;  %v656_v2 = vmul.f32 %v2377_v46, %v594_v51  ;;  %v723_v48 = vpop.permute.xlu0 %722  ;;  %v3006_v51 = vld [vmem:[#allocation30_spill] sm:$0xff] }
 0x1d1   :  { %v928_v47 = vadd.f32 %v912_v8, %v799_v26  ;;  %v785_v26 = vmul.f32 %v2384_v29, %v723_v48  ;;  %v3008_v48 = vld [vmem:[#allocation31_spill] sm:$0xff] }
 0x1d3   :  { %v944_v10 = vmax.f32 %v928_v47, 0.0  ;;  %v146_v47 = vld [vmem:[#allocation6 + $0x280] sm:$0xff] }
 0x1d4   :  { %1754 = vset.pattern.permute.xlu2 %v2995_v56  ;;  %1753 = vset.pattern.permute.xlu1 %v2995_v56  ;;  %v145_v56 = vld [vmem:[#allocation6 + $0x278] sm:$0xff] }
 0x1d5   :  { %1098 = vmatmul.f32.gmra.mxu2 %v944_v10  ;;  %1139 = vmatmul.f32.gmra.mxu3 %v944_v10  ;;  %v972_v45 = vrot.slane %v944_v10, 1  ;;  %v1160_v61 = vrot.slane %v944_v10, 2  ;;  %v147_v10 = vld [vmem:[#allocation6 + $0x288] sm:$0xff] }
 0x1d6   :  { %1183 = vmatpush.msrb.mxu0 %v146_v47  ;;  %1531 = vmatpush.msra.mxu2 %v146_v47  ;;  %v3010_v47 = vld [vmem:[#allocation33_spill] sm:$0xff] }
 0x1d7   :  { %v973_v27 = vsel %vm964_vm0, %v970_v58, %v972_v45  ;;  %v2485_v32 = vsel %vm1152_vm1, %v1158_v53, %v1160_v61  ;;  %v155_v58 = vld [vmem:[#allocation6 + $0x2c8] sm:$0xff] }
 0x1d8   :  { %1013 = vmatmul.f32.gmra.mxu0 %v973_v27  ;;  %1054 = vmatmul.f32.gmra.mxu1 %v973_v27  ;;  %v2998_v53 = vld [vmem:[#allocation10_spill] sm:$0xff]  ;;  %v142_v27 = vld [vmem:[#allocation6 + $0x260] sm:$0xff] }
 0x1d9   :  { %1220 = vmatpush.msrb.mxu1 %v155_v58  ;;  %1568 = vmatpush.msra.mxu3 %v155_v58 }
 0x1da   :  { %1184 = vmatpush.msrb.mxu0 %v144_v11  ;;  %1532 = vmatpush.msra.mxu2 %v144_v11 }
 0x1db   :  { %1221 = vmatpush.msrb.mxu1 %v153_v54  ;;  %1569 = vmatpush.msra.mxu3 %v153_v54  ;;  %v3004_v54 = vld [vmem:[#allocation28_spill] sm:$0xff] }
 0x1dc   :  { %875 = vperm.xlu2 %1754, %v1948_v14   ;;  %746 = vperm.xlu1 %1753, %v1922_v12  }
 0x1dd   :  { %1222 = vmatpush.msrb.mxu1 %v151_v63  ;;  %1570 = vmatpush.msra.mxu3 %v151_v63  ;;  %v3005_v63 = vld [vmem:[#allocation29_spill] sm:$0xff] }
 0x1de   :  { %v717_v36 = vpop.permute.xlu1 %716  ;;  %1185 = vmatpush.msrb.mxu0 %v142_v27  ;;  %1533 = vmatpush.msra.mxu2 %v142_v27  ;;  %v471_v0 = vpop.permute.xlu2 %470 }
 0x1df   :  { %v784_v37 = vmul.f32 %v2384_v29, %v717_v36  ;;  %1223 = vmatpush.msrb.mxu1 %v149_v16  ;;  %1571 = vmatpush.msra.mxu3 %v149_v16 }
 0x1e0   :  { %1186 = vmatpush.msrb.mxu0 %v140_v60  ;;  %1534 = vmatpush.msra.mxu2 %v140_v60  ;;  %v3016_v60 = vld [vmem:[#allocation40_spill] sm:$0xff] }
 0x1e1   :  { %v800_v5 = vadd.f32 %v784_v37, %v671_v62  ;;  %1224 = vmatpush.msrb.mxu1 %v147_v10  ;;  %1572 = vmatpush.msra.mxu3 %v147_v10  ;;  %v138_v62 = vld [vmem:[#allocation6 + $0x240] sm:$0xff]  ;;  %v139_v37 = vld [vmem:[#allocation6 + $0x248] sm:$0xff] }
 0x1e2   :  { %1187 = vmatpush.msrb.mxu0 %v138_v62  ;;  %1535 = vmatpush.msra.mxu2 %v138_v62  ;;  %v3011_v10 = vld [vmem:[#allocation34_spill] sm:$0xff] }
 0x1e3   :  { %v929_v7 = vadd.f32 %v913_v23, %v800_v5  ;;  %1225 = vmatpush.msrb.mxu1 %v145_v56  ;;  %1573 = vmatpush.msra.mxu3 %v145_v56  ;;  %v3018_v62 = vld [vmem:[#allocation42_spill] sm:$0xff] }
 0x1e4   :  { %1756 = vset.pattern.permute.xlu2 %v2997_v1  ;;  %1755 = vset.pattern.permute.xlu1 %v2997_v1  ;;  %v137_v1 = vld [vmem:[#allocation6 + $0x238] sm:$0xff] }
 0x1e5   :  { %v2495_v18 = vmax.f32 %v929_v7, 0.0  ;;  %1226 = vmatpush.msrb.mxu1 %v143_v38  ;;  %v136_v7 = vld [vmem:[#allocation6 + $0x230] sm:$0xff]  ;;  %1574 = vmatpush.msra.mxu3 %v143_v38  ;;  %v3014_v38 = vld [vmem:[#allocation37_spill] sm:$0xff] }
 0x1e6   :  { %1188 = vmatpush.msrb.mxu0 %v136_v7  ;;  %1536 = vmatpush.msra.mxu2 %v136_v7  ;;  %v3022_v7 = vld [vmem:[#allocation45_spill] sm:$0xff] }
 0x1e7   :  { %1101 = vmatmul.f32.gmra.mxu2 %v2495_v18  ;;  %1142 = vmatmul.f32.gmra.mxu3 %v2495_v18  ;;  %v974_v6 = vrot.slane %v2495_v18, 1  ;;  %v1162_v19 = vrot.slane %v2495_v18, 2  ;;  %v130_v18 = vld [vmem:[#allocation6 + $0x200] sm:$0xff] }
 0x1e8   :  { %1227 = vmatpush.msrb.mxu1 %v141_v28  ;;  %1575 = vmatpush.msra.mxu3 %v141_v28  ;;  %v3017_v28 = vld [vmem:[#allocation41_spill] sm:$0xff] }
 0x1e9   :  { %v975_v20 = vsel %vm964_vm0, %v972_v45, %v974_v6  ;;  %v2507_v21 = vsel %vm1152_vm1, %v1160_v61, %v1162_v19  ;;  %1189 = vmatpush.msrb.mxu0 %v134_v13  ;;  %1537 = vmatpush.msra.mxu2 %v134_v13  ;;  %v3026_v13 = vld [vmem:[#allocation50_spill] sm:$0xff] }
 0x1ea   :  { %1016 = vmatmul.f32.gmra.mxu0 %v975_v20  ;;  %1057 = vmatmul.f32.gmra.mxu1 %v975_v20 }
 0x1eb   :  { %1228 = vmatpush.msrb.mxu1 %v139_v37  ;;  %1576 = vmatpush.msra.mxu3 %v139_v37 }
 0x1ec   :  { %623 = vperm.xlu2 %1756, %v1948_v14   ;;  %494 = vperm.xlu1 %1755, %v1922_v12  }
 0x1ed   :  { %1229 = vmatpush.msrb.mxu1 %v137_v1  ;;  %1577 = vmatpush.msra.mxu3 %v137_v1  ;;  %v3023_v1 = vld [vmem:[#allocation46_spill] sm:$0xff] }
 0x1ee   :  { %v465_v40 = vpop.permute.xlu1 %464 }
 0x1ef   :  { %v527_v33 = vmul.f32 %v2360_v43, %v465_v40  ;;  %v132_v40 = vld [vmem:[#allocation6 + $0x210] sm:$0xff]  ;;  %1230 = vmatpush.msrb.mxu1 %v135_v17  ;;  %1578 = vmatpush.msra.mxu3 %v135_v17 }
 0x1f0   :  { %1190 = vmatpush.msrb.mxu0 %v132_v40  ;;  %1538 = vmatpush.msra.mxu2 %v132_v40  ;;  %v3027_v40 = vld [vmem:[#allocation51_spill] sm:$0xff] }
 0x1f1   :  { %v543_v39 = vadd.f32 %v527_v33, %v3000_v50  ;;  %1231 = vmatpush.msrb.mxu1 %v133_v41  ;;  %v3002_v33 = vld [vmem:[#allocation12_spill] sm:$0xff]  ;;  %1579 = vmatpush.msra.mxu3 %v133_v41 }
 0x1f2   :  { %1191 = vmatpush.msrb.mxu0 %v130_v18  ;;  %1539 = vmatpush.msra.mxu2 %v130_v18  ;;  %v3028_v41 = vld [vmem:[#allocation52_spill] sm:$0xff] }
 0x1f3   :  { %v672_v8 = vadd.f32 %v656_v2, %v543_v39 }
 0x1f4   :  { %1759 = vset.pattern.permute.xlu2 %v2998_v53  ;;  %1758 = vset.pattern.permute.xlu1 %v2999_v59  ;;  %v729_v59 = vpop.permute.xlu2 %728 }
 0x1f5   :  { %v801_v61 = vadd.f32 %v785_v26, %v672_v8  ;;  %1419 = vmatpush.msra.mxu0 %v3003_v49  ;;  %v786_v39 = vmul.f32 %v2384_v29, %v729_v59  ;;  %v3009_v26 = vld [vmem:[#allocation32_spill] sm:$0xff] }
 0x1f7   :  { %1420 = vmatpush.msra.mxu0 %v3005_v63 }
 0x1f9   :  { %1421 = vmatpush.msra.mxu0 %v3008_v48 }
 0x1fb   :  { %1422 = vmatpush.msra.mxu0 %v3010_v47 }
 0x1fc   :  { %500 = vperm.xlu2 %1759, %v1922_v12   ;;  %881 = vperm.xlu1 %1758, %v1948_v14  }
 0x1fe   :  { %v852_v45 = vpop.permute.xlu1 %851 }
 0x1ff   :  { %v914_v24 = vmul.f32 %v2395_v55, %v852_v45  ;;  %v3012_v45 = vld [vmem:[#allocation35_spill] sm:$0xff] }
 0x200   :  { %1423 = vmatpush.msra.mxu0 %v3012_v45 }
 0x201   :  { %v930_v9 = vadd.f32 %v914_v24, %v801_v61  ;;  %v3013_v61 = vld [vmem:[#allocation36_spill] sm:$0xff] }
 0x202   :  { %1424 = vmatpush.msra.mxu0 %v3014_v38 }
 0x203   :  { %v2520_v36 = vmax.f32 %v930_v9, 0.0  ;;  %v3015_v9 = vld [vmem:[#allocation38_spill] sm:$0xff] }
 0x204   :  { %1761 = vset.pattern.permute.xlu2 %v3001_v52  ;;  %1760 = vset.pattern.permute.xlu1 %v2998_v53  ;;  %v858_v53 = vpop.permute.xlu0 %857  ;;  %v3020_v52 = vld [vmem:[#allocation47_spill] sm:$0xff] }
 0x205   :  { %1104 = vmatmul.f32.gmra.mxu2 %v2520_v36  ;;  %1145 = vmatmul.f32.gmra.mxu3 %v2520_v36  ;;  %v976_v23 = vrot.slane %v2520_v36, 1  ;;  %v1164_v5 = vrot.slane %v2520_v36, 2  ;;  %v915_v50 = vmul.f32 %v2395_v55, %v858_v53  ;;  %v3019_v36 = vld [vmem:[#allocation43_spill] sm:$0xff] }
 0x206   :  { %1425 = vmatpush.msra.mxu0 %v3016_v60  ;;  %v3033_v53 = vld [vmem:[#allocation23_spill] sm:$0xff] }
 0x207   :  { %v977_v20 = vsel %vm964_vm0, %v974_v6, %v976_v23  ;;  %v2538_v15 = vsel %vm1152_vm1, %v1162_v19, %v1164_v5  ;;  %v528_v6 = vmul.f32 %v2360_v43, %v471_v0  ;;  %v131_v19 = vld [vmem:[#allocation6 + $0x208] sm:$0xff]  ;;  %v3025_v0 = vld [vmem:[#allocation49_spill] sm:$0xff] }
 0x208   :  { %1019 = vmatmul.f32.gmra.mxu0 %v977_v20  ;;  %1060 = vmatmul.f32.gmra.mxu1 %v977_v20  ;;  %v3024_v20 = vld [vmem:[#allocation48_spill] sm:$0xff] }
 0x209   :  { %v544_v3 = vadd.f32 %v528_v6, %v3002_v33  ;;  %1232 = vmatpush.msrb.mxu1 %v131_v19  ;;  %1580 = vmatpush.msra.mxu3 %v131_v19  ;;  %v3029_v19 = vld [vmem:[#allocation53_spill] sm:$0xff] }
 0x20a   :  { %1426 = vmatpush.msra.mxu0 %v3018_v62 }
 0x20b   :  { %1460 = vmatpush.msra.mxu1 %v3004_v54 }
 0x20c   :  { %758 = vperm.xlu2 %1761, %v1922_v12   ;;  %629 = vperm.xlu1 %1760, %v1948_v14   ;;  %v735_v59 = vpop.permute.xlu0 %734 }
 0x20d   :  { %1461 = vmatpush.msra.mxu1 %v3006_v51  ;;  %v787_v49 = vmul.f32 %v2384_v29, %v735_v59 }
 0x20e   :  { %v600_v22 = vpop.permute.xlu1 %599 }
 0x20f   :  { %v657_v58 = vmul.f32 %v2377_v46, %v600_v22  ;;  %1462 = vmatpush.msra.mxu1 %v3009_v26  ;;  %v3030_v22 = vld [vmem:[#allocation54_spill] sm:$0xff]  ;;  %v3038_v26 = vld [vmem:[#allocation17_spill] sm:$0xff] }
 0x211   :  { %v673_v57 = vadd.f32 %v657_v58, %v544_v3  ;;  %1463 = vmatpush.msra.mxu1 %v3011_v10  ;;  %v3031_v3 = vld [vmem:[#allocation55_spill] sm:$0xff]  ;;  %v3032_v58 = vld [vmem:[#allocation56_spill] sm:$0xff] }
 0x213   :  { %v802_v2 = vadd.f32 %v786_v39, %v673_v57  ;;  %1464 = vmatpush.msra.mxu1 %v3013_v61  ;;  %v3034_v39 = vld [vmem:[#allocation57_spill] sm:$0xff]  ;;  %v3035_v57 = vld [vmem:[#allocation58_spill] sm:$0xff] }
 0x214   :  { %1764 = vset.pattern.permute.xlu2 %v3007_v31  ;;  %1763 = vset.pattern.permute.xlu1 %v3007_v31  ;;  %v3037_v31 = vld [vmem:[#allocation60_spill] sm:$0xff] }
 0x215   :  { %v931_v16 = vadd.f32 %v915_v50, %v802_v2  ;;  %1465 = vmatpush.msra.mxu1 %v3015_v9  ;;  %v3036_v2 = vld [vmem:[#allocation59_spill] sm:$0xff] }
 0x217   :  { %v947_v8 = vmax.f32 %v931_v16, 0.0  ;;  %1466 = vmatpush.msra.mxu1 %v3017_v28 }
 0x219   :  { %1107 = vmatmul.f32.gmra.mxu2 %v947_v8  ;;  %1148 = vmatmul.f32.gmra.mxu3 %v947_v8  ;;  %v978_v11 = vrot.slane %v947_v8, 1  ;;  %v2557_v56 = vrot.slane %v947_v8, 2 }
 0x21a   :  { %1467 = vmatpush.msra.mxu1 %v3019_v36 }
 0x21b   :  { %v979_v24 = vsel %vm964_vm0, %v976_v23, %v978_v11  ;;  %v2568_v27 = vsel %vm1152_vm1, %v1164_v5, %v2557_v56  ;;  %v483_v23 = vpop.permute.xlu2 %482  ;;  %v3021_v5 = vld [vmem:[#allocation44_spill] sm:$0xff] }
 0x21c   :  { %635 = vperm.xlu2 %1764, %v1948_v14   ;;  %506 = vperm.xlu1 %1763, %v1922_v12   ;;  %v530_v63 = vmul.f32 %v2360_v43, %v483_v23 }
 0x21d   :  { %1022 = vmatmul.f32.gmra.mxu0 %v979_v24  ;;  %1063 = vmatmul.f32.gmra.mxu1 %v979_v24 }
 0x21e   :  { %v477_v37 = vpop.permute.xlu1 %476  ;;  %1427 = vmatpush.msra.mxu0 %v3021_v5  ;;  %1468 = vmatpush.msra.mxu1 %v3022_v7  ;;  %v546_v8 = vadd.f32 %v530_v63, %v3038_v26  ;;  %v3039_v5 = vld [vmem:[#allocation25_spill] sm:$0xff] }
 0x21f   :  { %v529_v6 = vmul.f32 %v2360_v43, %v477_v37 }
 0x220   :  { %1428 = vmatpush.msra.mxu0 %v3023_v1  ;;  %1469 = vmatpush.msra.mxu1 %v3024_v20 }
 0x222   :  { %1429 = vmatpush.msra.mxu0 %v3025_v0  ;;  %1470 = vmatpush.msra.mxu1 %v3026_v13 }
 0x223   :  { %v612_v18 = vpop.permute.xlu2 %611 }
 0x224   :  { %1766 = vset.pattern.permute.xlu2 %v3020_v52  ;;  %1765 = vset.pattern.permute.xlu1 %v3020_v52 }
 0x225   :  { %1025 = vmatmul.f32.gmra.mxu0 %v978_v11  ;;  %1066 = vmatmul.f32.gmra.mxu1 %v978_v11 }
 0x226   :  { %v606_v17 = vpop.permute.xlu1 %605  ;;  %1430 = vmatpush.msra.mxu0 %v3027_v40  ;;  %1471 = vmatpush.msra.mxu1 %v3028_v41 }
 0x227   :  { %v658_v33 = vmul.f32 %v2377_v46, %v606_v17 }
 0x228   :  { %1431 = vmatpush.msra.mxu0 %v3029_v19  ;;  %1472 = vmatpush.msra.mxu1 %v3030_v22 }
 0x22a   :  { %1432 = vmatpush.msra.mxu0 %v3031_v3  ;;  %1473 = vmatpush.msra.mxu1 %v3032_v58  ;;  %v3040_v3 = vld [vmem:[#allocation21_spill] sm:$0xff] }
 0x22b   :  { %v864_v51 = vpop.permute.xlu2 %863 }
 0x22c   :  { %893 = vperm.xlu2 %1766, %v1948_v14   ;;  %764 = vperm.xlu1 %1765, %v1922_v12   ;;  %v916_v16 = vmul.f32 %v2395_v55, %v864_v51 }
 0x22d   :  { %1192 = vmatmul.f32.vlgmr.msrb.gmra.mxu0 %v2429_v4  ;;  %1233 = vmatmul.f32.vlgmr.msrb.gmra.mxu1 %v2429_v4  ;;  %v545_v4 = vadd.f32 %v529_v6, %v3033_v53 }
 0x22e   :  { %1433 = vmatpush.msra.mxu0 %v3034_v39  ;;  %1474 = vmatpush.msra.mxu1 %v3035_v57 }
 0x22f   :  { %v674_v54 = vadd.f32 %v658_v33, %v545_v4 }
 0x230   :  { %1434 = vmatpush.msra.mxu0 %v3036_v2  ;;  %1475 = vmatpush.msra.mxu1 %v3037_v31 }
 0x231   :  { %v803_v48 = vadd.f32 %v787_v49, %v674_v54 }
 0x233   :  { %v932_v10 = vadd.f32 %v916_v16, %v803_v48  ;;  %v489_v60 = vpop.permute.xlu2 %488 }
 0x234   :  { %1769 = vset.pattern.permute.xlu2 %v2012_v30  ;;  %1768 = vset.pattern.permute.xlu1 %v2126_v25  ;;  %v659_v25 = vmul.f32 %v2377_v46, %v612_v18  ;;  %v531_v37 = vmul.f32 %v2360_v43, %v489_v60 }
 0x235   :  { %1195 = vmatmul.f32.gmra.mxu0 %v2450_v44  ;;  %1236 = vmatmul.f32.gmra.mxu1 %v2450_v44  ;;  %v948_v24 = vmax.f32 %v932_v10, 0.0 }
 0x236   :  { %v741_v50 = vpop.permute.xlu1 %740  ;;  %v675_v47 = vadd.f32 %v659_v25, %v546_v8 }
 0x237   :  { %v788_v44 = vmul.f32 %v2384_v29, %v741_v50  ;;  %v1314_v28 = vrot.slane %v948_v24, 1  ;;  %v1501_v62 = vrot.slane %v948_v24, 2 }
 0x239   :  { %v804_v45 = vadd.f32 %v788_v44, %v675_v47  ;;  %v3041_v47 = vld [vmem:[#allocation15_spill] sm:$0xff] }
 0x23b   :  { %v876_v7 = vpop.permute.xlu2 %875 }
 0x23c   :  { %770 = vperm.xlu2 %1769, %v1922_v12   ;;  %641 = vperm.xlu1 %1768, %v1948_v14   ;;  %v918_v20 = vmul.f32 %v2395_v55, %v876_v7 }
 0x23d   :  { %1198 = vmatmul.f32.gmra.mxu0 %v2467_v34  ;;  %1239 = vmatmul.f32.gmra.mxu1 %v2467_v34 }
 0x23e   :  { %v870_v11 = vpop.permute.xlu1 %869 }
 0x23f   :  { %v917_v61 = vmul.f32 %v2395_v55, %v870_v11 }
 0x241   :  { %v933_v38 = vadd.f32 %v917_v61, %v804_v45 }
 0x243   :  { %v2618_v9 = vmax.f32 %v933_v38, 0.0 }
 0x244   :  { %1771 = vset.pattern.permute.xlu2 %v2367_v35  ;;  %1770 = vset.pattern.permute.xlu1 %v2012_v30  ;;  %v618_v30 = vpop.permute.xlu0 %617 }
 0x245   :  { %1201 = vmatmul.f32.gmra.mxu0 %v2485_v32  ;;  %1242 = vmatmul.f32.gmra.mxu1 %v2485_v32  ;;  %v1315_v34 = vrot.slane %v2618_v9, 1  ;;  %v1502_v36 = vrot.slane %v2618_v9, 2  ;;  %v660_v35 = vmul.f32 %v2377_v46, %v618_v30  ;;  %v547_v32 = vadd.f32 %v531_v37, %v3039_v5 }
 0x246   :  { %v624_v22 = vpop.permute.xlu2 %623 }
 0x247   :  { %v1316_v52 = vsel %vm964_vm0, %v1314_v28, %v1315_v34  ;;  %v2629_v23 = vsel %vm1152_vm1, %v1501_v62, %v1502_v36  ;;  %v676_v0 = vadd.f32 %v660_v35, %v547_v32  ;;  %v661_v33 = vmul.f32 %v2377_v46, %v624_v22 }
 0x248   :  { %1353 = vmatmul.f32.vlgmr.msrb.gmra.mxu2 %v1316_v52  ;;  %1394 = vmatmul.f32.vlgmr.msrb.gmra.mxu3 %v1316_v52 }
 0x24c   :  { %518 = vperm.xlu2 %1771, %v1922_v12   ;;  %899 = vperm.xlu1 %1770, %v1948_v14   ;;  %v753_v53 = vpop.permute.xlu0 %752 }
 0x24d   :  { %1204 = vmatmul.f32.gmra.mxu0 %v2507_v21  ;;  %1245 = vmatmul.f32.gmra.mxu1 %v2507_v21  ;;  %v790_v4 = vmul.f32 %v2384_v29, %v753_v53 }
 0x24e   :  { %v747_v1 = vpop.permute.xlu1 %746 }
 0x24f   :  { %v789_v13 = vmul.f32 %v2384_v29, %v747_v1 }
 0x251   :  { %v805_v17 = vadd.f32 %v789_v13, %v676_v0 }
 0x253   :  { %v934_v40 = vadd.f32 %v918_v20, %v805_v17 }
 0x254   :  { %1773 = vset.pattern.permute.xlu1 %v2034_v42  ;;  %1774 = vset.pattern.permute.xlu2 %v2034_v42  ;;  %v888_v61 = vpop.permute.xlu0 %887 }
 0x255   :  { %v950_v41 = vmax.f32 %v934_v40, 0.0  ;;  %1207 = vmatmul.f32.gmra.mxu0 %v2538_v15  ;;  %1248 = vmatmul.f32.gmra.mxu1 %v2538_v15 }
 0x256   :  { %v501_v63 = vpop.permute.xlu2 %500 }
 0x257   :  { %v1317_v6 = vrot.slane %v950_v41, 1  ;;  %v1504_v21 = vrot.slane %v950_v41, 2  ;;  %v533_v26 = vmul.f32 %v2360_v43, %v501_v63 }
 0x259   :  { %v1318_v18 = vsel %vm964_vm0, %v1315_v34, %v1317_v6  ;;  %v2645_v19 = vsel %vm1152_vm1, %v1502_v36, %v1504_v21  ;;  %v549_v10 = vadd.f32 %v533_v26, %v3041_v47 }
 0x25a   :  { %1356 = vmatmul.f32.gmra.mxu2 %v1318_v18  ;;  %1397 = vmatmul.f32.gmra.mxu3 %v1318_v18 }
 0x25c   :  { %776 = vperm.xlu1 %1773, %v1922_v12   ;;  %905 = vperm.xlu2 %1774, %v1948_v14   ;;  %v2656_v12 = vpop.f32.mrf.mxu0  ;;  %v2658_v14 = vpop.f32.mrf.mxu1 }
 0x25d   :  { %1210 = vmatmul.f32.gmra.mxu0 %v2568_v27  ;;  %1251 = vmatmul.f32.gmra.mxu1 %v2568_v27 }
 0x25e   :  { %v495_v42 = vpop.permute.xlu1 %494 }
 0x25f   :  { %v532_v15 = vmul.f32 %v2360_v43, %v495_v42 }
 0x261   :  { %v548_v58 = vadd.f32 %v532_v15, %v3040_v3 }
 0x263   :  { %v677_v27 = vadd.f32 %v661_v33, %v548_v58 }
 0x264   :  { %v2662_v50 = vpop.f32.mrf.mxu0  ;;  %v2664_v39 = vpop.f32.mrf.mxu1 }
 0x265   :  { %1213 = vmatmul.f32.gmra.mxu0 %v2557_v56  ;;  %1254 = vmatmul.f32.gmra.mxu1 %v2557_v56  ;;  %v806_v49 = vadd.f32 %v790_v4, %v677_v27  ;;  %v1087_v4 = vpop.f32.mrf.mxu2 }
 0x266   :  { %v759_v8 = vpop.permute.xlu2 %758 }
 0x267   :  { %v791_v45 = vmul.f32 %v2384_v29, %v759_v8 }
 0x26c   :  { %v2672_v16 = vpop.f32.mrf.mxu0  ;;  %v2674_v48 = vpop.f32.mrf.mxu1 }
 0x26d   :  { %1435 = vmatmul.f32.vlgmr.msra.gmra.mxu0 %v948_v24  ;;  %1476 = vmatmul.f32.vlgmr.msra.gmra.mxu1 %v948_v24  ;;  %v920_v24 = vmul.f32 %v2395_v55, %v888_v61 }
 0x26e   :  { %v882_v59 = vpop.permute.xlu1 %881 }
 0x26f   :  { %v919_v54 = vmul.f32 %v2395_v55, %v882_v59  ;;  %v1128_v59 = vpop.f32.mrf.mxu3 }
 0x271   :  { %v935_v56 = vadd.f32 %v919_v54, %v806_v49 }
 0x273   :  { %v951_v57 = vmax.f32 %v935_v56, 0.0  ;;  %v1088_v56 = vadd.f32 %v1087_v4, %v2656_v12  ;;  %v1090_v12 = vpop.f32.mrf.mxu2 }
 0x274   :  { %v2683_v60 = vpop.f32.mrf.mxu1 }
 0x275   :  { %1438 = vmatmul.f32.gmra.mxu0 %v2618_v9  ;;  %1479 = vmatmul.f32.gmra.mxu1 %v2618_v9  ;;  %v1319_v51 = vrot.slane %v951_v57, 1  ;;  %v1506_v2 = vrot.slane %v951_v57, 2  ;;  %v2681_v9 = vpop.f32.mrf.mxu0 }
 0x276   :  { %v636_v1 = vpop.permute.xlu2 %635 }
 0x277   :  { %v1320_v31 = vsel %vm964_vm0, %v1317_v6, %v1319_v51  ;;  %v2670_v25 = vsel %vm1152_vm1, %v1504_v21, %v1506_v2  ;;  %v663_v40 = vmul.f32 %v2377_v46, %v636_v1 }
 0x278   :  { %1359 = vmatmul.f32.gmra.mxu2 %v1320_v31  ;;  %1400 = vmatmul.f32.gmra.mxu3 %v1320_v31 }
 0x27c   :  { %v2687_v30 = vpop.f32.mrf.mxu1 }
 0x27d   :  { %1441 = vmatmul.f32.gmra.mxu0 %v950_v41  ;;  %1482 = vmatmul.f32.gmra.mxu1 %v950_v41  ;;  %v2685_v52 = vpop.f32.mrf.mxu0  ;;  %v3042_v41 = vld [vmem:[#allocation26_spill] sm:$0xff] }
 0x27e   :  { %v630_v44 = vpop.permute.xlu1 %629 }
 0x27f   :  { %v662_v11 = vmul.f32 %v2377_v46, %v630_v44 }
 0x281   :  { %v678_v38 = vadd.f32 %v662_v11, %v549_v10  ;;  %v513_v10 = vpop.permute.xlu0 %512  ;;  %v1091_v11 = vadd.f32 %v1090_v12, %v2662_v50  ;;  %v3043_v50 = vld [vmem:[#allocation24_spill] sm:$0xff] }
 0x283   :  { %v807_v28 = vadd.f32 %v791_v45, %v678_v38 }
 0x285   :  { %v936_v34 = vadd.f32 %v920_v24, %v807_v28  ;;  %1444 = vmatmul.f32.gmra.mxu0 %v951_v57  ;;  %1485 = vmatmul.f32.gmra.mxu1 %v951_v57  ;;  %v2693_v32 = vpop.f32.mrf.mxu0  ;;  %v2695_v7 = vpop.f32.mrf.mxu1  ;;  %v1129_v57 = vadd.f32 %v1128_v59, %v2658_v14 }
 0x286   :  { %v894_v21 = vpop.permute.xlu2 %893  ;;  %v1131_v14 = vpop.f32.mrf.mxu3 }
 0x287   :  { %v952_v62 = vmax.f32 %v936_v34, 0.0  ;;  %v921_v42 = vmul.f32 %v2395_v55, %v894_v21  ;;  %v1132_v45 = vadd.f32 %v1131_v14, %v2664_v39 }
 0x289   :  { %v1321_v36 = vrot.slane %v952_v62, 1  ;;  %v1508_v37 = vrot.slane %v952_v62, 2 }
 0x28b   :  { %v1322_v35 = vsel %vm964_vm0, %v1319_v51, %v1321_v36  ;;  %v2691_v5 = vsel %vm1152_vm1, %v1506_v2, %v1508_v37 }
 0x28c   :  { %1362 = vmatmul.f32.gmra.mxu2 %v1322_v35  ;;  %1403 = vmatmul.f32.gmra.mxu3 %v1322_v35  ;;  %v1093_v35 = vpop.f32.mrf.mxu2 }
 0x28d   :  { %1447 = vmatmul.f32.gmra.mxu0 %v952_v62  ;;  %1488 = vmatmul.f32.gmra.mxu1 %v952_v62  ;;  %v535_v62 = vmul.f32 %v2360_v43, %v513_v10 }
 0x28e   :  { %v507_v20 = vpop.permute.xlu1 %506 }
 0x28f   :  { %v534_v0 = vmul.f32 %v2360_v43, %v507_v20  ;;  %v1134_v20 = vpop.f32.mrf.mxu3  ;;  %v551_v39 = vadd.f32 %v535_v62, %v3043_v50 }
 0x291   :  { %v550_v6 = vadd.f32 %v534_v0, %v3042_v41  ;;  %v1094_v0 = vadd.f32 %v1093_v35, %v2672_v16 }
 0x293   :  { %v679_v15 = vadd.f32 %v663_v40, %v550_v6  ;;  %v1135_v40 = vadd.f32 %v1134_v20, %v2674_v48 }
 0x294   :  { %v1096_v59 = vpop.f32.mrf.mxu2 }
 0x296   :  { %v771_v41 = vpop.permute.xlu2 %770 }
 0x297   :  { %v1137_v48 = vpop.f32.mrf.mxu3 }
 0x29a   :  { %v2698_v13 = vpop.f32.mrf.mxu0  ;;  %v2700_v17 = vpop.f32.mrf.mxu1 }
 0x29e   :  { %v765_v18 = vpop.permute.xlu1 %764 }
 0x29f   :  { %v792_v22 = vmul.f32 %v2384_v29, %v765_v18  ;;  %v793_v18 = vmul.f32 %v2384_v29, %v771_v41 }
 0x2a1   :  { %v808_v33 = vadd.f32 %v792_v22, %v679_v15 }
 0x2a2   :  { %v2706_v3 = vpop.f32.mrf.mxu0  ;;  %v2708_v58 = vpop.f32.mrf.mxu1 }
 0x2a3   :  { %v937_v53 = vadd.f32 %v921_v42, %v808_v33 }
 0x2a5   :  { %v2710_v27 = vmax.f32 %v937_v53, 0.0 }
 0x2a6   :  { %v519_v12 = vpop.permute.xlu2 %518 }
 0x2a7   :  { %1450 = vmatmul.f32.gmra.mxu0 %v2710_v27  ;;  %1491 = vmatmul.f32.gmra.mxu1 %v2710_v27  ;;  %v1323_v49 = vrot.slane %v2710_v27, 1  ;;  %v1510_v54 = vrot.slane %v2710_v27, 2 }
 0x2a9   :  { %v1324_v63 = vsel %vm964_vm0, %v1321_v36, %v1323_v49  ;;  %v2724_v51 = vsel %vm1152_vm1, %v1508_v37, %v1510_v54 }
 0x2aa   :  { %v1193_v2 = vpop.f32.mrf.mxu0  ;;  %v1234_v31 = vpop.f32.mrf.mxu1  ;;  %1365 = vmatmul.f32.gmra.mxu2 %v1324_v63  ;;  %1406 = vmatmul.f32.gmra.mxu3 %v1324_v63  ;;  %v1138_v63 = vadd.f32 %v1137_v48, %v2683_v60  ;;  %v536_v60 = vmul.f32 %v2360_v43, %v519_v12 }
 0x2ab   :  { %v1258_v26 = vadd.f32 %v1193_v2, %v1088_v56  ;;  %v1259_v8 = vadd.f32 %v1234_v31, %v1129_v57  ;;  %v1097_v57 = vadd.f32 %v1096_v59, %v2681_v9 }
 0x2ad   :  { %v1274_v44 = vmax.f32 %v1258_v26, 0.0  ;;  %v1275_v47 = vmax.f32 %v1259_v8, 0.0 }
 0x2ae   :  { %v642_v34 = vpop.permute.xlu1 %641 }
 0x2af   :  { %1290 = vst [vmem:[%s2895_s3] sm:$0xff] %v1274_v44  ;;  %v664_v1 = vmul.f32 %v2377_v46, %v642_v34 }
 0x2b0   :  { %1291 = vst [vmem:[%s2895_s3 + $0x8] sm:$0xff] %v1275_v47 }
 0x2b1   :  { %v680_v42 = vadd.f32 %v664_v1, %v551_v39 }
 0x2b2   :  { %v1196_v61 = vpop.f32.mrf.mxu0  ;;  %v1237_v24 = vpop.f32.mrf.mxu1 }
 0x2b3   :  { %v1260_v38 = vadd.f32 %v1196_v61, %v1091_v11  ;;  %v1261_v28 = vadd.f32 %v1237_v24, %v1132_v45  ;;  %v809_v56 = vadd.f32 %v793_v18, %v680_v42  ;;  %v1099_v45 = vpop.f32.mrf.mxu2 }
 0x2b4   :  { %v1100_v43 = vadd.f32 %v1099_v45, %v2685_v52 }
 0x2b5   :  { %v1276_v36 = vmax.f32 %v1260_v38, 0.0  ;;  %v1277_v37 = vmax.f32 %v1261_v28, 0.0  ;;  %v1140_v38 = vpop.f32.mrf.mxu3  ;;  %v648_v28 = vpop.permute.xlu0 %647 }
 0x2b6   :  { %v1141_v34 = vadd.f32 %v1140_v38, %v2687_v30  ;;  %v665_v27 = vmul.f32 %v2377_v46, %v648_v28  ;;  %v906_v1 = vpop.permute.xlu2 %905 }
 0x2b7   :  { %1292 = vst [vmem:[%s2895_s3 + $0x10] sm:$0xff] %v1276_v36  ;;  %v923_v30 = vmul.f32 %v2395_v55, %v906_v1 }
 0x2b8   :  { %1293 = vst [vmem:[%s2895_s3 + $0x18] sm:$0xff] %v1277_v37 }
 0x2ba   :  { %v1199_v6 = vpop.f32.mrf.mxu0  ;;  %v1240_v21 = vpop.f32.mrf.mxu1 }
 0x2bb   :  { %v1262_v15 = vadd.f32 %v1199_v6, %v1094_v0  ;;  %v1263_v22 = vadd.f32 %v1240_v21, %v1135_v40  ;;  %v1102_v40 = vpop.f32.mrf.mxu2 }
 0x2bc   :  { %v1103_v46 = vadd.f32 %v1102_v40, %v2693_v32 }
 0x2bd   :  { %v1278_v33 = vmax.f32 %v1262_v15, 0.0  ;;  %v1279_v53 = vmax.f32 %v1263_v22, 0.0  ;;  %v1143_v41 = vpop.f32.mrf.mxu3 }
 0x2be   :  { %v900_v4 = vpop.permute.xlu1 %899  ;;  %v1144_v6 = vadd.f32 %v1143_v41, %v2695_v7 }
 0x2bf   :  { %1294 = vst [vmem:[%s2895_s3 + $0x20] sm:$0xff] %v1278_v33  ;;  %v922_v16 = vmul.f32 %v2395_v55, %v900_v4 }
 0x2c0   :  { %1295 = vst [vmem:[%s2895_s3 + $0x28] sm:$0xff] %v1279_v53 }
 0x2c1   :  { %v938_v2 = vadd.f32 %v922_v16, %v809_v56 }
 0x2c2   :  { %v1202_v31 = vpop.f32.mrf.mxu0  ;;  %v1243_v26 = vpop.f32.mrf.mxu1 }
 0x2c3   :  { %v2755_v8 = vmax.f32 %v938_v2, 0.0  ;;  %v1264_v44 = vadd.f32 %v1202_v31, %v1097_v57  ;;  %v1265_v47 = vadd.f32 %v1243_v26, %v1138_v63  ;;  %v1105_v32 = vpop.f32.mrf.mxu2 }
 0x2c4   :  { %v1106_v7 = vadd.f32 %v1105_v32, %v2698_v13 }
 0x2c5   :  { %v1280_v14 = vmax.f32 %v1264_v44, 0.0  ;;  %v1281_v10 = vmax.f32 %v1265_v47, 0.0  ;;  %1453 = vmatmul.f32.gmra.mxu0 %v2755_v8  ;;  %1494 = vmatmul.f32.gmra.mxu1 %v2755_v8  ;;  %v1325_v11 = vrot.slane %v2755_v8, 1  ;;  %v1512_v9 = vrot.slane %v2755_v8, 2  ;;  %v1146_v56 = vpop.f32.mrf.mxu3 }
 0x2c6   :  { %v1147_v16 = vadd.f32 %v1146_v56, %v2700_v17 }
 0x2c7   :  { %1296 = vst [vmem:[%s2895_s3 + $0x30] sm:$0xff] %v1280_v14  ;;  %v1326_v61 = vsel %vm964_vm0, %v1323_v49, %v1325_v11  ;;  %v2771_v24 = vsel %vm1152_vm1, %v1510_v54, %v1512_v9  ;;  %v3044_v49 = vld [vmem:[#allocation39_spill] sm:$0xff] }
 0x2c8   :  { %1297 = vst [vmem:[%s2895_s3 + $0x38] sm:$0xff] %v1281_v10  ;;  %1368 = vmatmul.f32.gmra.mxu2 %v1326_v61  ;;  %1409 = vmatmul.f32.gmra.mxu3 %v1326_v61  ;;  %v552_v37 = vadd.f32 %v536_v60, %v3044_v49 }
 0x2ca   :  { %v1205_v62 = vpop.f32.mrf.mxu0  ;;  %v1246_v36 = vpop.f32.mrf.mxu1  ;;  %v681_v0 = vadd.f32 %v665_v27, %v552_v37 }
 0x2cb   :  { %v1266_v54 = vadd.f32 %v1205_v62, %v1100_v43  ;;  %v1267_v35 = vadd.f32 %v1246_v36, %v1141_v34  ;;  %v1108_v47 = vpop.f32.mrf.mxu2 }
 0x2cc   :  { %v1109_v17 = vadd.f32 %v1108_v47, %v2706_v3 }
 0x2cd   :  { %v1282_v20 = vmax.f32 %v1266_v54, 0.0  ;;  %v1283_v50 = vmax.f32 %v1267_v35, 0.0  ;;  %v1149_v13 = vpop.f32.mrf.mxu3 }
 0x2ce   :  { %v777_v39 = vpop.permute.xlu1 %776  ;;  %v1150_v12 = vadd.f32 %v1149_v13, %v2708_v58 }
 0x2cf   :  { %1298 = vst [vmem:[%s2895_s3 + $0x40] sm:$0xff] %v1282_v20  ;;  %v794_v52 = vmul.f32 %v2384_v29, %v777_v39 }
 0x2d0   :  { %1299 = vst [vmem:[%s2895_s3 + $0x48] sm:$0xff] %v1283_v50 }
 0x2d1   :  { %v810_v21 = vadd.f32 %v794_v52, %v681_v0 }
 0x2d2   :  { %v1208_v18 = vpop.f32.mrf.mxu0  ;;  %v1249_v42 = vpop.f32.mrf.mxu1 }
 0x2d3   :  { %v939_v15 = vadd.f32 %v923_v30, %v810_v21  ;;  %v1268_v22 = vadd.f32 %v1208_v18, %v1103_v46  ;;  %v1269_v33 = vadd.f32 %v1249_v42, %v1144_v6 }
 0x2d5   :  { %v955_v53 = vmax.f32 %v939_v15, 0.0  ;;  %v1284_v29 = vmax.f32 %v1268_v22, 0.0  ;;  %v1285_v4 = vmax.f32 %v1269_v33, 0.0 }
 0x2d7   :  { %1300 = vst [vmem:[%s2895_s3 + $0x50] sm:$0xff] %v1284_v29  ;;  %1456 = vmatmul.f32.gmra.mxu0 %v955_v53  ;;  %1497 = vmatmul.f32.gmra.mxu1 %v955_v53  ;;  %v1327_v55 = vrot.slane %v955_v53, 1  ;;  %v1514_v59 = vrot.slane %v955_v53, 2 }
 0x2d8   :  { %1301 = vst [vmem:[%s2895_s3 + $0x58] sm:$0xff] %v1285_v4 }
 0x2d9   :  { %v1328_v48 = vsel %vm964_vm0, %v1325_v11, %v1327_v55  ;;  %v1515_v57 = vsel %vm1152_vm1, %v1512_v9, %v1514_v59 }
 0x2da   :  { %v1211_v63 = vpop.f32.mrf.mxu0  ;;  %v1252_v2 = vpop.f32.mrf.mxu1  ;;  %1371 = vmatmul.f32.gmra.mxu2 %v1328_v48  ;;  %1412 = vmatmul.f32.gmra.mxu3 %v1328_v48 }
 0x2db   :  { %v1270_v31 = vadd.f32 %v1211_v63, %v1106_v7  ;;  %v1271_v26 = vadd.f32 %v1252_v2, %v1147_v16 }
 0x2dd   :  { %v1286_v8 = vmax.f32 %v1270_v31, 0.0  ;;  %v1287_v44 = vmax.f32 %v1271_v26, 0.0 }
 0x2df   :  { %1302 = vst [vmem:[%s2895_s3 + $0x60] sm:$0xff] %v1286_v8 }
 0x2e0   :  { %1303 = vst [vmem:[%s2895_s3 + $0x68] sm:$0xff] %v1287_v44 }
 0x2e2   :  { %v1214_v14 = vpop.f32.mrf.mxu0  ;;  %v1255_v10 = vpop.f32.mrf.mxu1  ;;  %1374 = vmatmul.f32.gmra.mxu2 %v1327_v55  ;;  %1415 = vmatmul.f32.gmra.mxu3 %v1327_v55 }
 0x2e3   :  { %v1272_v11 = vadd.f32 %v1214_v14, %v1109_v17  ;;  %v1273_v9 = vadd.f32 %v1255_v10, %v1150_v12 }
 0x2e5   :  { %v1288_v45 = vmax.f32 %v1272_v11, 0.0  ;;  %v1289_v60 = vmax.f32 %v1273_v9, 0.0 }
 0x2e7   :  { %1304 = vst [vmem:[%s2895_s3 + $0x70] sm:$0xf] %v1288_v45 }
 0x2e8   :  { %1305 = vst [vmem:[%s2895_s3 + $0x78] sm:$0xf] %v1289_v60 }
 0x2ea   :  { %1540 = vmatmul.f32.vlgmr.msra.gmra.mxu2 %v2629_v23  ;;  %1581 = vmatmul.f32.vlgmr.msra.gmra.mxu3 %v2629_v23  ;;  %v1354_v23 = vpop.f32.mrf.mxu2  ;;  %v1436_v36 = vpop.f32.mrf.mxu0 }
 0x2eb   :  { %v1477_v49 = vpop.f32.mrf.mxu1  ;;  %v1437_v54 = vadd.f32 %v1436_v36, %v1354_v23 }
 0x2f2   :  { %1543 = vmatmul.f32.gmra.mxu2 %v2645_v19  ;;  %1584 = vmatmul.f32.gmra.mxu3 %v2645_v19  ;;  %v1395_v19 = vpop.f32.mrf.mxu3  ;;  %v1357_v3 = vpop.f32.mrf.mxu2 }
 0x2f3   :  { %v1478_v35 = vadd.f32 %v1477_v49, %v1395_v19  ;;  %v1439_v1 = vpop.f32.mrf.mxu0  ;;  %v1480_v20 = vpop.f32.mrf.mxu1 }
 0x2f4   :  { %v1440_v41 = vadd.f32 %v1439_v1, %v1357_v3 }
 0x2fa   :  { %1546 = vmatmul.f32.gmra.mxu2 %v2670_v25  ;;  %1587 = vmatmul.f32.gmra.mxu3 %v2670_v25  ;;  %v1398_v25 = vpop.f32.mrf.mxu3 }
 0x2fb   :  { %v1360_v58 = vpop.f32.mrf.mxu2  ;;  %v1481_v46 = vadd.f32 %v1480_v20, %v1398_v25  ;;  %v1442_v15 = vpop.f32.mrf.mxu0 }
 0x2fc   :  { %v1483_v22 = vpop.f32.mrf.mxu1  ;;  %v1443_v29 = vadd.f32 %v1442_v15, %v1360_v58 }
 0x302   :  { %1549 = vmatmul.f32.gmra.mxu2 %v2691_v5  ;;  %1590 = vmatmul.f32.gmra.mxu3 %v2691_v5  ;;  %v1401_v61 = vpop.f32.mrf.mxu3 }
 0x303   :  { %v1484_v4 = vadd.f32 %v1483_v22, %v1401_v61  ;;  %v1445_v48 = vpop.f32.mrf.mxu0 }
 0x30a   :  { %1552 = vmatmul.f32.gmra.mxu2 %v2724_v51  ;;  %1593 = vmatmul.f32.gmra.mxu3 %v2724_v51 }
 0x30b   :  { %v1448_v17 = vpop.f32.mrf.mxu0 }
 0x30f   :  { %v1363_v38 = vpop.f32.mrf.mxu2  ;;  %v1404_v5 = vpop.f32.mrf.mxu3 }
 0x310   :  { %v1446_v63 = vadd.f32 %v1445_v48, %v1363_v38 }
 0x312   :  { %1555 = vmatmul.f32.gmra.mxu2 %v2771_v24  ;;  %1596 = vmatmul.f32.gmra.mxu3 %v2771_v24 }
 0x31a   :  { %1558 = vmatmul.f32.gmra.mxu2 %v1515_v57  ;;  %1599 = vmatmul.f32.gmra.mxu3 %v1515_v57  ;;  %v1486_v57 = vpop.f32.mrf.mxu1 }
 0x31b   :  { %v1487_v2 = vadd.f32 %v1486_v57, %v1404_v5 }
 0x322   :  { %1561 = vmatmul.f32.gmra.mxu2 %v1514_v59  ;;  %1602 = vmatmul.f32.gmra.mxu3 %v1514_v59  ;;  %v1489_v12 = vpop.f32.mrf.mxu1 }
 0x324   :  { %v1451_v3 = vpop.f32.mrf.mxu0 }
 0x32a   :  { %v1492_v25 = vpop.f32.mrf.mxu1 }
 0x32d   :  { %v1366_v28 = vpop.f32.mrf.mxu2  ;;  %v1407_v43 = vpop.f32.mrf.mxu3 }
 0x32e   :  { %v1449_v14 = vadd.f32 %v1448_v17, %v1366_v28  ;;  %v1490_v10 = vadd.f32 %v1489_v12, %v1407_v43 }
 0x34b   :  { %v2826_v34 = vpop.f32.mrf.mxu2  ;;  %v2828_v51 = vpop.f32.mrf.mxu3 }
 0x34c   :  { %v1452_v58 = vadd.f32 %v1451_v3, %v2826_v34  ;;  %v1493_v61 = vadd.f32 %v1492_v25, %v2828_v51 }
 0x35d   :  { %v2830_v62 = vpop.f32.mrf.mxu2  ;;  %v2832_v24 = vpop.f32.mrf.mxu3 }
 0x365   :  { %v2834_v37 = vpop.f32.mrf.mxu2  ;;  %v2836_v27 = vpop.f32.mrf.mxu3 }
 0x36d   :  { %v1541_v50 = vpop.f32.mrf.mxu2  ;;  %v1582_v39 = vpop.f32.mrf.mxu3 }
 0x36e   :  { %v1606_v0 = vadd.f32 %v1541_v50, %v1437_v54  ;;  %v1607_v52 = vadd.f32 %v1582_v39, %v1478_v35  ;;  %v1454_v54 = vpop.f32.mrf.mxu0  ;;  %v1495_v35 = vpop.f32.mrf.mxu1 }
 0x36f   :  { %v1455_v34 = vadd.f32 %v1454_v54, %v2830_v62  ;;  %v1496_v51 = vadd.f32 %v1495_v35, %v2832_v24 }
 0x370   :  { %v1622_v30 = vmax.f32 %v1606_v0, 0.0  ;;  %v1623_v40 = vmax.f32 %v1607_v52, 0.0 }
 0x372   :  { %1661 = vst [vmem:[%s2895_s3 + $0x80] sm:$0xff] %v1622_v30 }
 0x373   :  { %1662 = vst [vmem:[%s2895_s3 + $0x88] sm:$0xff] %v1623_v40 }
 0x375   :  { %v1544_v6 = vpop.f32.mrf.mxu2  ;;  %v1585_v21 = vpop.f32.mrf.mxu3 }
 0x376   :  { %v1608_v18 = vadd.f32 %v1544_v6, %v1440_v41  ;;  %v1609_v42 = vadd.f32 %v1585_v21, %v1481_v46  ;;  %v1457_v30 = vpop.f32.mrf.mxu0  ;;  %v1498_v40 = vpop.f32.mrf.mxu1 }
 0x377   :  { %v1458_v62 = vadd.f32 %v1457_v30, %v2834_v37  ;;  %v1499_v24 = vadd.f32 %v1498_v40, %v2836_v27 }
 0x378   :  { %v1624_v33 = vmax.f32 %v1608_v18, 0.0  ;;  %v1625_v53 = vmax.f32 %v1609_v42, 0.0 }
 0x37a   :  { %1663 = vst [vmem:[%s2895_s3 + $0x90] sm:$0xff] %v1624_v33 }
 0x37b   :  { %1664 = vst [vmem:[%s2895_s3 + $0x98] sm:$0xff] %v1625_v53 }
 0x37d   :  { %v1547_v55 = vpop.f32.mrf.mxu2  ;;  %v1588_v59 = vpop.f32.mrf.mxu3 }
 0x37e   :  { %v1610_v32 = vadd.f32 %v1547_v55, %v1443_v29  ;;  %v1611_v56 = vadd.f32 %v1588_v59, %v1484_v4 }
 0x380   :  { %v1626_v7 = vmax.f32 %v1610_v32, 0.0  ;;  %v1627_v16 = vmax.f32 %v1611_v56, 0.0 }
 0x382   :  { %1665 = vst [vmem:[%s2895_s3 + $0xa0] sm:$0xff] %v1626_v7 }
 0x383   :  { %1666 = vst [vmem:[%s2895_s3 + $0xa8] sm:$0xff] %v1627_v16 }
 0x385   :  { %v1550_v31 = vpop.f32.mrf.mxu2  ;;  %v1591_v26 = vpop.f32.mrf.mxu3 }
 0x386   :  { %v1612_v8 = vadd.f32 %v1550_v31, %v1446_v63  ;;  %v1613_v44 = vadd.f32 %v1591_v26, %v1487_v2 }
 0x388   :  { %v1628_v47 = vmax.f32 %v1612_v8, 0.0  ;;  %v1629_v13 = vmax.f32 %v1613_v44, 0.0 }
 0x38a   :  { %1667 = vst [vmem:[%s2895_s3 + $0xb0] sm:$0xff] %v1628_v47 }
 0x38b   :  { %1668 = vst [vmem:[%s2895_s3 + $0xb8] sm:$0xff] %v1629_v13 }
 0x38d   :  { %v1553_v11 = vpop.f32.mrf.mxu2  ;;  %v1594_v9 = vpop.f32.mrf.mxu3 }
 0x38e   :  { %v1614_v45 = vadd.f32 %v1553_v11, %v1449_v14  ;;  %v1615_v60 = vadd.f32 %v1594_v9, %v1490_v10 }
 0x390   :  { %v1630_v23 = vmax.f32 %v1614_v45, 0.0  ;;  %v1631_v19 = vmax.f32 %v1615_v60, 0.0 }
 0x392   :  { %1669 = vst [vmem:[%s2895_s3 + $0xc0] sm:$0xff] %v1630_v23 }
 0x393   :  { %1670 = vst [vmem:[%s2895_s3 + $0xc8] sm:$0xff] %v1631_v19 }
 0x395   :  { %v1556_v38 = vpop.f32.mrf.mxu2  ;;  %v1597_v5 = vpop.f32.mrf.mxu3 }
 0x396   :  { %v1616_v28 = vadd.f32 %v1556_v38, %v1452_v58  ;;  %v1617_v43 = vadd.f32 %v1597_v5, %v1493_v61 }
 0x398   :  { %v1632_v36 = vmax.f32 %v1616_v28, 0.0  ;;  %v1633_v49 = vmax.f32 %v1617_v43, 0.0 }
 0x39a   :  { %1671 = vst [vmem:[%s2895_s3 + $0xd0] sm:$0xff] %v1632_v36 }
 0x39b   :  { %1672 = vst [vmem:[%s2895_s3 + $0xd8] sm:$0xff] %v1633_v49 }
 0x39d   :  { %v1559_v1 = vpop.f32.mrf.mxu2  ;;  %v1600_v20 = vpop.f32.mrf.mxu3 }
 0x39e   :  { %v1618_v50 = vadd.f32 %v1559_v1, %v1455_v34  ;;  %v1619_v39 = vadd.f32 %v1600_v20, %v1496_v51 }
 0x3a0   :  { %v1634_v0 = vmax.f32 %v1618_v50, 0.0  ;;  %v1635_v52 = vmax.f32 %v1619_v39, 0.0 }
 0x3a2   :  { %1673 = vst [vmem:[%s2895_s3 + $0xe0] sm:$0xff] %v1634_v0 }
 0x3a3   :  { %1674 = vst [vmem:[%s2895_s3 + $0xe8] sm:$0xff] %v1635_v52 }
 0x3a5   :  { %v1562_v41 = vpop.f32.mrf.mxu2  ;;  %v1603_v46 = vpop.f32.mrf.mxu3 }
 0x3a6   :  { %v1620_v6 = vadd.f32 %v1562_v41, %v1458_v62  ;;  %v1621_v21 = vadd.f32 %v1603_v46, %v1499_v24 }
 0x3a8   :  { %v1636_v18 = vmax.f32 %v1620_v6, 0.0  ;;  %v1637_v42 = vmax.f32 %v1621_v21, 0.0 }
 0x3aa   :  { %1675 = vst [vmem:[%s2895_s3 + $0xf0] sm:$0xf] %v1636_v18 }
 0x3ab   :  { %1676 = vst [vmem:[%s2895_s3 + $0xf8] sm:$0xf] %v1637_v42 }
 0x3ac   :  { %1659 = vsyncpa [#allocation3], 1 }
 0x3ad   :  { %1660 = vsyncpa [#allocation5], 1 }

// kernel: baseline_net_forward.3
= control target key start
LH: loop header
LB: loop body
LE: loop exit
PB: predicated region body
PF: predicated region fallthrough
CT: control target
= control target key end

     0   :  { %s10043_s0 = inlined_call_operand.vmem [shape: f32[2,15360], index: 0, kind: input, shape index: {}]   ;;  %s10044_s1 = inlined_call_operand.hbm [shape: f32[15360,1024], index: 1, kind: input, shape index: {}]   ;;  %s10045_s2 = inlined_call_operand.hbm [shape: f32[1,1024], index: 2, kind: input, shape index: {}]   ;;  %s10046_s3 = inlined_call_operand.vmem [shape: f32[1024,4], index: 3, kind: input, shape index: {}]   ;;  %s10047_s4 = inlined_call_operand.vmem [shape: f32[2,2,4], index: 4, kind: output, shape index: {}]  }
   0x1   :  { %10050 = sst [smem:[#allocation37_spill]] %s10044_s1 }
   0x2   :  { %10051 = sst [smem:[#allocation38_spill]] %s10047_s4 }
   0x3   :  { %9 = vsyncpa [#allocation4], 0 }
   0x4   :  { %11 = vsyncpa [#allocation4 + $0x1], 0 }
   0x5   :  { %12 = vsyncpa [#allocation6], 0 }
   0x6   :  { %14 = vsyncpa [#allocation6 + $0x1], 0  ;;  %s6851_s15 = smov 0   ;;  %s6853_s16 = smov 0  }
   0x7   :  { %s6855_s17 = smov 0   ;;  %s6857_s18 = smov 0  }
   0x8   :  { %s6859_s19 = smov 0   ;;  %s6861_s20 = smov 0  }
   0x9   :  { %s6863_s21 = smov 0   ;;  %s6865_s22 = smov 0  }
   0xa   :  { %s6867_s23 = smov 0   ;;  %s6869_s24 = smov 0  }
   0xb   :  { %s6871_s25 = smov 0  }
   0xc LB: > { %s29_s26 = sadd.s32 1, %s6812_s23  ;;  %s32_s27 = sadd.s32 1, %s6816_s24  ;;  %s6820_s25 = sphi %s6871_s25, %s20_s25   ;;  %s6816_s24 = sphi %s6869_s24, %s10124_s24   ;;  %s6812_s23 = sphi %s6867_s23, %s10123_s23   ;;  %s6808_s22 = sphi %s6865_s22, %s10122_s22   ;;  %s6804_s21 = sphi %s6863_s21, %s10121_s21   ;;  %s6800_s20 = sphi %s6861_s20, %s10120_s20   ;;  %s6796_s19 = sphi %s6859_s19, %s10119_s19   ;;  %s6792_s18 = sphi %s6857_s18, %s10118_s18   ;;  %s6788_s17 = sphi %s6855_s17, %s10117_s17   ;;  %s6784_s16 = sphi %s6853_s16, %s10116_s16   ;;  %s6780_s15 = sphi %s6851_s15, %s10115_s15  }
   0xd   : > { %p30_p0 = scmp.ge.s32.totalorder %s29_s26, 3  ;;  %p74_p1 = scmp.ne.s32.totalorder %s6800_s20, %s6796_s19 }
   0xe   : > { %p75_p2 = scmp.eq.s32.totalorder %s6820_s25, 0  ;;  %p6549_p4 = scmp.lt.s32.totalorder %s6820_s25, 6 }
   0xf   : > { %s10126_s26 = smov (%p30_p0, %s29_s26), 0  ;;  %s10128_s27 = smov (!%p30_p0, %s32_s27), %s6816_s24 }
  0x10   : > { %10052 = sst [smem:[#allocation9_spill]] %s10126_s26  ;;  %p76_p3 = por %p75_p2, %p74_p1 }
  0x11   : > { %s191_s29 = sand.u32 1, %s6800_s20   ;;  %s6520_s30 = sshll.u32 %s6816_s24, 2 }
  0x12   : > { %s6536_s5 = smul.u32 20480, %s191_s29  ;;  %p6543_p5 = pnand %p6549_p4, %p76_p3 }
  0x13   : > { %s6535_s6 = smul.u32 5120, %s6812_s23  ;;  %s10053_s1 = sld [smem:[#allocation37_spill]] }
  0x14   : > { %s195_s8 = scalar_lea.vmem [#allocation3], %s6536_s5  ;;  %s192_s28 = scalar_lea.sflag [#allocation4], %s191_s29 }
  0x15   : > { %s201_s7 = sadd.s32 %s6535_s6, %s6520_s30  ;;  %s206_s9 = sshll.u32 %s195_s8, 4  ;;  %s207_s9 = int_to_ptr.vmem [resolvable:$true] %s206_s9 }
  0x16   : > { %s6522_s10 = sshll.u32 %s201_s7, 3  ;;  %s6822_s4 = smov 1024  }
  0x17   : > { %s6823_s5 = smov 512   ;;  %s6824_s6 = smov 32  }
  0x18   : > { %p6525_p6 = scmp.ge.s32.totalorder %s6820_s25, 1  ;;  %p242_p7 = scmp.lt.s32.totalorder %s6820_s25, 7 }
  0x19   : > { %s203_s13 = scalar_lea.hbm %s10053_s1, %s6522_s10  ;;  %s62_s7 = ssub.s32 %s6812_s23, %s10126_s26 }
  0x1a   : > { %s204_s14 = sshll.u32 %s203_s13, 4  ;;  %p6934_p8 = pnand %p6525_p6, %p242_p7  ;;  %s205_s14 = int_to_ptr.hbm [resolvable:$true] %s204_s14 }
  0x1b   : > { %6545 = dma.hbm_to_vmem [thread:$0]  (!%p6543_p5), %s205_s14, 327680, %s207_s9, %s192_s28, %s6822_s4, %s6823_s5, %s6824_s6  }
  0x1c   : > { %s6516_s29 = sadd.s32 4294967295, %s6820_s25   ;;  %p34_p9 = scmp.ge.s32.totalorder %s10128_s27, 2 }
  0x1d   : > { %p80_p10 = scmp.ne.s32.totalorder %s6796_s19, %s6792_s18  ;;  %p81_p11 = scmp.eq.s32.totalorder %s6516_s29, 0 }
  0x1e   : > { %s10130_s27 = smov (%p34_p9, %s10128_s27), 0  ;;  %s93_s28 = sadd.s32 1, %s6788_s17 }
  0x1f   : > { %10055 = sst [smem:[#allocation10_spill]] %s10130_s27  ;;  %p6945_p12 = por %p81_p11, %p80_p10 }
  0x20   : > { %s63_s9 = ssub.s32 %s6816_s24, %s10130_s27  ;;  %p106_p13 = scmp.ne.s32.totalorder %s6784_s16, %s6780_s15 }
  0x21   : > { %s64_s10 = sor.u32 %s63_s9, %s62_s7  ;;  %p91_p0 = scmp.eq.s32.totalorder %s63_s9, 0 }
  0x22   : > { %p65_p1 = scmp.eq.s32.totalorder %s64_s10, 0  ;;  %p100_p3 = scmp.ne.s32.totalorder %s6788_s17, %s6784_s16 }
  0x23   : > { %s6957_s11 = scalar_select %p91_p0, %s6788_s17, %s93_s28  }
  0x24   : > { %s10057_s18 = sadd.s32 1, %s6800_s20  ;;  %p6964_p5 = por %p106_p13, %p81_p11 }
  0x25   : > { %s6962_s12 = scalar_select %p65_p1, %s6800_s20, %s10057_s18  }
  0x26   : > { %s216_s14 = sand.u32 1, %s6788_s17   ;;  %p102_p6 = por %p100_p3, %p75_p2 }
  0x27   : > { %s6523_s5 = sshll.u32 %s216_s14, 2  ;;  %s224_s7 = scalar_lea.hbm %s10045_s2, %s6520_s30 }
  0x28   : > { %s226_s29 = sshll.u32 %s224_s7, 4  ;;  %s220_s9 = scalar_lea.vmem [#allocation5], %s6523_s5  ;;  %s227_s29 = int_to_ptr.hbm [resolvable:$true] %s226_s29 }
  0x29   : > { %s228_s28 = sshll.u32 %s220_s9, 4  ;;  %p6546_p7 = pnand %p6549_p4, %p102_p6  ;;  %s229_s28 = int_to_ptr.vmem [resolvable:$true] %s228_s28 }
  0x2a   : > { %s217_s10 = scalar_lea.sflag [#allocation6], %s216_s14  ;;  %246 = sbr.rel (%p6934_p8) target bundleno = 2908 (0xb5c), region = 36 }
  0x2b   : > { %6548 = dma.hbm_to_vmem [thread:$0]  (!%p6546_p7), %s227_s29, 64, %s229_s28, %s217_s10  }
  0x2f   : > { %s248_s18 = sand.u32 1, %s6796_s19  }
  0x30   : > { %s6537_s1 = smul.u32 20480, %s248_s18  ;;  %s249_s27 = scalar_lea.sflag [#allocation4], %s248_s18 }
  0x32   : > { %s6981_s26 = scalar_lea.vmem [#allocation3], %s6537_s1 }
  0x33   : > { %6771 = dma.done.wait (%p6945_p12), %s249_s27, 327680  }
  0x34   : > { %6773 = vsyncadd (%p6945_p12), %s249_s27, 4294639616  ;;  %s258_s30 = sand.u32 1, %s6784_s16  }
  0x35   : > { %s6988_s14 = sshll.u32 %s258_s30, 2  ;;  %s259_s8 = scalar_lea.sflag [#allocation6], %s258_s30 }
  0x36   : > { %6775 = dma.done.wait (%p6964_p5), %s259_s8, 64  }
  0x37   : > { %6777 = vsyncadd (%p6964_p5), %s259_s8, 4294967232  ;;  %s302_s1 = smul.u32 40, %s6804_s21  ;;  %s6528_s4 = sshll.u32 %s6808_s22, 6 }
  0x38   : > { %p312_p2 = scmp.lt.s32.totalorder %s6528_s4, 127  ;;  %p317_p8 = scmp.lt.s32.totalorder %s6808_s22, 1 }
  0x39   : > { %p303_p4 = scmp.lt.s32.totalorder %s302_s1, 119  ;;  %s10059_s8 = sld [smem:[#allocation38_spill]] }
  0x3a   : > { %s10132_s4 = smov (!%p312_p2, %s6528_s4), 127  ;;  %s10136_s22 = smov (!%p317_p8, %s6808_s22), 1 }
  0x3b   : > { %s10134_s1 = smov (!%p303_p4, %s302_s1), 119  ;;  %s6529_s27 = sshll.u32 %s10132_s4, 3 }
  0x3c   : > { %s6527_s15 = sshll.u32 %s10134_s1, 1  ;;  %s7001_s29 = scalar_lea.vmem %s10046_s3, %s6529_s27 }
  0x3d   : > { %s7006_s28 = scalar_lea.vmem %s10043_s0, %s6527_s15  ;;  %s6530_s10 = sshll.u32 %s10136_s22, 1 }
  0x3e   : > { %p6531_p9 = scmp.ne.s32.totalorder %s6804_s21, 0 }
  0x3f   : > { %s7012_s5 = scalar_lea.vmem %s10059_s8, %s6530_s10 }
  0x40   : > { %324 = sbr.rel (%p6531_p9) target bundleno = 71 (0x47), region = 48 }
  0x45   : > { %v6825_v0 = vmov 0.0  }
  0x46   : > { %325 = vst [vmem:[#allocation2] sm:$0xff] %v6825_v0 }
  0x47 PF: > { %v397_v1 = vld [vmem:[%s6981_s26 + $0x1e0] sm:$0xff]  ;;  %vm6205_vm0 = vcmask 1041408   ;;  %vm6207_vm1 = vcmask 1045508   ;;  %vm6209_vm2 = vcmask 1043456   ;;  %p6532_p10 = scmp.ne.s32.totalorder %s6804_s21, 2 }
  0x48   : > { %v525_v2 = vld [vmem:[%s6981_s26 + $0x5e0] sm:$0xff]  ;;  %2998 = vmatpush.msra.mxu0 %v397_v1  ;;  %s10112_s21 = scalar_lea.vmem (!%p6532_p10), [#allocation5], %s6988_s14 }
  0x49   : > { %v393_v3 = vld [vmem:[%s6981_s26 + $0x1c0] sm:$0xff]  ;;  %3038 = vmatpush.msra.mxu2 %v525_v2 }
  0x4a   : > { %v461_v4 = vld [vmem:[%s6981_s26 + $0x3e0] sm:$0xff]  ;;  %2999 = vmatpush.msra.mxu0 %v393_v3 }
  0x4b   : > { %v521_v5 = vld [vmem:[%s6981_s26 + $0x5c0] sm:$0xff]  ;;  %3018 = vmatpush.msra.mxu1 %v461_v4 }
  0x4c   : > { %v589_v6 = vld [vmem:[%s6981_s26 + $0x7e0] sm:$0xff]  ;;  %3039 = vmatpush.msra.mxu2 %v521_v5 }
  0x4d   : > { %3058 = vmatpush.msra.mxu3 %v589_v6  ;;  %v389_v7 = vld [vmem:[%s6981_s26 + $0x1a0] sm:$0xff] }
  0x4e   : > { %v457_v8 = vld [vmem:[%s6981_s26 + $0x3c0] sm:$0xff]  ;;  %3000 = vmatpush.msra.mxu0 %v389_v7 }
  0x4f   : > { %v517_v9 = vld [vmem:[%s6981_s26 + $0x5a0] sm:$0xff]  ;;  %3019 = vmatpush.msra.mxu1 %v457_v8 }
  0x50   : > { %v585_v10 = vld [vmem:[%s6981_s26 + $0x7c0] sm:$0xff]  ;;  %3040 = vmatpush.msra.mxu2 %v517_v9 }
  0x51   : > { %v453_v11 = vld [vmem:[%s6981_s26 + $0x3a0] sm:$0xff]  ;;  %3059 = vmatpush.msra.mxu3 %v585_v10 }
  0x52   : > { %v385_v12 = vld [vmem:[%s6981_s26 + $0x180] sm:$0xff]  ;;  %3020 = vmatpush.msra.mxu1 %v453_v11 }
  0x53   : > { %v513_v13 = vld [vmem:[%s6981_s26 + $0x580] sm:$0xff]  ;;  %3001 = vmatpush.msra.mxu0 %v385_v12 }
  0x54   : > { %v581_v14 = vld [vmem:[%s6981_s26 + $0x7a0] sm:$0xff]  ;;  %3041 = vmatpush.msra.mxu2 %v513_v13 }
  0x55   : > { %v449_v15 = vld [vmem:[%s6981_s26 + $0x380] sm:$0xff]  ;;  %3060 = vmatpush.msra.mxu3 %v581_v14 }
  0x56   : > { %v577_v16 = vld [vmem:[%s6981_s26 + $0x780] sm:$0xff]  ;;  %3021 = vmatpush.msra.mxu1 %v449_v15 }
  0x57   : > { %v381_v17 = vld [vmem:[%s6981_s26 + $0x160] sm:$0xff]  ;;  %3061 = vmatpush.msra.mxu3 %v577_v16 }
  0x58   : > { %v509_v18 = vld [vmem:[%s6981_s26 + $0x560] sm:$0xff]  ;;  %3002 = vmatpush.msra.mxu0 %v381_v17 }
  0x59   : > { %v445_v19 = vld [vmem:[%s6981_s26 + $0x360] sm:$0xff]  ;;  %3042 = vmatpush.msra.mxu2 %v509_v18 }
  0x5a   : > { %v573_v20 = vld [vmem:[%s6981_s26 + $0x760] sm:$0xff]  ;;  %3022 = vmatpush.msra.mxu1 %v445_v19 }
  0x5b   : > { %v377_v21 = vld [vmem:[%s6981_s26 + $0x140] sm:$0xff]  ;;  %3062 = vmatpush.msra.mxu3 %v573_v20 }
  0x5c   : > { %v505_v22 = vld [vmem:[%s6981_s26 + $0x540] sm:$0xff]  ;;  %3003 = vmatpush.msra.mxu0 %v377_v21 }
  0x5d   : > { %v441_v23 = vld [vmem:[%s6981_s26 + $0x340] sm:$0xff]  ;;  %3043 = vmatpush.msra.mxu2 %v505_v22 }
  0x5e   : > { %v569_v24 = vld [vmem:[%s6981_s26 + $0x740] sm:$0xff]  ;;  %3023 = vmatpush.msra.mxu1 %v441_v23  ;;  %v327_v23 = vld [vmem:[%s7006_s28] sm:$0xff] }
  0x5f   : > { %v373_v25 = vld [vmem:[%s6981_s26 + $0x120] sm:$0xff]  ;;  %3063 = vmatpush.msra.mxu3 %v569_v24  ;;  %2907 = vst [vmem:[#allocation1] ss:$4 sm:$0xff] %v327_v23 }
  0x60   : > { %v501_v26 = vld [vmem:[%s6981_s26 + $0x520] sm:$0xff]  ;;  %3004 = vmatpush.msra.mxu0 %v373_v25 }
  0x61   : > { %v437_v27 = vld [vmem:[%s6981_s26 + $0x320] sm:$0xff]  ;;  %3044 = vmatpush.msra.mxu2 %v501_v26 }
  0x62   : > { %v565_v28 = vld [vmem:[%s6981_s26 + $0x720] sm:$0xff]  ;;  %3024 = vmatpush.msra.mxu1 %v437_v27 }
  0x63   : > { %v369_v29 = vld [vmem:[%s6981_s26 + $0x100] sm:$0xff]  ;;  %3064 = vmatpush.msra.mxu3 %v565_v28 }
  0x64   : > { %v497_v30 = vld [vmem:[%s6981_s26 + $0x500] sm:$0xff]  ;;  %3005 = vmatpush.msra.mxu0 %v369_v29 }
  0x65   : > { %v433_v31 = vld [vmem:[%s6981_s26 + $0x300] sm:$0xff]  ;;  %3045 = vmatpush.msra.mxu2 %v497_v30 }
  0x66   : > { %v561_v32 = vld [vmem:[%s6981_s26 + $0x700] sm:$0xff]  ;;  %3025 = vmatpush.msra.mxu1 %v433_v31 }
  0x67   : > { %v365_v33 = vld [vmem:[%s6981_s26 + $0xe0] sm:$0xff]  ;;  %3065 = vmatpush.msra.mxu3 %v561_v32 }
  0x68   : > { %v493_v34 = vld [vmem:[%s6981_s26 + $0x4e0] sm:$0xff]  ;;  %3006 = vmatpush.msra.mxu0 %v365_v33 }
  0x69   : > { %v429_v35 = vld [vmem:[%s6981_s26 + $0x2e0] sm:$0xff]  ;;  %3046 = vmatpush.msra.mxu2 %v493_v34 }
  0x6a   : > { %v557_v36 = vld [vmem:[%s6981_s26 + $0x6e0] sm:$0xff]  ;;  %3026 = vmatpush.msra.mxu1 %v429_v35 }
  0x6b   : > { %v361_v37 = vld [vmem:[%s6981_s26 + $0xc0] sm:$0xff]  ;;  %3066 = vmatpush.msra.mxu3 %v557_v36 }
  0x6c   : > { %v489_v38 = vld [vmem:[%s6981_s26 + $0x4c0] sm:$0xff]  ;;  %3007 = vmatpush.msra.mxu0 %v361_v37 }
  0x6d   : > { %v425_v39 = vld [vmem:[%s6981_s26 + $0x2c0] sm:$0xff]  ;;  %3047 = vmatpush.msra.mxu2 %v489_v38 }
  0x6e   : > { %v553_v40 = vld [vmem:[%s6981_s26 + $0x6c0] sm:$0xff]  ;;  %3027 = vmatpush.msra.mxu1 %v425_v39 }
  0x6f   : > { %v357_v41 = vld [vmem:[%s6981_s26 + $0xa0] sm:$0xff]  ;;  %3067 = vmatpush.msra.mxu3 %v553_v40  ;;  %v328_v40 = vld [vmem:[%s7006_s28 + $0x8] sm:$0xff] }
  0x70   : > { %v485_v42 = vld [vmem:[%s6981_s26 + $0x4a0] sm:$0xff]  ;;  %3008 = vmatpush.msra.mxu0 %v357_v41  ;;  %2909 = vst [vmem:[#allocation1 + $0x20] ss:$4 sm:$0xff] %v328_v40 }
  0x71   : > { %v421_v43 = vld [vmem:[%s6981_s26 + $0x2a0] sm:$0xff]  ;;  %3048 = vmatpush.msra.mxu2 %v485_v42 }
  0x72   : > { %v549_v44 = vld [vmem:[%s6981_s26 + $0x6a0] sm:$0xff]  ;;  %3028 = vmatpush.msra.mxu1 %v421_v43 }
  0x73   : > { %v353_v45 = vld [vmem:[%s6981_s26 + $0x80] sm:$0xff]  ;;  %3068 = vmatpush.msra.mxu3 %v549_v44 }
  0x74   : > { %v481_v46 = vld [vmem:[%s6981_s26 + $0x480] sm:$0xff]  ;;  %3009 = vmatpush.msra.mxu0 %v353_v45 }
  0x75   : > { %v417_v47 = vld [vmem:[%s6981_s26 + $0x280] sm:$0xff]  ;;  %3049 = vmatpush.msra.mxu2 %v481_v46  ;;  %v7125_v46 = vld.sshfl [vmem:[#allocation1] sm:$0xff pattern:$0x73625140] }
  0x76   : > { %v545_v48 = vld [vmem:[%s6981_s26 + $0x680] sm:$0xff]  ;;  %3029 = vmatpush.msra.mxu1 %v417_v47  ;;  %v7127_v47 = vld.sshfl [vmem:[#allocation1 + $0x18] sm:$0xff pattern:$0x73625140] }
  0x77   : > { %v349_v49 = vld [vmem:[%s6981_s26 + $0x60] sm:$0xff]  ;;  %3069 = vmatpush.msra.mxu3 %v545_v48  ;;  %v7129_v48 = vld.sshfl [vmem:[#allocation1 + $0x8] sm:$0xff pattern:$0x73625140] }
  0x78   : > { %v477_v50 = vld [vmem:[%s6981_s26 + $0x460] sm:$0xff]  ;;  %3010 = vmatpush.msra.mxu0 %v349_v49 }
  0x79   : > { %v413_v51 = vld [vmem:[%s6981_s26 + $0x260] sm:$0xff]  ;;  %3050 = vmatpush.msra.mxu2 %v477_v50 }
  0x7a   : > { %v541_v52 = vld [vmem:[%s6981_s26 + $0x660] sm:$0xff]  ;;  %3030 = vmatpush.msra.mxu1 %v413_v51 }
  0x7b   : > { %v345_v53 = vld [vmem:[%s6981_s26 + $0x40] sm:$0xff]  ;;  %3070 = vmatpush.msra.mxu3 %v541_v52 }
  0x7c   : > { %v473_v54 = vld [vmem:[%s6981_s26 + $0x440] sm:$0xff]  ;;  %3011 = vmatpush.msra.mxu0 %v345_v53 }
  0x7d   : > { %v409_v55 = vld [vmem:[%s6981_s26 + $0x240] sm:$0xff]  ;;  %3051 = vmatpush.msra.mxu2 %v473_v54 }
  0x7e   : > { %v537_v56 = vld [vmem:[%s6981_s26 + $0x640] sm:$0xff]  ;;  %3031 = vmatpush.msra.mxu1 %v409_v55 }
  0x7f   : > { %v341_v57 = vld [vmem:[%s6981_s26 + $0x20] sm:$0xff]  ;;  %3071 = vmatpush.msra.mxu3 %v537_v56 }
  0x80   : > { %v469_v58 = vld [vmem:[%s6981_s26 + $0x420] sm:$0xff]  ;;  %3012 = vmatpush.msra.mxu0 %v341_v57 }
  0x81   : > { %v405_v59 = vld [vmem:[%s6981_s26 + $0x220] sm:$0xff]  ;;  %3052 = vmatpush.msra.mxu2 %v469_v58 }
  0x82   : > { %v533_v60 = vld [vmem:[%s6981_s26 + $0x620] sm:$0xff]  ;;  %3032 = vmatpush.msra.mxu1 %v405_v59 }
  0x83   : > { %v337_v61 = vld [vmem:[%s6981_s26] sm:$0xff]  ;;  %3072 = vmatpush.msra.mxu3 %v533_v60  ;;  %v330_v60 = vld [vmem:[%s7006_s28 + $0x18] sm:$0xff] }
  0x84   : > { %v465_v62 = vld [vmem:[%s6981_s26 + $0x400] sm:$0xff]  ;;  %3013 = vmatpush.msra.mxu0 %v337_v61 }
  0x85   : > { %v653_v63 = vld [vmem:[%s6981_s26 + $0x9e0] sm:$0xff]  ;;  %3053 = vmatpush.msra.mxu2 %v465_v62  ;;  %v7145_v62 = vld.sshfl [vmem:[#allocation1 + $0x20] sm:$0xff pattern:$0x73625140]  ;;  %3014 = vmatmul.f32.vlgmr.msra.gmra.mxu0 %v7125_v46 }
  0x86   : > { %v781_v0 = vld [vmem:[%s6981_s26 + $0xde0] sm:$0xff]  ;;  %3078 = vmatpush.msrb.mxu0 %v653_v63  ;;  %v7147_v63 = vld.sshfl [vmem:[#allocation1 + $0x38] sm:$0xff pattern:$0x73625140] }
  0x87   : > { %v401_v1 = vld [vmem:[%s6981_s26 + $0x200] sm:$0xff]  ;;  %3118 = vmatpush.msrb.mxu2 %v781_v0  ;;  %v7149_v0 = vld.sshfl [vmem:[#allocation1 + $0x28] sm:$0xff pattern:$0x73625140] }
  0x88   : > { %v529_v2 = vld [vmem:[%s6981_s26 + $0x600] sm:$0xff]  ;;  %3033 = vmatpush.msra.mxu1 %v401_v1 }
  0x89   : > { %v649_v3 = vld [vmem:[%s6981_s26 + $0x9c0] sm:$0xff]  ;;  %3073 = vmatpush.msra.mxu3 %v529_v2  ;;  %3034 = vmatmul.f32.vlgmr.msra.gmra.mxu1 %v7129_v48 }
  0x8a   : > { %v717_v4 = vld [vmem:[%s6981_s26 + $0xbe0] sm:$0xff]  ;;  %3079 = vmatpush.msrb.mxu0 %v649_v3  ;;  %3074 = vmatmul.f32.vlgmr.msra.gmra.mxu3 %v7127_v47 }
  0x8b   : > { %v777_v5 = vld [vmem:[%s6981_s26 + $0xdc0] sm:$0xff]  ;;  %3098 = vmatpush.msrb.mxu1 %v717_v4 }
  0x8c   : > { %v845_v6 = vld [vmem:[%s6981_s26 + $0xfe0] sm:$0xff]  ;;  %3119 = vmatpush.msrb.mxu2 %v777_v5 }
  0x8d   : > { %v645_v7 = vld [vmem:[%s6981_s26 + $0x9a0] sm:$0xff]  ;;  %3138 = vmatpush.msrb.mxu3 %v845_v6 }
  0x8e   : > { %v713_v8 = vld [vmem:[%s6981_s26 + $0xbc0] sm:$0xff]  ;;  %3080 = vmatpush.msrb.mxu0 %v645_v7 }
  0x8f   : > { %v773_v9 = vld [vmem:[%s6981_s26 + $0xda0] sm:$0xff]  ;;  %3099 = vmatpush.msrb.mxu1 %v713_v8 }
  0x90   : > { %v841_v10 = vld [vmem:[%s6981_s26 + $0xfc0] sm:$0xff]  ;;  %3120 = vmatpush.msrb.mxu2 %v773_v9 }
  0x91   : > { %v641_v11 = vld [vmem:[%s6981_s26 + $0x980] sm:$0xff]  ;;  %3139 = vmatpush.msrb.mxu3 %v841_v10 }
  0x92   : > { %v709_v12 = vld [vmem:[%s6981_s26 + $0xba0] sm:$0xff]  ;;  %3081 = vmatpush.msrb.mxu0 %v641_v11 }
  0x93   : > { %v769_v13 = vld [vmem:[%s6981_s26 + $0xd80] sm:$0xff]  ;;  %3100 = vmatpush.msrb.mxu1 %v709_v12 }
  0x94   : > { %v837_v14 = vld [vmem:[%s6981_s26 + $0xfa0] sm:$0xff]  ;;  %3121 = vmatpush.msrb.mxu2 %v769_v13 }
  0x95   : > { %v637_v15 = vld [vmem:[%s6981_s26 + $0x960] sm:$0xff]  ;;  %3140 = vmatpush.msrb.mxu3 %v837_v14 }
  0x96   : > { %v705_v16 = vld [vmem:[%s6981_s26 + $0xb80] sm:$0xff]  ;;  %3082 = vmatpush.msrb.mxu0 %v637_v15 }
  0x97   : > { %v765_v17 = vld [vmem:[%s6981_s26 + $0xd60] sm:$0xff]  ;;  %3101 = vmatpush.msrb.mxu1 %v705_v16 }
  0x98   : > { %v833_v18 = vld [vmem:[%s6981_s26 + $0xf80] sm:$0xff]  ;;  %3122 = vmatpush.msrb.mxu2 %v765_v17 }
  0x99   : > { %v633_v19 = vld [vmem:[%s6981_s26 + $0x940] sm:$0xff]  ;;  %3141 = vmatpush.msrb.mxu3 %v833_v18 }
  0x9a   : > { %v701_v20 = vld [vmem:[%s6981_s26 + $0xb60] sm:$0xff]  ;;  %3083 = vmatpush.msrb.mxu0 %v633_v19 }
  0x9b   : > { %v761_v21 = vld [vmem:[%s6981_s26 + $0xd40] sm:$0xff]  ;;  %3102 = vmatpush.msrb.mxu1 %v701_v20 }
  0x9c   : > { %v829_v22 = vld [vmem:[%s6981_s26 + $0xf60] sm:$0xff]  ;;  %3123 = vmatpush.msrb.mxu2 %v761_v21 }
  0x9d   : > { %v629_v24 = vld [vmem:[%s6981_s26 + $0x920] sm:$0xff]  ;;  %3142 = vmatpush.msrb.mxu3 %v829_v22 }
  0x9e   : > { %v697_v25 = vld [vmem:[%s6981_s26 + $0xb40] sm:$0xff]  ;;  %3084 = vmatpush.msrb.mxu0 %v629_v24 }
  0x9f   : > { %v757_v26 = vld [vmem:[%s6981_s26 + $0xd20] sm:$0xff]  ;;  %3103 = vmatpush.msrb.mxu1 %v697_v25 }
  0xa0   : > { %v825_v27 = vld [vmem:[%s6981_s26 + $0xf40] sm:$0xff]  ;;  %3124 = vmatpush.msrb.mxu2 %v757_v26 }
  0xa1   : > { %v625_v28 = vld [vmem:[%s6981_s26 + $0x900] sm:$0xff]  ;;  %3143 = vmatpush.msrb.mxu3 %v825_v27 }
  0xa2   : > { %v693_v29 = vld [vmem:[%s6981_s26 + $0xb20] sm:$0xff]  ;;  %3085 = vmatpush.msrb.mxu0 %v625_v28 }
  0xa3   : > { %v753_v30 = vld [vmem:[%s6981_s26 + $0xd00] sm:$0xff]  ;;  %3104 = vmatpush.msrb.mxu1 %v693_v29 }
  0xa4   : > { %v821_v31 = vld [vmem:[%s6981_s26 + $0xf20] sm:$0xff]  ;;  %3125 = vmatpush.msrb.mxu2 %v753_v30  ;;  %v331_v30 = vld [vmem:[%s7006_s28 + $0x20] sm:$0xff] }
  0xa5   : > { %v621_v32 = vld [vmem:[%s6981_s26 + $0x8e0] sm:$0xff]  ;;  %3144 = vmatpush.msrb.mxu3 %v821_v31 }
  0xa6   : > { %v689_v33 = vld [vmem:[%s6981_s26 + $0xb00] sm:$0xff]  ;;  %3086 = vmatpush.msrb.mxu0 %v621_v32 }
  0xa7   : > { %v749_v34 = vld [vmem:[%s6981_s26 + $0xce0] sm:$0xff]  ;;  %3105 = vmatpush.msrb.mxu1 %v689_v33 }
  0xa8   : > { %v817_v35 = vld [vmem:[%s6981_s26 + $0xf00] sm:$0xff]  ;;  %3126 = vmatpush.msrb.mxu2 %v749_v34 }
  0xa9   : > { %v617_v36 = vld [vmem:[%s6981_s26 + $0x8c0] sm:$0xff]  ;;  %3145 = vmatpush.msrb.mxu3 %v817_v35 }
  0xaa   : > { %v685_v37 = vld [vmem:[%s6981_s26 + $0xae0] sm:$0xff]  ;;  %3087 = vmatpush.msrb.mxu0 %v617_v36 }
  0xab   : > { %v745_v38 = vld [vmem:[%s6981_s26 + $0xcc0] sm:$0xff]  ;;  %3106 = vmatpush.msrb.mxu1 %v685_v37 }
  0xac   : > { %v813_v39 = vld [vmem:[%s6981_s26 + $0xee0] sm:$0xff]  ;;  %3127 = vmatpush.msrb.mxu2 %v745_v38 }
  0xad   : > { %v613_v41 = vld [vmem:[%s6981_s26 + $0x8a0] sm:$0xff]  ;;  %3146 = vmatpush.msrb.mxu3 %v813_v39 }
  0xae   : > { %v681_v42 = vld [vmem:[%s6981_s26 + $0xac0] sm:$0xff]  ;;  %3088 = vmatpush.msrb.mxu0 %v613_v41 }
  0xaf   : > { %v329_v43 = vld [vmem:[%s7006_s28 + $0x10] sm:$0xff]  ;;  %3107 = vmatpush.msrb.mxu1 %v681_v42 }
  0xb0   : > { %v741_v44 = vld [vmem:[%s6981_s26 + $0xca0] sm:$0xff] }
  0xb1   : > { %v7123_v45 = vld.sshfl [vmem:[#allocation1 + $0x10] sm:$0xff pattern:$0x73625140]  ;;  %3128 = vmatpush.msrb.mxu2 %v741_v44 }
  0xb2   : > { %v809_v49 = vld [vmem:[%s6981_s26 + $0xec0] sm:$0xff]  ;;  %2918 = vst [vmem:[#allocation1] ss:$4 sm:$0xff] %v329_v43  ;;  %3054 = vmatmul.f32.vlgmr.msra.gmra.mxu2 %v7123_v45 }
  0xb3   : > { %v609_v50 = vld [vmem:[%s6981_s26 + $0x880] sm:$0xff]  ;;  %3147 = vmatpush.msrb.mxu3 %v809_v49 }
  0xb4   : > { %v677_v51 = vld [vmem:[%s6981_s26 + $0xaa0] sm:$0xff]  ;;  %3089 = vmatpush.msrb.mxu0 %v609_v50 }
  0xb5   : > { %v737_v52 = vld [vmem:[%s6981_s26 + $0xc80] sm:$0xff]  ;;  %3108 = vmatpush.msrb.mxu1 %v677_v51 }
  0xb6   : > { %v805_v53 = vld [vmem:[%s6981_s26 + $0xea0] sm:$0xff]  ;;  %3129 = vmatpush.msrb.mxu2 %v737_v52 }
  0xb7   : > { %v605_v54 = vld [vmem:[%s6981_s26 + $0x860] sm:$0xff]  ;;  %3148 = vmatpush.msrb.mxu3 %v805_v53 }
  0xb8   : > { %v673_v55 = vld [vmem:[%s6981_s26 + $0xa80] sm:$0xff]  ;;  %3090 = vmatpush.msrb.mxu0 %v605_v54 }
  0xb9   : > { %v733_v56 = vld [vmem:[%s6981_s26 + $0xc60] sm:$0xff]  ;;  %3109 = vmatpush.msrb.mxu1 %v673_v55  ;;  %v7180_v26 = vld.sshfl [vmem:[#allocation1] sm:$0xff pattern:$0x73625140] }
  0xba   : > { %v801_v57 = vld [vmem:[%s6981_s26 + $0xe80] sm:$0xff]  ;;  %3130 = vmatpush.msrb.mxu2 %v733_v56  ;;  %v7184_v28 = vld.sshfl [vmem:[#allocation1 + $0x8] sm:$0xff pattern:$0x73625140] }
  0xbb   : > { %v601_v58 = vld [vmem:[%s6981_s26 + $0x840] sm:$0xff]  ;;  %3149 = vmatpush.msrb.mxu3 %v801_v57  ;;  %v7188_v31 = vld.sshfl [vmem:[#allocation1 + $0x18] sm:$0xff pattern:$0x73625140] }
  0xbc   : > { %v669_v59 = vld [vmem:[%s6981_s26 + $0xa60] sm:$0xff]  ;;  %3091 = vmatpush.msrb.mxu0 %v601_v58 }
  0xbd   : > { %v7143_v61 = vld.sshfl [vmem:[#allocation1 + $0x30] sm:$0xff pattern:$0x73625140]  ;;  %3110 = vmatpush.msrb.mxu1 %v669_v59 }
  0xbe   : > { %v729_v1 = vld [vmem:[%s6981_s26 + $0xc40] sm:$0xff]  ;;  %2919 = vst [vmem:[#allocation1 + $0x20] ss:$4 sm:$0xff] %v330_v60 }
  0xbf   : > { %v797_v2 = vld [vmem:[%s6981_s26 + $0xe60] sm:$0xff]  ;;  %3131 = vmatpush.msrb.mxu2 %v729_v1 }
  0xc0   : > { %v597_v3 = vld [vmem:[%s6981_s26 + $0x820] sm:$0xff]  ;;  %3150 = vmatpush.msrb.mxu3 %v797_v2 }
  0xc1   : > { %v665_v4 = vld [vmem:[%s6981_s26 + $0xa40] sm:$0xff]  ;;  %3092 = vmatpush.msrb.mxu0 %v597_v3 }
  0xc2   : > { %v725_v5 = vld [vmem:[%s6981_s26 + $0xc20] sm:$0xff]  ;;  %3111 = vmatpush.msrb.mxu1 %v665_v4 }
  0xc3   : > { %v793_v6 = vld [vmem:[%s6981_s26 + $0xe40] sm:$0xff]  ;;  %3132 = vmatpush.msrb.mxu2 %v725_v5 }
  0xc4   : > { %v593_v7 = vld [vmem:[%s6981_s26 + $0x800] sm:$0xff]  ;;  %3151 = vmatpush.msrb.mxu3 %v793_v6 }
  0xc5   : > { %v661_v8 = vld [vmem:[%s6981_s26 + $0xa20] sm:$0xff]  ;;  %3093 = vmatpush.msrb.mxu0 %v593_v7 }
  0xc6   : > { %v721_v9 = vld [vmem:[%s6981_s26 + $0xc00] sm:$0xff]  ;;  %3112 = vmatpush.msrb.mxu1 %v661_v8  ;;  %3094 = vmatmul.f32.vlgmr.msrb.gmra.mxu0 %v7145_v62 }
  0xc7   : > { %v789_v10 = vld [vmem:[%s6981_s26 + $0xe20] sm:$0xff]  ;;  %3133 = vmatpush.msrb.mxu2 %v721_v9 }
  0xc8   : > { %v909_v11 = vld [vmem:[%s6981_s26 + $0x11e0] sm:$0xff]  ;;  %3152 = vmatpush.msrb.mxu3 %v789_v10  ;;  %3134 = vmatmul.f32.vlgmr.msrb.gmra.mxu2 %v7143_v61 }
  0xc9   : > { %v1037_v12 = vld [vmem:[%s6981_s26 + $0x15e0] sm:$0xff]  ;;  %3158 = vmatpush.msra.mxu0 %v909_v11 }
  0xca   : > { %v657_v13 = vld [vmem:[%s6981_s26 + $0xa00] sm:$0xff]  ;;  %3198 = vmatpush.msra.mxu2 %v1037_v12 }
  0xcb   : > { %v785_v14 = vld [vmem:[%s6981_s26 + $0xe00] sm:$0xff]  ;;  %3113 = vmatpush.msrb.mxu1 %v657_v13 }
  0xcc   : > { %v905_v15 = vld [vmem:[%s6981_s26 + $0x11c0] sm:$0xff]  ;;  %3153 = vmatpush.msrb.mxu3 %v785_v14  ;;  %3114 = vmatmul.f32.vlgmr.msrb.gmra.mxu1 %v7149_v0 }
  0xcd   : > { %v973_v16 = vld [vmem:[%s6981_s26 + $0x13e0] sm:$0xff]  ;;  %3159 = vmatpush.msra.mxu0 %v905_v15  ;;  %3154 = vmatmul.f32.vlgmr.msrb.gmra.mxu3 %v7147_v63 }
  0xce   : > { %v1033_v17 = vld [vmem:[%s6981_s26 + $0x15c0] sm:$0xff]  ;;  %3178 = vmatpush.msra.mxu1 %v973_v16 }
  0xcf   : > { %v1101_v18 = vld [vmem:[%s6981_s26 + $0x17e0] sm:$0xff]  ;;  %3199 = vmatpush.msra.mxu2 %v1033_v17 }
  0xd0   : > { %v901_v19 = vld [vmem:[%s6981_s26 + $0x11a0] sm:$0xff]  ;;  %3218 = vmatpush.msra.mxu3 %v1101_v18 }
  0xd1   : > { %v969_v20 = vld [vmem:[%s6981_s26 + $0x13c0] sm:$0xff]  ;;  %3160 = vmatpush.msra.mxu0 %v901_v19 }
  0xd2   : > { %v1029_v21 = vld [vmem:[%s6981_s26 + $0x15a0] sm:$0xff]  ;;  %3179 = vmatpush.msra.mxu1 %v969_v20 }
  0xd3   : > { %v1097_v22 = vld [vmem:[%s6981_s26 + $0x17c0] sm:$0xff]  ;;  %3200 = vmatpush.msra.mxu2 %v1029_v21 }
  0xd4   : > { %v897_v23 = vld [vmem:[%s6981_s26 + $0x1180] sm:$0xff]  ;;  %3219 = vmatpush.msra.mxu3 %v1097_v22 }
  0xd5   : > { %v965_v24 = vld [vmem:[%s6981_s26 + $0x13a0] sm:$0xff]  ;;  %3161 = vmatpush.msra.mxu0 %v897_v23 }
  0xd6   : > { %v1025_v25 = vld [vmem:[%s6981_s26 + $0x1580] sm:$0xff]  ;;  %3180 = vmatpush.msra.mxu1 %v965_v24 }
  0xd7   : > { %v7182_v27 = vld.sshfl [vmem:[#allocation1 + $0x10] sm:$0xff pattern:$0x73625140]  ;;  %3201 = vmatpush.msra.mxu2 %v1025_v25 }
  0xd8   : > { %v1093_v29 = vld [vmem:[%s6981_s26 + $0x17a0] sm:$0xff]  ;;  %2928 = vst [vmem:[#allocation1] ss:$4 sm:$0xff] %v331_v30 }
  0xd9   : > { %v893_v32 = vld [vmem:[%s6981_s26 + $0x1160] sm:$0xff]  ;;  %3220 = vmatpush.msra.mxu3 %v1093_v29 }
  0xda   : > { %v961_v33 = vld [vmem:[%s6981_s26 + $0x1380] sm:$0xff]  ;;  %3162 = vmatpush.msra.mxu0 %v893_v32 }
  0xdb   : > { %v1021_v34 = vld [vmem:[%s6981_s26 + $0x1560] sm:$0xff]  ;;  %3181 = vmatpush.msra.mxu1 %v961_v33 }
  0xdc   : > { %v1089_v35 = vld [vmem:[%s6981_s26 + $0x1780] sm:$0xff]  ;;  %3202 = vmatpush.msra.mxu2 %v1021_v34 }
  0xdd   : > { %v889_v36 = vld [vmem:[%s6981_s26 + $0x1140] sm:$0xff]  ;;  %3221 = vmatpush.msra.mxu3 %v1089_v35 }
  0xde   : > { %v957_v37 = vld [vmem:[%s6981_s26 + $0x1360] sm:$0xff]  ;;  %3163 = vmatpush.msra.mxu0 %v889_v36 }
  0xdf   : > { %v1017_v38 = vld [vmem:[%s6981_s26 + $0x1540] sm:$0xff]  ;;  %3182 = vmatpush.msra.mxu1 %v957_v37 }
  0xe0   : > { %v1085_v39 = vld [vmem:[%s6981_s26 + $0x1760] sm:$0xff]  ;;  %3203 = vmatpush.msra.mxu2 %v1017_v38 }
  0xe1   : > { %v885_v40 = vld [vmem:[%s6981_s26 + $0x1120] sm:$0xff]  ;;  %3222 = vmatpush.msra.mxu3 %v1085_v39 }
  0xe2   : > { %v953_v41 = vld [vmem:[%s6981_s26 + $0x1340] sm:$0xff]  ;;  %3164 = vmatpush.msra.mxu0 %v885_v40 }
  0xe3   : > { %v1013_v42 = vld [vmem:[%s6981_s26 + $0x1520] sm:$0xff]  ;;  %3183 = vmatpush.msra.mxu1 %v953_v41  ;;  %v7259_v41 = vld.sshfl [vmem:[#allocation1 + $0x20] sm:$0xff pattern:$0x73625140] }
  0xe4   : > { %v1081_v43 = vld [vmem:[%s6981_s26 + $0x1740] sm:$0xff]  ;;  %3204 = vmatpush.msra.mxu2 %v1013_v42 }
  0xe5   : > { %v881_v44 = vld [vmem:[%s6981_s26 + $0x1100] sm:$0xff]  ;;  %3223 = vmatpush.msra.mxu3 %v1081_v43  ;;  %v7263_v43 = vld.sshfl [vmem:[#allocation1 + $0x28] sm:$0xff pattern:$0x73625140] }
  0xe6   : > { %v949_v49 = vld [vmem:[%s6981_s26 + $0x1320] sm:$0xff]  ;;  %3165 = vmatpush.msra.mxu0 %v881_v44 }
  0xe7   : > { %v1009_v50 = vld [vmem:[%s6981_s26 + $0x1500] sm:$0xff]  ;;  %3184 = vmatpush.msra.mxu1 %v949_v49  ;;  %v332_v49 = vld [vmem:[%s7006_s28 + $0x28] sm:$0xff] }
  0xe8   : > { %v1077_v51 = vld [vmem:[%s6981_s26 + $0x1720] sm:$0xff]  ;;  %3205 = vmatpush.msra.mxu2 %v1009_v50  ;;  %v7267_v50 = vld.sshfl [vmem:[#allocation1 + $0x38] sm:$0xff pattern:$0x73625140] }
  0xe9   : > { %v877_v52 = vld [vmem:[%s6981_s26 + $0x10e0] sm:$0xff]  ;;  %3224 = vmatpush.msra.mxu3 %v1077_v51 }
  0xea   : > { %v945_v53 = vld [vmem:[%s6981_s26 + $0x1300] sm:$0xff]  ;;  %3166 = vmatpush.msra.mxu0 %v877_v52 }
  0xeb   : > { %v1005_v54 = vld [vmem:[%s6981_s26 + $0x14e0] sm:$0xff]  ;;  %3185 = vmatpush.msra.mxu1 %v945_v53 }
  0xec   : > { %v1073_v55 = vld [vmem:[%s6981_s26 + $0x1700] sm:$0xff]  ;;  %3206 = vmatpush.msra.mxu2 %v1005_v54 }
  0xed   : > { %v873_v56 = vld [vmem:[%s6981_s26 + $0x10c0] sm:$0xff]  ;;  %3225 = vmatpush.msra.mxu3 %v1073_v55 }
  0xee   : > { %v941_v57 = vld [vmem:[%s6981_s26 + $0x12e0] sm:$0xff]  ;;  %3167 = vmatpush.msra.mxu0 %v873_v56 }
  0xef   : > { %v1001_v58 = vld [vmem:[%s6981_s26 + $0x14c0] sm:$0xff]  ;;  %3186 = vmatpush.msra.mxu1 %v941_v57 }
  0xf0   : > { %v1069_v59 = vld [vmem:[%s6981_s26 + $0x16e0] sm:$0xff]  ;;  %3207 = vmatpush.msra.mxu2 %v1001_v58 }
  0xf1   : > { %v869_v60 = vld [vmem:[%s6981_s26 + $0x10a0] sm:$0xff]  ;;  %3226 = vmatpush.msra.mxu3 %v1069_v59 }
  0xf2   : > { %v937_v1 = vld [vmem:[%s6981_s26 + $0x12c0] sm:$0xff]  ;;  %3168 = vmatpush.msra.mxu0 %v869_v60 }
  0xf3   : > { %v997_v2 = vld [vmem:[%s6981_s26 + $0x14a0] sm:$0xff]  ;;  %3187 = vmatpush.msra.mxu1 %v937_v1 }
  0xf4   : > { %v1065_v3 = vld [vmem:[%s6981_s26 + $0x16c0] sm:$0xff]  ;;  %3208 = vmatpush.msra.mxu2 %v997_v2 }
  0xf5   : > { %v865_v4 = vld [vmem:[%s6981_s26 + $0x1080] sm:$0xff]  ;;  %3227 = vmatpush.msra.mxu3 %v1065_v3 }
  0xf6   : > { %v933_v5 = vld [vmem:[%s6981_s26 + $0x12a0] sm:$0xff]  ;;  %3169 = vmatpush.msra.mxu0 %v865_v4 }
  0xf7   : > { %v993_v6 = vld [vmem:[%s6981_s26 + $0x1480] sm:$0xff]  ;;  %3188 = vmatpush.msra.mxu1 %v933_v5 }
  0xf8   : > { %v1061_v7 = vld [vmem:[%s6981_s26 + $0x16a0] sm:$0xff]  ;;  %3209 = vmatpush.msra.mxu2 %v993_v6 }
  0xf9   : > { %v861_v8 = vld [vmem:[%s6981_s26 + $0x1060] sm:$0xff]  ;;  %3228 = vmatpush.msra.mxu3 %v1061_v7 }
  0xfa   : > { %v929_v9 = vld [vmem:[%s6981_s26 + $0x1280] sm:$0xff]  ;;  %3170 = vmatpush.msra.mxu0 %v861_v8 }
  0xfb   : > { %v989_v10 = vld [vmem:[%s6981_s26 + $0x1460] sm:$0xff]  ;;  %3189 = vmatpush.msra.mxu1 %v929_v9 }
  0xfc   : > { %v1057_v11 = vld [vmem:[%s6981_s26 + $0x1680] sm:$0xff]  ;;  %3210 = vmatpush.msra.mxu2 %v989_v10 }
  0xfd   : > { %v857_v12 = vld [vmem:[%s6981_s26 + $0x1040] sm:$0xff]  ;;  %3229 = vmatpush.msra.mxu3 %v1057_v11 }
  0xfe   : > { %v925_v13 = vld [vmem:[%s6981_s26 + $0x1260] sm:$0xff]  ;;  %3171 = vmatpush.msra.mxu0 %v857_v12 }
  0xff   : > { %v985_v14 = vld [vmem:[%s6981_s26 + $0x1440] sm:$0xff]  ;;  %3190 = vmatpush.msra.mxu1 %v925_v13 }
 0x100   : > { %v1053_v15 = vld [vmem:[%s6981_s26 + $0x1660] sm:$0xff]  ;;  %3211 = vmatpush.msra.mxu2 %v985_v14 }
 0x101   : > { %v853_v16 = vld [vmem:[%s6981_s26 + $0x1020] sm:$0xff]  ;;  %3230 = vmatpush.msra.mxu3 %v1053_v15 }
 0x102   : > { %v921_v17 = vld [vmem:[%s6981_s26 + $0x1240] sm:$0xff]  ;;  %3172 = vmatpush.msra.mxu0 %v853_v16 }
 0x103   : > { %v981_v18 = vld [vmem:[%s6981_s26 + $0x1420] sm:$0xff]  ;;  %3191 = vmatpush.msra.mxu1 %v921_v17 }
 0x104   : > { %v1049_v19 = vld [vmem:[%s6981_s26 + $0x1640] sm:$0xff]  ;;  %3212 = vmatpush.msra.mxu2 %v981_v18 }
 0x105   : > { %v849_v20 = vld [vmem:[%s6981_s26 + $0x1000] sm:$0xff]  ;;  %3231 = vmatpush.msra.mxu3 %v1049_v19 }
 0x106   : > { %v917_v21 = vld [vmem:[%s6981_s26 + $0x1220] sm:$0xff]  ;;  %3173 = vmatpush.msra.mxu0 %v849_v20 }
 0x107   : > { %v977_v22 = vld [vmem:[%s6981_s26 + $0x1400] sm:$0xff]  ;;  %3192 = vmatpush.msra.mxu1 %v917_v21  ;;  %3174 = vmatmul.f32.vlgmr.msra.gmra.mxu0 %v7180_v26 }
 0x108   : > { %v1045_v23 = vld [vmem:[%s6981_s26 + $0x1620] sm:$0xff]  ;;  %3213 = vmatpush.msra.mxu2 %v977_v22 }
 0x109   : > { %v1165_v24 = vld [vmem:[%s6981_s26 + $0x19e0] sm:$0xff]  ;;  %3232 = vmatpush.msra.mxu3 %v1045_v23  ;;  %3214 = vmatmul.f32.vlgmr.msra.gmra.mxu2 %v7182_v27 }
 0x10a   : > { %v1293_v25 = vld [vmem:[%s6981_s26 + $0x1de0] sm:$0xff]  ;;  %3238 = vmatpush.msrb.mxu0 %v1165_v24 }
 0x10b   : > { %v913_v29 = vld [vmem:[%s6981_s26 + $0x1200] sm:$0xff]  ;;  %3278 = vmatpush.msrb.mxu2 %v1293_v25 }
 0x10c   : > { %v1041_v30 = vld [vmem:[%s6981_s26 + $0x1600] sm:$0xff]  ;;  %3193 = vmatpush.msra.mxu1 %v913_v29 }
 0x10d   : > { %v1161_v32 = vld [vmem:[%s6981_s26 + $0x19c0] sm:$0xff]  ;;  %3233 = vmatpush.msra.mxu3 %v1041_v30  ;;  %3194 = vmatmul.f32.vlgmr.msra.gmra.mxu1 %v7184_v28 }
 0x10e   : > { %v1229_v33 = vld [vmem:[%s6981_s26 + $0x1be0] sm:$0xff]  ;;  %3234 = vmatmul.f32.vlgmr.msra.gmra.mxu3 %v7188_v31  ;;  %3239 = vmatpush.msrb.mxu0 %v1161_v32 }
 0x10f   : > { %v1289_v34 = vld [vmem:[%s6981_s26 + $0x1dc0] sm:$0xff]  ;;  %3258 = vmatpush.msrb.mxu1 %v1229_v33 }
 0x110   : > { %v1357_v35 = vld [vmem:[%s6981_s26 + $0x1fe0] sm:$0xff]  ;;  %3279 = vmatpush.msrb.mxu2 %v1289_v34 }
 0x111   : > { %v1157_v36 = vld [vmem:[%s6981_s26 + $0x19a0] sm:$0xff]  ;;  %3298 = vmatpush.msrb.mxu3 %v1357_v35 }
 0x112   : > { %v1225_v37 = vld [vmem:[%s6981_s26 + $0x1bc0] sm:$0xff]  ;;  %3240 = vmatpush.msrb.mxu0 %v1157_v36 }
 0x113   : > { %v1285_v38 = vld [vmem:[%s6981_s26 + $0x1da0] sm:$0xff]  ;;  %3259 = vmatpush.msrb.mxu1 %v1225_v37 }
 0x114   : > { %v1353_v39 = vld [vmem:[%s6981_s26 + $0x1fc0] sm:$0xff]  ;;  %3280 = vmatpush.msrb.mxu2 %v1285_v38 }
 0x115   : > { %v1153_v40 = vld [vmem:[%s6981_s26 + $0x1980] sm:$0xff]  ;;  %3299 = vmatpush.msrb.mxu3 %v1353_v39 }
 0x116   : > { %v7261_v42 = vld.sshfl [vmem:[#allocation1 + $0x30] sm:$0xff pattern:$0x73625140]  ;;  %3241 = vmatpush.msrb.mxu0 %v1153_v40 }
 0x117   : > { %v1221_v44 = vld [vmem:[%s6981_s26 + $0x1ba0] sm:$0xff]  ;;  %2929 = vst [vmem:[#allocation1 + $0x20] ss:$4 sm:$0xff] %v332_v49 }
 0x118   : > { %v1281_v51 = vld [vmem:[%s6981_s26 + $0x1d80] sm:$0xff]  ;;  %3260 = vmatpush.msrb.mxu1 %v1221_v44 }
 0x119   : > { %v1349_v52 = vld [vmem:[%s6981_s26 + $0x1fa0] sm:$0xff]  ;;  %3281 = vmatpush.msrb.mxu2 %v1281_v51 }
 0x11a   : > { %v1149_v53 = vld [vmem:[%s6981_s26 + $0x1960] sm:$0xff]  ;;  %3300 = vmatpush.msrb.mxu3 %v1349_v52 }
 0x11b   : > { %v1217_v54 = vld [vmem:[%s6981_s26 + $0x1b80] sm:$0xff]  ;;  %3242 = vmatpush.msrb.mxu0 %v1149_v53 }
 0x11c   : > { %v1277_v55 = vld [vmem:[%s6981_s26 + $0x1d60] sm:$0xff]  ;;  %3261 = vmatpush.msrb.mxu1 %v1217_v54 }
 0x11d   : > { %v1345_v56 = vld [vmem:[%s6981_s26 + $0x1f80] sm:$0xff]  ;;  %3282 = vmatpush.msrb.mxu2 %v1277_v55 }
 0x11e   : > { %v1145_v57 = vld [vmem:[%s6981_s26 + $0x1940] sm:$0xff]  ;;  %3301 = vmatpush.msrb.mxu3 %v1345_v56 }
 0x11f   : > { %v1213_v58 = vld [vmem:[%s6981_s26 + $0x1b60] sm:$0xff]  ;;  %3243 = vmatpush.msrb.mxu0 %v1145_v57 }
 0x120   : > { %v1273_v59 = vld [vmem:[%s6981_s26 + $0x1d40] sm:$0xff]  ;;  %3262 = vmatpush.msrb.mxu1 %v1213_v58 }
 0x121   : > { %v1341_v60 = vld [vmem:[%s6981_s26 + $0x1f60] sm:$0xff]  ;;  %3283 = vmatpush.msrb.mxu2 %v1273_v59 }
 0x122   : > { %v1141_v1 = vld [vmem:[%s6981_s26 + $0x1920] sm:$0xff]  ;;  %3302 = vmatpush.msrb.mxu3 %v1341_v60 }
 0x123   : > { %v1209_v2 = vld [vmem:[%s6981_s26 + $0x1b40] sm:$0xff]  ;;  %3244 = vmatpush.msrb.mxu0 %v1141_v1 }
 0x124   : > { %v1269_v3 = vld [vmem:[%s6981_s26 + $0x1d20] sm:$0xff]  ;;  %3263 = vmatpush.msrb.mxu1 %v1209_v2 }
 0x125   : > { %v1337_v4 = vld [vmem:[%s6981_s26 + $0x1f40] sm:$0xff]  ;;  %3284 = vmatpush.msrb.mxu2 %v1269_v3 }
 0x126   : > { %v1137_v5 = vld [vmem:[%s6981_s26 + $0x1900] sm:$0xff]  ;;  %3303 = vmatpush.msrb.mxu3 %v1337_v4 }
 0x127   : > { %v1205_v6 = vld [vmem:[%s6981_s26 + $0x1b20] sm:$0xff]  ;;  %3245 = vmatpush.msrb.mxu0 %v1137_v5 }
 0x128   : > { %v1265_v7 = vld [vmem:[%s6981_s26 + $0x1d00] sm:$0xff]  ;;  %3264 = vmatpush.msrb.mxu1 %v1205_v6 }
 0x129   : > { %v1333_v8 = vld [vmem:[%s6981_s26 + $0x1f20] sm:$0xff]  ;;  %3285 = vmatpush.msrb.mxu2 %v1265_v7 }
 0x12a   : > { %v1133_v9 = vld [vmem:[%s6981_s26 + $0x18e0] sm:$0xff]  ;;  %3304 = vmatpush.msrb.mxu3 %v1333_v8 }
 0x12b   : > { %v1201_v10 = vld [vmem:[%s6981_s26 + $0x1b00] sm:$0xff]  ;;  %3246 = vmatpush.msrb.mxu0 %v1133_v9 }
 0x12c   : > { %v1261_v11 = vld [vmem:[%s6981_s26 + $0x1ce0] sm:$0xff]  ;;  %3265 = vmatpush.msrb.mxu1 %v1201_v10 }
 0x12d   : > { %v1329_v12 = vld [vmem:[%s6981_s26 + $0x1f00] sm:$0xff]  ;;  %3286 = vmatpush.msrb.mxu2 %v1261_v11 }
 0x12e   : > { %v1129_v13 = vld [vmem:[%s6981_s26 + $0x18c0] sm:$0xff]  ;;  %3305 = vmatpush.msrb.mxu3 %v1329_v12 }
 0x12f   : > { %v1197_v14 = vld [vmem:[%s6981_s26 + $0x1ae0] sm:$0xff]  ;;  %3247 = vmatpush.msrb.mxu0 %v1129_v13 }
 0x130   : > { %v1257_v15 = vld [vmem:[%s6981_s26 + $0x1cc0] sm:$0xff]  ;;  %3266 = vmatpush.msrb.mxu1 %v1197_v14 }
 0x131   : > { %v1325_v16 = vld [vmem:[%s6981_s26 + $0x1ee0] sm:$0xff]  ;;  %3287 = vmatpush.msrb.mxu2 %v1257_v15 }
 0x132   : > { %v1125_v17 = vld [vmem:[%s6981_s26 + $0x18a0] sm:$0xff]  ;;  %3306 = vmatpush.msrb.mxu3 %v1325_v16 }
 0x133   : > { %v1193_v18 = vld [vmem:[%s6981_s26 + $0x1ac0] sm:$0xff]  ;;  %3248 = vmatpush.msrb.mxu0 %v1125_v17 }
 0x134   : > { %v1253_v19 = vld [vmem:[%s6981_s26 + $0x1ca0] sm:$0xff]  ;;  %3267 = vmatpush.msrb.mxu1 %v1193_v18 }
 0x135   : > { %v1321_v20 = vld [vmem:[%s6981_s26 + $0x1ec0] sm:$0xff]  ;;  %3288 = vmatpush.msrb.mxu2 %v1253_v19 }
 0x136   : > { %v1121_v21 = vld [vmem:[%s6981_s26 + $0x1880] sm:$0xff]  ;;  %3307 = vmatpush.msrb.mxu3 %v1321_v20 }
 0x137   : > { %v1189_v22 = vld [vmem:[%s6981_s26 + $0x1aa0] sm:$0xff]  ;;  %3249 = vmatpush.msrb.mxu0 %v1121_v21 }
 0x138   : > { %v1249_v23 = vld [vmem:[%s6981_s26 + $0x1c80] sm:$0xff]  ;;  %3268 = vmatpush.msrb.mxu1 %v1189_v22 }
 0x139   : > { %v1317_v24 = vld [vmem:[%s6981_s26 + $0x1ea0] sm:$0xff]  ;;  %3289 = vmatpush.msrb.mxu2 %v1249_v23 }
 0x13a   : > { %v1117_v25 = vld [vmem:[%s6981_s26 + $0x1860] sm:$0xff]  ;;  %3308 = vmatpush.msrb.mxu3 %v1317_v24 }
 0x13b   : > { %v1185_v29 = vld [vmem:[%s6981_s26 + $0x1a80] sm:$0xff]  ;;  %3250 = vmatpush.msrb.mxu0 %v1117_v25 }
 0x13c   : > { %v1245_v30 = vld [vmem:[%s6981_s26 + $0x1c60] sm:$0xff]  ;;  %3269 = vmatpush.msrb.mxu1 %v1185_v29 }
 0x13d   : > { %v1313_v32 = vld [vmem:[%s6981_s26 + $0x1e80] sm:$0xff]  ;;  %3290 = vmatpush.msrb.mxu2 %v1245_v30 }
 0x13e   : > { %v1113_v33 = vld [vmem:[%s6981_s26 + $0x1840] sm:$0xff]  ;;  %3309 = vmatpush.msrb.mxu3 %v1313_v32 }
 0x13f   : > { %v1181_v34 = vld [vmem:[%s6981_s26 + $0x1a60] sm:$0xff]  ;;  %3251 = vmatpush.msrb.mxu0 %v1113_v33 }
 0x140   : > { %v1241_v35 = vld [vmem:[%s6981_s26 + $0x1c40] sm:$0xff]  ;;  %3270 = vmatpush.msrb.mxu1 %v1181_v34 }
 0x141   : > { %v1309_v36 = vld [vmem:[%s6981_s26 + $0x1e60] sm:$0xff]  ;;  %3291 = vmatpush.msrb.mxu2 %v1241_v35 }
 0x142   : > { %v1109_v37 = vld [vmem:[%s6981_s26 + $0x1820] sm:$0xff]  ;;  %3310 = vmatpush.msrb.mxu3 %v1309_v36 }
 0x143   : > { %v1177_v38 = vld [vmem:[%s6981_s26 + $0x1a40] sm:$0xff]  ;;  %3252 = vmatpush.msrb.mxu0 %v1109_v37 }
 0x144   : > { %v1237_v39 = vld [vmem:[%s6981_s26 + $0x1c20] sm:$0xff]  ;;  %3271 = vmatpush.msrb.mxu1 %v1177_v38 }
 0x145   : > { %v1305_v40 = vld [vmem:[%s6981_s26 + $0x1e40] sm:$0xff]  ;;  %3292 = vmatpush.msrb.mxu2 %v1237_v39 }
 0x146   : > { %v1105_v44 = vld [vmem:[%s6981_s26 + $0x1800] sm:$0xff]  ;;  %3311 = vmatpush.msrb.mxu3 %v1305_v40 }
 0x147   : > { %v1173_v49 = vld [vmem:[%s6981_s26 + $0x1a20] sm:$0xff]  ;;  %3253 = vmatpush.msrb.mxu0 %v1105_v44 }
 0x148   : > { %v1233_v51 = vld [vmem:[%s6981_s26 + $0x1c00] sm:$0xff]  ;;  %3272 = vmatpush.msrb.mxu1 %v1173_v49  ;;  %3254 = vmatmul.f32.vlgmr.msrb.gmra.mxu0 %v7259_v41 }
 0x149   : > { %v1301_v52 = vld [vmem:[%s6981_s26 + $0x1e20] sm:$0xff]  ;;  %3293 = vmatpush.msrb.mxu2 %v1233_v51 }
 0x14a   : > { %v1421_v53 = vld [vmem:[%s6981_s26 + $0x21e0] sm:$0xff]  ;;  %3312 = vmatpush.msrb.mxu3 %v1301_v52  ;;  %3294 = vmatmul.f32.vlgmr.msrb.gmra.mxu2 %v7261_v42 }
 0x14b   : > { %v1549_v54 = vld [vmem:[%s6981_s26 + $0x25e0] sm:$0xff]  ;;  %3318 = vmatpush.msra.mxu0 %v1421_v53 }
 0x14c   : > { %v1169_v55 = vld [vmem:[%s6981_s26 + $0x1a00] sm:$0xff]  ;;  %3358 = vmatpush.msra.mxu2 %v1549_v54 }
 0x14d   : > { %v1297_v56 = vld [vmem:[%s6981_s26 + $0x1e00] sm:$0xff]  ;;  %3273 = vmatpush.msrb.mxu1 %v1169_v55 }
 0x14e   : > { %v1417_v57 = vld [vmem:[%s6981_s26 + $0x21c0] sm:$0xff]  ;;  %3313 = vmatpush.msrb.mxu3 %v1297_v56  ;;  %3274 = vmatmul.f32.vlgmr.msrb.gmra.mxu1 %v7263_v43 }
 0x14f   : > { %v1485_v58 = vld [vmem:[%s6981_s26 + $0x23e0] sm:$0xff]  ;;  %3314 = vmatmul.f32.vlgmr.msrb.gmra.mxu3 %v7267_v50  ;;  %3319 = vmatpush.msra.mxu0 %v1417_v57 }
 0x150   : > { %v1545_v59 = vld [vmem:[%s6981_s26 + $0x25c0] sm:$0xff]  ;;  %3338 = vmatpush.msra.mxu1 %v1485_v58 }
 0x151   : > { %v1613_v60 = vld [vmem:[%s6981_s26 + $0x27e0] sm:$0xff]  ;;  %3359 = vmatpush.msra.mxu2 %v1545_v59 }
 0x152   : > { %v1413_v1 = vld [vmem:[%s6981_s26 + $0x21a0] sm:$0xff]  ;;  %3378 = vmatpush.msra.mxu3 %v1613_v60 }
 0x153   : > { %v1481_v2 = vld [vmem:[%s6981_s26 + $0x23c0] sm:$0xff]  ;;  %3320 = vmatpush.msra.mxu0 %v1413_v1 }
 0x154   : > { %v1541_v3 = vld [vmem:[%s6981_s26 + $0x25a0] sm:$0xff]  ;;  %3339 = vmatpush.msra.mxu1 %v1481_v2 }
 0x155   : > { %v1609_v4 = vld [vmem:[%s6981_s26 + $0x27c0] sm:$0xff]  ;;  %3360 = vmatpush.msra.mxu2 %v1541_v3 }
 0x156   : > { %v1409_v5 = vld [vmem:[%s6981_s26 + $0x2180] sm:$0xff]  ;;  %3379 = vmatpush.msra.mxu3 %v1609_v4 }
 0x157   : > { %v1477_v6 = vld [vmem:[%s6981_s26 + $0x23a0] sm:$0xff]  ;;  %3321 = vmatpush.msra.mxu0 %v1409_v5 }
 0x158   : > { %v1537_v7 = vld [vmem:[%s6981_s26 + $0x2580] sm:$0xff]  ;;  %3340 = vmatpush.msra.mxu1 %v1477_v6 }
 0x159   : > { %v1605_v8 = vld [vmem:[%s6981_s26 + $0x27a0] sm:$0xff]  ;;  %3361 = vmatpush.msra.mxu2 %v1537_v7 }
 0x15a   : > { %v1405_v9 = vld [vmem:[%s6981_s26 + $0x2160] sm:$0xff]  ;;  %3380 = vmatpush.msra.mxu3 %v1605_v8 }
 0x15b   : > { %v1473_v10 = vld [vmem:[%s6981_s26 + $0x2380] sm:$0xff]  ;;  %3322 = vmatpush.msra.mxu0 %v1405_v9  ;;  %v7387_v9 = vld.sshfl [vmem:[#allocation1] sm:$0xff pattern:$0x73625140] }
 0x15c   : > { %v1533_v11 = vld [vmem:[%s6981_s26 + $0x2560] sm:$0xff]  ;;  %3341 = vmatpush.msra.mxu1 %v1473_v10 }
 0x15d   : > { %v1601_v12 = vld [vmem:[%s6981_s26 + $0x2780] sm:$0xff]  ;;  %3362 = vmatpush.msra.mxu2 %v1533_v11 }
 0x15e   : > { %v1401_v13 = vld [vmem:[%s6981_s26 + $0x2140] sm:$0xff]  ;;  %3381 = vmatpush.msra.mxu3 %v1601_v12 }
 0x15f   : > { %v1469_v14 = vld [vmem:[%s6981_s26 + $0x2360] sm:$0xff]  ;;  %3323 = vmatpush.msra.mxu0 %v1401_v13 }
 0x160   : > { %v1529_v15 = vld [vmem:[%s6981_s26 + $0x2540] sm:$0xff]  ;;  %3342 = vmatpush.msra.mxu1 %v1469_v14 }
 0x161   : > { %v1597_v16 = vld [vmem:[%s6981_s26 + $0x2760] sm:$0xff]  ;;  %3363 = vmatpush.msra.mxu2 %v1529_v15  ;;  %v7397_v15 = vld.sshfl [vmem:[#allocation1 + $0x8] sm:$0xff pattern:$0x73625140] }
 0x162   : > { %v1397_v17 = vld [vmem:[%s6981_s26 + $0x2120] sm:$0xff]  ;;  %3382 = vmatpush.msra.mxu3 %v1597_v16  ;;  %v7399_v16 = vld.sshfl [vmem:[#allocation1 + $0x18] sm:$0xff pattern:$0x73625140] }
 0x163   : > { %v1465_v18 = vld [vmem:[%s6981_s26 + $0x2340] sm:$0xff]  ;;  %3324 = vmatpush.msra.mxu0 %v1397_v17 }
 0x164   : > { %v1525_v19 = vld [vmem:[%s6981_s26 + $0x2520] sm:$0xff]  ;;  %3343 = vmatpush.msra.mxu1 %v1465_v18 }
 0x165   : > { %v1593_v20 = vld [vmem:[%s6981_s26 + $0x2740] sm:$0xff]  ;;  %3364 = vmatpush.msra.mxu2 %v1525_v19 }
 0x166   : > { %v1393_v21 = vld [vmem:[%s6981_s26 + $0x2100] sm:$0xff]  ;;  %3383 = vmatpush.msra.mxu3 %v1593_v20 }
 0x167   : > { %v1461_v22 = vld [vmem:[%s6981_s26 + $0x2320] sm:$0xff]  ;;  %3325 = vmatpush.msra.mxu0 %v1393_v21 }
 0x168   : > { %v1521_v23 = vld [vmem:[%s6981_s26 + $0x2500] sm:$0xff]  ;;  %3344 = vmatpush.msra.mxu1 %v1461_v22 }
 0x169   : > { %v1589_v24 = vld [vmem:[%s6981_s26 + $0x2720] sm:$0xff]  ;;  %3365 = vmatpush.msra.mxu2 %v1521_v23 }
 0x16a   : > { %v1389_v25 = vld [vmem:[%s6981_s26 + $0x20e0] sm:$0xff]  ;;  %3384 = vmatpush.msra.mxu3 %v1589_v24 }
 0x16b   : > { %v1457_v29 = vld [vmem:[%s6981_s26 + $0x2300] sm:$0xff]  ;;  %3326 = vmatpush.msra.mxu0 %v1389_v25 }
 0x16c   : > { %v1517_v30 = vld [vmem:[%s6981_s26 + $0x24e0] sm:$0xff]  ;;  %3345 = vmatpush.msra.mxu1 %v1457_v29 }
 0x16d   : > { %v1585_v32 = vld [vmem:[%s6981_s26 + $0x2700] sm:$0xff]  ;;  %3366 = vmatpush.msra.mxu2 %v1517_v30 }
 0x16e   : > { %v1385_v33 = vld [vmem:[%s6981_s26 + $0x20c0] sm:$0xff]  ;;  %3385 = vmatpush.msra.mxu3 %v1585_v32 }
 0x16f   : > { %v1453_v34 = vld [vmem:[%s6981_s26 + $0x22e0] sm:$0xff]  ;;  %3327 = vmatpush.msra.mxu0 %v1385_v33 }
 0x170   : > { %v1513_v35 = vld [vmem:[%s6981_s26 + $0x24c0] sm:$0xff]  ;;  %3346 = vmatpush.msra.mxu1 %v1453_v34 }
 0x171   : > { %v1581_v36 = vld [vmem:[%s6981_s26 + $0x26e0] sm:$0xff]  ;;  %3367 = vmatpush.msra.mxu2 %v1513_v35 }
 0x172   : > { %v1381_v37 = vld [vmem:[%s6981_s26 + $0x20a0] sm:$0xff]  ;;  %3386 = vmatpush.msra.mxu3 %v1581_v36 }
 0x173   : > { %v1449_v38 = vld [vmem:[%s6981_s26 + $0x22c0] sm:$0xff]  ;;  %3328 = vmatpush.msra.mxu0 %v1381_v37 }
 0x174   : > { %v1509_v39 = vld [vmem:[%s6981_s26 + $0x24a0] sm:$0xff]  ;;  %3347 = vmatpush.msra.mxu1 %v1449_v38 }
 0x175   : > { %v1577_v40 = vld [vmem:[%s6981_s26 + $0x26c0] sm:$0xff]  ;;  %3368 = vmatpush.msra.mxu2 %v1509_v39 }
 0x176   : > { %v1377_v44 = vld [vmem:[%s6981_s26 + $0x2080] sm:$0xff]  ;;  %3387 = vmatpush.msra.mxu3 %v1577_v40 }
 0x177   : > { %v1445_v49 = vld [vmem:[%s6981_s26 + $0x22a0] sm:$0xff]  ;;  %3329 = vmatpush.msra.mxu0 %v1377_v44 }
 0x178   : > { %v1505_v51 = vld [vmem:[%s6981_s26 + $0x2480] sm:$0xff]  ;;  %3348 = vmatpush.msra.mxu1 %v1445_v49 }
 0x179   : > { %v1573_v52 = vld [vmem:[%s6981_s26 + $0x26a0] sm:$0xff]  ;;  %3369 = vmatpush.msra.mxu2 %v1505_v51 }
 0x17a   : > { %v1373_v53 = vld [vmem:[%s6981_s26 + $0x2060] sm:$0xff]  ;;  %3388 = vmatpush.msra.mxu3 %v1573_v52 }
 0x17b   : > { %v1441_v54 = vld [vmem:[%s6981_s26 + $0x2280] sm:$0xff]  ;;  %3330 = vmatpush.msra.mxu0 %v1373_v53 }
 0x17c   : > { %v1501_v55 = vld [vmem:[%s6981_s26 + $0x2460] sm:$0xff]  ;;  %3349 = vmatpush.msra.mxu1 %v1441_v54 }
 0x17d   : > { %v1569_v56 = vld [vmem:[%s6981_s26 + $0x2680] sm:$0xff]  ;;  %3370 = vmatpush.msra.mxu2 %v1501_v55 }
 0x17e   : > { %v1369_v57 = vld [vmem:[%s6981_s26 + $0x2040] sm:$0xff]  ;;  %3389 = vmatpush.msra.mxu3 %v1569_v56 }
 0x17f   : > { %v1437_v58 = vld [vmem:[%s6981_s26 + $0x2260] sm:$0xff]  ;;  %3331 = vmatpush.msra.mxu0 %v1369_v57 }
 0x180   : > { %v1497_v59 = vld [vmem:[%s6981_s26 + $0x2440] sm:$0xff]  ;;  %3350 = vmatpush.msra.mxu1 %v1437_v58 }
 0x181   : > { %v1565_v60 = vld [vmem:[%s6981_s26 + $0x2660] sm:$0xff]  ;;  %3371 = vmatpush.msra.mxu2 %v1497_v59 }
 0x182   : > { %v1365_v1 = vld [vmem:[%s6981_s26 + $0x2020] sm:$0xff]  ;;  %3390 = vmatpush.msra.mxu3 %v1565_v60 }
 0x183   : > { %v1433_v2 = vld [vmem:[%s6981_s26 + $0x2240] sm:$0xff]  ;;  %3332 = vmatpush.msra.mxu0 %v1365_v1 }
 0x184   : > { %v1493_v3 = vld [vmem:[%s6981_s26 + $0x2420] sm:$0xff]  ;;  %3351 = vmatpush.msra.mxu1 %v1433_v2 }
 0x185   : > { %v1561_v4 = vld [vmem:[%s6981_s26 + $0x2640] sm:$0xff]  ;;  %3372 = vmatpush.msra.mxu2 %v1493_v3 }
 0x186   : > { %v1361_v5 = vld [vmem:[%s6981_s26 + $0x2000] sm:$0xff]  ;;  %3391 = vmatpush.msra.mxu3 %v1561_v4 }
 0x187   : > { %v1429_v6 = vld [vmem:[%s6981_s26 + $0x2220] sm:$0xff]  ;;  %3333 = vmatpush.msra.mxu0 %v1361_v5 }
 0x188   : > { %v1489_v7 = vld [vmem:[%s6981_s26 + $0x2400] sm:$0xff]  ;;  %3352 = vmatpush.msra.mxu1 %v1429_v6  ;;  %3334 = vmatmul.f32.vlgmr.msra.gmra.mxu0 %v7387_v9 }
 0x189   : > { %v1557_v8 = vld [vmem:[%s6981_s26 + $0x2620] sm:$0xff]  ;;  %3373 = vmatpush.msra.mxu2 %v1489_v7 }
 0x18a   : > { %v7389_v10 = vld.sshfl [vmem:[#allocation1 + $0x10] sm:$0xff pattern:$0x73625140]  ;;  %3392 = vmatpush.msra.mxu3 %v1557_v8 }
 0x18b   : > { %v1677_v11 = vld [vmem:[%s6981_s26 + $0x29e0] sm:$0xff]  ;;  %3374 = vmatmul.f32.vlgmr.msra.gmra.mxu2 %v7389_v10 }
 0x18c   : > { %v1805_v12 = vld [vmem:[%s6981_s26 + $0x2de0] sm:$0xff]  ;;  %3398 = vmatpush.msrb.mxu0 %v1677_v11 }
 0x18d   : > { %v1425_v13 = vld [vmem:[%s6981_s26 + $0x2200] sm:$0xff]  ;;  %3438 = vmatpush.msrb.mxu2 %v1805_v12 }
 0x18e   : > { %v1553_v14 = vld [vmem:[%s6981_s26 + $0x2600] sm:$0xff]  ;;  %3353 = vmatpush.msra.mxu1 %v1425_v13 }
 0x18f   : > { %v1673_v17 = vld [vmem:[%s6981_s26 + $0x29c0] sm:$0xff]  ;;  %3393 = vmatpush.msra.mxu3 %v1553_v14  ;;  %3354 = vmatmul.f32.vlgmr.msra.gmra.mxu1 %v7397_v15 }
 0x190   : > { %v1741_v18 = vld [vmem:[%s6981_s26 + $0x2be0] sm:$0xff]  ;;  %3394 = vmatmul.f32.vlgmr.msra.gmra.mxu3 %v7399_v16  ;;  %3399 = vmatpush.msrb.mxu0 %v1673_v17 }
 0x191   : > { %v1801_v19 = vld [vmem:[%s6981_s26 + $0x2dc0] sm:$0xff]  ;;  %3418 = vmatpush.msrb.mxu1 %v1741_v18 }
 0x192   : > { %v1869_v20 = vld [vmem:[%s6981_s26 + $0x2fe0] sm:$0xff]  ;;  %3439 = vmatpush.msrb.mxu2 %v1801_v19 }
 0x193   : > { %v1669_v21 = vld [vmem:[%s6981_s26 + $0x29a0] sm:$0xff]  ;;  %3458 = vmatpush.msrb.mxu3 %v1869_v20 }
 0x194   : > { %v1737_v22 = vld [vmem:[%s6981_s26 + $0x2bc0] sm:$0xff]  ;;  %3400 = vmatpush.msrb.mxu0 %v1669_v21 }
 0x195   : > { %v1797_v23 = vld [vmem:[%s6981_s26 + $0x2da0] sm:$0xff]  ;;  %3419 = vmatpush.msrb.mxu1 %v1737_v22 }
 0x196   : > { %v1865_v24 = vld [vmem:[%s6981_s26 + $0x2fc0] sm:$0xff]  ;;  %3440 = vmatpush.msrb.mxu2 %v1797_v23 }
 0x197   : > { %v1665_v25 = vld [vmem:[%s6981_s26 + $0x2980] sm:$0xff]  ;;  %3459 = vmatpush.msrb.mxu3 %v1865_v24 }
 0x198   : > { %v1733_v29 = vld [vmem:[%s6981_s26 + $0x2ba0] sm:$0xff]  ;;  %3401 = vmatpush.msrb.mxu0 %v1665_v25 }
 0x199   : > { %v1793_v30 = vld [vmem:[%s6981_s26 + $0x2d80] sm:$0xff]  ;;  %3420 = vmatpush.msrb.mxu1 %v1733_v29 }
 0x19a   : > { %v1861_v32 = vld [vmem:[%s6981_s26 + $0x2fa0] sm:$0xff]  ;;  %3441 = vmatpush.msrb.mxu2 %v1793_v30 }
 0x19b   : > { %v1661_v33 = vld [vmem:[%s6981_s26 + $0x2960] sm:$0xff]  ;;  %3460 = vmatpush.msrb.mxu3 %v1861_v32 }
 0x19c   : > { %v1729_v34 = vld [vmem:[%s6981_s26 + $0x2b80] sm:$0xff]  ;;  %3402 = vmatpush.msrb.mxu0 %v1661_v33 }
 0x19d   : > { %v1789_v35 = vld [vmem:[%s6981_s26 + $0x2d60] sm:$0xff]  ;;  %3421 = vmatpush.msrb.mxu1 %v1729_v34 }
 0x19e   : > { %v1857_v36 = vld [vmem:[%s6981_s26 + $0x2f80] sm:$0xff]  ;;  %3442 = vmatpush.msrb.mxu2 %v1789_v35 }
 0x19f   : > { %v1657_v37 = vld [vmem:[%s6981_s26 + $0x2940] sm:$0xff]  ;;  %3461 = vmatpush.msrb.mxu3 %v1857_v36 }
 0x1a0   : > { %v1725_v38 = vld [vmem:[%s6981_s26 + $0x2b60] sm:$0xff]  ;;  %3403 = vmatpush.msrb.mxu0 %v1657_v37 }
 0x1a1   : > { %v1785_v39 = vld [vmem:[%s6981_s26 + $0x2d40] sm:$0xff]  ;;  %3422 = vmatpush.msrb.mxu1 %v1725_v38  ;;  %v7464_v38 = vld.sshfl [vmem:[#allocation1 + $0x20] sm:$0xff pattern:$0x73625140] }
 0x1a2   : > { %v1853_v40 = vld [vmem:[%s6981_s26 + $0x2f60] sm:$0xff]  ;;  %3443 = vmatpush.msrb.mxu2 %v1785_v39 }
 0x1a3   : > { %v1653_v44 = vld [vmem:[%s6981_s26 + $0x2920] sm:$0xff]  ;;  %3462 = vmatpush.msrb.mxu3 %v1853_v40 }
 0x1a4   : > { %v1721_v49 = vld [vmem:[%s6981_s26 + $0x2b40] sm:$0xff]  ;;  %3404 = vmatpush.msrb.mxu0 %v1653_v44 }
 0x1a5   : > { %v1781_v51 = vld [vmem:[%s6981_s26 + $0x2d20] sm:$0xff]  ;;  %3423 = vmatpush.msrb.mxu1 %v1721_v49 }
 0x1a6   : > { %v1849_v52 = vld [vmem:[%s6981_s26 + $0x2f40] sm:$0xff]  ;;  %3444 = vmatpush.msrb.mxu2 %v1781_v51 }
 0x1a7   : > { %v1649_v53 = vld [vmem:[%s6981_s26 + $0x2900] sm:$0xff]  ;;  %3463 = vmatpush.msrb.mxu3 %v1849_v52  ;;  %v7474_v52 = vld.sshfl [vmem:[#allocation1 + $0x28] sm:$0xff pattern:$0x73625140] }
 0x1a8   : > { %v1717_v54 = vld [vmem:[%s6981_s26 + $0x2b20] sm:$0xff]  ;;  %3405 = vmatpush.msrb.mxu0 %v1649_v53  ;;  %v7476_v53 = vld.sshfl [vmem:[#allocation1 + $0x38] sm:$0xff pattern:$0x73625140] }
 0x1a9   : > { %v1777_v55 = vld [vmem:[%s6981_s26 + $0x2d00] sm:$0xff]  ;;  %3424 = vmatpush.msrb.mxu1 %v1717_v54 }
 0x1aa   : > { %v1845_v56 = vld [vmem:[%s6981_s26 + $0x2f20] sm:$0xff]  ;;  %3445 = vmatpush.msrb.mxu2 %v1777_v55 }
 0x1ab   : > { %v1645_v57 = vld [vmem:[%s6981_s26 + $0x28e0] sm:$0xff]  ;;  %3464 = vmatpush.msrb.mxu3 %v1845_v56 }
 0x1ac   : > { %v1713_v58 = vld [vmem:[%s6981_s26 + $0x2b00] sm:$0xff]  ;;  %3406 = vmatpush.msrb.mxu0 %v1645_v57 }
 0x1ad   : > { %v1773_v59 = vld [vmem:[%s6981_s26 + $0x2ce0] sm:$0xff]  ;;  %3425 = vmatpush.msrb.mxu1 %v1713_v58 }
 0x1ae   : > { %v1841_v60 = vld [vmem:[%s6981_s26 + $0x2f00] sm:$0xff]  ;;  %3446 = vmatpush.msrb.mxu2 %v1773_v59 }
 0x1af   : > { %v1641_v1 = vld [vmem:[%s6981_s26 + $0x28c0] sm:$0xff]  ;;  %3465 = vmatpush.msrb.mxu3 %v1841_v60 }
 0x1b0   : > { %v1709_v2 = vld [vmem:[%s6981_s26 + $0x2ae0] sm:$0xff]  ;;  %3407 = vmatpush.msrb.mxu0 %v1641_v1 }
 0x1b1   : > { %v1769_v3 = vld [vmem:[%s6981_s26 + $0x2cc0] sm:$0xff]  ;;  %3426 = vmatpush.msrb.mxu1 %v1709_v2 }
 0x1b2   : > { %v1837_v4 = vld [vmem:[%s6981_s26 + $0x2ee0] sm:$0xff]  ;;  %3447 = vmatpush.msrb.mxu2 %v1769_v3 }
 0x1b3   : > { %v1637_v5 = vld [vmem:[%s6981_s26 + $0x28a0] sm:$0xff]  ;;  %3466 = vmatpush.msrb.mxu3 %v1837_v4 }
 0x1b4   : > { %v1705_v6 = vld [vmem:[%s6981_s26 + $0x2ac0] sm:$0xff]  ;;  %3408 = vmatpush.msrb.mxu0 %v1637_v5 }
 0x1b5   : > { %v1765_v7 = vld [vmem:[%s6981_s26 + $0x2ca0] sm:$0xff]  ;;  %3427 = vmatpush.msrb.mxu1 %v1705_v6 }
 0x1b6   : > { %v1833_v8 = vld [vmem:[%s6981_s26 + $0x2ec0] sm:$0xff]  ;;  %3448 = vmatpush.msrb.mxu2 %v1765_v7 }
 0x1b7   : > { %v1633_v11 = vld [vmem:[%s6981_s26 + $0x2880] sm:$0xff]  ;;  %3467 = vmatpush.msrb.mxu3 %v1833_v8 }
 0x1b8   : > { %v1701_v12 = vld [vmem:[%s6981_s26 + $0x2aa0] sm:$0xff]  ;;  %3409 = vmatpush.msrb.mxu0 %v1633_v11 }
 0x1b9   : > { %v1761_v13 = vld [vmem:[%s6981_s26 + $0x2c80] sm:$0xff]  ;;  %3428 = vmatpush.msrb.mxu1 %v1701_v12 }
 0x1ba   : > { %v1829_v14 = vld [vmem:[%s6981_s26 + $0x2ea0] sm:$0xff]  ;;  %3449 = vmatpush.msrb.mxu2 %v1761_v13 }
 0x1bb   : > { %v1629_v17 = vld [vmem:[%s6981_s26 + $0x2860] sm:$0xff]  ;;  %3468 = vmatpush.msrb.mxu3 %v1829_v14 }
 0x1bc   : > { %v1697_v18 = vld [vmem:[%s6981_s26 + $0x2a80] sm:$0xff]  ;;  %3410 = vmatpush.msrb.mxu0 %v1629_v17 }
 0x1bd   : > { %v1757_v19 = vld [vmem:[%s6981_s26 + $0x2c60] sm:$0xff]  ;;  %3429 = vmatpush.msrb.mxu1 %v1697_v18 }
 0x1be   : > { %v1825_v20 = vld [vmem:[%s6981_s26 + $0x2e80] sm:$0xff]  ;;  %3450 = vmatpush.msrb.mxu2 %v1757_v19 }
 0x1bf   : > { %v1625_v21 = vld [vmem:[%s6981_s26 + $0x2840] sm:$0xff]  ;;  %3469 = vmatpush.msrb.mxu3 %v1825_v20 }
 0x1c0   : > { %v1693_v22 = vld [vmem:[%s6981_s26 + $0x2a60] sm:$0xff]  ;;  %3411 = vmatpush.msrb.mxu0 %v1625_v21 }
 0x1c1   : > { %v1753_v23 = vld [vmem:[%s6981_s26 + $0x2c40] sm:$0xff]  ;;  %3430 = vmatpush.msrb.mxu1 %v1693_v22 }
 0x1c2   : > { %v1821_v24 = vld [vmem:[%s6981_s26 + $0x2e60] sm:$0xff]  ;;  %3451 = vmatpush.msrb.mxu2 %v1753_v23 }
 0x1c3   : > { %v1621_v25 = vld [vmem:[%s6981_s26 + $0x2820] sm:$0xff]  ;;  %3470 = vmatpush.msrb.mxu3 %v1821_v24 }
 0x1c4   : > { %v1689_v29 = vld [vmem:[%s6981_s26 + $0x2a40] sm:$0xff]  ;;  %3412 = vmatpush.msrb.mxu0 %v1621_v25 }
 0x1c5   : > { %v333_v30 = vld [vmem:[%s7006_s28 + $0x30] sm:$0xff]  ;;  %3431 = vmatpush.msrb.mxu1 %v1689_v29 }
 0x1c6   : > { %v1749_v32 = vld [vmem:[%s6981_s26 + $0x2c20] sm:$0xff]  ;;  %2938 = vst [vmem:[#allocation1] ss:$4 sm:$0xff] %v333_v30 }
 0x1c7   : > { %v1817_v33 = vld [vmem:[%s6981_s26 + $0x2e40] sm:$0xff]  ;;  %3452 = vmatpush.msrb.mxu2 %v1749_v32 }
 0x1c8   : > { %v1617_v34 = vld [vmem:[%s6981_s26 + $0x2800] sm:$0xff]  ;;  %3471 = vmatpush.msrb.mxu3 %v1817_v33 }
 0x1c9   : > { %v1685_v35 = vld [vmem:[%s6981_s26 + $0x2a20] sm:$0xff]  ;;  %3413 = vmatpush.msrb.mxu0 %v1617_v34 }
 0x1ca   : > { %v1745_v36 = vld [vmem:[%s6981_s26 + $0x2c00] sm:$0xff]  ;;  %3432 = vmatpush.msrb.mxu1 %v1685_v35  ;;  %3414 = vmatmul.f32.vlgmr.msrb.gmra.mxu0 %v7464_v38 }
 0x1cb   : > { %v1813_v37 = vld [vmem:[%s6981_s26 + $0x2e20] sm:$0xff]  ;;  %3453 = vmatpush.msrb.mxu2 %v1745_v36 }
 0x1cc   : > { %v7466_v39 = vld.sshfl [vmem:[#allocation1 + $0x30] sm:$0xff pattern:$0x73625140]  ;;  %3472 = vmatpush.msrb.mxu3 %v1813_v37 }
 0x1cd   : > { %v1933_v40 = vld [vmem:[%s6981_s26 + $0x31e0] sm:$0xff]  ;;  %3454 = vmatmul.f32.vlgmr.msrb.gmra.mxu2 %v7466_v39 }
 0x1ce   : > { %v2061_v44 = vld [vmem:[%s6981_s26 + $0x35e0] sm:$0xff]  ;;  %3478 = vmatpush.msra.mxu0 %v1933_v40 }
 0x1cf   : > { %v1681_v49 = vld [vmem:[%s6981_s26 + $0x2a00] sm:$0xff]  ;;  %3518 = vmatpush.msra.mxu2 %v2061_v44 }
 0x1d0   : > { %v1809_v51 = vld [vmem:[%s6981_s26 + $0x2e00] sm:$0xff]  ;;  %3433 = vmatpush.msrb.mxu1 %v1681_v49 }
 0x1d1   : > { %v1929_v54 = vld [vmem:[%s6981_s26 + $0x31c0] sm:$0xff]  ;;  %3473 = vmatpush.msrb.mxu3 %v1809_v51  ;;  %3434 = vmatmul.f32.vlgmr.msrb.gmra.mxu1 %v7474_v52 }
 0x1d2   : > { %v1997_v55 = vld [vmem:[%s6981_s26 + $0x33e0] sm:$0xff]  ;;  %3474 = vmatmul.f32.vlgmr.msrb.gmra.mxu3 %v7476_v53  ;;  %3479 = vmatpush.msra.mxu0 %v1929_v54 }
 0x1d3   : > { %v2057_v56 = vld [vmem:[%s6981_s26 + $0x35c0] sm:$0xff]  ;;  %3498 = vmatpush.msra.mxu1 %v1997_v55 }
 0x1d4   : > { %v2125_v57 = vld [vmem:[%s6981_s26 + $0x37e0] sm:$0xff]  ;;  %3519 = vmatpush.msra.mxu2 %v2057_v56 }
 0x1d5   : > { %v1925_v58 = vld [vmem:[%s6981_s26 + $0x31a0] sm:$0xff]  ;;  %3538 = vmatpush.msra.mxu3 %v2125_v57 }
 0x1d6   : > { %v1993_v59 = vld [vmem:[%s6981_s26 + $0x33c0] sm:$0xff]  ;;  %3480 = vmatpush.msra.mxu0 %v1925_v58 }
 0x1d7   : > { %v2053_v60 = vld [vmem:[%s6981_s26 + $0x35a0] sm:$0xff]  ;;  %3499 = vmatpush.msra.mxu1 %v1993_v59 }
 0x1d8   : > { %v2121_v1 = vld [vmem:[%s6981_s26 + $0x37c0] sm:$0xff]  ;;  %3520 = vmatpush.msra.mxu2 %v2053_v60 }
 0x1d9   : > { %v1921_v2 = vld [vmem:[%s6981_s26 + $0x3180] sm:$0xff]  ;;  %3539 = vmatpush.msra.mxu3 %v2121_v1 }
 0x1da   : > { %v1989_v3 = vld [vmem:[%s6981_s26 + $0x33a0] sm:$0xff]  ;;  %3481 = vmatpush.msra.mxu0 %v1921_v2 }
 0x1db   : > { %v2049_v4 = vld [vmem:[%s6981_s26 + $0x3580] sm:$0xff]  ;;  %3500 = vmatpush.msra.mxu1 %v1989_v3 }
 0x1dc   : > { %v2117_v5 = vld [vmem:[%s6981_s26 + $0x37a0] sm:$0xff]  ;;  %3521 = vmatpush.msra.mxu2 %v2049_v4 }
 0x1dd   : > { %v1917_v6 = vld [vmem:[%s6981_s26 + $0x3160] sm:$0xff]  ;;  %3540 = vmatpush.msra.mxu3 %v2117_v5 }
 0x1de   : > { %v1985_v7 = vld [vmem:[%s6981_s26 + $0x3380] sm:$0xff]  ;;  %3482 = vmatpush.msra.mxu0 %v1917_v6 }
 0x1df   : > { %v2045_v8 = vld [vmem:[%s6981_s26 + $0x3560] sm:$0xff]  ;;  %3501 = vmatpush.msra.mxu1 %v1985_v7 }
 0x1e0   : > { %v2113_v11 = vld [vmem:[%s6981_s26 + $0x3780] sm:$0xff]  ;;  %3522 = vmatpush.msra.mxu2 %v2045_v8  ;;  %v334_v8 = vld [vmem:[%s7006_s28 + $0x38] sm:$0xff] }
 0x1e1   : > { %v1913_v12 = vld [vmem:[%s6981_s26 + $0x3140] sm:$0xff]  ;;  %3541 = vmatpush.msra.mxu3 %v2113_v11  ;;  %2939 = vst [vmem:[#allocation1 + $0x20] ss:$4 sm:$0xff] %v334_v8 }
 0x1e2   : > { %v1981_v13 = vld [vmem:[%s6981_s26 + $0x3360] sm:$0xff]  ;;  %3483 = vmatpush.msra.mxu0 %v1913_v12 }
 0x1e3   : > { %v2041_v14 = vld [vmem:[%s6981_s26 + $0x3540] sm:$0xff]  ;;  %3502 = vmatpush.msra.mxu1 %v1981_v13 }
 0x1e4   : > { %v2109_v17 = vld [vmem:[%s6981_s26 + $0x3760] sm:$0xff]  ;;  %3523 = vmatpush.msra.mxu2 %v2041_v14 }
 0x1e5   : > { %v1909_v18 = vld [vmem:[%s6981_s26 + $0x3120] sm:$0xff]  ;;  %3542 = vmatpush.msra.mxu3 %v2109_v17 }
 0x1e6   : > { %v1977_v19 = vld [vmem:[%s6981_s26 + $0x3340] sm:$0xff]  ;;  %3484 = vmatpush.msra.mxu0 %v1909_v18 }
 0x1e7   : > { %v2037_v20 = vld [vmem:[%s6981_s26 + $0x3520] sm:$0xff]  ;;  %3503 = vmatpush.msra.mxu1 %v1977_v19  ;;  %v7541_v19 = vld.sshfl [vmem:[#allocation1] sm:$0xff pattern:$0x73625140] }
 0x1e8   : > { %v2105_v21 = vld [vmem:[%s6981_s26 + $0x3740] sm:$0xff]  ;;  %3524 = vmatpush.msra.mxu2 %v2037_v20 }
 0x1e9   : > { %v1905_v22 = vld [vmem:[%s6981_s26 + $0x3100] sm:$0xff]  ;;  %3543 = vmatpush.msra.mxu3 %v2105_v21 }
 0x1ea   : > { %v1973_v23 = vld [vmem:[%s6981_s26 + $0x3320] sm:$0xff]  ;;  %3485 = vmatpush.msra.mxu0 %v1905_v22 }
 0x1eb   : > { %v2033_v24 = vld [vmem:[%s6981_s26 + $0x3500] sm:$0xff]  ;;  %3504 = vmatpush.msra.mxu1 %v1973_v23 }
 0x1ec   : > { %v2101_v25 = vld [vmem:[%s6981_s26 + $0x3720] sm:$0xff]  ;;  %3525 = vmatpush.msra.mxu2 %v2033_v24 }
 0x1ed   : > { %v1901_v29 = vld [vmem:[%s6981_s26 + $0x30e0] sm:$0xff]  ;;  %3544 = vmatpush.msra.mxu3 %v2101_v25  ;;  %v7551_v25 = vld.sshfl [vmem:[#allocation1 + $0x8] sm:$0xff pattern:$0x73625140] }
 0x1ee   : > { %v1969_v30 = vld [vmem:[%s6981_s26 + $0x3300] sm:$0xff]  ;;  %3486 = vmatpush.msra.mxu0 %v1901_v29  ;;  %v7553_v29 = vld.sshfl [vmem:[#allocation1 + $0x18] sm:$0xff pattern:$0x73625140] }
 0x1ef   : > { %v2029_v32 = vld [vmem:[%s6981_s26 + $0x34e0] sm:$0xff]  ;;  %3505 = vmatpush.msra.mxu1 %v1969_v30 }
 0x1f0   : > { %v2097_v33 = vld [vmem:[%s6981_s26 + $0x3700] sm:$0xff]  ;;  %3526 = vmatpush.msra.mxu2 %v2029_v32 }
 0x1f1   : > { %v1897_v34 = vld [vmem:[%s6981_s26 + $0x30c0] sm:$0xff]  ;;  %3545 = vmatpush.msra.mxu3 %v2097_v33 }
 0x1f2   : > { %v1965_v35 = vld [vmem:[%s6981_s26 + $0x32e0] sm:$0xff]  ;;  %3487 = vmatpush.msra.mxu0 %v1897_v34 }
 0x1f3   : > { %v2025_v36 = vld [vmem:[%s6981_s26 + $0x34c0] sm:$0xff]  ;;  %3506 = vmatpush.msra.mxu1 %v1965_v35 }
 0x1f4   : > { %v2093_v37 = vld [vmem:[%s6981_s26 + $0x36e0] sm:$0xff]  ;;  %3527 = vmatpush.msra.mxu2 %v2025_v36 }
 0x1f5   : > { %v1893_v40 = vld [vmem:[%s6981_s26 + $0x30a0] sm:$0xff]  ;;  %3546 = vmatpush.msra.mxu3 %v2093_v37 }
 0x1f6   : > { %v1961_v44 = vld [vmem:[%s6981_s26 + $0x32c0] sm:$0xff]  ;;  %3488 = vmatpush.msra.mxu0 %v1893_v40 }
 0x1f7   : > { %v2021_v49 = vld [vmem:[%s6981_s26 + $0x34a0] sm:$0xff]  ;;  %3507 = vmatpush.msra.mxu1 %v1961_v44 }
 0x1f8   : > { %v2089_v51 = vld [vmem:[%s6981_s26 + $0x36c0] sm:$0xff]  ;;  %3528 = vmatpush.msra.mxu2 %v2021_v49 }
 0x1f9   : > { %v1889_v54 = vld [vmem:[%s6981_s26 + $0x3080] sm:$0xff]  ;;  %3547 = vmatpush.msra.mxu3 %v2089_v51 }
 0x1fa   : > { %v1957_v55 = vld [vmem:[%s6981_s26 + $0x32a0] sm:$0xff]  ;;  %3489 = vmatpush.msra.mxu0 %v1889_v54 }
 0x1fb   : > { %v2017_v56 = vld [vmem:[%s6981_s26 + $0x3480] sm:$0xff]  ;;  %3508 = vmatpush.msra.mxu1 %v1957_v55 }
 0x1fc   : > { %v2085_v57 = vld [vmem:[%s6981_s26 + $0x36a0] sm:$0xff]  ;;  %3529 = vmatpush.msra.mxu2 %v2017_v56 }
 0x1fd   : > { %v1885_v58 = vld [vmem:[%s6981_s26 + $0x3060] sm:$0xff]  ;;  %3548 = vmatpush.msra.mxu3 %v2085_v57 }
 0x1fe   : > { %v1953_v59 = vld [vmem:[%s6981_s26 + $0x3280] sm:$0xff]  ;;  %3490 = vmatpush.msra.mxu0 %v1885_v58 }
 0x1ff   : > { %v2013_v60 = vld [vmem:[%s6981_s26 + $0x3460] sm:$0xff]  ;;  %3509 = vmatpush.msra.mxu1 %v1953_v59 }
 0x200   : > { %v2081_v1 = vld [vmem:[%s6981_s26 + $0x3680] sm:$0xff]  ;;  %3530 = vmatpush.msra.mxu2 %v2013_v60 }
 0x201   : > { %v1881_v2 = vld [vmem:[%s6981_s26 + $0x3040] sm:$0xff]  ;;  %3549 = vmatpush.msra.mxu3 %v2081_v1 }
 0x202   : > { %v1949_v3 = vld [vmem:[%s6981_s26 + $0x3260] sm:$0xff]  ;;  %3491 = vmatpush.msra.mxu0 %v1881_v2 }
 0x203   : > { %v2009_v4 = vld [vmem:[%s6981_s26 + $0x3440] sm:$0xff]  ;;  %3510 = vmatpush.msra.mxu1 %v1949_v3 }
 0x204   : > { %v2077_v5 = vld [vmem:[%s6981_s26 + $0x3660] sm:$0xff]  ;;  %3531 = vmatpush.msra.mxu2 %v2009_v4 }
 0x205   : > { %v1877_v6 = vld [vmem:[%s6981_s26 + $0x3020] sm:$0xff]  ;;  %3550 = vmatpush.msra.mxu3 %v2077_v5 }
 0x206   : > { %v1945_v7 = vld [vmem:[%s6981_s26 + $0x3240] sm:$0xff]  ;;  %3492 = vmatpush.msra.mxu0 %v1877_v6 }
 0x207   : > { %v2005_v11 = vld [vmem:[%s6981_s26 + $0x3420] sm:$0xff]  ;;  %3511 = vmatpush.msra.mxu1 %v1945_v7 }
 0x208   : > { %v2073_v12 = vld [vmem:[%s6981_s26 + $0x3640] sm:$0xff]  ;;  %3532 = vmatpush.msra.mxu2 %v2005_v11 }
 0x209   : > { %v1873_v13 = vld [vmem:[%s6981_s26 + $0x3000] sm:$0xff]  ;;  %3551 = vmatpush.msra.mxu3 %v2073_v12 }
 0x20a   : > { %v1941_v14 = vld [vmem:[%s6981_s26 + $0x3220] sm:$0xff]  ;;  %3493 = vmatpush.msra.mxu0 %v1873_v13 }
 0x20b   : > { %v2001_v17 = vld [vmem:[%s6981_s26 + $0x3400] sm:$0xff]  ;;  %3512 = vmatpush.msra.mxu1 %v1941_v14  ;;  %3494 = vmatmul.f32.vlgmr.msra.gmra.mxu0 %v7541_v19 }
 0x20c   : > { %v2069_v18 = vld [vmem:[%s6981_s26 + $0x3620] sm:$0xff]  ;;  %3533 = vmatpush.msra.mxu2 %v2001_v17 }
 0x20d   : > { %v7543_v20 = vld.sshfl [vmem:[#allocation1 + $0x10] sm:$0xff pattern:$0x73625140]  ;;  %3552 = vmatpush.msra.mxu3 %v2069_v18 }
 0x20e   : > { %v2189_v21 = vld [vmem:[%s6981_s26 + $0x39e0] sm:$0xff]  ;;  %3534 = vmatmul.f32.vlgmr.msra.gmra.mxu2 %v7543_v20 }
 0x20f   : > { %v2317_v22 = vld [vmem:[%s6981_s26 + $0x3de0] sm:$0xff]  ;;  %3558 = vmatpush.msrb.mxu0 %v2189_v21 }
 0x210   : > { %v1937_v23 = vld [vmem:[%s6981_s26 + $0x3200] sm:$0xff]  ;;  %3598 = vmatpush.msrb.mxu2 %v2317_v22 }
 0x211   : > { %v2065_v24 = vld [vmem:[%s6981_s26 + $0x3600] sm:$0xff]  ;;  %3513 = vmatpush.msra.mxu1 %v1937_v23 }
 0x212   : > { %v2185_v30 = vld [vmem:[%s6981_s26 + $0x39c0] sm:$0xff]  ;;  %3553 = vmatpush.msra.mxu3 %v2065_v24  ;;  %3514 = vmatmul.f32.vlgmr.msra.gmra.mxu1 %v7551_v25 }
 0x213   : > { %v2253_v32 = vld [vmem:[%s6981_s26 + $0x3be0] sm:$0xff]  ;;  %3554 = vmatmul.f32.vlgmr.msra.gmra.mxu3 %v7553_v29  ;;  %3559 = vmatpush.msrb.mxu0 %v2185_v30 }
 0x214   : > { %v2313_v33 = vld [vmem:[%s6981_s26 + $0x3dc0] sm:$0xff]  ;;  %3578 = vmatpush.msrb.mxu1 %v2253_v32 }
 0x215   : > { %v2381_v34 = vld [vmem:[%s6981_s26 + $0x3fe0] sm:$0xff]  ;;  %3599 = vmatpush.msrb.mxu2 %v2313_v33 }
 0x216   : > { %v2181_v35 = vld [vmem:[%s6981_s26 + $0x39a0] sm:$0xff]  ;;  %3618 = vmatpush.msrb.mxu3 %v2381_v34 }
 0x217   : > { %v2249_v36 = vld [vmem:[%s6981_s26 + $0x3bc0] sm:$0xff]  ;;  %3560 = vmatpush.msrb.mxu0 %v2181_v35 }
 0x218   : > { %v2309_v37 = vld [vmem:[%s6981_s26 + $0x3da0] sm:$0xff]  ;;  %3579 = vmatpush.msrb.mxu1 %v2249_v36 }
 0x219   : > { %v2377_v40 = vld [vmem:[%s6981_s26 + $0x3fc0] sm:$0xff]  ;;  %3600 = vmatpush.msrb.mxu2 %v2309_v37 }
 0x21a   : > { %v2177_v44 = vld [vmem:[%s6981_s26 + $0x3980] sm:$0xff]  ;;  %3619 = vmatpush.msrb.mxu3 %v2377_v40 }
 0x21b   : > { %v2245_v49 = vld [vmem:[%s6981_s26 + $0x3ba0] sm:$0xff]  ;;  %3561 = vmatpush.msrb.mxu0 %v2177_v44 }
 0x21c   : > { %v2305_v51 = vld [vmem:[%s6981_s26 + $0x3d80] sm:$0xff]  ;;  %3580 = vmatpush.msrb.mxu1 %v2245_v49 }
 0x21d   : > { %v2373_v54 = vld [vmem:[%s6981_s26 + $0x3fa0] sm:$0xff]  ;;  %3601 = vmatpush.msrb.mxu2 %v2305_v51 }
 0x21e   : > { %v2173_v55 = vld [vmem:[%s6981_s26 + $0x3960] sm:$0xff]  ;;  %3620 = vmatpush.msrb.mxu3 %v2373_v54 }
 0x21f   : > { %v2241_v56 = vld [vmem:[%s6981_s26 + $0x3b80] sm:$0xff]  ;;  %3562 = vmatpush.msrb.mxu0 %v2173_v55 }
 0x220   : > { %v2301_v57 = vld [vmem:[%s6981_s26 + $0x3d60] sm:$0xff]  ;;  %3581 = vmatpush.msrb.mxu1 %v2241_v56 }
 0x221   : > { %v2369_v58 = vld [vmem:[%s6981_s26 + $0x3f80] sm:$0xff]  ;;  %3602 = vmatpush.msrb.mxu2 %v2301_v57 }
 0x222   : > { %v2169_v59 = vld [vmem:[%s6981_s26 + $0x3940] sm:$0xff]  ;;  %3621 = vmatpush.msrb.mxu3 %v2369_v58 }
 0x223   : > { %v2237_v60 = vld [vmem:[%s6981_s26 + $0x3b60] sm:$0xff]  ;;  %3563 = vmatpush.msrb.mxu0 %v2169_v59 }
 0x224   : > { %v2297_v1 = vld [vmem:[%s6981_s26 + $0x3d40] sm:$0xff]  ;;  %3582 = vmatpush.msrb.mxu1 %v2237_v60 }
 0x225   : > { %v2365_v2 = vld [vmem:[%s6981_s26 + $0x3f60] sm:$0xff]  ;;  %3603 = vmatpush.msrb.mxu2 %v2297_v1  ;;  %v335_v1 = vld [vmem:[%s7006_s28 + $0x40] sm:$0xff] }
 0x226   : > { %v2165_v3 = vld [vmem:[%s6981_s26 + $0x3920] sm:$0xff]  ;;  %3622 = vmatpush.msrb.mxu3 %v2365_v2  ;;  %2948 = vst [vmem:[#allocation1] ss:$4 sm:$0xff] %v335_v1 }
 0x227   : > { %v2233_v4 = vld [vmem:[%s6981_s26 + $0x3b40] sm:$0xff]  ;;  %3564 = vmatpush.msrb.mxu0 %v2165_v3 }
 0x228   : > { %v2293_v5 = vld [vmem:[%s6981_s26 + $0x3d20] sm:$0xff]  ;;  %3583 = vmatpush.msrb.mxu1 %v2233_v4 }
 0x229   : > { %v2361_v6 = vld [vmem:[%s6981_s26 + $0x3f40] sm:$0xff]  ;;  %3604 = vmatpush.msrb.mxu2 %v2293_v5 }
 0x22a   : > { %v2161_v7 = vld [vmem:[%s6981_s26 + $0x3900] sm:$0xff]  ;;  %3623 = vmatpush.msrb.mxu3 %v2361_v6 }
 0x22b   : > { %v2229_v8 = vld [vmem:[%s6981_s26 + $0x3b20] sm:$0xff]  ;;  %3565 = vmatpush.msrb.mxu0 %v2161_v7 }
 0x22c   : > { %v2289_v11 = vld [vmem:[%s6981_s26 + $0x3d00] sm:$0xff]  ;;  %3584 = vmatpush.msrb.mxu1 %v2229_v8  ;;  %v7618_v8 = vld.sshfl [vmem:[#allocation1 + $0x20] sm:$0xff pattern:$0x73625140] }
 0x22d   : > { %v2357_v12 = vld [vmem:[%s6981_s26 + $0x3f20] sm:$0xff]  ;;  %3605 = vmatpush.msrb.mxu2 %v2289_v11 }
 0x22e   : > { %v2157_v13 = vld [vmem:[%s6981_s26 + $0x38e0] sm:$0xff]  ;;  %3624 = vmatpush.msrb.mxu3 %v2357_v12 }
 0x22f   : > { %v2225_v14 = vld [vmem:[%s6981_s26 + $0x3b00] sm:$0xff]  ;;  %3566 = vmatpush.msrb.mxu0 %v2157_v13 }
 0x230   : > { %v2285_v17 = vld [vmem:[%s6981_s26 + $0x3ce0] sm:$0xff]  ;;  %3585 = vmatpush.msrb.mxu1 %v2225_v14 }
 0x231   : > { %v2353_v18 = vld [vmem:[%s6981_s26 + $0x3f00] sm:$0xff]  ;;  %3606 = vmatpush.msrb.mxu2 %v2285_v17 }
 0x232   : > { %v2153_v21 = vld [vmem:[%s6981_s26 + $0x38c0] sm:$0xff]  ;;  %3625 = vmatpush.msrb.mxu3 %v2353_v18  ;;  %v7628_v18 = vld.sshfl [vmem:[#allocation1 + $0x28] sm:$0xff pattern:$0x73625140] }
 0x233   : > { %v2221_v22 = vld [vmem:[%s6981_s26 + $0x3ae0] sm:$0xff]  ;;  %3567 = vmatpush.msrb.mxu0 %v2153_v21  ;;  %v7630_v21 = vld.sshfl [vmem:[#allocation1 + $0x38] sm:$0xff pattern:$0x73625140] }
 0x234   : > { %v2281_v23 = vld [vmem:[%s6981_s26 + $0x3cc0] sm:$0xff]  ;;  %3586 = vmatpush.msrb.mxu1 %v2221_v22 }
 0x235   : > { %v2349_v24 = vld [vmem:[%s6981_s26 + $0x3ee0] sm:$0xff]  ;;  %3607 = vmatpush.msrb.mxu2 %v2281_v23 }
 0x236   : > { %v2149_v30 = vld [vmem:[%s6981_s26 + $0x38a0] sm:$0xff]  ;;  %3626 = vmatpush.msrb.mxu3 %v2349_v24 }
 0x237   : > { %v2217_v32 = vld [vmem:[%s6981_s26 + $0x3ac0] sm:$0xff]  ;;  %3568 = vmatpush.msrb.mxu0 %v2149_v30 }
 0x238   : > { %v2277_v33 = vld [vmem:[%s6981_s26 + $0x3ca0] sm:$0xff]  ;;  %3587 = vmatpush.msrb.mxu1 %v2217_v32 }
 0x239   : > { %v2345_v34 = vld [vmem:[%s6981_s26 + $0x3ec0] sm:$0xff]  ;;  %3608 = vmatpush.msrb.mxu2 %v2277_v33 }
 0x23a   : > { %v2145_v35 = vld [vmem:[%s6981_s26 + $0x3880] sm:$0xff]  ;;  %3627 = vmatpush.msrb.mxu3 %v2345_v34 }
 0x23b   : > { %v2213_v36 = vld [vmem:[%s6981_s26 + $0x3aa0] sm:$0xff]  ;;  %3569 = vmatpush.msrb.mxu0 %v2145_v35 }
 0x23c   : > { %v2273_v37 = vld [vmem:[%s6981_s26 + $0x3c80] sm:$0xff]  ;;  %3588 = vmatpush.msrb.mxu1 %v2213_v36 }
 0x23d   : > { %v2341_v40 = vld [vmem:[%s6981_s26 + $0x3ea0] sm:$0xff]  ;;  %3609 = vmatpush.msrb.mxu2 %v2273_v37 }
 0x23e   : > { %v2141_v44 = vld [vmem:[%s6981_s26 + $0x3860] sm:$0xff]  ;;  %3628 = vmatpush.msrb.mxu3 %v2341_v40 }
 0x23f   : > { %v2209_v49 = vld [vmem:[%s6981_s26 + $0x3a80] sm:$0xff]  ;;  %3570 = vmatpush.msrb.mxu0 %v2141_v44 }
 0x240   : > { %v2269_v51 = vld [vmem:[%s6981_s26 + $0x3c60] sm:$0xff]  ;;  %3589 = vmatpush.msrb.mxu1 %v2209_v49 }
 0x241   : > { %v2337_v54 = vld [vmem:[%s6981_s26 + $0x3e80] sm:$0xff]  ;;  %3610 = vmatpush.msrb.mxu2 %v2269_v51 }
 0x242   : > { %v2137_v55 = vld [vmem:[%s6981_s26 + $0x3840] sm:$0xff]  ;;  %3629 = vmatpush.msrb.mxu3 %v2337_v54 }
 0x243   : > { %v2205_v56 = vld [vmem:[%s6981_s26 + $0x3a60] sm:$0xff]  ;;  %3571 = vmatpush.msrb.mxu0 %v2137_v55 }
 0x244   : > { %v2265_v57 = vld [vmem:[%s6981_s26 + $0x3c40] sm:$0xff]  ;;  %3590 = vmatpush.msrb.mxu1 %v2205_v56 }
 0x245   : > { %v2333_v58 = vld [vmem:[%s6981_s26 + $0x3e60] sm:$0xff]  ;;  %3611 = vmatpush.msrb.mxu2 %v2265_v57 }
 0x246   : > { %v2133_v59 = vld [vmem:[%s6981_s26 + $0x3820] sm:$0xff]  ;;  %3630 = vmatpush.msrb.mxu3 %v2333_v58 }
 0x247   : > { %v2201_v60 = vld [vmem:[%s6981_s26 + $0x3a40] sm:$0xff]  ;;  %3572 = vmatpush.msrb.mxu0 %v2133_v59 }
 0x248   : > { %v2261_v2 = vld [vmem:[%s6981_s26 + $0x3c20] sm:$0xff]  ;;  %3591 = vmatpush.msrb.mxu1 %v2201_v60 }
 0x249   : > { %v2329_v3 = vld [vmem:[%s6981_s26 + $0x3e40] sm:$0xff]  ;;  %3612 = vmatpush.msrb.mxu2 %v2261_v2 }
 0x24a   : > { %v2129_v4 = vld [vmem:[%s6981_s26 + $0x3800] sm:$0xff]  ;;  %3631 = vmatpush.msrb.mxu3 %v2329_v3 }
 0x24b   : > { %v2197_v5 = vld [vmem:[%s6981_s26 + $0x3a20] sm:$0xff]  ;;  %3573 = vmatpush.msrb.mxu0 %v2129_v4 }
 0x24c   : > { %v2257_v6 = vld [vmem:[%s6981_s26 + $0x3c00] sm:$0xff]  ;;  %3592 = vmatpush.msrb.mxu1 %v2197_v5  ;;  %3574 = vmatmul.f32.vlgmr.msrb.gmra.mxu0 %v7618_v8 }
 0x24d   : > { %v2325_v7 = vld [vmem:[%s6981_s26 + $0x3e20] sm:$0xff]  ;;  %3613 = vmatpush.msrb.mxu2 %v2257_v6 }
 0x24e   : > { %v7620_v11 = vld.sshfl [vmem:[#allocation1 + $0x30] sm:$0xff pattern:$0x73625140]  ;;  %3632 = vmatpush.msrb.mxu3 %v2325_v7 }
 0x24f   : > { %v2445_v12 = vld [vmem:[%s6981_s26 + $0x41e0] sm:$0xff]  ;;  %3614 = vmatmul.f32.vlgmr.msrb.gmra.mxu2 %v7620_v11 }
 0x250   : > { %v2573_v13 = vld [vmem:[%s6981_s26 + $0x45e0] sm:$0xff]  ;;  %3638 = vmatpush.msra.mxu0 %v2445_v12 }
 0x251   : > { %v2193_v14 = vld [vmem:[%s6981_s26 + $0x3a00] sm:$0xff]  ;;  %3678 = vmatpush.msra.mxu2 %v2573_v13 }
 0x252   : > { %v2321_v17 = vld [vmem:[%s6981_s26 + $0x3e00] sm:$0xff]  ;;  %3593 = vmatpush.msrb.mxu1 %v2193_v14 }
 0x253   : > { %v2441_v22 = vld [vmem:[%s6981_s26 + $0x41c0] sm:$0xff]  ;;  %3633 = vmatpush.msrb.mxu3 %v2321_v17  ;;  %3594 = vmatmul.f32.vlgmr.msrb.gmra.mxu1 %v7628_v18 }
 0x254   : > { %v2509_v23 = vld [vmem:[%s6981_s26 + $0x43e0] sm:$0xff]  ;;  %3634 = vmatmul.f32.vlgmr.msrb.gmra.mxu3 %v7630_v21  ;;  %3639 = vmatpush.msra.mxu0 %v2441_v22 }
 0x255   : > { %v2569_v24 = vld [vmem:[%s6981_s26 + $0x45c0] sm:$0xff]  ;;  %3658 = vmatpush.msra.mxu1 %v2509_v23 }
 0x256   : > { %v2637_v30 = vld [vmem:[%s6981_s26 + $0x47e0] sm:$0xff]  ;;  %3679 = vmatpush.msra.mxu2 %v2569_v24 }
 0x257   : > { %v2437_v32 = vld [vmem:[%s6981_s26 + $0x41a0] sm:$0xff]  ;;  %3698 = vmatpush.msra.mxu3 %v2637_v30 }
 0x258   : > { %v2505_v33 = vld [vmem:[%s6981_s26 + $0x43c0] sm:$0xff]  ;;  %3640 = vmatpush.msra.mxu0 %v2437_v32 }
 0x259   : > { %v2565_v34 = vld [vmem:[%s6981_s26 + $0x45a0] sm:$0xff]  ;;  %3659 = vmatpush.msra.mxu1 %v2505_v33 }
 0x25a   : > { %v2633_v35 = vld [vmem:[%s6981_s26 + $0x47c0] sm:$0xff]  ;;  %3680 = vmatpush.msra.mxu2 %v2565_v34 }
 0x25b   : > { %v2433_v36 = vld [vmem:[%s6981_s26 + $0x4180] sm:$0xff]  ;;  %3699 = vmatpush.msra.mxu3 %v2633_v35 }
 0x25c   : > { %v2501_v37 = vld [vmem:[%s6981_s26 + $0x43a0] sm:$0xff]  ;;  %3641 = vmatpush.msra.mxu0 %v2433_v36 }
 0x25d   : > { %v2561_v40 = vld [vmem:[%s6981_s26 + $0x4580] sm:$0xff]  ;;  %3660 = vmatpush.msra.mxu1 %v2501_v37 }
 0x25e   : > { %v2629_v44 = vld [vmem:[%s6981_s26 + $0x47a0] sm:$0xff]  ;;  %3681 = vmatpush.msra.mxu2 %v2561_v40 }
 0x25f   : > { %v2429_v49 = vld [vmem:[%s6981_s26 + $0x4160] sm:$0xff]  ;;  %3700 = vmatpush.msra.mxu3 %v2629_v44 }
 0x260   : > { %v2497_v51 = vld [vmem:[%s6981_s26 + $0x4380] sm:$0xff]  ;;  %3642 = vmatpush.msra.mxu0 %v2429_v49 }
 0x261   : > { %v2557_v54 = vld [vmem:[%s6981_s26 + $0x4560] sm:$0xff]  ;;  %3661 = vmatpush.msra.mxu1 %v2497_v51 }
 0x262   : > { %v2625_v55 = vld [vmem:[%s6981_s26 + $0x4780] sm:$0xff]  ;;  %3682 = vmatpush.msra.mxu2 %v2557_v54 }
 0x263   : > { %v2425_v56 = vld [vmem:[%s6981_s26 + $0x4140] sm:$0xff]  ;;  %3701 = vmatpush.msra.mxu3 %v2625_v55 }
 0x264   : > { %v2493_v57 = vld [vmem:[%s6981_s26 + $0x4360] sm:$0xff]  ;;  %3643 = vmatpush.msra.mxu0 %v2425_v56 }
 0x265   : > { %v2553_v58 = vld [vmem:[%s6981_s26 + $0x4540] sm:$0xff]  ;;  %3662 = vmatpush.msra.mxu1 %v2493_v57 }
 0x266   : > { %v2621_v59 = vld [vmem:[%s6981_s26 + $0x4760] sm:$0xff]  ;;  %3683 = vmatpush.msra.mxu2 %v2553_v58 }
 0x267   : > { %v2421_v60 = vld [vmem:[%s6981_s26 + $0x4120] sm:$0xff]  ;;  %3702 = vmatpush.msra.mxu3 %v2621_v59 }
 0x268   : > { %v2489_v1 = vld [vmem:[%s6981_s26 + $0x4340] sm:$0xff]  ;;  %3644 = vmatpush.msra.mxu0 %v2421_v60 }
 0x269   : > { %v2549_v2 = vld [vmem:[%s6981_s26 + $0x4520] sm:$0xff]  ;;  %3663 = vmatpush.msra.mxu1 %v2489_v1 }
 0x26a   : > { %v2617_v3 = vld [vmem:[%s6981_s26 + $0x4740] sm:$0xff]  ;;  %3684 = vmatpush.msra.mxu2 %v2549_v2  ;;  %v336_v2 = vld [vmem:[%s7006_s28 + $0x48] sm:$0xff] }
 0x26b   : > { %v2417_v4 = vld [vmem:[%s6981_s26 + $0x4100] sm:$0xff]  ;;  %3703 = vmatpush.msra.mxu3 %v2617_v3  ;;  %2949 = vst [vmem:[#allocation1 + $0x20] ss:$4 sm:$0xff] %v336_v2 }
 0x26c   : > { %v2485_v5 = vld [vmem:[%s6981_s26 + $0x4320] sm:$0xff]  ;;  %3645 = vmatpush.msra.mxu0 %v2417_v4 }
 0x26d   : > { %v2545_v6 = vld [vmem:[%s6981_s26 + $0x4500] sm:$0xff]  ;;  %3664 = vmatpush.msra.mxu1 %v2485_v5 }
 0x26e   : > { %v2613_v7 = vld [vmem:[%s6981_s26 + $0x4720] sm:$0xff]  ;;  %3685 = vmatpush.msra.mxu2 %v2545_v6 }
 0x26f   : > { %v2413_v12 = vld [vmem:[%s6981_s26 + $0x40e0] sm:$0xff]  ;;  %3704 = vmatpush.msra.mxu3 %v2613_v7 }
 0x270   : > { %v2481_v13 = vld [vmem:[%s6981_s26 + $0x4300] sm:$0xff]  ;;  %3646 = vmatpush.msra.mxu0 %v2413_v12 }
 0x271   : > { %v2541_v14 = vld [vmem:[%s6981_s26 + $0x44e0] sm:$0xff]  ;;  %3665 = vmatpush.msra.mxu1 %v2481_v13  ;;  %v2950_v13 = vld.sshfl [vmem:[#allocation1] sm:$0xff pattern:$0x73625140] }
 0x272   : > { %v2609_v17 = vld [vmem:[%s6981_s26 + $0x4700] sm:$0xff]  ;;  %3686 = vmatpush.msra.mxu2 %v2541_v14 }
 0x273   : > { %v2409_v22 = vld [vmem:[%s6981_s26 + $0x40c0] sm:$0xff]  ;;  %3705 = vmatpush.msra.mxu3 %v2609_v17 }
 0x274   : > { %v2477_v23 = vld [vmem:[%s6981_s26 + $0x42e0] sm:$0xff]  ;;  %3647 = vmatpush.msra.mxu0 %v2409_v22 }
 0x275   : > { %v2537_v24 = vld [vmem:[%s6981_s26 + $0x44c0] sm:$0xff]  ;;  %3666 = vmatpush.msra.mxu1 %v2477_v23 }
 0x276   : > { %v2605_v30 = vld [vmem:[%s6981_s26 + $0x46e0] sm:$0xff]  ;;  %3687 = vmatpush.msra.mxu2 %v2537_v24 }
 0x277   : > { %v2405_v32 = vld [vmem:[%s6981_s26 + $0x40a0] sm:$0xff]  ;;  %3706 = vmatpush.msra.mxu3 %v2605_v30  ;;  %v2951_v30 = vld.sshfl [vmem:[#allocation1 + $0x8] sm:$0xff pattern:$0x73625140] }
 0x278   : > { %v2473_v33 = vld [vmem:[%s6981_s26 + $0x42c0] sm:$0xff]  ;;  %3648 = vmatpush.msra.mxu0 %v2405_v32  ;;  %v2953_v32 = vld.sshfl [vmem:[#allocation1 + $0x18] sm:$0xff pattern:$0x73625140] }
 0x279   : > { %v2533_v34 = vld [vmem:[%s6981_s26 + $0x44a0] sm:$0xff]  ;;  %3667 = vmatpush.msra.mxu1 %v2473_v33 }
 0x27a   : > { %v2601_v35 = vld [vmem:[%s6981_s26 + $0x46c0] sm:$0xff]  ;;  %3688 = vmatpush.msra.mxu2 %v2533_v34 }
 0x27b   : > { %v2401_v36 = vld [vmem:[%s6981_s26 + $0x4080] sm:$0xff]  ;;  %3707 = vmatpush.msra.mxu3 %v2601_v35 }
 0x27c   : > { %v2469_v37 = vld [vmem:[%s6981_s26 + $0x42a0] sm:$0xff]  ;;  %3649 = vmatpush.msra.mxu0 %v2401_v36 }
 0x27d   : > { %v2529_v40 = vld [vmem:[%s6981_s26 + $0x4480] sm:$0xff]  ;;  %3668 = vmatpush.msra.mxu1 %v2469_v37 }
 0x27e   : > { %v2597_v44 = vld [vmem:[%s6981_s26 + $0x46a0] sm:$0xff]  ;;  %3689 = vmatpush.msra.mxu2 %v2529_v40 }
 0x27f   : > { %v2397_v49 = vld [vmem:[%s6981_s26 + $0x4060] sm:$0xff]  ;;  %3708 = vmatpush.msra.mxu3 %v2597_v44 }
 0x280   : > { %v2465_v51 = vld [vmem:[%s6981_s26 + $0x4280] sm:$0xff]  ;;  %3650 = vmatpush.msra.mxu0 %v2397_v49 }
 0x281   : > { %v2525_v54 = vld [vmem:[%s6981_s26 + $0x4460] sm:$0xff]  ;;  %3669 = vmatpush.msra.mxu1 %v2465_v51 }
 0x282   : > { %v2593_v55 = vld [vmem:[%s6981_s26 + $0x4680] sm:$0xff]  ;;  %3690 = vmatpush.msra.mxu2 %v2525_v54 }
 0x283   : > { %v2393_v56 = vld [vmem:[%s6981_s26 + $0x4040] sm:$0xff]  ;;  %3709 = vmatpush.msra.mxu3 %v2593_v55 }
 0x284   : > { %v2461_v57 = vld [vmem:[%s6981_s26 + $0x4260] sm:$0xff]  ;;  %3651 = vmatpush.msra.mxu0 %v2393_v56 }
 0x285   : > { %v2521_v58 = vld [vmem:[%s6981_s26 + $0x4440] sm:$0xff]  ;;  %3670 = vmatpush.msra.mxu1 %v2461_v57 }
 0x286   : > { %v2589_v59 = vld [vmem:[%s6981_s26 + $0x4660] sm:$0xff]  ;;  %3691 = vmatpush.msra.mxu2 %v2521_v58 }
 0x287   : > { %v2389_v60 = vld [vmem:[%s6981_s26 + $0x4020] sm:$0xff]  ;;  %3710 = vmatpush.msra.mxu3 %v2589_v59 }
 0x288   : > { %v2457_v1 = vld [vmem:[%s6981_s26 + $0x4240] sm:$0xff]  ;;  %3652 = vmatpush.msra.mxu0 %v2389_v60 }
 0x289   : > { %v2517_v3 = vld [vmem:[%s6981_s26 + $0x4420] sm:$0xff]  ;;  %3671 = vmatpush.msra.mxu1 %v2457_v1 }
 0x28a   : > { %v2585_v4 = vld [vmem:[%s6981_s26 + $0x4640] sm:$0xff]  ;;  %3692 = vmatpush.msra.mxu2 %v2517_v3 }
 0x28b   : > { %v2385_v5 = vld [vmem:[%s6981_s26 + $0x4000] sm:$0xff]  ;;  %3711 = vmatpush.msra.mxu3 %v2585_v4 }
 0x28c   : > { %v2453_v6 = vld [vmem:[%s6981_s26 + $0x4220] sm:$0xff]  ;;  %3653 = vmatpush.msra.mxu0 %v2385_v5 }
 0x28d   : > { %v2513_v7 = vld [vmem:[%s6981_s26 + $0x4400] sm:$0xff]  ;;  %3672 = vmatpush.msra.mxu1 %v2453_v6  ;;  %3654 = vmatmul.f32.vlgmr.msra.gmra.mxu0 %v2950_v13 }
 0x28e   : > { %v2581_v12 = vld [vmem:[%s6981_s26 + $0x4620] sm:$0xff]  ;;  %3693 = vmatpush.msra.mxu2 %v2513_v7 }
 0x28f   : > { %v2952_v14 = vld.sshfl [vmem:[#allocation1 + $0x10] sm:$0xff pattern:$0x73625140]  ;;  %3712 = vmatpush.msra.mxu3 %v2581_v12 }
 0x290   : > { %v2701_v17 = vld [vmem:[%s6981_s26 + $0x49e0] sm:$0xff]  ;;  %3694 = vmatmul.f32.vlgmr.msra.gmra.mxu2 %v2952_v14 }
 0x291   : > { %v2829_v22 = vld [vmem:[%s6981_s26 + $0x4de0] sm:$0xff]  ;;  %3718 = vmatpush.msrb.mxu0 %v2701_v17 }
 0x292   : > { %v2449_v23 = vld [vmem:[%s6981_s26 + $0x4200] sm:$0xff]  ;;  %3758 = vmatpush.msrb.mxu2 %v2829_v22 }
 0x293   : > { %v2577_v24 = vld [vmem:[%s6981_s26 + $0x4600] sm:$0xff]  ;;  %3673 = vmatpush.msra.mxu1 %v2449_v23 }
 0x294   : > { %v2697_v33 = vld [vmem:[%s6981_s26 + $0x49c0] sm:$0xff]  ;;  %3713 = vmatpush.msra.mxu3 %v2577_v24  ;;  %3674 = vmatmul.f32.vlgmr.msra.gmra.mxu1 %v2951_v30 }
 0x295   : > { %v2765_v34 = vld [vmem:[%s6981_s26 + $0x4be0] sm:$0xff]  ;;  %3714 = vmatmul.f32.vlgmr.msra.gmra.mxu3 %v2953_v32  ;;  %3719 = vmatpush.msrb.mxu0 %v2697_v33 }
 0x296   : > { %v2825_v35 = vld [vmem:[%s6981_s26 + $0x4dc0] sm:$0xff]  ;;  %3738 = vmatpush.msrb.mxu1 %v2765_v34 }
 0x297   : > { %v2893_v36 = vld [vmem:[%s6981_s26 + $0x4fe0] sm:$0xff]  ;;  %3759 = vmatpush.msrb.mxu2 %v2825_v35 }
 0x298   : > { %v2693_v37 = vld [vmem:[%s6981_s26 + $0x49a0] sm:$0xff]  ;;  %3778 = vmatpush.msrb.mxu3 %v2893_v36 }
 0x299   : > { %v2761_v40 = vld [vmem:[%s6981_s26 + $0x4bc0] sm:$0xff]  ;;  %3720 = vmatpush.msrb.mxu0 %v2693_v37 }
 0x29a   : > { %v2821_v44 = vld [vmem:[%s6981_s26 + $0x4da0] sm:$0xff]  ;;  %3739 = vmatpush.msrb.mxu1 %v2761_v40 }
 0x29b   : > { %v2889_v49 = vld [vmem:[%s6981_s26 + $0x4fc0] sm:$0xff]  ;;  %3760 = vmatpush.msrb.mxu2 %v2821_v44 }
 0x29c   : > { %v2689_v51 = vld [vmem:[%s6981_s26 + $0x4980] sm:$0xff]  ;;  %3779 = vmatpush.msrb.mxu3 %v2889_v49 }
 0x29d   : > { %v2757_v54 = vld [vmem:[%s6981_s26 + $0x4ba0] sm:$0xff]  ;;  %3721 = vmatpush.msrb.mxu0 %v2689_v51 }
 0x29e   : > { %v2817_v55 = vld [vmem:[%s6981_s26 + $0x4d80] sm:$0xff]  ;;  %3740 = vmatpush.msrb.mxu1 %v2757_v54 }
 0x29f   : > { %v2885_v56 = vld [vmem:[%s6981_s26 + $0x4fa0] sm:$0xff]  ;;  %3761 = vmatpush.msrb.mxu2 %v2817_v55 }
 0x2a0   : > { %v2685_v57 = vld [vmem:[%s6981_s26 + $0x4960] sm:$0xff]  ;;  %3780 = vmatpush.msrb.mxu3 %v2885_v56 }
 0x2a1   : > { %v2753_v58 = vld [vmem:[%s6981_s26 + $0x4b80] sm:$0xff]  ;;  %3722 = vmatpush.msrb.mxu0 %v2685_v57 }
 0x2a2   : > { %v2813_v59 = vld [vmem:[%s6981_s26 + $0x4d60] sm:$0xff]  ;;  %3741 = vmatpush.msrb.mxu1 %v2753_v58 }
 0x2a3   : > { %v2881_v60 = vld [vmem:[%s6981_s26 + $0x4f80] sm:$0xff]  ;;  %3762 = vmatpush.msrb.mxu2 %v2813_v59 }
 0x2a4   : > { %v2681_v1 = vld [vmem:[%s6981_s26 + $0x4940] sm:$0xff]  ;;  %3781 = vmatpush.msrb.mxu3 %v2881_v60 }
 0x2a5   : > { %v2749_v2 = vld [vmem:[%s6981_s26 + $0x4b60] sm:$0xff]  ;;  %3723 = vmatpush.msrb.mxu0 %v2681_v1 }
 0x2a6   : > { %v2809_v3 = vld [vmem:[%s6981_s26 + $0x4d40] sm:$0xff]  ;;  %3742 = vmatpush.msrb.mxu1 %v2749_v2 }
 0x2a7   : > { %v2877_v4 = vld [vmem:[%s6981_s26 + $0x4f60] sm:$0xff]  ;;  %3763 = vmatpush.msrb.mxu2 %v2809_v3 }
 0x2a8   : > { %v2677_v5 = vld [vmem:[%s6981_s26 + $0x4920] sm:$0xff]  ;;  %3782 = vmatpush.msrb.mxu3 %v2877_v4 }
 0x2a9   : > { %v2745_v6 = vld [vmem:[%s6981_s26 + $0x4b40] sm:$0xff]  ;;  %3724 = vmatpush.msrb.mxu0 %v2677_v5 }
 0x2aa   : > { %v2805_v7 = vld [vmem:[%s6981_s26 + $0x4d20] sm:$0xff]  ;;  %3743 = vmatpush.msrb.mxu1 %v2745_v6 }
 0x2ab   : > { %v2873_v12 = vld [vmem:[%s6981_s26 + $0x4f40] sm:$0xff]  ;;  %3764 = vmatpush.msrb.mxu2 %v2805_v7 }
 0x2ac   : > { %v2673_v13 = vld [vmem:[%s6981_s26 + $0x4900] sm:$0xff]  ;;  %3783 = vmatpush.msrb.mxu3 %v2873_v12 }
 0x2ad   : > { %v2741_v14 = vld [vmem:[%s6981_s26 + $0x4b20] sm:$0xff]  ;;  %3725 = vmatpush.msrb.mxu0 %v2673_v13 }
 0x2ae   : > { %v2801_v17 = vld [vmem:[%s6981_s26 + $0x4d00] sm:$0xff]  ;;  %3744 = vmatpush.msrb.mxu1 %v2741_v14 }
 0x2af   : > { %v2869_v22 = vld [vmem:[%s6981_s26 + $0x4f20] sm:$0xff]  ;;  %3765 = vmatpush.msrb.mxu2 %v2801_v17 }
 0x2b0   : > { %v2669_v23 = vld [vmem:[%s6981_s26 + $0x48e0] sm:$0xff]  ;;  %3784 = vmatpush.msrb.mxu3 %v2869_v22 }
 0x2b1   : > { %v2737_v24 = vld [vmem:[%s6981_s26 + $0x4b00] sm:$0xff]  ;;  %3726 = vmatpush.msrb.mxu0 %v2669_v23  ;;  %v2954_v23 = vld.sshfl [vmem:[#allocation1 + $0x20] sm:$0xff pattern:$0x73625140] }
 0x2b2   : > { %v2797_v30 = vld [vmem:[%s6981_s26 + $0x4ce0] sm:$0xff]  ;;  %3745 = vmatpush.msrb.mxu1 %v2737_v24 }
 0x2b3   : > { %v2865_v32 = vld [vmem:[%s6981_s26 + $0x4f00] sm:$0xff]  ;;  %3766 = vmatpush.msrb.mxu2 %v2797_v30  ;;  %v398_v30 = vld [vmem:[%s6981_s26 + $0x1e8] sm:$0xff] }
 0x2b4   : > { %v2665_v33 = vld [vmem:[%s6981_s26 + $0x48c0] sm:$0xff]  ;;  %3785 = vmatpush.msrb.mxu3 %v2865_v32  ;;  %v526_v32 = vld [vmem:[%s6981_s26 + $0x5e8] sm:$0xff] }
 0x2b5   : > { %v2733_v34 = vld [vmem:[%s6981_s26 + $0x4ae0] sm:$0xff]  ;;  %3727 = vmatpush.msrb.mxu0 %v2665_v33 }
 0x2b6   : > { %v2793_v35 = vld [vmem:[%s6981_s26 + $0x4cc0] sm:$0xff]  ;;  %3746 = vmatpush.msrb.mxu1 %v2733_v34 }
 0x2b7   : > { %v2861_v36 = vld [vmem:[%s6981_s26 + $0x4ee0] sm:$0xff]  ;;  %3767 = vmatpush.msrb.mxu2 %v2793_v35  ;;  %v2955_v35 = vld.sshfl [vmem:[#allocation1 + $0x28] sm:$0xff pattern:$0x73625140] }
 0x2b8   : > { %v2661_v37 = vld [vmem:[%s6981_s26 + $0x48a0] sm:$0xff]  ;;  %3786 = vmatpush.msrb.mxu3 %v2861_v36  ;;  %v2957_v36 = vld.sshfl [vmem:[#allocation1 + $0x38] sm:$0xff pattern:$0x73625140] }
 0x2b9   : > { %v2729_v40 = vld [vmem:[%s6981_s26 + $0x4ac0] sm:$0xff]  ;;  %3728 = vmatpush.msrb.mxu0 %v2661_v37  ;;  %v394_v37 = vld [vmem:[%s6981_s26 + $0x1c8] sm:$0xff] }
 0x2ba   : > { %v2789_v44 = vld [vmem:[%s6981_s26 + $0x4ca0] sm:$0xff]  ;;  %3747 = vmatpush.msrb.mxu1 %v2729_v40  ;;  %v462_v40 = vld [vmem:[%s6981_s26 + $0x3e8] sm:$0xff] }
 0x2bb   : > { %v2857_v49 = vld [vmem:[%s6981_s26 + $0x4ec0] sm:$0xff]  ;;  %3768 = vmatpush.msrb.mxu2 %v2789_v44  ;;  %v522_v44 = vld [vmem:[%s6981_s26 + $0x5c8] sm:$0xff] }
 0x2bc   : > { %v2657_v51 = vld [vmem:[%s6981_s26 + $0x4880] sm:$0xff]  ;;  %3787 = vmatpush.msrb.mxu3 %v2857_v49  ;;  %v590_v49 = vld [vmem:[%s6981_s26 + $0x7e8] sm:$0xff] }
 0x2bd   : > { %v2725_v54 = vld [vmem:[%s6981_s26 + $0x4aa0] sm:$0xff]  ;;  %3729 = vmatpush.msrb.mxu0 %v2657_v51  ;;  %v390_v51 = vld [vmem:[%s6981_s26 + $0x1a8] sm:$0xff] }
 0x2be   : > { %v2785_v55 = vld [vmem:[%s6981_s26 + $0x4c80] sm:$0xff]  ;;  %3748 = vmatpush.msrb.mxu1 %v2725_v54  ;;  %v458_v54 = vld [vmem:[%s6981_s26 + $0x3c8] sm:$0xff] }
 0x2bf   : > { %v2853_v56 = vld [vmem:[%s6981_s26 + $0x4ea0] sm:$0xff]  ;;  %3769 = vmatpush.msrb.mxu2 %v2785_v55  ;;  %v518_v55 = vld [vmem:[%s6981_s26 + $0x5a8] sm:$0xff] }
 0x2c0   : > { %v2653_v57 = vld [vmem:[%s6981_s26 + $0x4860] sm:$0xff]  ;;  %3788 = vmatpush.msrb.mxu3 %v2853_v56  ;;  %v586_v56 = vld [vmem:[%s6981_s26 + $0x7c8] sm:$0xff] }
 0x2c1   : > { %v2721_v58 = vld [vmem:[%s6981_s26 + $0x4a80] sm:$0xff]  ;;  %3730 = vmatpush.msrb.mxu0 %v2653_v57  ;;  %v386_v57 = vld [vmem:[%s6981_s26 + $0x188] sm:$0xff] }
 0x2c2   : > { %v2781_v59 = vld [vmem:[%s6981_s26 + $0x4c60] sm:$0xff]  ;;  %3749 = vmatpush.msrb.mxu1 %v2721_v58  ;;  %v454_v58 = vld [vmem:[%s6981_s26 + $0x3a8] sm:$0xff] }
 0x2c3   : > { %v2849_v60 = vld [vmem:[%s6981_s26 + $0x4e80] sm:$0xff]  ;;  %3770 = vmatpush.msrb.mxu2 %v2781_v59  ;;  %v514_v59 = vld [vmem:[%s6981_s26 + $0x588] sm:$0xff] }
 0x2c4   : > { %v2649_v1 = vld [vmem:[%s6981_s26 + $0x4840] sm:$0xff]  ;;  %3789 = vmatpush.msrb.mxu3 %v2849_v60  ;;  %v582_v60 = vld [vmem:[%s6981_s26 + $0x7a8] sm:$0xff] }
 0x2c5   : > { %v2717_v2 = vld [vmem:[%s6981_s26 + $0x4a60] sm:$0xff]  ;;  %3731 = vmatpush.msrb.mxu0 %v2649_v1  ;;  %v382_v1 = vld [vmem:[%s6981_s26 + $0x168] sm:$0xff] }
 0x2c6   : > { %v2777_v3 = vld [vmem:[%s6981_s26 + $0x4c40] sm:$0xff]  ;;  %3750 = vmatpush.msrb.mxu1 %v2717_v2  ;;  %v450_v2 = vld [vmem:[%s6981_s26 + $0x388] sm:$0xff] }
 0x2c7   : > { %v2845_v4 = vld [vmem:[%s6981_s26 + $0x4e60] sm:$0xff]  ;;  %3771 = vmatpush.msrb.mxu2 %v2777_v3  ;;  %v510_v3 = vld [vmem:[%s6981_s26 + $0x568] sm:$0xff] }
 0x2c8   : > { %v2645_v5 = vld [vmem:[%s6981_s26 + $0x4820] sm:$0xff]  ;;  %3790 = vmatpush.msrb.mxu3 %v2845_v4  ;;  %v578_v4 = vld [vmem:[%s6981_s26 + $0x788] sm:$0xff] }
 0x2c9   : > { %v2713_v6 = vld [vmem:[%s6981_s26 + $0x4a40] sm:$0xff]  ;;  %3732 = vmatpush.msrb.mxu0 %v2645_v5  ;;  %v378_v5 = vld [vmem:[%s6981_s26 + $0x148] sm:$0xff] }
 0x2ca   : > { %v2773_v7 = vld [vmem:[%s6981_s26 + $0x4c20] sm:$0xff]  ;;  %3751 = vmatpush.msrb.mxu1 %v2713_v6  ;;  %v446_v6 = vld [vmem:[%s6981_s26 + $0x368] sm:$0xff] }
 0x2cb   : > { %v2841_v12 = vld [vmem:[%s6981_s26 + $0x4e40] sm:$0xff]  ;;  %3772 = vmatpush.msrb.mxu2 %v2773_v7  ;;  %v506_v7 = vld [vmem:[%s6981_s26 + $0x548] sm:$0xff] }
 0x2cc   : > { %v2641_v13 = vld [vmem:[%s6981_s26 + $0x4800] sm:$0xff]  ;;  %3791 = vmatpush.msrb.mxu3 %v2841_v12  ;;  %v574_v12 = vld [vmem:[%s6981_s26 + $0x768] sm:$0xff] }
 0x2cd   : > { %v2709_v14 = vld [vmem:[%s6981_s26 + $0x4a20] sm:$0xff]  ;;  %3733 = vmatpush.msrb.mxu0 %v2641_v13  ;;  %v374_v13 = vld [vmem:[%s6981_s26 + $0x128] sm:$0xff] }
 0x2ce   : > { %v2769_v17 = vld [vmem:[%s6981_s26 + $0x4c00] sm:$0xff]  ;;  %3752 = vmatpush.msrb.mxu1 %v2709_v14  ;;  %3734 = vmatmul.f32.vlgmr.msrb.gmra.mxu0 %v2954_v23  ;;  %v442_v14 = vld [vmem:[%s6981_s26 + $0x348] sm:$0xff] }
 0x2cf   : > { %v2837_v22 = vld [vmem:[%s6981_s26 + $0x4e20] sm:$0xff]  ;;  %3773 = vmatpush.msrb.mxu2 %v2769_v17  ;;  %3798 = vmatpush.msra.mxu0 %v398_v30  ;;  %v502_v17 = vld [vmem:[%s6981_s26 + $0x528] sm:$0xff] }
 0x2d0   : > { %v2956_v24 = vld.sshfl [vmem:[#allocation1 + $0x30] sm:$0xff pattern:$0x73625140]  ;;  %3792 = vmatpush.msrb.mxu3 %v2837_v22  ;;  %v570_v22 = vld [vmem:[%s6981_s26 + $0x748] sm:$0xff] }
 0x2d1   : > { %v2705_v33 = vld [vmem:[%s6981_s26 + $0x4a00] sm:$0xff]  ;;  %3774 = vmatmul.f32.vlgmr.msrb.gmra.mxu2 %v2956_v24  ;;  %3799 = vmatpush.msra.mxu0 %v394_v37  ;;  %v370_v23 = vld [vmem:[%s6981_s26 + $0x108] sm:$0xff] }
 0x2d2   : > { %v2833_v34 = vld [vmem:[%s6981_s26 + $0x4e00] sm:$0xff]  ;;  %3838 = vmatpush.msra.mxu2 %v526_v32  ;;  %3753 = vmatpush.msrb.mxu1 %v2705_v33  ;;  %v438_v24 = vld [vmem:[%s6981_s26 + $0x328] sm:$0xff] }
 0x2d3   : > { %3793 = vmatpush.msrb.mxu3 %v2833_v34  ;;  %3754 = vmatmul.f32.vlgmr.msrb.gmra.mxu1 %v2955_v35  ;;  %v498_v30 = vld [vmem:[%s6981_s26 + $0x508] sm:$0xff] }
 0x2d4   : > { %3794 = vmatmul.f32.vlgmr.msrb.gmra.mxu3 %v2957_v36  ;;  %3818 = vmatpush.msra.mxu1 %v462_v40  ;;  %v566_v32 = vld [vmem:[%s6981_s26 + $0x728] sm:$0xff] }
 0x2d5   : > { %3839 = vmatpush.msra.mxu2 %v522_v44  ;;  %3858 = vmatpush.msra.mxu3 %v590_v49  ;;  %v366_v33 = vld [vmem:[%s6981_s26 + $0xe8] sm:$0xff] }
 0x2d6   : > { %3800 = vmatpush.msra.mxu0 %v390_v51  ;;  %3819 = vmatpush.msra.mxu1 %v458_v54  ;;  %v434_v34 = vld [vmem:[%s6981_s26 + $0x308] sm:$0xff] }
 0x2d7   : > { %3840 = vmatpush.msra.mxu2 %v518_v55  ;;  %3859 = vmatpush.msra.mxu3 %v586_v56  ;;  %v494_v35 = vld [vmem:[%s6981_s26 + $0x4e8] sm:$0xff] }
 0x2d8   : > { %3801 = vmatpush.msra.mxu0 %v386_v57  ;;  %3820 = vmatpush.msra.mxu1 %v454_v58  ;;  %v562_v36 = vld [vmem:[%s6981_s26 + $0x708] sm:$0xff] }
 0x2d9   : > { %3841 = vmatpush.msra.mxu2 %v514_v59  ;;  %3860 = vmatpush.msra.mxu3 %v582_v60  ;;  %v362_v37 = vld [vmem:[%s6981_s26 + $0xc8] sm:$0xff] }
 0x2da   : > { %3802 = vmatpush.msra.mxu0 %v382_v1  ;;  %3821 = vmatpush.msra.mxu1 %v450_v2  ;;  %v430_v40 = vld [vmem:[%s6981_s26 + $0x2e8] sm:$0xff] }
 0x2db   : > { %3842 = vmatpush.msra.mxu2 %v510_v3  ;;  %3861 = vmatpush.msra.mxu3 %v578_v4  ;;  %v490_v44 = vld [vmem:[%s6981_s26 + $0x4c8] sm:$0xff] }
 0x2dc   : > { %3803 = vmatpush.msra.mxu0 %v378_v5  ;;  %3822 = vmatpush.msra.mxu1 %v446_v6  ;;  %v558_v49 = vld [vmem:[%s6981_s26 + $0x6e8] sm:$0xff] }
 0x2dd   : > { %3843 = vmatpush.msra.mxu2 %v506_v7  ;;  %3862 = vmatpush.msra.mxu3 %v574_v12  ;;  %v358_v51 = vld [vmem:[%s6981_s26 + $0xa8] sm:$0xff] }
 0x2de   : > { %3804 = vmatpush.msra.mxu0 %v374_v13  ;;  %3823 = vmatpush.msra.mxu1 %v442_v14  ;;  %v426_v54 = vld [vmem:[%s6981_s26 + $0x2c8] sm:$0xff] }
 0x2df   : > { %3844 = vmatpush.msra.mxu2 %v502_v17  ;;  %3863 = vmatpush.msra.mxu3 %v570_v22  ;;  %v486_v55 = vld [vmem:[%s6981_s26 + $0x4a8] sm:$0xff] }
 0x2e0   : > { %3805 = vmatpush.msra.mxu0 %v370_v23  ;;  %3824 = vmatpush.msra.mxu1 %v438_v24  ;;  %v554_v56 = vld [vmem:[%s6981_s26 + $0x6c8] sm:$0xff] }
 0x2e1   : > { %3845 = vmatpush.msra.mxu2 %v498_v30  ;;  %3864 = vmatpush.msra.mxu3 %v566_v32  ;;  %v354_v57 = vld [vmem:[%s6981_s26 + $0x88] sm:$0xff] }
 0x2e2   : > { %3806 = vmatpush.msra.mxu0 %v366_v33  ;;  %3825 = vmatpush.msra.mxu1 %v434_v34  ;;  %v422_v58 = vld [vmem:[%s6981_s26 + $0x2a8] sm:$0xff] }
 0x2e3   : > { %3846 = vmatpush.msra.mxu2 %v494_v35  ;;  %3865 = vmatpush.msra.mxu3 %v562_v36  ;;  %v482_v59 = vld [vmem:[%s6981_s26 + $0x488] sm:$0xff] }
 0x2e4   : > { %3807 = vmatpush.msra.mxu0 %v362_v37  ;;  %3826 = vmatpush.msra.mxu1 %v430_v40  ;;  %v550_v60 = vld [vmem:[%s6981_s26 + $0x6a8] sm:$0xff] }
 0x2e5   : > { %3847 = vmatpush.msra.mxu2 %v490_v44  ;;  %3866 = vmatpush.msra.mxu3 %v558_v49  ;;  %v350_v1 = vld [vmem:[%s6981_s26 + $0x68] sm:$0xff] }
 0x2e6   : > { %3808 = vmatpush.msra.mxu0 %v358_v51  ;;  %3827 = vmatpush.msra.mxu1 %v426_v54  ;;  %v418_v2 = vld [vmem:[%s6981_s26 + $0x288] sm:$0xff] }
 0x2e7   : > { %3848 = vmatpush.msra.mxu2 %v486_v55  ;;  %3867 = vmatpush.msra.mxu3 %v554_v56  ;;  %v478_v3 = vld [vmem:[%s6981_s26 + $0x468] sm:$0xff] }
 0x2e8   : > { %3809 = vmatpush.msra.mxu0 %v354_v57  ;;  %3828 = vmatpush.msra.mxu1 %v422_v58  ;;  %v546_v4 = vld [vmem:[%s6981_s26 + $0x688] sm:$0xff] }
 0x2e9   : > { %3849 = vmatpush.msra.mxu2 %v482_v59  ;;  %3868 = vmatpush.msra.mxu3 %v550_v60  ;;  %v346_v5 = vld [vmem:[%s6981_s26 + $0x48] sm:$0xff] }
 0x2ea   : > { %v414_v6 = vld [vmem:[%s6981_s26 + $0x268] sm:$0xff]  ;;  %3810 = vmatpush.msra.mxu0 %v350_v1  ;;  %3829 = vmatpush.msra.mxu1 %v418_v2 }
 0x2eb   : > { %v474_v7 = vld [vmem:[%s6981_s26 + $0x448] sm:$0xff]  ;;  %3850 = vmatpush.msra.mxu2 %v478_v3  ;;  %3869 = vmatpush.msra.mxu3 %v546_v4 }
 0x2ec   : > { %v542_v12 = vld [vmem:[%s6981_s26 + $0x668] sm:$0xff]  ;;  %3811 = vmatpush.msra.mxu0 %v346_v5  ;;  %3830 = vmatpush.msra.mxu1 %v414_v6 }
 0x2ed   : > { %v342_v13 = vld [vmem:[%s6981_s26 + $0x28] sm:$0xff]  ;;  %3851 = vmatpush.msra.mxu2 %v474_v7  ;;  %3870 = vmatpush.msra.mxu3 %v542_v12 }
 0x2ee   : > { %v410_v14 = vld [vmem:[%s6981_s26 + $0x248] sm:$0xff]  ;;  %3812 = vmatpush.msra.mxu0 %v342_v13 }
 0x2ef   : > { %v470_v17 = vld [vmem:[%s6981_s26 + $0x428] sm:$0xff]  ;;  %3831 = vmatpush.msra.mxu1 %v410_v14 }
 0x2f0   : > { %v538_v22 = vld [vmem:[%s6981_s26 + $0x648] sm:$0xff]  ;;  %3852 = vmatpush.msra.mxu2 %v470_v17 }
 0x2f1   : > { %v338_v23 = vld [vmem:[%s6981_s26 + $0x8] sm:$0xff]  ;;  %3871 = vmatpush.msra.mxu3 %v538_v22 }
 0x2f2   : > { %v406_v24 = vld [vmem:[%s6981_s26 + $0x228] sm:$0xff]  ;;  %3813 = vmatpush.msra.mxu0 %v338_v23 }
 0x2f3   : > { %v466_v30 = vld [vmem:[%s6981_s26 + $0x408] sm:$0xff]  ;;  %3832 = vmatpush.msra.mxu1 %v406_v24  ;;  %3814 = vmatmul.f32.vlgmr.msra.gmra.mxu0 %v7125_v46 }
 0x2f4   : > { %v534_v32 = vld [vmem:[%s6981_s26 + $0x628] sm:$0xff]  ;;  %3853 = vmatpush.msra.mxu2 %v466_v30 }
 0x2f5   : > { %v654_v33 = vld [vmem:[%s6981_s26 + $0x9e8] sm:$0xff]  ;;  %3872 = vmatpush.msra.mxu3 %v534_v32  ;;  %3854 = vmatmul.f32.vlgmr.msra.gmra.mxu2 %v7123_v45 }
 0x2f6   : > { %v782_v34 = vld [vmem:[%s6981_s26 + $0xde8] sm:$0xff]  ;;  %3878 = vmatpush.msrb.mxu0 %v654_v33 }
 0x2f7   : > { %v402_v35 = vld [vmem:[%s6981_s26 + $0x208] sm:$0xff]  ;;  %3918 = vmatpush.msrb.mxu2 %v782_v34 }
 0x2f8   : > { %v530_v36 = vld [vmem:[%s6981_s26 + $0x608] sm:$0xff]  ;;  %3833 = vmatpush.msra.mxu1 %v402_v35 }
 0x2f9   : > { %v650_v37 = vld [vmem:[%s6981_s26 + $0x9c8] sm:$0xff]  ;;  %3873 = vmatpush.msra.mxu3 %v530_v36  ;;  %3834 = vmatmul.f32.vlgmr.msra.gmra.mxu1 %v7129_v48 }
 0x2fa   : > { %v718_v40 = vld [vmem:[%s6981_s26 + $0xbe8] sm:$0xff]  ;;  %3879 = vmatpush.msrb.mxu0 %v650_v37  ;;  %3874 = vmatmul.f32.vlgmr.msra.gmra.mxu3 %v7127_v47 }
 0x2fb   : > { %v778_v44 = vld [vmem:[%s6981_s26 + $0xdc8] sm:$0xff]  ;;  %3898 = vmatpush.msrb.mxu1 %v718_v40 }
 0x2fc   : > { %v846_v49 = vld [vmem:[%s6981_s26 + $0xfe8] sm:$0xff]  ;;  %3919 = vmatpush.msrb.mxu2 %v778_v44 }
 0x2fd   : > { %v646_v51 = vld [vmem:[%s6981_s26 + $0x9a8] sm:$0xff]  ;;  %3938 = vmatpush.msrb.mxu3 %v846_v49 }
 0x2fe   : > { %v714_v54 = vld [vmem:[%s6981_s26 + $0xbc8] sm:$0xff]  ;;  %3880 = vmatpush.msrb.mxu0 %v646_v51 }
 0x2ff   : > { %v774_v55 = vld [vmem:[%s6981_s26 + $0xda8] sm:$0xff]  ;;  %3899 = vmatpush.msrb.mxu1 %v714_v54 }
 0x300   : > { %v842_v56 = vld [vmem:[%s6981_s26 + $0xfc8] sm:$0xff]  ;;  %3920 = vmatpush.msrb.mxu2 %v774_v55 }
 0x301   : > { %v642_v57 = vld [vmem:[%s6981_s26 + $0x988] sm:$0xff]  ;;  %3939 = vmatpush.msrb.mxu3 %v842_v56 }
 0x302   : > { %v710_v58 = vld [vmem:[%s6981_s26 + $0xba8] sm:$0xff]  ;;  %3881 = vmatpush.msrb.mxu0 %v642_v57 }
 0x303   : > { %v770_v59 = vld [vmem:[%s6981_s26 + $0xd88] sm:$0xff]  ;;  %3900 = vmatpush.msrb.mxu1 %v710_v58 }
 0x304   : > { %v838_v60 = vld [vmem:[%s6981_s26 + $0xfa8] sm:$0xff]  ;;  %3921 = vmatpush.msrb.mxu2 %v770_v59 }
 0x305   : > { %v638_v1 = vld [vmem:[%s6981_s26 + $0x968] sm:$0xff]  ;;  %3940 = vmatpush.msrb.mxu3 %v838_v60 }
 0x306   : > { %v706_v2 = vld [vmem:[%s6981_s26 + $0xb88] sm:$0xff]  ;;  %3882 = vmatpush.msrb.mxu0 %v638_v1 }
 0x307   : > { %v766_v3 = vld [vmem:[%s6981_s26 + $0xd68] sm:$0xff]  ;;  %3901 = vmatpush.msrb.mxu1 %v706_v2 }
 0x308   : > { %v834_v4 = vld [vmem:[%s6981_s26 + $0xf88] sm:$0xff]  ;;  %3922 = vmatpush.msrb.mxu2 %v766_v3 }
 0x309   : > { %v634_v5 = vld [vmem:[%s6981_s26 + $0x948] sm:$0xff]  ;;  %3941 = vmatpush.msrb.mxu3 %v834_v4 }
 0x30a   : > { %v702_v6 = vld [vmem:[%s6981_s26 + $0xb68] sm:$0xff]  ;;  %3883 = vmatpush.msrb.mxu0 %v634_v5 }
 0x30b   : > { %v762_v7 = vld [vmem:[%s6981_s26 + $0xd48] sm:$0xff]  ;;  %3902 = vmatpush.msrb.mxu1 %v702_v6 }
 0x30c   : > { %v830_v12 = vld [vmem:[%s6981_s26 + $0xf68] sm:$0xff]  ;;  %3923 = vmatpush.msrb.mxu2 %v762_v7 }
 0x30d   : > { %v630_v13 = vld [vmem:[%s6981_s26 + $0x928] sm:$0xff]  ;;  %3942 = vmatpush.msrb.mxu3 %v830_v12 }
 0x30e   : > { %v698_v14 = vld [vmem:[%s6981_s26 + $0xb48] sm:$0xff]  ;;  %3884 = vmatpush.msrb.mxu0 %v630_v13 }
 0x30f   : > { %v758_v17 = vld [vmem:[%s6981_s26 + $0xd28] sm:$0xff]  ;;  %3903 = vmatpush.msrb.mxu1 %v698_v14 }
 0x310   : > { %v826_v22 = vld [vmem:[%s6981_s26 + $0xf48] sm:$0xff]  ;;  %3924 = vmatpush.msrb.mxu2 %v758_v17 }
 0x311   : > { %v626_v23 = vld [vmem:[%s6981_s26 + $0x908] sm:$0xff]  ;;  %3943 = vmatpush.msrb.mxu3 %v826_v22 }
 0x312   : > { %v694_v24 = vld [vmem:[%s6981_s26 + $0xb28] sm:$0xff]  ;;  %3885 = vmatpush.msrb.mxu0 %v626_v23 }
 0x313   : > { %v754_v30 = vld [vmem:[%s6981_s26 + $0xd08] sm:$0xff]  ;;  %3904 = vmatpush.msrb.mxu1 %v694_v24 }
 0x314   : > { %v822_v32 = vld [vmem:[%s6981_s26 + $0xf28] sm:$0xff]  ;;  %3925 = vmatpush.msrb.mxu2 %v754_v30 }
 0x315   : > { %v622_v33 = vld [vmem:[%s6981_s26 + $0x8e8] sm:$0xff]  ;;  %3944 = vmatpush.msrb.mxu3 %v822_v32 }
 0x316   : > { %v690_v34 = vld [vmem:[%s6981_s26 + $0xb08] sm:$0xff]  ;;  %3886 = vmatpush.msrb.mxu0 %v622_v33 }
 0x317   : > { %v750_v35 = vld [vmem:[%s6981_s26 + $0xce8] sm:$0xff]  ;;  %3905 = vmatpush.msrb.mxu1 %v690_v34 }
 0x318   : > { %v818_v36 = vld [vmem:[%s6981_s26 + $0xf08] sm:$0xff]  ;;  %3926 = vmatpush.msrb.mxu2 %v750_v35 }
 0x319   : > { %v618_v37 = vld [vmem:[%s6981_s26 + $0x8c8] sm:$0xff]  ;;  %3945 = vmatpush.msrb.mxu3 %v818_v36 }
 0x31a   : > { %v686_v40 = vld [vmem:[%s6981_s26 + $0xae8] sm:$0xff]  ;;  %3887 = vmatpush.msrb.mxu0 %v618_v37 }
 0x31b   : > { %v746_v44 = vld [vmem:[%s6981_s26 + $0xcc8] sm:$0xff]  ;;  %3906 = vmatpush.msrb.mxu1 %v686_v40 }
 0x31c   : > { %v814_v49 = vld [vmem:[%s6981_s26 + $0xee8] sm:$0xff]  ;;  %3927 = vmatpush.msrb.mxu2 %v746_v44 }
 0x31d   : > { %v614_v51 = vld [vmem:[%s6981_s26 + $0x8a8] sm:$0xff]  ;;  %3946 = vmatpush.msrb.mxu3 %v814_v49 }
 0x31e   : > { %v682_v54 = vld [vmem:[%s6981_s26 + $0xac8] sm:$0xff]  ;;  %3888 = vmatpush.msrb.mxu0 %v614_v51 }
 0x31f   : > { %v742_v55 = vld [vmem:[%s6981_s26 + $0xca8] sm:$0xff]  ;;  %3907 = vmatpush.msrb.mxu1 %v682_v54 }
 0x320   : > { %v810_v56 = vld [vmem:[%s6981_s26 + $0xec8] sm:$0xff]  ;;  %3928 = vmatpush.msrb.mxu2 %v742_v55 }
 0x321   : > { %v610_v57 = vld [vmem:[%s6981_s26 + $0x888] sm:$0xff]  ;;  %3947 = vmatpush.msrb.mxu3 %v810_v56 }
 0x322   : > { %v678_v58 = vld [vmem:[%s6981_s26 + $0xaa8] sm:$0xff]  ;;  %3889 = vmatpush.msrb.mxu0 %v610_v57 }
 0x323   : > { %v738_v59 = vld [vmem:[%s6981_s26 + $0xc88] sm:$0xff]  ;;  %3908 = vmatpush.msrb.mxu1 %v678_v58 }
 0x324   : > { %v806_v60 = vld [vmem:[%s6981_s26 + $0xea8] sm:$0xff]  ;;  %3929 = vmatpush.msrb.mxu2 %v738_v59 }
 0x325   : > { %v606_v1 = vld [vmem:[%s6981_s26 + $0x868] sm:$0xff]  ;;  %3948 = vmatpush.msrb.mxu3 %v806_v60 }
 0x326   : > { %v674_v2 = vld [vmem:[%s6981_s26 + $0xa88] sm:$0xff]  ;;  %3890 = vmatpush.msrb.mxu0 %v606_v1 }
 0x327   : > { %v734_v3 = vld [vmem:[%s6981_s26 + $0xc68] sm:$0xff]  ;;  %3909 = vmatpush.msrb.mxu1 %v674_v2 }
 0x328   : > { %v802_v4 = vld [vmem:[%s6981_s26 + $0xe88] sm:$0xff]  ;;  %3930 = vmatpush.msrb.mxu2 %v734_v3 }
 0x329   : > { %v602_v5 = vld [vmem:[%s6981_s26 + $0x848] sm:$0xff]  ;;  %3949 = vmatpush.msrb.mxu3 %v802_v4 }
 0x32a   : > { %v670_v6 = vld [vmem:[%s6981_s26 + $0xa68] sm:$0xff]  ;;  %3891 = vmatpush.msrb.mxu0 %v602_v5 }
 0x32b   : > { %v730_v7 = vld [vmem:[%s6981_s26 + $0xc48] sm:$0xff]  ;;  %3910 = vmatpush.msrb.mxu1 %v670_v6 }
 0x32c   : > { %v798_v12 = vld [vmem:[%s6981_s26 + $0xe68] sm:$0xff]  ;;  %3931 = vmatpush.msrb.mxu2 %v730_v7 }
 0x32d   : > { %v598_v13 = vld [vmem:[%s6981_s26 + $0x828] sm:$0xff]  ;;  %3950 = vmatpush.msrb.mxu3 %v798_v12 }
 0x32e   : > { %v666_v14 = vld [vmem:[%s6981_s26 + $0xa48] sm:$0xff]  ;;  %3892 = vmatpush.msrb.mxu0 %v598_v13 }
 0x32f   : > { %v726_v17 = vld [vmem:[%s6981_s26 + $0xc28] sm:$0xff]  ;;  %3911 = vmatpush.msrb.mxu1 %v666_v14 }
 0x330   : > { %v794_v22 = vld [vmem:[%s6981_s26 + $0xe48] sm:$0xff]  ;;  %3932 = vmatpush.msrb.mxu2 %v726_v17 }
 0x331   : > { %v594_v23 = vld [vmem:[%s6981_s26 + $0x808] sm:$0xff]  ;;  %3951 = vmatpush.msrb.mxu3 %v794_v22 }
 0x332   : > { %v662_v24 = vld [vmem:[%s6981_s26 + $0xa28] sm:$0xff]  ;;  %3893 = vmatpush.msrb.mxu0 %v594_v23 }
 0x333   : > { %v722_v30 = vld [vmem:[%s6981_s26 + $0xc08] sm:$0xff]  ;;  %3912 = vmatpush.msrb.mxu1 %v662_v24  ;;  %3894 = vmatmul.f32.vlgmr.msrb.gmra.mxu0 %v7145_v62 }
 0x334   : > { %v790_v32 = vld [vmem:[%s6981_s26 + $0xe28] sm:$0xff]  ;;  %3933 = vmatpush.msrb.mxu2 %v722_v30 }
 0x335   : > { %v910_v33 = vld [vmem:[%s6981_s26 + $0x11e8] sm:$0xff]  ;;  %3952 = vmatpush.msrb.mxu3 %v790_v32  ;;  %3934 = vmatmul.f32.vlgmr.msrb.gmra.mxu2 %v7143_v61 }
 0x336   : > { %v1038_v34 = vld [vmem:[%s6981_s26 + $0x15e8] sm:$0xff]  ;;  %3958 = vmatpush.msra.mxu0 %v910_v33 }
 0x337   : > { %v658_v35 = vld [vmem:[%s6981_s26 + $0xa08] sm:$0xff]  ;;  %3998 = vmatpush.msra.mxu2 %v1038_v34 }
 0x338   : > { %v786_v36 = vld [vmem:[%s6981_s26 + $0xe08] sm:$0xff]  ;;  %3913 = vmatpush.msrb.mxu1 %v658_v35 }
 0x339   : > { %v906_v37 = vld [vmem:[%s6981_s26 + $0x11c8] sm:$0xff]  ;;  %3953 = vmatpush.msrb.mxu3 %v786_v36  ;;  %3914 = vmatmul.f32.vlgmr.msrb.gmra.mxu1 %v7149_v0 }
 0x33a   : > { %v974_v40 = vld [vmem:[%s6981_s26 + $0x13e8] sm:$0xff]  ;;  %3959 = vmatpush.msra.mxu0 %v906_v37  ;;  %3954 = vmatmul.f32.vlgmr.msrb.gmra.mxu3 %v7147_v63 }
 0x33b   : > { %v1034_v44 = vld [vmem:[%s6981_s26 + $0x15c8] sm:$0xff]  ;;  %3978 = vmatpush.msra.mxu1 %v974_v40 }
 0x33c   : > { %v1102_v49 = vld [vmem:[%s6981_s26 + $0x17e8] sm:$0xff]  ;;  %3999 = vmatpush.msra.mxu2 %v1034_v44 }
 0x33d   : > { %v902_v51 = vld [vmem:[%s6981_s26 + $0x11a8] sm:$0xff]  ;;  %4018 = vmatpush.msra.mxu3 %v1102_v49 }
 0x33e   : > { %v970_v54 = vld [vmem:[%s6981_s26 + $0x13c8] sm:$0xff]  ;;  %3960 = vmatpush.msra.mxu0 %v902_v51 }
 0x33f   : > { %v1030_v55 = vld [vmem:[%s6981_s26 + $0x15a8] sm:$0xff]  ;;  %3979 = vmatpush.msra.mxu1 %v970_v54 }
 0x340   : > { %v1098_v56 = vld [vmem:[%s6981_s26 + $0x17c8] sm:$0xff]  ;;  %4000 = vmatpush.msra.mxu2 %v1030_v55 }
 0x341   : > { %v898_v57 = vld [vmem:[%s6981_s26 + $0x1188] sm:$0xff]  ;;  %4019 = vmatpush.msra.mxu3 %v1098_v56 }
 0x342   : > { %v966_v58 = vld [vmem:[%s6981_s26 + $0x13a8] sm:$0xff]  ;;  %3961 = vmatpush.msra.mxu0 %v898_v57 }
 0x343   : > { %v1026_v59 = vld [vmem:[%s6981_s26 + $0x1588] sm:$0xff]  ;;  %3980 = vmatpush.msra.mxu1 %v966_v58 }
 0x344   : > { %v1094_v60 = vld [vmem:[%s6981_s26 + $0x17a8] sm:$0xff]  ;;  %4001 = vmatpush.msra.mxu2 %v1026_v59 }
 0x345   : > { %v894_v1 = vld [vmem:[%s6981_s26 + $0x1168] sm:$0xff]  ;;  %4020 = vmatpush.msra.mxu3 %v1094_v60 }
 0x346   : > { %v962_v2 = vld [vmem:[%s6981_s26 + $0x1388] sm:$0xff]  ;;  %3962 = vmatpush.msra.mxu0 %v894_v1 }
 0x347   : > { %v1022_v3 = vld [vmem:[%s6981_s26 + $0x1568] sm:$0xff]  ;;  %3981 = vmatpush.msra.mxu1 %v962_v2 }
 0x348   : > { %v1090_v4 = vld [vmem:[%s6981_s26 + $0x1788] sm:$0xff]  ;;  %4002 = vmatpush.msra.mxu2 %v1022_v3 }
 0x349   : > { %v890_v5 = vld [vmem:[%s6981_s26 + $0x1148] sm:$0xff]  ;;  %4021 = vmatpush.msra.mxu3 %v1090_v4 }
 0x34a   : > { %v958_v6 = vld [vmem:[%s6981_s26 + $0x1368] sm:$0xff]  ;;  %3963 = vmatpush.msra.mxu0 %v890_v5 }
 0x34b   : > { %v1018_v7 = vld [vmem:[%s6981_s26 + $0x1548] sm:$0xff]  ;;  %3982 = vmatpush.msra.mxu1 %v958_v6 }
 0x34c   : > { %v1086_v12 = vld [vmem:[%s6981_s26 + $0x1768] sm:$0xff]  ;;  %4003 = vmatpush.msra.mxu2 %v1018_v7 }
 0x34d   : > { %v886_v13 = vld [vmem:[%s6981_s26 + $0x1128] sm:$0xff]  ;;  %4022 = vmatpush.msra.mxu3 %v1086_v12 }
 0x34e   : > { %v954_v14 = vld [vmem:[%s6981_s26 + $0x1348] sm:$0xff]  ;;  %3964 = vmatpush.msra.mxu0 %v886_v13 }
 0x34f   : > { %v1014_v17 = vld [vmem:[%s6981_s26 + $0x1528] sm:$0xff]  ;;  %3983 = vmatpush.msra.mxu1 %v954_v14 }
 0x350   : > { %v1082_v22 = vld [vmem:[%s6981_s26 + $0x1748] sm:$0xff]  ;;  %4004 = vmatpush.msra.mxu2 %v1014_v17 }
 0x351   : > { %v882_v23 = vld [vmem:[%s6981_s26 + $0x1108] sm:$0xff]  ;;  %4023 = vmatpush.msra.mxu3 %v1082_v22 }
 0x352   : > { %v950_v24 = vld [vmem:[%s6981_s26 + $0x1328] sm:$0xff]  ;;  %3965 = vmatpush.msra.mxu0 %v882_v23 }
 0x353   : > { %v1010_v30 = vld [vmem:[%s6981_s26 + $0x1508] sm:$0xff]  ;;  %3984 = vmatpush.msra.mxu1 %v950_v24 }
 0x354   : > { %v1078_v32 = vld [vmem:[%s6981_s26 + $0x1728] sm:$0xff]  ;;  %4005 = vmatpush.msra.mxu2 %v1010_v30 }
 0x355   : > { %v878_v33 = vld [vmem:[%s6981_s26 + $0x10e8] sm:$0xff]  ;;  %4024 = vmatpush.msra.mxu3 %v1078_v32 }
 0x356   : > { %v946_v34 = vld [vmem:[%s6981_s26 + $0x1308] sm:$0xff]  ;;  %3966 = vmatpush.msra.mxu0 %v878_v33 }
 0x357   : > { %v1006_v35 = vld [vmem:[%s6981_s26 + $0x14e8] sm:$0xff]  ;;  %3985 = vmatpush.msra.mxu1 %v946_v34 }
 0x358   : > { %v1074_v36 = vld [vmem:[%s6981_s26 + $0x1708] sm:$0xff]  ;;  %4006 = vmatpush.msra.mxu2 %v1006_v35 }
 0x359   : > { %v874_v37 = vld [vmem:[%s6981_s26 + $0x10c8] sm:$0xff]  ;;  %4025 = vmatpush.msra.mxu3 %v1074_v36 }
 0x35a   : > { %v942_v40 = vld [vmem:[%s6981_s26 + $0x12e8] sm:$0xff]  ;;  %3967 = vmatpush.msra.mxu0 %v874_v37 }
 0x35b   : > { %v1002_v44 = vld [vmem:[%s6981_s26 + $0x14c8] sm:$0xff]  ;;  %3986 = vmatpush.msra.mxu1 %v942_v40 }
 0x35c   : > { %v1070_v49 = vld [vmem:[%s6981_s26 + $0x16e8] sm:$0xff]  ;;  %4007 = vmatpush.msra.mxu2 %v1002_v44 }
 0x35d   : > { %v870_v51 = vld [vmem:[%s6981_s26 + $0x10a8] sm:$0xff]  ;;  %4026 = vmatpush.msra.mxu3 %v1070_v49 }
 0x35e   : > { %v938_v54 = vld [vmem:[%s6981_s26 + $0x12c8] sm:$0xff]  ;;  %3968 = vmatpush.msra.mxu0 %v870_v51 }
 0x35f   : > { %v998_v55 = vld [vmem:[%s6981_s26 + $0x14a8] sm:$0xff]  ;;  %3987 = vmatpush.msra.mxu1 %v938_v54 }
 0x360   : > { %v1066_v56 = vld [vmem:[%s6981_s26 + $0x16c8] sm:$0xff]  ;;  %4008 = vmatpush.msra.mxu2 %v998_v55 }
 0x361   : > { %v866_v57 = vld [vmem:[%s6981_s26 + $0x1088] sm:$0xff]  ;;  %4027 = vmatpush.msra.mxu3 %v1066_v56 }
 0x362   : > { %v934_v58 = vld [vmem:[%s6981_s26 + $0x12a8] sm:$0xff]  ;;  %3969 = vmatpush.msra.mxu0 %v866_v57 }
 0x363   : > { %v994_v59 = vld [vmem:[%s6981_s26 + $0x1488] sm:$0xff]  ;;  %3988 = vmatpush.msra.mxu1 %v934_v58 }
 0x364   : > { %v1062_v60 = vld [vmem:[%s6981_s26 + $0x16a8] sm:$0xff]  ;;  %4009 = vmatpush.msra.mxu2 %v994_v59 }
 0x365   : > { %v862_v1 = vld [vmem:[%s6981_s26 + $0x1068] sm:$0xff]  ;;  %4028 = vmatpush.msra.mxu3 %v1062_v60 }
 0x366   : > { %v930_v2 = vld [vmem:[%s6981_s26 + $0x1288] sm:$0xff]  ;;  %3970 = vmatpush.msra.mxu0 %v862_v1 }
 0x367   : > { %v990_v3 = vld [vmem:[%s6981_s26 + $0x1468] sm:$0xff]  ;;  %3989 = vmatpush.msra.mxu1 %v930_v2 }
 0x368   : > { %v1058_v4 = vld [vmem:[%s6981_s26 + $0x1688] sm:$0xff]  ;;  %4010 = vmatpush.msra.mxu2 %v990_v3 }
 0x369   : > { %v858_v5 = vld [vmem:[%s6981_s26 + $0x1048] sm:$0xff]  ;;  %4029 = vmatpush.msra.mxu3 %v1058_v4 }
 0x36a   : > { %v926_v6 = vld [vmem:[%s6981_s26 + $0x1268] sm:$0xff]  ;;  %3971 = vmatpush.msra.mxu0 %v858_v5 }
 0x36b   : > { %v986_v7 = vld [vmem:[%s6981_s26 + $0x1448] sm:$0xff]  ;;  %3990 = vmatpush.msra.mxu1 %v926_v6 }
 0x36c   : > { %v1054_v12 = vld [vmem:[%s6981_s26 + $0x1668] sm:$0xff]  ;;  %4011 = vmatpush.msra.mxu2 %v986_v7 }
 0x36d   : > { %v854_v13 = vld [vmem:[%s6981_s26 + $0x1028] sm:$0xff]  ;;  %4030 = vmatpush.msra.mxu3 %v1054_v12 }
 0x36e   : > { %v922_v14 = vld [vmem:[%s6981_s26 + $0x1248] sm:$0xff]  ;;  %3972 = vmatpush.msra.mxu0 %v854_v13 }
 0x36f   : > { %v982_v17 = vld [vmem:[%s6981_s26 + $0x1428] sm:$0xff]  ;;  %3991 = vmatpush.msra.mxu1 %v922_v14 }
 0x370   : > { %v1050_v22 = vld [vmem:[%s6981_s26 + $0x1648] sm:$0xff]  ;;  %4012 = vmatpush.msra.mxu2 %v982_v17 }
 0x371   : > { %v850_v23 = vld [vmem:[%s6981_s26 + $0x1008] sm:$0xff]  ;;  %4031 = vmatpush.msra.mxu3 %v1050_v22 }
 0x372   : > { %v918_v24 = vld [vmem:[%s6981_s26 + $0x1228] sm:$0xff]  ;;  %3973 = vmatpush.msra.mxu0 %v850_v23 }
 0x373   : > { %v978_v30 = vld [vmem:[%s6981_s26 + $0x1408] sm:$0xff]  ;;  %3992 = vmatpush.msra.mxu1 %v918_v24  ;;  %3974 = vmatmul.f32.vlgmr.msra.gmra.mxu0 %v7180_v26 }
 0x374   : > { %v1046_v32 = vld [vmem:[%s6981_s26 + $0x1628] sm:$0xff]  ;;  %4013 = vmatpush.msra.mxu2 %v978_v30 }
 0x375   : > { %v1166_v33 = vld [vmem:[%s6981_s26 + $0x19e8] sm:$0xff]  ;;  %4032 = vmatpush.msra.mxu3 %v1046_v32  ;;  %4014 = vmatmul.f32.vlgmr.msra.gmra.mxu2 %v7182_v27 }
 0x376   : > { %v1294_v34 = vld [vmem:[%s6981_s26 + $0x1de8] sm:$0xff]  ;;  %4038 = vmatpush.msrb.mxu0 %v1166_v33 }
 0x377   : > { %v914_v35 = vld [vmem:[%s6981_s26 + $0x1208] sm:$0xff]  ;;  %4078 = vmatpush.msrb.mxu2 %v1294_v34 }
 0x378   : > { %v1042_v36 = vld [vmem:[%s6981_s26 + $0x1608] sm:$0xff]  ;;  %3993 = vmatpush.msra.mxu1 %v914_v35 }
 0x379   : > { %v1162_v37 = vld [vmem:[%s6981_s26 + $0x19c8] sm:$0xff]  ;;  %4033 = vmatpush.msra.mxu3 %v1042_v36  ;;  %3994 = vmatmul.f32.vlgmr.msra.gmra.mxu1 %v7184_v28 }
 0x37a   : > { %v1230_v40 = vld [vmem:[%s6981_s26 + $0x1be8] sm:$0xff]  ;;  %4034 = vmatmul.f32.vlgmr.msra.gmra.mxu3 %v7188_v31  ;;  %4039 = vmatpush.msrb.mxu0 %v1162_v37 }
 0x37b   : > { %v1290_v44 = vld [vmem:[%s6981_s26 + $0x1dc8] sm:$0xff]  ;;  %4058 = vmatpush.msrb.mxu1 %v1230_v40 }
 0x37c   : > { %v1358_v49 = vld [vmem:[%s6981_s26 + $0x1fe8] sm:$0xff]  ;;  %4079 = vmatpush.msrb.mxu2 %v1290_v44 }
 0x37d   : > { %v1158_v51 = vld [vmem:[%s6981_s26 + $0x19a8] sm:$0xff]  ;;  %4098 = vmatpush.msrb.mxu3 %v1358_v49 }
 0x37e   : > { %v1226_v54 = vld [vmem:[%s6981_s26 + $0x1bc8] sm:$0xff]  ;;  %4040 = vmatpush.msrb.mxu0 %v1158_v51 }
 0x37f   : > { %v1286_v55 = vld [vmem:[%s6981_s26 + $0x1da8] sm:$0xff]  ;;  %4059 = vmatpush.msrb.mxu1 %v1226_v54 }
 0x380   : > { %v1354_v56 = vld [vmem:[%s6981_s26 + $0x1fc8] sm:$0xff]  ;;  %4080 = vmatpush.msrb.mxu2 %v1286_v55 }
 0x381   : > { %v1154_v57 = vld [vmem:[%s6981_s26 + $0x1988] sm:$0xff]  ;;  %4099 = vmatpush.msrb.mxu3 %v1354_v56 }
 0x382   : > { %v1222_v58 = vld [vmem:[%s6981_s26 + $0x1ba8] sm:$0xff]  ;;  %4041 = vmatpush.msrb.mxu0 %v1154_v57 }
 0x383   : > { %v1282_v59 = vld [vmem:[%s6981_s26 + $0x1d88] sm:$0xff]  ;;  %4060 = vmatpush.msrb.mxu1 %v1222_v58 }
 0x384   : > { %v1350_v60 = vld [vmem:[%s6981_s26 + $0x1fa8] sm:$0xff]  ;;  %4081 = vmatpush.msrb.mxu2 %v1282_v59 }
 0x385   : > { %v1150_v1 = vld [vmem:[%s6981_s26 + $0x1968] sm:$0xff]  ;;  %4100 = vmatpush.msrb.mxu3 %v1350_v60 }
 0x386   : > { %v1218_v2 = vld [vmem:[%s6981_s26 + $0x1b88] sm:$0xff]  ;;  %4042 = vmatpush.msrb.mxu0 %v1150_v1 }
 0x387   : > { %v1278_v3 = vld [vmem:[%s6981_s26 + $0x1d68] sm:$0xff]  ;;  %4061 = vmatpush.msrb.mxu1 %v1218_v2 }
 0x388   : > { %v1346_v4 = vld [vmem:[%s6981_s26 + $0x1f88] sm:$0xff]  ;;  %4082 = vmatpush.msrb.mxu2 %v1278_v3 }
 0x389   : > { %v1146_v5 = vld [vmem:[%s6981_s26 + $0x1948] sm:$0xff]  ;;  %4101 = vmatpush.msrb.mxu3 %v1346_v4 }
 0x38a   : > { %v1214_v6 = vld [vmem:[%s6981_s26 + $0x1b68] sm:$0xff]  ;;  %4043 = vmatpush.msrb.mxu0 %v1146_v5 }
 0x38b   : > { %v1274_v7 = vld [vmem:[%s6981_s26 + $0x1d48] sm:$0xff]  ;;  %4062 = vmatpush.msrb.mxu1 %v1214_v6 }
 0x38c   : > { %v1342_v12 = vld [vmem:[%s6981_s26 + $0x1f68] sm:$0xff]  ;;  %4083 = vmatpush.msrb.mxu2 %v1274_v7 }
 0x38d   : > { %v1142_v13 = vld [vmem:[%s6981_s26 + $0x1928] sm:$0xff]  ;;  %4102 = vmatpush.msrb.mxu3 %v1342_v12 }
 0x38e   : > { %v1210_v14 = vld [vmem:[%s6981_s26 + $0x1b48] sm:$0xff]  ;;  %4044 = vmatpush.msrb.mxu0 %v1142_v13 }
 0x38f   : > { %v1270_v17 = vld [vmem:[%s6981_s26 + $0x1d28] sm:$0xff]  ;;  %4063 = vmatpush.msrb.mxu1 %v1210_v14 }
 0x390   : > { %v1338_v22 = vld [vmem:[%s6981_s26 + $0x1f48] sm:$0xff]  ;;  %4084 = vmatpush.msrb.mxu2 %v1270_v17 }
 0x391   : > { %v1138_v23 = vld [vmem:[%s6981_s26 + $0x1908] sm:$0xff]  ;;  %4103 = vmatpush.msrb.mxu3 %v1338_v22 }
 0x392   : > { %v1206_v24 = vld [vmem:[%s6981_s26 + $0x1b28] sm:$0xff]  ;;  %4045 = vmatpush.msrb.mxu0 %v1138_v23 }
 0x393   : > { %v1266_v30 = vld [vmem:[%s6981_s26 + $0x1d08] sm:$0xff]  ;;  %4064 = vmatpush.msrb.mxu1 %v1206_v24 }
 0x394   : > { %v1334_v32 = vld [vmem:[%s6981_s26 + $0x1f28] sm:$0xff]  ;;  %4085 = vmatpush.msrb.mxu2 %v1266_v30 }
 0x395   : > { %v1134_v33 = vld [vmem:[%s6981_s26 + $0x18e8] sm:$0xff]  ;;  %4104 = vmatpush.msrb.mxu3 %v1334_v32 }
 0x396   : > { %v1202_v34 = vld [vmem:[%s6981_s26 + $0x1b08] sm:$0xff]  ;;  %4046 = vmatpush.msrb.mxu0 %v1134_v33 }
 0x397   : > { %v1262_v35 = vld [vmem:[%s6981_s26 + $0x1ce8] sm:$0xff]  ;;  %4065 = vmatpush.msrb.mxu1 %v1202_v34 }
 0x398   : > { %v1330_v36 = vld [vmem:[%s6981_s26 + $0x1f08] sm:$0xff]  ;;  %4086 = vmatpush.msrb.mxu2 %v1262_v35 }
 0x399   : > { %v1130_v37 = vld [vmem:[%s6981_s26 + $0x18c8] sm:$0xff]  ;;  %4105 = vmatpush.msrb.mxu3 %v1330_v36 }
 0x39a   : > { %v1198_v40 = vld [vmem:[%s6981_s26 + $0x1ae8] sm:$0xff]  ;;  %4047 = vmatpush.msrb.mxu0 %v1130_v37 }
 0x39b   : > { %v1258_v44 = vld [vmem:[%s6981_s26 + $0x1cc8] sm:$0xff]  ;;  %4066 = vmatpush.msrb.mxu1 %v1198_v40 }
 0x39c   : > { %v1326_v49 = vld [vmem:[%s6981_s26 + $0x1ee8] sm:$0xff]  ;;  %4087 = vmatpush.msrb.mxu2 %v1258_v44 }
 0x39d   : > { %v1126_v51 = vld [vmem:[%s6981_s26 + $0x18a8] sm:$0xff]  ;;  %4106 = vmatpush.msrb.mxu3 %v1326_v49 }
 0x39e   : > { %v1194_v54 = vld [vmem:[%s6981_s26 + $0x1ac8] sm:$0xff]  ;;  %4048 = vmatpush.msrb.mxu0 %v1126_v51 }
 0x39f   : > { %v1254_v55 = vld [vmem:[%s6981_s26 + $0x1ca8] sm:$0xff]  ;;  %4067 = vmatpush.msrb.mxu1 %v1194_v54 }
 0x3a0   : > { %v1322_v56 = vld [vmem:[%s6981_s26 + $0x1ec8] sm:$0xff]  ;;  %4088 = vmatpush.msrb.mxu2 %v1254_v55 }
 0x3a1   : > { %v1122_v57 = vld [vmem:[%s6981_s26 + $0x1888] sm:$0xff]  ;;  %4107 = vmatpush.msrb.mxu3 %v1322_v56 }
 0x3a2   : > { %v1190_v58 = vld [vmem:[%s6981_s26 + $0x1aa8] sm:$0xff]  ;;  %4049 = vmatpush.msrb.mxu0 %v1122_v57 }
 0x3a3   : > { %v1250_v59 = vld [vmem:[%s6981_s26 + $0x1c88] sm:$0xff]  ;;  %4068 = vmatpush.msrb.mxu1 %v1190_v58 }
 0x3a4   : > { %v1318_v60 = vld [vmem:[%s6981_s26 + $0x1ea8] sm:$0xff]  ;;  %4089 = vmatpush.msrb.mxu2 %v1250_v59 }
 0x3a5   : > { %v1118_v1 = vld [vmem:[%s6981_s26 + $0x1868] sm:$0xff]  ;;  %4108 = vmatpush.msrb.mxu3 %v1318_v60 }
 0x3a6   : > { %v1186_v2 = vld [vmem:[%s6981_s26 + $0x1a88] sm:$0xff]  ;;  %4050 = vmatpush.msrb.mxu0 %v1118_v1 }
 0x3a7   : > { %v1246_v3 = vld [vmem:[%s6981_s26 + $0x1c68] sm:$0xff]  ;;  %4069 = vmatpush.msrb.mxu1 %v1186_v2 }
 0x3a8   : > { %v1314_v4 = vld [vmem:[%s6981_s26 + $0x1e88] sm:$0xff]  ;;  %4090 = vmatpush.msrb.mxu2 %v1246_v3 }
 0x3a9   : > { %v1114_v5 = vld [vmem:[%s6981_s26 + $0x1848] sm:$0xff]  ;;  %4109 = vmatpush.msrb.mxu3 %v1314_v4 }
 0x3aa   : > { %v1182_v6 = vld [vmem:[%s6981_s26 + $0x1a68] sm:$0xff]  ;;  %4051 = vmatpush.msrb.mxu0 %v1114_v5 }
 0x3ab   : > { %v1242_v7 = vld [vmem:[%s6981_s26 + $0x1c48] sm:$0xff]  ;;  %4070 = vmatpush.msrb.mxu1 %v1182_v6 }
 0x3ac   : > { %v1310_v12 = vld [vmem:[%s6981_s26 + $0x1e68] sm:$0xff]  ;;  %4091 = vmatpush.msrb.mxu2 %v1242_v7 }
 0x3ad   : > { %v1110_v13 = vld [vmem:[%s6981_s26 + $0x1828] sm:$0xff]  ;;  %4110 = vmatpush.msrb.mxu3 %v1310_v12 }
 0x3ae   : > { %v1178_v14 = vld [vmem:[%s6981_s26 + $0x1a48] sm:$0xff]  ;;  %4052 = vmatpush.msrb.mxu0 %v1110_v13 }
 0x3af   : > { %v1238_v17 = vld [vmem:[%s6981_s26 + $0x1c28] sm:$0xff]  ;;  %4071 = vmatpush.msrb.mxu1 %v1178_v14 }
 0x3b0   : > { %v1306_v22 = vld [vmem:[%s6981_s26 + $0x1e48] sm:$0xff]  ;;  %4092 = vmatpush.msrb.mxu2 %v1238_v17 }
 0x3b1   : > { %v1106_v23 = vld [vmem:[%s6981_s26 + $0x1808] sm:$0xff]  ;;  %4111 = vmatpush.msrb.mxu3 %v1306_v22 }
 0x3b2   : > { %v1174_v24 = vld [vmem:[%s6981_s26 + $0x1a28] sm:$0xff]  ;;  %4053 = vmatpush.msrb.mxu0 %v1106_v23 }
 0x3b3   : > { %v1234_v30 = vld [vmem:[%s6981_s26 + $0x1c08] sm:$0xff]  ;;  %4072 = vmatpush.msrb.mxu1 %v1174_v24  ;;  %4054 = vmatmul.f32.vlgmr.msrb.gmra.mxu0 %v7259_v41 }
 0x3b4   : > { %v1302_v32 = vld [vmem:[%s6981_s26 + $0x1e28] sm:$0xff]  ;;  %4093 = vmatpush.msrb.mxu2 %v1234_v30 }
 0x3b5   : > { %v1422_v33 = vld [vmem:[%s6981_s26 + $0x21e8] sm:$0xff]  ;;  %4112 = vmatpush.msrb.mxu3 %v1302_v32  ;;  %4094 = vmatmul.f32.vlgmr.msrb.gmra.mxu2 %v7261_v42 }
 0x3b6   : > { %v1550_v34 = vld [vmem:[%s6981_s26 + $0x25e8] sm:$0xff]  ;;  %4118 = vmatpush.msra.mxu0 %v1422_v33 }
 0x3b7   : > { %v1170_v35 = vld [vmem:[%s6981_s26 + $0x1a08] sm:$0xff]  ;;  %4158 = vmatpush.msra.mxu2 %v1550_v34 }
 0x3b8   : > { %v1298_v36 = vld [vmem:[%s6981_s26 + $0x1e08] sm:$0xff]  ;;  %4073 = vmatpush.msrb.mxu1 %v1170_v35 }
 0x3b9   : > { %v1418_v37 = vld [vmem:[%s6981_s26 + $0x21c8] sm:$0xff]  ;;  %4113 = vmatpush.msrb.mxu3 %v1298_v36  ;;  %4074 = vmatmul.f32.vlgmr.msrb.gmra.mxu1 %v7263_v43 }
 0x3ba   : > { %v1486_v40 = vld [vmem:[%s6981_s26 + $0x23e8] sm:$0xff]  ;;  %4114 = vmatmul.f32.vlgmr.msrb.gmra.mxu3 %v7267_v50  ;;  %4119 = vmatpush.msra.mxu0 %v1418_v37 }
 0x3bb   : > { %v1546_v44 = vld [vmem:[%s6981_s26 + $0x25c8] sm:$0xff]  ;;  %4138 = vmatpush.msra.mxu1 %v1486_v40 }
 0x3bc   : > { %v1614_v49 = vld [vmem:[%s6981_s26 + $0x27e8] sm:$0xff]  ;;  %4159 = vmatpush.msra.mxu2 %v1546_v44 }
 0x3bd   : > { %v1414_v51 = vld [vmem:[%s6981_s26 + $0x21a8] sm:$0xff]  ;;  %4178 = vmatpush.msra.mxu3 %v1614_v49 }
 0x3be   : > { %v1482_v54 = vld [vmem:[%s6981_s26 + $0x23c8] sm:$0xff]  ;;  %4120 = vmatpush.msra.mxu0 %v1414_v51 }
 0x3bf   : > { %v1542_v55 = vld [vmem:[%s6981_s26 + $0x25a8] sm:$0xff]  ;;  %4139 = vmatpush.msra.mxu1 %v1482_v54 }
 0x3c0   : > { %v1610_v56 = vld [vmem:[%s6981_s26 + $0x27c8] sm:$0xff]  ;;  %4160 = vmatpush.msra.mxu2 %v1542_v55 }
 0x3c1   : > { %v1410_v57 = vld [vmem:[%s6981_s26 + $0x2188] sm:$0xff]  ;;  %4179 = vmatpush.msra.mxu3 %v1610_v56 }
 0x3c2   : > { %v1478_v58 = vld [vmem:[%s6981_s26 + $0x23a8] sm:$0xff]  ;;  %4121 = vmatpush.msra.mxu0 %v1410_v57 }
 0x3c3   : > { %v1538_v59 = vld [vmem:[%s6981_s26 + $0x2588] sm:$0xff]  ;;  %4140 = vmatpush.msra.mxu1 %v1478_v58 }
 0x3c4   : > { %v1606_v60 = vld [vmem:[%s6981_s26 + $0x27a8] sm:$0xff]  ;;  %4161 = vmatpush.msra.mxu2 %v1538_v59 }
 0x3c5   : > { %v1406_v1 = vld [vmem:[%s6981_s26 + $0x2168] sm:$0xff]  ;;  %4180 = vmatpush.msra.mxu3 %v1606_v60 }
 0x3c6   : > { %v1474_v2 = vld [vmem:[%s6981_s26 + $0x2388] sm:$0xff]  ;;  %4122 = vmatpush.msra.mxu0 %v1406_v1 }
 0x3c7   : > { %v1534_v3 = vld [vmem:[%s6981_s26 + $0x2568] sm:$0xff]  ;;  %4141 = vmatpush.msra.mxu1 %v1474_v2 }
 0x3c8   : > { %v1602_v4 = vld [vmem:[%s6981_s26 + $0x2788] sm:$0xff]  ;;  %4162 = vmatpush.msra.mxu2 %v1534_v3 }
 0x3c9   : > { %v1402_v5 = vld [vmem:[%s6981_s26 + $0x2148] sm:$0xff]  ;;  %4181 = vmatpush.msra.mxu3 %v1602_v4 }
 0x3ca   : > { %v1470_v6 = vld [vmem:[%s6981_s26 + $0x2368] sm:$0xff]  ;;  %4123 = vmatpush.msra.mxu0 %v1402_v5 }
 0x3cb   : > { %v1530_v7 = vld [vmem:[%s6981_s26 + $0x2548] sm:$0xff]  ;;  %4142 = vmatpush.msra.mxu1 %v1470_v6 }
 0x3cc   : > { %v1598_v12 = vld [vmem:[%s6981_s26 + $0x2768] sm:$0xff]  ;;  %4163 = vmatpush.msra.mxu2 %v1530_v7 }
 0x3cd   : > { %v1398_v13 = vld [vmem:[%s6981_s26 + $0x2128] sm:$0xff]  ;;  %4182 = vmatpush.msra.mxu3 %v1598_v12 }
 0x3ce   : > { %v1466_v14 = vld [vmem:[%s6981_s26 + $0x2348] sm:$0xff]  ;;  %4124 = vmatpush.msra.mxu0 %v1398_v13 }
 0x3cf   : > { %v1526_v17 = vld [vmem:[%s6981_s26 + $0x2528] sm:$0xff]  ;;  %4143 = vmatpush.msra.mxu1 %v1466_v14 }
 0x3d0   : > { %v1594_v22 = vld [vmem:[%s6981_s26 + $0x2748] sm:$0xff]  ;;  %4164 = vmatpush.msra.mxu2 %v1526_v17 }
 0x3d1   : > { %v1394_v23 = vld [vmem:[%s6981_s26 + $0x2108] sm:$0xff]  ;;  %4183 = vmatpush.msra.mxu3 %v1594_v22 }
 0x3d2   : > { %v1462_v24 = vld [vmem:[%s6981_s26 + $0x2328] sm:$0xff]  ;;  %4125 = vmatpush.msra.mxu0 %v1394_v23 }
 0x3d3   : > { %v1522_v30 = vld [vmem:[%s6981_s26 + $0x2508] sm:$0xff]  ;;  %4144 = vmatpush.msra.mxu1 %v1462_v24 }
 0x3d4   : > { %v1590_v32 = vld [vmem:[%s6981_s26 + $0x2728] sm:$0xff]  ;;  %4165 = vmatpush.msra.mxu2 %v1522_v30 }
 0x3d5   : > { %v1390_v33 = vld [vmem:[%s6981_s26 + $0x20e8] sm:$0xff]  ;;  %4184 = vmatpush.msra.mxu3 %v1590_v32 }
 0x3d6   : > { %v1458_v34 = vld [vmem:[%s6981_s26 + $0x2308] sm:$0xff]  ;;  %4126 = vmatpush.msra.mxu0 %v1390_v33 }
 0x3d7   : > { %v1518_v35 = vld [vmem:[%s6981_s26 + $0x24e8] sm:$0xff]  ;;  %4145 = vmatpush.msra.mxu1 %v1458_v34 }
 0x3d8   : > { %v1586_v36 = vld [vmem:[%s6981_s26 + $0x2708] sm:$0xff]  ;;  %4166 = vmatpush.msra.mxu2 %v1518_v35 }
 0x3d9   : > { %v1386_v37 = vld [vmem:[%s6981_s26 + $0x20c8] sm:$0xff]  ;;  %4185 = vmatpush.msra.mxu3 %v1586_v36 }
 0x3da   : > { %v1454_v40 = vld [vmem:[%s6981_s26 + $0x22e8] sm:$0xff]  ;;  %4127 = vmatpush.msra.mxu0 %v1386_v37 }
 0x3db   : > { %v1514_v44 = vld [vmem:[%s6981_s26 + $0x24c8] sm:$0xff]  ;;  %4146 = vmatpush.msra.mxu1 %v1454_v40 }
 0x3dc   : > { %v1582_v49 = vld [vmem:[%s6981_s26 + $0x26e8] sm:$0xff]  ;;  %4167 = vmatpush.msra.mxu2 %v1514_v44 }
 0x3dd   : > { %v1382_v51 = vld [vmem:[%s6981_s26 + $0x20a8] sm:$0xff]  ;;  %4186 = vmatpush.msra.mxu3 %v1582_v49 }
 0x3de   : > { %v1450_v54 = vld [vmem:[%s6981_s26 + $0x22c8] sm:$0xff]  ;;  %4128 = vmatpush.msra.mxu0 %v1382_v51 }
 0x3df   : > { %v1510_v55 = vld [vmem:[%s6981_s26 + $0x24a8] sm:$0xff]  ;;  %4147 = vmatpush.msra.mxu1 %v1450_v54 }
 0x3e0   : > { %v1578_v56 = vld [vmem:[%s6981_s26 + $0x26c8] sm:$0xff]  ;;  %4168 = vmatpush.msra.mxu2 %v1510_v55 }
 0x3e1   : > { %v1378_v57 = vld [vmem:[%s6981_s26 + $0x2088] sm:$0xff]  ;;  %4187 = vmatpush.msra.mxu3 %v1578_v56 }
 0x3e2   : > { %v1446_v58 = vld [vmem:[%s6981_s26 + $0x22a8] sm:$0xff]  ;;  %4129 = vmatpush.msra.mxu0 %v1378_v57 }
 0x3e3   : > { %v1506_v59 = vld [vmem:[%s6981_s26 + $0x2488] sm:$0xff]  ;;  %4148 = vmatpush.msra.mxu1 %v1446_v58 }
 0x3e4   : > { %v1574_v60 = vld [vmem:[%s6981_s26 + $0x26a8] sm:$0xff]  ;;  %4169 = vmatpush.msra.mxu2 %v1506_v59 }
 0x3e5   : > { %v1374_v1 = vld [vmem:[%s6981_s26 + $0x2068] sm:$0xff]  ;;  %4188 = vmatpush.msra.mxu3 %v1574_v60 }
 0x3e6   : > { %v1442_v2 = vld [vmem:[%s6981_s26 + $0x2288] sm:$0xff]  ;;  %4130 = vmatpush.msra.mxu0 %v1374_v1 }
 0x3e7   : > { %v1502_v3 = vld [vmem:[%s6981_s26 + $0x2468] sm:$0xff]  ;;  %4149 = vmatpush.msra.mxu1 %v1442_v2 }
 0x3e8   : > { %v1570_v4 = vld [vmem:[%s6981_s26 + $0x2688] sm:$0xff]  ;;  %4170 = vmatpush.msra.mxu2 %v1502_v3 }
 0x3e9   : > { %v1370_v5 = vld [vmem:[%s6981_s26 + $0x2048] sm:$0xff]  ;;  %4189 = vmatpush.msra.mxu3 %v1570_v4 }
 0x3ea   : > { %v1438_v6 = vld [vmem:[%s6981_s26 + $0x2268] sm:$0xff]  ;;  %4131 = vmatpush.msra.mxu0 %v1370_v5 }
 0x3eb   : > { %v1498_v7 = vld [vmem:[%s6981_s26 + $0x2448] sm:$0xff]  ;;  %4150 = vmatpush.msra.mxu1 %v1438_v6 }
 0x3ec   : > { %v1566_v12 = vld [vmem:[%s6981_s26 + $0x2668] sm:$0xff]  ;;  %4171 = vmatpush.msra.mxu2 %v1498_v7 }
 0x3ed   : > { %v1366_v13 = vld [vmem:[%s6981_s26 + $0x2028] sm:$0xff]  ;;  %4190 = vmatpush.msra.mxu3 %v1566_v12 }
 0x3ee   : > { %v1434_v14 = vld [vmem:[%s6981_s26 + $0x2248] sm:$0xff]  ;;  %4132 = vmatpush.msra.mxu0 %v1366_v13 }
 0x3ef   : > { %v1494_v17 = vld [vmem:[%s6981_s26 + $0x2428] sm:$0xff]  ;;  %4151 = vmatpush.msra.mxu1 %v1434_v14 }
 0x3f0   : > { %v1562_v22 = vld [vmem:[%s6981_s26 + $0x2648] sm:$0xff]  ;;  %4172 = vmatpush.msra.mxu2 %v1494_v17 }
 0x3f1   : > { %v1362_v23 = vld [vmem:[%s6981_s26 + $0x2008] sm:$0xff]  ;;  %4191 = vmatpush.msra.mxu3 %v1562_v22 }
 0x3f2   : > { %v1430_v24 = vld [vmem:[%s6981_s26 + $0x2228] sm:$0xff]  ;;  %4133 = vmatpush.msra.mxu0 %v1362_v23 }
 0x3f3   : > { %v1490_v30 = vld [vmem:[%s6981_s26 + $0x2408] sm:$0xff]  ;;  %4152 = vmatpush.msra.mxu1 %v1430_v24  ;;  %4134 = vmatmul.f32.vlgmr.msra.gmra.mxu0 %v7387_v9 }
 0x3f4   : > { %v1558_v32 = vld [vmem:[%s6981_s26 + $0x2628] sm:$0xff]  ;;  %4173 = vmatpush.msra.mxu2 %v1490_v30 }
 0x3f5   : > { %v1678_v33 = vld [vmem:[%s6981_s26 + $0x29e8] sm:$0xff]  ;;  %4192 = vmatpush.msra.mxu3 %v1558_v32  ;;  %4174 = vmatmul.f32.vlgmr.msra.gmra.mxu2 %v7389_v10 }
 0x3f6   : > { %v1806_v34 = vld [vmem:[%s6981_s26 + $0x2de8] sm:$0xff]  ;;  %4198 = vmatpush.msrb.mxu0 %v1678_v33 }
 0x3f7   : > { %v1426_v35 = vld [vmem:[%s6981_s26 + $0x2208] sm:$0xff]  ;;  %4238 = vmatpush.msrb.mxu2 %v1806_v34 }
 0x3f8   : > { %v1554_v36 = vld [vmem:[%s6981_s26 + $0x2608] sm:$0xff]  ;;  %4153 = vmatpush.msra.mxu1 %v1426_v35 }
 0x3f9   : > { %v1674_v37 = vld [vmem:[%s6981_s26 + $0x29c8] sm:$0xff]  ;;  %4193 = vmatpush.msra.mxu3 %v1554_v36  ;;  %4154 = vmatmul.f32.vlgmr.msra.gmra.mxu1 %v7397_v15 }
 0x3fa   : > { %v1742_v40 = vld [vmem:[%s6981_s26 + $0x2be8] sm:$0xff]  ;;  %4194 = vmatmul.f32.vlgmr.msra.gmra.mxu3 %v7399_v16  ;;  %4199 = vmatpush.msrb.mxu0 %v1674_v37 }
 0x3fb   : > { %v1802_v44 = vld [vmem:[%s6981_s26 + $0x2dc8] sm:$0xff]  ;;  %4218 = vmatpush.msrb.mxu1 %v1742_v40 }
 0x3fc   : > { %v1870_v49 = vld [vmem:[%s6981_s26 + $0x2fe8] sm:$0xff]  ;;  %4239 = vmatpush.msrb.mxu2 %v1802_v44 }
 0x3fd   : > { %v1670_v51 = vld [vmem:[%s6981_s26 + $0x29a8] sm:$0xff]  ;;  %4258 = vmatpush.msrb.mxu3 %v1870_v49 }
 0x3fe   : > { %v1738_v54 = vld [vmem:[%s6981_s26 + $0x2bc8] sm:$0xff]  ;;  %4200 = vmatpush.msrb.mxu0 %v1670_v51 }
 0x3ff   : > { %v1798_v55 = vld [vmem:[%s6981_s26 + $0x2da8] sm:$0xff]  ;;  %4219 = vmatpush.msrb.mxu1 %v1738_v54 }
 0x400   : > { %v1866_v56 = vld [vmem:[%s6981_s26 + $0x2fc8] sm:$0xff]  ;;  %4240 = vmatpush.msrb.mxu2 %v1798_v55 }
 0x401   : > { %v1666_v57 = vld [vmem:[%s6981_s26 + $0x2988] sm:$0xff]  ;;  %4259 = vmatpush.msrb.mxu3 %v1866_v56 }
 0x402   : > { %v1734_v58 = vld [vmem:[%s6981_s26 + $0x2ba8] sm:$0xff]  ;;  %4201 = vmatpush.msrb.mxu0 %v1666_v57 }
 0x403   : > { %v1794_v59 = vld [vmem:[%s6981_s26 + $0x2d88] sm:$0xff]  ;;  %4220 = vmatpush.msrb.mxu1 %v1734_v58 }
 0x404   : > { %v1862_v60 = vld [vmem:[%s6981_s26 + $0x2fa8] sm:$0xff]  ;;  %4241 = vmatpush.msrb.mxu2 %v1794_v59 }
 0x405   : > { %v1662_v1 = vld [vmem:[%s6981_s26 + $0x2968] sm:$0xff]  ;;  %4260 = vmatpush.msrb.mxu3 %v1862_v60 }
 0x406   : > { %v1730_v2 = vld [vmem:[%s6981_s26 + $0x2b88] sm:$0xff]  ;;  %4202 = vmatpush.msrb.mxu0 %v1662_v1 }
 0x407   : > { %v1790_v3 = vld [vmem:[%s6981_s26 + $0x2d68] sm:$0xff]  ;;  %4221 = vmatpush.msrb.mxu1 %v1730_v2 }
 0x408   : > { %v1858_v4 = vld [vmem:[%s6981_s26 + $0x2f88] sm:$0xff]  ;;  %4242 = vmatpush.msrb.mxu2 %v1790_v3 }
 0x409   : > { %v1658_v5 = vld [vmem:[%s6981_s26 + $0x2948] sm:$0xff]  ;;  %4261 = vmatpush.msrb.mxu3 %v1858_v4 }
 0x40a   : > { %v1726_v6 = vld [vmem:[%s6981_s26 + $0x2b68] sm:$0xff]  ;;  %4203 = vmatpush.msrb.mxu0 %v1658_v5 }
 0x40b   : > { %v1786_v7 = vld [vmem:[%s6981_s26 + $0x2d48] sm:$0xff]  ;;  %4222 = vmatpush.msrb.mxu1 %v1726_v6 }
 0x40c   : > { %v1854_v12 = vld [vmem:[%s6981_s26 + $0x2f68] sm:$0xff]  ;;  %4243 = vmatpush.msrb.mxu2 %v1786_v7 }
 0x40d   : > { %v1654_v13 = vld [vmem:[%s6981_s26 + $0x2928] sm:$0xff]  ;;  %4262 = vmatpush.msrb.mxu3 %v1854_v12 }
 0x40e   : > { %v1722_v14 = vld [vmem:[%s6981_s26 + $0x2b48] sm:$0xff]  ;;  %4204 = vmatpush.msrb.mxu0 %v1654_v13 }
 0x40f   : > { %v1782_v17 = vld [vmem:[%s6981_s26 + $0x2d28] sm:$0xff]  ;;  %4223 = vmatpush.msrb.mxu1 %v1722_v14 }
 0x410   : > { %v1850_v22 = vld [vmem:[%s6981_s26 + $0x2f48] sm:$0xff]  ;;  %4244 = vmatpush.msrb.mxu2 %v1782_v17 }
 0x411   : > { %v1650_v23 = vld [vmem:[%s6981_s26 + $0x2908] sm:$0xff]  ;;  %4263 = vmatpush.msrb.mxu3 %v1850_v22 }
 0x412   : > { %v1718_v24 = vld [vmem:[%s6981_s26 + $0x2b28] sm:$0xff]  ;;  %4205 = vmatpush.msrb.mxu0 %v1650_v23 }
 0x413   : > { %v1778_v30 = vld [vmem:[%s6981_s26 + $0x2d08] sm:$0xff]  ;;  %4224 = vmatpush.msrb.mxu1 %v1718_v24 }
 0x414   : > { %v1846_v32 = vld [vmem:[%s6981_s26 + $0x2f28] sm:$0xff]  ;;  %4245 = vmatpush.msrb.mxu2 %v1778_v30 }
 0x415   : > { %v1646_v33 = vld [vmem:[%s6981_s26 + $0x28e8] sm:$0xff]  ;;  %4264 = vmatpush.msrb.mxu3 %v1846_v32 }
 0x416   : > { %v1714_v34 = vld [vmem:[%s6981_s26 + $0x2b08] sm:$0xff]  ;;  %4206 = vmatpush.msrb.mxu0 %v1646_v33 }
 0x417   : > { %v1774_v35 = vld [vmem:[%s6981_s26 + $0x2ce8] sm:$0xff]  ;;  %4225 = vmatpush.msrb.mxu1 %v1714_v34 }
 0x418   : > { %v1842_v36 = vld [vmem:[%s6981_s26 + $0x2f08] sm:$0xff]  ;;  %4246 = vmatpush.msrb.mxu2 %v1774_v35 }
 0x419   : > { %v1642_v37 = vld [vmem:[%s6981_s26 + $0x28c8] sm:$0xff]  ;;  %4265 = vmatpush.msrb.mxu3 %v1842_v36 }
 0x41a   : > { %v1710_v40 = vld [vmem:[%s6981_s26 + $0x2ae8] sm:$0xff]  ;;  %4207 = vmatpush.msrb.mxu0 %v1642_v37  ;;  %v8169_v37 = vpop.f32.mrf.mxu1 }
 0x41b   : > { %v1770_v44 = vld [vmem:[%s6981_s26 + $0x2cc8] sm:$0xff]  ;;  %4226 = vmatpush.msrb.mxu1 %v1710_v40 }
 0x41c   : > { %v1838_v49 = vld [vmem:[%s6981_s26 + $0x2ee8] sm:$0xff]  ;;  %4247 = vmatpush.msrb.mxu2 %v1770_v44 }
 0x41d   : > { %v1638_v51 = vld [vmem:[%s6981_s26 + $0x28a8] sm:$0xff]  ;;  %4266 = vmatpush.msrb.mxu3 %v1838_v49 }
 0x41e   : > { %v1706_v54 = vld [vmem:[%s6981_s26 + $0x2ac8] sm:$0xff]  ;;  %4208 = vmatpush.msrb.mxu0 %v1638_v51 }
 0x41f   : > { %v1766_v55 = vld [vmem:[%s6981_s26 + $0x2ca8] sm:$0xff]  ;;  %4227 = vmatpush.msrb.mxu1 %v1706_v54  ;;  %v8175_v54 = vpop.f32.mrf.mxu0 }
 0x420   : > { %v1834_v56 = vld [vmem:[%s6981_s26 + $0x2ec8] sm:$0xff]  ;;  %4248 = vmatpush.msrb.mxu2 %v1766_v55 }
 0x421   : > { %v1634_v57 = vld [vmem:[%s6981_s26 + $0x2888] sm:$0xff]  ;;  %4267 = vmatpush.msrb.mxu3 %v1834_v56 }
 0x422   : > { %v1702_v58 = vld [vmem:[%s6981_s26 + $0x2aa8] sm:$0xff]  ;;  %4209 = vmatpush.msrb.mxu0 %v1634_v57 }
 0x423   : > { %v1762_v59 = vld [vmem:[%s6981_s26 + $0x2c88] sm:$0xff]  ;;  %4228 = vmatpush.msrb.mxu1 %v1702_v58 }
 0x424   : > { %v1830_v60 = vld [vmem:[%s6981_s26 + $0x2ea8] sm:$0xff]  ;;  %4249 = vmatpush.msrb.mxu2 %v1762_v59  ;;  %v8183_v59 = vpop.f32.mrf.mxu2 }
 0x425   : > { %v1630_v1 = vld [vmem:[%s6981_s26 + $0x2868] sm:$0xff]  ;;  %4268 = vmatpush.msrb.mxu3 %v1830_v60 }
 0x426   : > { %v1698_v2 = vld [vmem:[%s6981_s26 + $0x2a88] sm:$0xff]  ;;  %4210 = vmatpush.msrb.mxu0 %v1630_v1 }
 0x427   : > { %v1758_v3 = vld [vmem:[%s6981_s26 + $0x2c68] sm:$0xff]  ;;  %4229 = vmatpush.msrb.mxu1 %v1698_v2 }
 0x428   : > { %v1826_v4 = vld [vmem:[%s6981_s26 + $0x2e88] sm:$0xff]  ;;  %4250 = vmatpush.msrb.mxu2 %v1758_v3 }
 0x429   : > { %v1626_v5 = vld [vmem:[%s6981_s26 + $0x2848] sm:$0xff]  ;;  %4269 = vmatpush.msrb.mxu3 %v1826_v4 }
 0x42a   : > { %v1694_v6 = vld [vmem:[%s6981_s26 + $0x2a68] sm:$0xff]  ;;  %4211 = vmatpush.msrb.mxu0 %v1626_v5 }
 0x42b   : > { %v1754_v7 = vld [vmem:[%s6981_s26 + $0x2c48] sm:$0xff]  ;;  %4230 = vmatpush.msrb.mxu1 %v1694_v6 }
 0x42c   : > { %v1822_v12 = vld [vmem:[%s6981_s26 + $0x2e68] sm:$0xff]  ;;  %4251 = vmatpush.msrb.mxu2 %v1754_v7 }
 0x42d   : > { %v1622_v13 = vld [vmem:[%s6981_s26 + $0x2828] sm:$0xff]  ;;  %4270 = vmatpush.msrb.mxu3 %v1822_v12  ;;  %v8193_v12 = vpop.f32.mrf.mxu3 }
 0x42e   : > { %v1690_v14 = vld [vmem:[%s6981_s26 + $0x2a48] sm:$0xff]  ;;  %4212 = vmatpush.msrb.mxu0 %v1622_v13 }
 0x42f   : > { %v1750_v17 = vld [vmem:[%s6981_s26 + $0x2c28] sm:$0xff]  ;;  %4231 = vmatpush.msrb.mxu1 %v1690_v14 }
 0x430   : > { %v1818_v22 = vld [vmem:[%s6981_s26 + $0x2e48] sm:$0xff]  ;;  %4252 = vmatpush.msrb.mxu2 %v1750_v17 }
 0x431   : > { %v1618_v23 = vld [vmem:[%s6981_s26 + $0x2808] sm:$0xff]  ;;  %4271 = vmatpush.msrb.mxu3 %v1818_v22 }
 0x432   : > { %v1686_v24 = vld [vmem:[%s6981_s26 + $0x2a28] sm:$0xff]  ;;  %4213 = vmatpush.msrb.mxu0 %v1618_v23  ;;  %v8199_v23 = vpop.f32.mrf.mxu1 }
 0x433   : > { %v1746_v30 = vld [vmem:[%s6981_s26 + $0x2c08] sm:$0xff]  ;;  %4232 = vmatpush.msrb.mxu1 %v1686_v24  ;;  %4214 = vmatmul.f32.vlgmr.msrb.gmra.mxu0 %v7464_v38 }
 0x434   : > { %v1814_v32 = vld [vmem:[%s6981_s26 + $0x2e28] sm:$0xff]  ;;  %4253 = vmatpush.msrb.mxu2 %v1746_v30 }
 0x435   : > { %v1934_v33 = vld [vmem:[%s6981_s26 + $0x31e8] sm:$0xff]  ;;  %4272 = vmatpush.msrb.mxu3 %v1814_v32  ;;  %4254 = vmatmul.f32.vlgmr.msrb.gmra.mxu2 %v7466_v39 }
 0x436   : > { %v2062_v34 = vld [vmem:[%s6981_s26 + $0x35e8] sm:$0xff]  ;;  %4278 = vmatpush.msra.mxu0 %v1934_v33 }
 0x437   : > { %v1682_v35 = vld [vmem:[%s6981_s26 + $0x2a08] sm:$0xff]  ;;  %4318 = vmatpush.msra.mxu2 %v2062_v34  ;;  %v8205_v34 = vpop.f32.mrf.mxu0 }
 0x438   : > { %v1810_v36 = vld [vmem:[%s6981_s26 + $0x2e08] sm:$0xff]  ;;  %4233 = vmatpush.msrb.mxu1 %v1682_v35 }
 0x439   : > { %v1930_v40 = vld [vmem:[%s6981_s26 + $0x31c8] sm:$0xff]  ;;  %4273 = vmatpush.msrb.mxu3 %v1810_v36  ;;  %4234 = vmatmul.f32.vlgmr.msrb.gmra.mxu1 %v7474_v52 }
 0x43a   : > { %v1998_v44 = vld [vmem:[%s6981_s26 + $0x33e8] sm:$0xff]  ;;  %4274 = vmatmul.f32.vlgmr.msrb.gmra.mxu3 %v7476_v53  ;;  %4279 = vmatpush.msra.mxu0 %v1930_v40 }
 0x43b   : > { %v2058_v49 = vld [vmem:[%s6981_s26 + $0x35c8] sm:$0xff]  ;;  %4298 = vmatpush.msra.mxu1 %v1998_v44 }
 0x43c   : > { %v2126_v51 = vld [vmem:[%s6981_s26 + $0x37e8] sm:$0xff]  ;;  %4319 = vmatpush.msra.mxu2 %v2058_v49  ;;  %v8211_v49 = vpop.f32.mrf.mxu2 }
 0x43d   : > { %v1926_v55 = vld [vmem:[%s6981_s26 + $0x31a8] sm:$0xff]  ;;  %4338 = vmatpush.msra.mxu3 %v2126_v51 }
 0x43e   : > { %v1994_v56 = vld [vmem:[%s6981_s26 + $0x33c8] sm:$0xff]  ;;  %4280 = vmatpush.msra.mxu0 %v1926_v55 }
 0x43f   : > { %v2054_v57 = vld [vmem:[%s6981_s26 + $0x35a8] sm:$0xff]  ;;  %4299 = vmatpush.msra.mxu1 %v1994_v56 }
 0x440   : > { %v2122_v58 = vld [vmem:[%s6981_s26 + $0x37c8] sm:$0xff]  ;;  %4320 = vmatpush.msra.mxu2 %v2054_v57 }
 0x441   : > { %v1922_v60 = vld [vmem:[%s6981_s26 + $0x3188] sm:$0xff]  ;;  %4339 = vmatpush.msra.mxu3 %v2122_v58 }
 0x442   : > { %v1990_v1 = vld [vmem:[%s6981_s26 + $0x33a8] sm:$0xff]  ;;  %4281 = vmatpush.msra.mxu0 %v1922_v60 }
 0x443   : > { %v2050_v2 = vld [vmem:[%s6981_s26 + $0x3588] sm:$0xff]  ;;  %4300 = vmatpush.msra.mxu1 %v1990_v1 }
 0x444   : > { %v2118_v3 = vld [vmem:[%s6981_s26 + $0x37a8] sm:$0xff]  ;;  %4321 = vmatpush.msra.mxu2 %v2050_v2 }
 0x445   : > { %v1918_v4 = vld [vmem:[%s6981_s26 + $0x3168] sm:$0xff]  ;;  %4340 = vmatpush.msra.mxu3 %v2118_v3  ;;  %v8221_v3 = vpop.f32.mrf.mxu3 }
 0x446   : > { %v1986_v5 = vld [vmem:[%s6981_s26 + $0x3388] sm:$0xff]  ;;  %4282 = vmatpush.msra.mxu0 %v1918_v4  ;;  %v8223_v4 = vpop.f32.mrf.mxu1 }
 0x447   : > { %v2046_v6 = vld [vmem:[%s6981_s26 + $0x3568] sm:$0xff]  ;;  %4301 = vmatpush.msra.mxu1 %v1986_v5 }
 0x448   : > { %v2114_v7 = vld [vmem:[%s6981_s26 + $0x3788] sm:$0xff]  ;;  %4322 = vmatpush.msra.mxu2 %v2046_v6 }
 0x449   : > { %v1914_v13 = vld [vmem:[%s6981_s26 + $0x3148] sm:$0xff]  ;;  %4341 = vmatpush.msra.mxu3 %v2114_v7 }
 0x44a   : > { %v1982_v14 = vld [vmem:[%s6981_s26 + $0x3368] sm:$0xff]  ;;  %4283 = vmatpush.msra.mxu0 %v1914_v13 }
 0x44b   : > { %v2042_v17 = vld [vmem:[%s6981_s26 + $0x3548] sm:$0xff]  ;;  %4302 = vmatpush.msra.mxu1 %v1982_v14  ;;  %v8229_v14 = vpop.f32.mrf.mxu0 }
 0x44c   : > { %v2110_v22 = vld [vmem:[%s6981_s26 + $0x3768] sm:$0xff]  ;;  %4323 = vmatpush.msra.mxu2 %v2042_v17 }
 0x44d   : > { %v1910_v24 = vld [vmem:[%s6981_s26 + $0x3128] sm:$0xff]  ;;  %4342 = vmatpush.msra.mxu3 %v2110_v22 }
 0x44e   : > { %v1978_v30 = vld [vmem:[%s6981_s26 + $0x3348] sm:$0xff]  ;;  %4284 = vmatpush.msra.mxu0 %v1910_v24 }
 0x44f   : > { %v2038_v32 = vld [vmem:[%s6981_s26 + $0x3528] sm:$0xff]  ;;  %4303 = vmatpush.msra.mxu1 %v1978_v30 }
 0x450   : > { %v2106_v33 = vld [vmem:[%s6981_s26 + $0x3748] sm:$0xff]  ;;  %4324 = vmatpush.msra.mxu2 %v2038_v32  ;;  %v8235_v32 = vpop.f32.mrf.mxu2 }
 0x451   : > { %v1906_v35 = vld [vmem:[%s6981_s26 + $0x3108] sm:$0xff]  ;;  %4343 = vmatpush.msra.mxu3 %v2106_v33 }
 0x452   : > { %v1974_v36 = vld [vmem:[%s6981_s26 + $0x3328] sm:$0xff]  ;;  %4285 = vmatpush.msra.mxu0 %v1906_v35 }
 0x453   : > { %v2034_v40 = vld [vmem:[%s6981_s26 + $0x3508] sm:$0xff]  ;;  %4304 = vmatpush.msra.mxu1 %v1974_v36 }
 0x454   : > { %v2102_v44 = vld [vmem:[%s6981_s26 + $0x3728] sm:$0xff]  ;;  %4325 = vmatpush.msra.mxu2 %v2034_v40 }
 0x455   : > { %v1902_v51 = vld [vmem:[%s6981_s26 + $0x30e8] sm:$0xff]  ;;  %4344 = vmatpush.msra.mxu3 %v2102_v44 }
 0x456   : > { %v1970_v55 = vld [vmem:[%s6981_s26 + $0x3308] sm:$0xff]  ;;  %4286 = vmatpush.msra.mxu0 %v1902_v51 }
 0x457   : > { %v2030_v56 = vld [vmem:[%s6981_s26 + $0x34e8] sm:$0xff]  ;;  %4305 = vmatpush.msra.mxu1 %v1970_v55 }
 0x458   : > { %v2098_v57 = vld [vmem:[%s6981_s26 + $0x3708] sm:$0xff]  ;;  %4326 = vmatpush.msra.mxu2 %v2030_v56 }
 0x459   : > { %v1898_v58 = vld [vmem:[%s6981_s26 + $0x30c8] sm:$0xff]  ;;  %4345 = vmatpush.msra.mxu3 %v2098_v57  ;;  %v8245_v57 = vpop.f32.mrf.mxu3 }
 0x45a   : > { %v1966_v60 = vld [vmem:[%s6981_s26 + $0x32e8] sm:$0xff]  ;;  %4287 = vmatpush.msra.mxu0 %v1898_v58  ;;  %v8247_v58 = vpop.f32.mrf.mxu1 }
 0x45b   : > { %v2026_v1 = vld [vmem:[%s6981_s26 + $0x34c8] sm:$0xff]  ;;  %4306 = vmatpush.msra.mxu1 %v1966_v60 }
 0x45c   : > { %v2094_v2 = vld [vmem:[%s6981_s26 + $0x36e8] sm:$0xff]  ;;  %4327 = vmatpush.msra.mxu2 %v2026_v1 }
 0x45d   : > { %v1894_v5 = vld [vmem:[%s6981_s26 + $0x30a8] sm:$0xff]  ;;  %4346 = vmatpush.msra.mxu3 %v2094_v2 }
 0x45e   : > { %v1962_v6 = vld [vmem:[%s6981_s26 + $0x32c8] sm:$0xff]  ;;  %4288 = vmatpush.msra.mxu0 %v1894_v5 }
 0x45f   : > { %v2022_v7 = vld [vmem:[%s6981_s26 + $0x34a8] sm:$0xff]  ;;  %4307 = vmatpush.msra.mxu1 %v1962_v6  ;;  %v8253_v6 = vpop.f32.mrf.mxu0 }
 0x460   : > { %v2090_v13 = vld [vmem:[%s6981_s26 + $0x36c8] sm:$0xff]  ;;  %4328 = vmatpush.msra.mxu2 %v2022_v7 }
 0x461   : > { %v1890_v17 = vld [vmem:[%s6981_s26 + $0x3088] sm:$0xff]  ;;  %4347 = vmatpush.msra.mxu3 %v2090_v13 }
 0x462   : > { %v1958_v22 = vld [vmem:[%s6981_s26 + $0x32a8] sm:$0xff]  ;;  %4289 = vmatpush.msra.mxu0 %v1890_v17 }
 0x463   : > { %v2018_v24 = vld [vmem:[%s6981_s26 + $0x3488] sm:$0xff]  ;;  %4308 = vmatpush.msra.mxu1 %v1958_v22 }
 0x464   : > { %v2086_v30 = vld [vmem:[%s6981_s26 + $0x36a8] sm:$0xff]  ;;  %4329 = vmatpush.msra.mxu2 %v2018_v24  ;;  %v8259_v24 = vpop.f32.mrf.mxu2 }
 0x465   : > { %v1886_v33 = vld [vmem:[%s6981_s26 + $0x3068] sm:$0xff]  ;;  %4348 = vmatpush.msra.mxu3 %v2086_v30  ;;  %10060 = vst [vmem:[#allocation11_spill] sm:$0xff] %v8259_v24 }
 0x466   : > { %v1954_v35 = vld [vmem:[%s6981_s26 + $0x3288] sm:$0xff]  ;;  %4290 = vmatpush.msra.mxu0 %v1886_v33 }
 0x467   : > { %v2014_v36 = vld [vmem:[%s6981_s26 + $0x3468] sm:$0xff]  ;;  %4309 = vmatpush.msra.mxu1 %v1954_v35 }
 0x468   : > { %v2082_v40 = vld [vmem:[%s6981_s26 + $0x3688] sm:$0xff]  ;;  %4330 = vmatpush.msra.mxu2 %v2014_v36 }
 0x469   : > { %v1882_v44 = vld [vmem:[%s6981_s26 + $0x3048] sm:$0xff]  ;;  %4349 = vmatpush.msra.mxu3 %v2082_v40  ;;  %v8267_v40 = vpop.f32.mrf.mxu3 }
 0x46a   : > { %v1950_v51 = vld [vmem:[%s6981_s26 + $0x3268] sm:$0xff]  ;;  %4291 = vmatpush.msra.mxu0 %v1882_v44  ;;  %10061 = vst [vmem:[#allocation12_spill] sm:$0xff] %v8267_v40  ;;  %v8269_v44 = vpop.f32.mrf.mxu1 }
 0x46b   : > { %v2010_v55 = vld [vmem:[%s6981_s26 + $0x3448] sm:$0xff]  ;;  %4310 = vmatpush.msra.mxu1 %v1950_v51  ;;  %10062 = vst [vmem:[#allocation13_spill] sm:$0xff] %v8269_v44 }
 0x46c   : > { %v2078_v56 = vld [vmem:[%s6981_s26 + $0x3668] sm:$0xff]  ;;  %4331 = vmatpush.msra.mxu2 %v2010_v55 }
 0x46d   : > { %v1878_v60 = vld [vmem:[%s6981_s26 + $0x3028] sm:$0xff]  ;;  %4350 = vmatpush.msra.mxu3 %v2078_v56 }
 0x46e   : > { %v1946_v1 = vld [vmem:[%s6981_s26 + $0x3248] sm:$0xff]  ;;  %4292 = vmatpush.msra.mxu0 %v1878_v60 }
 0x46f   : > { %v2006_v2 = vld [vmem:[%s6981_s26 + $0x3428] sm:$0xff]  ;;  %4311 = vmatpush.msra.mxu1 %v1946_v1  ;;  %v8275_v1 = vpop.f32.mrf.mxu0 }
 0x470   : > { %v2074_v5 = vld [vmem:[%s6981_s26 + $0x3648] sm:$0xff]  ;;  %4332 = vmatpush.msra.mxu2 %v2006_v2  ;;  %10063 = vst [vmem:[#allocation14_spill] sm:$0xff] %v8275_v1 }
 0x471   : > { %v1874_v7 = vld [vmem:[%s6981_s26 + $0x3008] sm:$0xff]  ;;  %4351 = vmatpush.msra.mxu3 %v2074_v5 }
 0x472   : > { %v1942_v13 = vld [vmem:[%s6981_s26 + $0x3228] sm:$0xff]  ;;  %4293 = vmatpush.msra.mxu0 %v1874_v7 }
 0x473   : > { %v2002_v17 = vld [vmem:[%s6981_s26 + $0x3408] sm:$0xff]  ;;  %4312 = vmatpush.msra.mxu1 %v1942_v13  ;;  %4294 = vmatmul.f32.vlgmr.msra.gmra.mxu0 %v7541_v19 }
 0x474   : > { %v2070_v22 = vld [vmem:[%s6981_s26 + $0x3628] sm:$0xff]  ;;  %4333 = vmatpush.msra.mxu2 %v2002_v17  ;;  %v8283_v17 = vpop.f32.mrf.mxu2 }
 0x475   : > { %v2190_v30 = vld [vmem:[%s6981_s26 + $0x39e8] sm:$0xff]  ;;  %4352 = vmatpush.msra.mxu3 %v2070_v22  ;;  %4334 = vmatmul.f32.vlgmr.msra.gmra.mxu2 %v7543_v20  ;;  %10064 = vst [vmem:[#allocation15_spill] sm:$0xff] %v8283_v17 }
 0x476   : > { %v2318_v33 = vld [vmem:[%s6981_s26 + $0x3de8] sm:$0xff]  ;;  %4358 = vmatpush.msrb.mxu0 %v2190_v30 }
 0x477   : > { %v1938_v35 = vld [vmem:[%s6981_s26 + $0x3208] sm:$0xff]  ;;  %4398 = vmatpush.msrb.mxu2 %v2318_v33 }
 0x478   : > { %v2066_v36 = vld [vmem:[%s6981_s26 + $0x3608] sm:$0xff]  ;;  %4313 = vmatpush.msra.mxu1 %v1938_v35 }
 0x479   : > { %v2186_v51 = vld [vmem:[%s6981_s26 + $0x39c8] sm:$0xff]  ;;  %4353 = vmatpush.msra.mxu3 %v2066_v36  ;;  %4314 = vmatmul.f32.vlgmr.msra.gmra.mxu1 %v7551_v25 }
 0x47a   : > { %v2254_v55 = vld [vmem:[%s6981_s26 + $0x3be8] sm:$0xff]  ;;  %4354 = vmatmul.f32.vlgmr.msra.gmra.mxu3 %v7553_v29  ;;  %4359 = vmatpush.msrb.mxu0 %v2186_v51 }
 0x47b   : > { %v2314_v56 = vld [vmem:[%s6981_s26 + $0x3dc8] sm:$0xff]  ;;  %4378 = vmatpush.msrb.mxu1 %v2254_v55 }
 0x47c   : > { %v2382_v60 = vld [vmem:[%s6981_s26 + $0x3fe8] sm:$0xff]  ;;  %4399 = vmatpush.msrb.mxu2 %v2314_v56 }
 0x47d   : > { %v2182_v2 = vld [vmem:[%s6981_s26 + $0x39a8] sm:$0xff]  ;;  %4418 = vmatpush.msrb.mxu3 %v2382_v60  ;;  %v8293_v60 = vpop.f32.mrf.mxu3 }
 0x47e   : > { %v2250_v5 = vld [vmem:[%s6981_s26 + $0x3bc8] sm:$0xff]  ;;  %4360 = vmatpush.msrb.mxu0 %v2182_v2  ;;  %10065 = vst [vmem:[#allocation16_spill] sm:$0xff] %v8293_v60  ;;  %v8295_v2 = vpop.f32.mrf.mxu1 }
 0x47f   : > { %v2310_v7 = vld [vmem:[%s6981_s26 + $0x3da8] sm:$0xff]  ;;  %4379 = vmatpush.msrb.mxu1 %v2250_v5  ;;  %10066 = vst [vmem:[#allocation17_spill] sm:$0xff] %v8295_v2 }
 0x480   : > { %v2378_v13 = vld [vmem:[%s6981_s26 + $0x3fc8] sm:$0xff]  ;;  %4400 = vmatpush.msrb.mxu2 %v2310_v7 }
 0x481   : > { %v2178_v22 = vld [vmem:[%s6981_s26 + $0x3988] sm:$0xff]  ;;  %4419 = vmatpush.msrb.mxu3 %v2378_v13 }
 0x482   : > { %v2246_v30 = vld [vmem:[%s6981_s26 + $0x3ba8] sm:$0xff]  ;;  %4361 = vmatpush.msrb.mxu0 %v2178_v22 }
 0x483   : > { %v2306_v33 = vld [vmem:[%s6981_s26 + $0x3d88] sm:$0xff]  ;;  %4380 = vmatpush.msrb.mxu1 %v2246_v30  ;;  %v8301_v30 = vpop.f32.mrf.mxu0 }
 0x484   : > { %v2374_v35 = vld [vmem:[%s6981_s26 + $0x3fa8] sm:$0xff]  ;;  %4401 = vmatpush.msrb.mxu2 %v2306_v33  ;;  %10067 = vst [vmem:[#allocation18_spill] sm:$0xff] %v8301_v30 }
 0x485   : > { %v2174_v36 = vld [vmem:[%s6981_s26 + $0x3968] sm:$0xff]  ;;  %4420 = vmatpush.msrb.mxu3 %v2374_v35 }
 0x486   : > { %v2242_v51 = vld [vmem:[%s6981_s26 + $0x3b88] sm:$0xff]  ;;  %4362 = vmatpush.msrb.mxu0 %v2174_v36  ;;  %v8307_v36 = vpop.f32.mrf.mxu2 }
 0x487   : > { %v2302_v55 = vld [vmem:[%s6981_s26 + $0x3d68] sm:$0xff]  ;;  %4381 = vmatpush.msrb.mxu1 %v2242_v51  ;;  %10068 = vst [vmem:[#allocation19_spill] sm:$0xff] %v8307_v36 }
 0x488   : > { %v2370_v56 = vld [vmem:[%s6981_s26 + $0x3f88] sm:$0xff]  ;;  %4402 = vmatpush.msrb.mxu2 %v2302_v55 }
 0x489   : > { %v2170_v5 = vld [vmem:[%s6981_s26 + $0x3948] sm:$0xff]  ;;  %4421 = vmatpush.msrb.mxu3 %v2370_v56 }
 0x48a   : > { %v2238_v7 = vld [vmem:[%s6981_s26 + $0x3b68] sm:$0xff]  ;;  %4363 = vmatpush.msrb.mxu0 %v2170_v5 }
 0x48b   : > { %v2298_v13 = vld [vmem:[%s6981_s26 + $0x3d48] sm:$0xff]  ;;  %4382 = vmatpush.msrb.mxu1 %v2238_v7 }
 0x48c   : > { %v2366_v22 = vld [vmem:[%s6981_s26 + $0x3f68] sm:$0xff]  ;;  %4403 = vmatpush.msrb.mxu2 %v2298_v13 }
 0x48d   : > { %v2166_v60 = vld [vmem:[%s6981_s26 + $0x3928] sm:$0xff]  ;;  %4422 = vmatpush.msrb.mxu3 %v2366_v22  ;;  %v8317_v22 = vpop.f32.mrf.mxu3 }
 0x48e   : > { %v2234_v2 = vld [vmem:[%s6981_s26 + $0x3b48] sm:$0xff]  ;;  %4364 = vmatpush.msrb.mxu0 %v2166_v60  ;;  %10069 = vst [vmem:[#allocation20_spill] sm:$0xff] %v8317_v22  ;;  %v8319_v60 = vpop.f32.mrf.mxu1 }
 0x48f   : > { %v2294_v33 = vld [vmem:[%s6981_s26 + $0x3d28] sm:$0xff]  ;;  %4383 = vmatpush.msrb.mxu1 %v2234_v2  ;;  %10070 = vst [vmem:[#allocation21_spill] sm:$0xff] %v8319_v60 }
 0x490   : > { %v2362_v35 = vld [vmem:[%s6981_s26 + $0x3f48] sm:$0xff]  ;;  %4404 = vmatpush.msrb.mxu2 %v2294_v33 }
 0x491   : > { %v2162_v51 = vld [vmem:[%s6981_s26 + $0x3908] sm:$0xff]  ;;  %4423 = vmatpush.msrb.mxu3 %v2362_v35 }
 0x492   : > { %v2230_v30 = vld [vmem:[%s6981_s26 + $0x3b28] sm:$0xff]  ;;  %4365 = vmatpush.msrb.mxu0 %v2162_v51  ;;  %v8325_v51 = vpop.f32.mrf.mxu0 }
 0x493   : > { %v2290_v55 = vld [vmem:[%s6981_s26 + $0x3d08] sm:$0xff]  ;;  %4384 = vmatpush.msrb.mxu1 %v2230_v30  ;;  %10071 = vst [vmem:[#allocation22_spill] sm:$0xff] %v8325_v51 }
 0x494   : > { %v2358_v56 = vld [vmem:[%s6981_s26 + $0x3f28] sm:$0xff]  ;;  %4405 = vmatpush.msrb.mxu2 %v2290_v55 }
 0x495   : > { %v2158_v5 = vld [vmem:[%s6981_s26 + $0x38e8] sm:$0xff]  ;;  %4424 = vmatpush.msrb.mxu3 %v2358_v56 }
 0x496   : > { %v2226_v7 = vld [vmem:[%s6981_s26 + $0x3b08] sm:$0xff]  ;;  %4366 = vmatpush.msrb.mxu0 %v2158_v5  ;;  %v8331_v5 = vpop.f32.mrf.mxu2 }
 0x497   : > { %v2286_v36 = vld [vmem:[%s6981_s26 + $0x3ce8] sm:$0xff]  ;;  %4385 = vmatpush.msrb.mxu1 %v2226_v7  ;;  %10072 = vst [vmem:[#allocation23_spill] sm:$0xff] %v8331_v5 }
 0x498   : > { %v2354_v13 = vld [vmem:[%s6981_s26 + $0x3f08] sm:$0xff]  ;;  %4406 = vmatpush.msrb.mxu2 %v2286_v36 }
 0x499   : > { %v2154_v2 = vld [vmem:[%s6981_s26 + $0x38c8] sm:$0xff]  ;;  %4425 = vmatpush.msrb.mxu3 %v2354_v13 }
 0x49a   : > { %v2222_v33 = vld [vmem:[%s6981_s26 + $0x3ae8] sm:$0xff]  ;;  %4367 = vmatpush.msrb.mxu0 %v2154_v2 }
 0x49b   : > { %v2282_v35 = vld [vmem:[%s6981_s26 + $0x3cc8] sm:$0xff]  ;;  %4386 = vmatpush.msrb.mxu1 %v2222_v33 }
 0x49c   : > { %v2350_v30 = vld [vmem:[%s6981_s26 + $0x3ee8] sm:$0xff]  ;;  %4407 = vmatpush.msrb.mxu2 %v2282_v35 }
 0x49d   : > { %v2150_v22 = vld [vmem:[%s6981_s26 + $0x38a8] sm:$0xff]  ;;  %4426 = vmatpush.msrb.mxu3 %v2350_v30  ;;  %v8341_v30 = vpop.f32.mrf.mxu3 }
 0x49e   : > { %v2218_v60 = vld [vmem:[%s6981_s26 + $0x3ac8] sm:$0xff]  ;;  %4368 = vmatpush.msrb.mxu0 %v2150_v22  ;;  %10073 = vst [vmem:[#allocation24_spill] sm:$0xff] %v8341_v30  ;;  %v8343_v22 = vpop.f32.mrf.mxu1 }
 0x49f   : > { %v2278_v55 = vld [vmem:[%s6981_s26 + $0x3ca8] sm:$0xff]  ;;  %4387 = vmatpush.msrb.mxu1 %v2218_v60  ;;  %10074 = vst [vmem:[#allocation25_spill] sm:$0xff] %v8343_v22 }
 0x4a0   : > { %v2346_v56 = vld [vmem:[%s6981_s26 + $0x3ec8] sm:$0xff]  ;;  %4408 = vmatpush.msrb.mxu2 %v2278_v55 }
 0x4a1   : > { %v2146_v7 = vld [vmem:[%s6981_s26 + $0x3888] sm:$0xff]  ;;  %4427 = vmatpush.msrb.mxu3 %v2346_v56 }
 0x4a2   : > { %v2214_v51 = vld [vmem:[%s6981_s26 + $0x3aa8] sm:$0xff]  ;;  %4369 = vmatpush.msrb.mxu0 %v2146_v7  ;;  %v8349_v7 = vpop.f32.mrf.mxu0 }
 0x4a3   : > { %v2274_v36 = vld [vmem:[%s6981_s26 + $0x3c88] sm:$0xff]  ;;  %4388 = vmatpush.msrb.mxu1 %v2214_v51  ;;  %10075 = vst [vmem:[#allocation26_spill] sm:$0xff] %v8349_v7 }
 0x4a4   : > { %v2342_v13 = vld [vmem:[%s6981_s26 + $0x3ea8] sm:$0xff]  ;;  %4409 = vmatpush.msrb.mxu2 %v2274_v36 }
 0x4a5   : > { %v2142_v2 = vld [vmem:[%s6981_s26 + $0x3868] sm:$0xff]  ;;  %4428 = vmatpush.msrb.mxu3 %v2342_v13 }
 0x4a6   : > { %v2210_v33 = vld [vmem:[%s6981_s26 + $0x3a88] sm:$0xff]  ;;  %4370 = vmatpush.msrb.mxu0 %v2142_v2  ;;  %v8355_v2 = vpop.f32.mrf.mxu2 }
 0x4a7   : > { %v2270_v5 = vld [vmem:[%s6981_s26 + $0x3c68] sm:$0xff]  ;;  %4389 = vmatpush.msrb.mxu1 %v2210_v33  ;;  %10076 = vst [vmem:[#allocation27_spill] sm:$0xff] %v8355_v2  ;;  %v8363_v2 = vpop.f32.mrf.mxu3 }
 0x4a8   : > { %v2338_v35 = vld [vmem:[%s6981_s26 + $0x3e88] sm:$0xff]  ;;  %4410 = vmatpush.msrb.mxu2 %v2270_v5  ;;  %10077 = vst [vmem:[#allocation28_spill] sm:$0xff] %v8363_v2 }
 0x4a9   : > { %v2138_v60 = vld [vmem:[%s6981_s26 + $0x3848] sm:$0xff]  ;;  %4429 = vmatpush.msrb.mxu3 %v2338_v35 }
 0x4aa   : > { %v2206_v55 = vld [vmem:[%s6981_s26 + $0x3a68] sm:$0xff]  ;;  %4371 = vmatpush.msrb.mxu0 %v2138_v60 }
 0x4ab   : > { %v2266_v56 = vld [vmem:[%s6981_s26 + $0x3c48] sm:$0xff]  ;;  %4390 = vmatpush.msrb.mxu1 %v2206_v55 }
 0x4ac   : > { %v2334_v51 = vld [vmem:[%s6981_s26 + $0x3e68] sm:$0xff]  ;;  %4411 = vmatpush.msrb.mxu2 %v2266_v56  ;;  %v8365_v56 = vpop.f32.mrf.mxu1 }
 0x4ad   : > { %v2134_v30 = vld [vmem:[%s6981_s26 + $0x3828] sm:$0xff]  ;;  %4430 = vmatpush.msrb.mxu3 %v2334_v51  ;;  %10078 = vst [vmem:[#allocation29_spill] sm:$0xff] %v8365_v56  ;;  %v8371_v51 = vpop.f32.mrf.mxu0 }
 0x4ae   : > { %v2202_v22 = vld [vmem:[%s6981_s26 + $0x3a48] sm:$0xff]  ;;  %4372 = vmatpush.msrb.mxu0 %v2134_v30  ;;  %10079 = vst [vmem:[#allocation30_spill] sm:$0xff] %v8371_v51 }
 0x4af   : > { %v2262_v36 = vld [vmem:[%s6981_s26 + $0x3c28] sm:$0xff]  ;;  %4391 = vmatpush.msrb.mxu1 %v2202_v22  ;;  %v8389_v2 = vpop.f32.mrf.mxu3 }
 0x4b0   : > { %v2330_v13 = vld [vmem:[%s6981_s26 + $0x3e48] sm:$0xff]  ;;  %4412 = vmatpush.msrb.mxu2 %v2262_v36  ;;  %10081 = vst [vmem:[#allocation32_spill] sm:$0xff] %v8389_v2 }
 0x4b1   : > { %v2130_v33 = vld [vmem:[%s6981_s26 + $0x3808] sm:$0xff]  ;;  %4431 = vmatpush.msrb.mxu3 %v2330_v13 }
 0x4b2   : > { %v2198_v17 = vld [vmem:[%s6981_s26 + $0x3a28] sm:$0xff]  ;;  %4373 = vmatpush.msrb.mxu0 %v2130_v33 }
 0x4b3   : > { %v2258_v5 = vld [vmem:[%s6981_s26 + $0x3c08] sm:$0xff]  ;;  %4392 = vmatpush.msrb.mxu1 %v2198_v17  ;;  %4374 = vmatmul.f32.vlgmr.msrb.gmra.mxu0 %v7618_v8 }
 0x4b4   : > { %v2326_v35 = vld [vmem:[%s6981_s26 + $0x3e28] sm:$0xff]  ;;  %4413 = vmatpush.msrb.mxu2 %v2258_v5  ;;  %v8377_v5 = vpop.f32.mrf.mxu2 }
 0x4b5   : > { %v2446_v60 = vld [vmem:[%s6981_s26 + $0x41e8] sm:$0xff]  ;;  %4432 = vmatpush.msrb.mxu3 %v2326_v35  ;;  %4414 = vmatmul.f32.vlgmr.msrb.gmra.mxu2 %v7620_v11  ;;  %10080 = vst [vmem:[#allocation31_spill] sm:$0xff] %v8377_v5 }
 0x4b6   : > { %v2574_v55 = vld [vmem:[%s6981_s26 + $0x45e8] sm:$0xff]  ;;  %4438 = vmatpush.msra.mxu0 %v2446_v60 }
 0x4b7   : > { %v2194_v30 = vld [vmem:[%s6981_s26 + $0x3a08] sm:$0xff]  ;;  %4478 = vmatpush.msra.mxu2 %v2574_v55 }
 0x4b8   : > { %v2322_v22 = vld [vmem:[%s6981_s26 + $0x3e08] sm:$0xff]  ;;  %4393 = vmatpush.msrb.mxu1 %v2194_v30 }
 0x4b9   : > { %v2442_v17 = vld [vmem:[%s6981_s26 + $0x41c8] sm:$0xff]  ;;  %4433 = vmatpush.msrb.mxu3 %v2322_v22  ;;  %4394 = vmatmul.f32.vlgmr.msrb.gmra.mxu1 %v7628_v18 }
 0x4ba   : > { %v2510_v36 = vld [vmem:[%s6981_s26 + $0x43e8] sm:$0xff]  ;;  %4434 = vmatmul.f32.vlgmr.msrb.gmra.mxu3 %v7630_v21  ;;  %4439 = vmatpush.msra.mxu0 %v2442_v17  ;;  %v8391_v17 = vpop.f32.mrf.mxu1 }
 0x4bb   : > { %v2570_v13 = vld [vmem:[%s6981_s26 + $0x45c8] sm:$0xff]  ;;  %4458 = vmatpush.msra.mxu1 %v2510_v36  ;;  %10082 = vst [vmem:[#allocation33_spill] sm:$0xff] %v8391_v17 }
 0x4bc   : > { %v2638_v33 = vld [vmem:[%s6981_s26 + $0x47e8] sm:$0xff]  ;;  %4479 = vmatpush.msra.mxu2 %v2570_v13 }
 0x4bd   : > { %v2438_v35 = vld [vmem:[%s6981_s26 + $0x41a8] sm:$0xff]  ;;  %4498 = vmatpush.msra.mxu3 %v2638_v33 }
 0x4be   : > { %v2506_v60 = vld [vmem:[%s6981_s26 + $0x43c8] sm:$0xff]  ;;  %4440 = vmatpush.msra.mxu0 %v2438_v35 }
 0x4bf   : > { %v2566_v55 = vld [vmem:[%s6981_s26 + $0x45a8] sm:$0xff]  ;;  %4459 = vmatpush.msra.mxu1 %v2506_v60  ;;  %v8397_v60 = vpop.f32.mrf.mxu0 }
 0x4c0   : > { %v2634_v30 = vld [vmem:[%s6981_s26 + $0x47c8] sm:$0xff]  ;;  %4480 = vmatpush.msra.mxu2 %v2566_v55  ;;  %10083 = vst [vmem:[#allocation34_spill] sm:$0xff] %v8397_v60 }
 0x4c1   : > { %v2434_v22 = vld [vmem:[%s6981_s26 + $0x4188] sm:$0xff]  ;;  %4499 = vmatpush.msra.mxu3 %v2634_v30 }
 0x4c2   : > { %v2502_v56 = vld [vmem:[%s6981_s26 + $0x43a8] sm:$0xff]  ;;  %4441 = vmatpush.msra.mxu0 %v2434_v22  ;;  %v8403_v22 = vpop.f32.mrf.mxu2 }
 0x4c3   : > { %v2562_v5 = vld [vmem:[%s6981_s26 + $0x4588] sm:$0xff]  ;;  %4460 = vmatpush.msra.mxu1 %v2502_v56  ;;  %10084 = vst [vmem:[#allocation35_spill] sm:$0xff] %v8403_v22 }
 0x4c4   : > { %v2630_v51 = vld [vmem:[%s6981_s26 + $0x47a8] sm:$0xff]  ;;  %4481 = vmatpush.msra.mxu2 %v2562_v5 }
 0x4c5   : > { %v2430_v36 = vld [vmem:[%s6981_s26 + $0x4168] sm:$0xff]  ;;  %4500 = vmatpush.msra.mxu3 %v2630_v51 }
 0x4c6   : > { %v2498_v13 = vld [vmem:[%s6981_s26 + $0x4388] sm:$0xff]  ;;  %4442 = vmatpush.msra.mxu0 %v2430_v36 }
 0x4c7   : > { %v2558_v33 = vld [vmem:[%s6981_s26 + $0x4568] sm:$0xff]  ;;  %4461 = vmatpush.msra.mxu1 %v2498_v13 }
 0x4c8   : > { %v2626_v35 = vld [vmem:[%s6981_s26 + $0x4788] sm:$0xff]  ;;  %4482 = vmatpush.msra.mxu2 %v2558_v33 }
 0x4c9   : > { %v2426_v2 = vld [vmem:[%s6981_s26 + $0x4148] sm:$0xff]  ;;  %4501 = vmatpush.msra.mxu3 %v2626_v35  ;;  %v8413_v35 = vpop.f32.mrf.mxu3 }
 0x4ca   : > { %v2494_v17 = vld [vmem:[%s6981_s26 + $0x4368] sm:$0xff]  ;;  %4443 = vmatpush.msra.mxu0 %v2426_v2  ;;  %10085 = vst [vmem:[#allocation36_spill] sm:$0xff] %v8413_v35  ;;  %v3835_v2 = vpop.f32.mrf.mxu1 }
 0x4cb   : > { %v2554_v55 = vld [vmem:[%s6981_s26 + $0x4548] sm:$0xff]  ;;  %4462 = vmatpush.msra.mxu1 %v2494_v17 }
 0x4cc   : > { %v2622_v30 = vld [vmem:[%s6981_s26 + $0x4768] sm:$0xff]  ;;  %4483 = vmatpush.msra.mxu2 %v2554_v55 }
 0x4cd   : > { %v2422_v56 = vld [vmem:[%s6981_s26 + $0x4128] sm:$0xff]  ;;  %4502 = vmatpush.msra.mxu3 %v2622_v30 }
 0x4ce   : > { %v2490_v60 = vld [vmem:[%s6981_s26 + $0x4348] sm:$0xff]  ;;  %4444 = vmatpush.msra.mxu0 %v2422_v56 }
 0x4cf   : > { %v2550_v51 = vld [vmem:[%s6981_s26 + $0x4528] sm:$0xff]  ;;  %4463 = vmatpush.msra.mxu1 %v2490_v60  ;;  %v3815_v60 = vpop.f32.mrf.mxu0 }
 0x4d0   : > { %v2618_v5 = vld [vmem:[%s6981_s26 + $0x4748] sm:$0xff]  ;;  %4484 = vmatpush.msra.mxu2 %v2550_v51  ;;  %v3836_v44 = vadd.f32 %v3835_v2, %v3815_v60 }
 0x4d1   : > { %v2418_v36 = vld [vmem:[%s6981_s26 + $0x4108] sm:$0xff]  ;;  %4503 = vmatpush.msra.mxu3 %v2618_v5  ;;  %v3875_v60 = vpop.f32.mrf.mxu3 }
 0x4d2   : > { %v2486_v13 = vld [vmem:[%s6981_s26 + $0x4328] sm:$0xff]  ;;  %4445 = vmatpush.msra.mxu0 %v2418_v36  ;;  %v3855_v36 = vpop.f32.mrf.mxu2 }
 0x4d3   : > { %v2546_v22 = vld [vmem:[%s6981_s26 + $0x4508] sm:$0xff]  ;;  %4464 = vmatpush.msra.mxu1 %v2486_v13 }
 0x4d4   : > { %v2614_v33 = vld [vmem:[%s6981_s26 + $0x4728] sm:$0xff]  ;;  %4485 = vmatpush.msra.mxu2 %v2546_v22 }
 0x4d5   : > { %v2414_v17 = vld [vmem:[%s6981_s26 + $0x40e8] sm:$0xff]  ;;  %4504 = vmatpush.msra.mxu3 %v2614_v33 }
 0x4d6   : > { %v2482_v55 = vld [vmem:[%s6981_s26 + $0x4308] sm:$0xff]  ;;  %4446 = vmatpush.msra.mxu0 %v2414_v17 }
 0x4d7   : > { %v2542_v30 = vld [vmem:[%s6981_s26 + $0x44e8] sm:$0xff]  ;;  %4465 = vmatpush.msra.mxu1 %v2482_v55  ;;  %v3856_v55 = vadd.f32 %v3855_v36, %v3836_v44 }
 0x4d8   : > { %v2610_v56 = vld [vmem:[%s6981_s26 + $0x4708] sm:$0xff]  ;;  %4486 = vmatpush.msra.mxu2 %v2542_v30 }
 0x4d9   : > { %v2410_v7 = vld [vmem:[%s6981_s26 + $0x40c8] sm:$0xff]  ;;  %4505 = vmatpush.msra.mxu3 %v2610_v56  ;;  %v3876_v36 = vadd.f32 %v3875_v60, %v3856_v55 }
 0x4da   : > { %v2478_v35 = vld [vmem:[%s6981_s26 + $0x42e8] sm:$0xff]  ;;  %4447 = vmatpush.msra.mxu0 %v2410_v7 }
 0x4db   : > { %v2538_v51 = vld [vmem:[%s6981_s26 + $0x44c8] sm:$0xff]  ;;  %4466 = vmatpush.msra.mxu1 %v2478_v35 }
 0x4dc   : > { %v2606_v5 = vld [vmem:[%s6981_s26 + $0x46e8] sm:$0xff]  ;;  %4487 = vmatpush.msra.mxu2 %v2538_v51 }
 0x4dd   : > { %v2406_v13 = vld [vmem:[%s6981_s26 + $0x40a8] sm:$0xff]  ;;  %4506 = vmatpush.msra.mxu3 %v2606_v5 }
 0x4de   : > { %v2474_v1 = vld [vmem:[%s6981_s26 + $0x42c8] sm:$0xff]  ;;  %4448 = vmatpush.msra.mxu0 %v2406_v13 }
 0x4df   : > { %v2534_v22 = vld [vmem:[%s6981_s26 + $0x44a8] sm:$0xff]  ;;  %4467 = vmatpush.msra.mxu1 %v2474_v1 }
 0x4e0   : > { %v2602_v33 = vld [vmem:[%s6981_s26 + $0x46c8] sm:$0xff]  ;;  %4488 = vmatpush.msra.mxu2 %v2534_v22 }
 0x4e1   : > { %v2402_v2 = vld [vmem:[%s6981_s26 + $0x4088] sm:$0xff]  ;;  %4507 = vmatpush.msra.mxu3 %v2602_v33  ;;  %v3895_v33 = vpop.f32.mrf.mxu0 }
 0x4e2   : > { %v2470_v17 = vld [vmem:[%s6981_s26 + $0x42a8] sm:$0xff]  ;;  %4449 = vmatpush.msra.mxu0 %v2402_v2 }
 0x4e3   : > { %v2530_v30 = vld [vmem:[%s6981_s26 + $0x4488] sm:$0xff]  ;;  %4468 = vmatpush.msra.mxu1 %v2470_v17 }
 0x4e4   : > { %v2598_v56 = vld [vmem:[%s6981_s26 + $0x46a8] sm:$0xff]  ;;  %4489 = vmatpush.msra.mxu2 %v2530_v30 }
 0x4e5   : > { %v2398_v7 = vld [vmem:[%s6981_s26 + $0x4068] sm:$0xff]  ;;  %4508 = vmatpush.msra.mxu3 %v2598_v56 }
 0x4e6   : > { %v2466_v35 = vld [vmem:[%s6981_s26 + $0x4288] sm:$0xff]  ;;  %4450 = vmatpush.msra.mxu0 %v2398_v7  ;;  %v3896_v7 = vadd.f32 %v3895_v33, %v3876_v36  ;;  %v6642_v33 = vld.sshfl [vmem:[#allocation1] sm:$0xff pattern:$0x73625140] }
 0x4e7   : > { %v2526_v51 = vld [vmem:[%s6981_s26 + $0x4468] sm:$0xff]  ;;  %4469 = vmatpush.msra.mxu1 %v2466_v35 }
 0x4e8   : > { %v2594_v5 = vld [vmem:[%s6981_s26 + $0x4688] sm:$0xff]  ;;  %4490 = vmatpush.msra.mxu2 %v2526_v51 }
 0x4e9   : > { %v2394_v44 = vld [vmem:[%s6981_s26 + $0x4048] sm:$0xff]  ;;  %4509 = vmatpush.msra.mxu3 %v2594_v5  ;;  %v3915_v5 = vpop.f32.mrf.mxu1 }
 0x4ea   : > { %v2462_v1 = vld [vmem:[%s6981_s26 + $0x4268] sm:$0xff]  ;;  %4451 = vmatpush.msra.mxu0 %v2394_v44  ;;  %v3916_v36 = vadd.f32 %v3915_v5, %v3896_v7  ;;  %v6644_v7 = vld.sshfl [vmem:[#allocation1 + $0x8] sm:$0xff pattern:$0x73625140] }
 0x4eb   : > { %v2522_v13 = vld [vmem:[%s6981_s26 + $0x4448] sm:$0xff]  ;;  %4470 = vmatpush.msra.mxu1 %v2462_v1 }
 0x4ec   : > { %v2590_v22 = vld [vmem:[%s6981_s26 + $0x4668] sm:$0xff]  ;;  %4491 = vmatpush.msra.mxu2 %v2522_v13 }
 0x4ed   : > { %v2390_v2 = vld [vmem:[%s6981_s26 + $0x4028] sm:$0xff]  ;;  %4510 = vmatpush.msra.mxu3 %v2590_v22 }
 0x4ee   : > { %v2458_v17 = vld [vmem:[%s6981_s26 + $0x4248] sm:$0xff]  ;;  %4452 = vmatpush.msra.mxu0 %v2390_v2  ;;  %v6643_v2 = vld.sshfl [vmem:[#allocation1 + $0x10] sm:$0xff pattern:$0x73625140] }
 0x4ef   : > { %v2518_v30 = vld [vmem:[%s6981_s26 + $0x4428] sm:$0xff]  ;;  %4471 = vmatpush.msra.mxu1 %v2458_v17  ;;  %v3935_v17 = vpop.f32.mrf.mxu2 }
 0x4f0   : > { %v2586_v56 = vld [vmem:[%s6981_s26 + $0x4648] sm:$0xff]  ;;  %4492 = vmatpush.msra.mxu2 %v2518_v30 }
 0x4f1   : > { %v2386_v55 = vld [vmem:[%s6981_s26 + $0x4008] sm:$0xff]  ;;  %4511 = vmatpush.msra.mxu3 %v2586_v56 }
 0x4f2   : > { %v2454_v60 = vld [vmem:[%s6981_s26 + $0x4228] sm:$0xff]  ;;  %4453 = vmatpush.msra.mxu0 %v2386_v55 }
 0x4f3   : > { %v2514_v35 = vld [vmem:[%s6981_s26 + $0x4408] sm:$0xff]  ;;  %4472 = vmatpush.msra.mxu1 %v2454_v60  ;;  %4454 = vmatmul.f32.vlgmr.msra.gmra.mxu0 %v6642_v33 }
 0x4f4   : > { %v2582_v51 = vld [vmem:[%s6981_s26 + $0x4628] sm:$0xff]  ;;  %4493 = vmatpush.msra.mxu2 %v2514_v35 }
 0x4f5   : > { %v2702_v44 = vld [vmem:[%s6981_s26 + $0x49e8] sm:$0xff]  ;;  %4512 = vmatpush.msra.mxu3 %v2582_v51  ;;  %4494 = vmatmul.f32.vlgmr.msra.gmra.mxu2 %v6643_v2 }
 0x4f6   : > { %v2830_v1 = vld [vmem:[%s6981_s26 + $0x4de8] sm:$0xff]  ;;  %4518 = vmatpush.msrb.mxu0 %v2702_v44  ;;  %v3936_v44 = vadd.f32 %v3935_v17, %v3916_v36  ;;  %v3975_v36 = vpop.f32.mrf.mxu0 }
 0x4f7   : > { %v2450_v13 = vld [vmem:[%s6981_s26 + $0x4208] sm:$0xff]  ;;  %4558 = vmatpush.msrb.mxu2 %v2830_v1 }
 0x4f8   : > { %v2578_v22 = vld [vmem:[%s6981_s26 + $0x4608] sm:$0xff]  ;;  %4473 = vmatpush.msra.mxu1 %v2450_v13 }
 0x4f9   : > { %v2698_v30 = vld [vmem:[%s6981_s26 + $0x49c8] sm:$0xff]  ;;  %4513 = vmatpush.msra.mxu3 %v2578_v22  ;;  %4474 = vmatmul.f32.vlgmr.msra.gmra.mxu1 %v6644_v7  ;;  %v3955_v22 = vpop.f32.mrf.mxu3 }
 0x4fa   : > { %v2766_v56 = vld [vmem:[%s6981_s26 + $0x4be8] sm:$0xff]  ;;  %4519 = vmatpush.msrb.mxu0 %v2698_v30 }
 0x4fb   : > { %v2826_v55 = vld [vmem:[%s6981_s26 + $0x4dc8] sm:$0xff]  ;;  %4538 = vmatpush.msrb.mxu1 %v2766_v56  ;;  %v3956_v56 = vadd.f32 %v3955_v22, %v3936_v44  ;;  %v3995_v44 = vpop.f32.mrf.mxu1 }
 0x4fc   : > { %v2894_v60 = vld [vmem:[%s6981_s26 + $0x4fe8] sm:$0xff]  ;;  %4559 = vmatpush.msrb.mxu2 %v2826_v55 }
 0x4fd   : > { %v6645_v35 = vld.sshfl [vmem:[#allocation1 + $0x18] sm:$0xff pattern:$0x73625140]  ;;  %4578 = vmatpush.msrb.mxu3 %v2894_v60  ;;  %v3976_v40 = vadd.f32 %v3975_v36, %v3956_v56 }
 0x4fe   : > { %4514 = vmatmul.f32.vlgmr.msra.gmra.mxu3 %v6645_v35  ;;  %v2694_v51 = vld [vmem:[%s6981_s26 + $0x49a8] sm:$0xff] }
 0x4ff   : > { %v2762_v5 = vld [vmem:[%s6981_s26 + $0x4bc8] sm:$0xff]  ;;  %4520 = vmatpush.msrb.mxu0 %v2694_v51 }
 0x500   : > { %v2822_v1 = vld [vmem:[%s6981_s26 + $0x4da8] sm:$0xff]  ;;  %4539 = vmatpush.msrb.mxu1 %v2762_v5 }
 0x501   : > { %v2890_v13 = vld [vmem:[%s6981_s26 + $0x4fc8] sm:$0xff]  ;;  %4560 = vmatpush.msrb.mxu2 %v2822_v1 }
 0x502   : > { %v2690_v33 = vld [vmem:[%s6981_s26 + $0x4988] sm:$0xff]  ;;  %4579 = vmatpush.msrb.mxu3 %v2890_v13 }
 0x503   : > { %v2758_v2 = vld [vmem:[%s6981_s26 + $0x4ba8] sm:$0xff]  ;;  %4521 = vmatpush.msrb.mxu0 %v2690_v33 }
 0x504   : > { %v2818_v7 = vld [vmem:[%s6981_s26 + $0x4d88] sm:$0xff]  ;;  %4540 = vmatpush.msrb.mxu1 %v2758_v2 }
 0x505   : > { %v2886_v35 = vld [vmem:[%s6981_s26 + $0x4fa8] sm:$0xff]  ;;  %4561 = vmatpush.msrb.mxu2 %v2818_v7 }
 0x506   : > { %v2686_v17 = vld [vmem:[%s6981_s26 + $0x4968] sm:$0xff]  ;;  %4580 = vmatpush.msrb.mxu3 %v2886_v35  ;;  %v4015_v35 = vpop.f32.mrf.mxu2 }
 0x507   : > { %v2754_v30 = vld [vmem:[%s6981_s26 + $0x4b88] sm:$0xff]  ;;  %4522 = vmatpush.msrb.mxu0 %v2686_v17 }
 0x508   : > { %v2814_v55 = vld [vmem:[%s6981_s26 + $0x4d68] sm:$0xff]  ;;  %4541 = vmatpush.msrb.mxu1 %v2754_v30  ;;  %v3996_v30 = vadd.f32 %v3995_v44, %v3976_v40  ;;  %v4035_v40 = vpop.f32.mrf.mxu3 }
 0x509   : > { %v2882_v60 = vld [vmem:[%s6981_s26 + $0x4f88] sm:$0xff]  ;;  %4562 = vmatpush.msrb.mxu2 %v2814_v55 }
 0x50a   : > { %v2682_v51 = vld [vmem:[%s6981_s26 + $0x4948] sm:$0xff]  ;;  %4581 = vmatpush.msrb.mxu3 %v2882_v60 }
 0x50b   : > { %v2750_v5 = vld [vmem:[%s6981_s26 + $0x4b68] sm:$0xff]  ;;  %4523 = vmatpush.msrb.mxu0 %v2682_v51 }
 0x50c   : > { %v2810_v1 = vld [vmem:[%s6981_s26 + $0x4d48] sm:$0xff]  ;;  %4542 = vmatpush.msrb.mxu1 %v2750_v5  ;;  %v4016_v5 = vadd.f32 %v4015_v35, %v3996_v30 }
 0x50d   : > { %v2878_v13 = vld [vmem:[%s6981_s26 + $0x4f68] sm:$0xff]  ;;  %4563 = vmatpush.msrb.mxu2 %v2810_v1 }
 0x50e   : > { %v2678_v22 = vld [vmem:[%s6981_s26 + $0x4928] sm:$0xff]  ;;  %4582 = vmatpush.msrb.mxu3 %v2878_v13 }
 0x50f   : > { %v2746_v33 = vld [vmem:[%s6981_s26 + $0x4b48] sm:$0xff]  ;;  %4524 = vmatpush.msrb.mxu0 %v2678_v22 }
 0x510   : > { %v2806_v2 = vld [vmem:[%s6981_s26 + $0x4d28] sm:$0xff]  ;;  %4543 = vmatpush.msrb.mxu1 %v2746_v33  ;;  %v4115_v24 = vpop.f32.mrf.mxu3 }
 0x511   : > { %v2874_v7 = vld [vmem:[%s6981_s26 + $0x4f48] sm:$0xff]  ;;  %4564 = vmatpush.msrb.mxu2 %v2806_v2 }
 0x512   : > { %v2674_v36 = vld [vmem:[%s6981_s26 + $0x4908] sm:$0xff]  ;;  %4583 = vmatpush.msrb.mxu3 %v2874_v7  ;;  %v4055_v7 = vpop.f32.mrf.mxu0 }
 0x513   : > { %v2742_v17 = vld [vmem:[%s6981_s26 + $0x4b28] sm:$0xff]  ;;  %4525 = vmatpush.msrb.mxu0 %v2674_v36 }
 0x514   : > { %v2802_v56 = vld [vmem:[%s6981_s26 + $0x4d08] sm:$0xff]  ;;  %4544 = vmatpush.msrb.mxu1 %v2742_v17  ;;  %v4036_v17 = vadd.f32 %v4035_v40, %v4016_v5  ;;  %v4075_v5 = vpop.f32.mrf.mxu1 }
 0x515   : > { %v2870_v55 = vld [vmem:[%s6981_s26 + $0x4f28] sm:$0xff]  ;;  %4565 = vmatpush.msrb.mxu2 %v2802_v56 }
 0x516   : > { %v2670_v60 = vld [vmem:[%s6981_s26 + $0x48e8] sm:$0xff]  ;;  %4584 = vmatpush.msrb.mxu3 %v2870_v55 }
 0x517   : > { %v2738_v51 = vld [vmem:[%s6981_s26 + $0x4b08] sm:$0xff]  ;;  %4526 = vmatpush.msrb.mxu0 %v2670_v60 }
 0x518   : > { %v2798_v1 = vld [vmem:[%s6981_s26 + $0x4ce8] sm:$0xff]  ;;  %4545 = vmatpush.msrb.mxu1 %v2738_v51  ;;  %v4056_v51 = vadd.f32 %v4055_v7, %v4036_v17 }
 0x519   : > { %v2866_v13 = vld [vmem:[%s6981_s26 + $0x4f08] sm:$0xff]  ;;  %4566 = vmatpush.msrb.mxu2 %v2798_v1 }
 0x51a   : > { %v2666_v44 = vld [vmem:[%s6981_s26 + $0x48c8] sm:$0xff]  ;;  %4585 = vmatpush.msrb.mxu3 %v2866_v13 }
 0x51b   : > { %v2734_v22 = vld [vmem:[%s6981_s26 + $0x4ae8] sm:$0xff]  ;;  %4527 = vmatpush.msrb.mxu0 %v2666_v44 }
 0x51c   : > { %v2794_v33 = vld [vmem:[%s6981_s26 + $0x4cc8] sm:$0xff]  ;;  %4546 = vmatpush.msrb.mxu1 %v2734_v22 }
 0x51d   : > { %v2862_v2 = vld [vmem:[%s6981_s26 + $0x4ee8] sm:$0xff]  ;;  %4567 = vmatpush.msrb.mxu2 %v2794_v33 }
 0x51e   : > { %v2662_v35 = vld [vmem:[%s6981_s26 + $0x48a8] sm:$0xff]  ;;  %4586 = vmatpush.msrb.mxu3 %v2862_v2  ;;  %v4095_v2 = vpop.f32.mrf.mxu2 }
 0x51f   : > { %v2730_v36 = vld [vmem:[%s6981_s26 + $0x4ac8] sm:$0xff]  ;;  %4528 = vmatpush.msrb.mxu0 %v2662_v35 }
 0x520   : > { %v2790_v30 = vld [vmem:[%s6981_s26 + $0x4ca8] sm:$0xff]  ;;  %4547 = vmatpush.msrb.mxu1 %v2730_v36  ;;  %v4076_v36 = vadd.f32 %v4075_v5, %v4056_v51 }
 0x521   : > { %v2858_v56 = vld [vmem:[%s6981_s26 + $0x4ec8] sm:$0xff]  ;;  %4568 = vmatpush.msrb.mxu2 %v2790_v30 }
 0x522   : > { %v2658_v55 = vld [vmem:[%s6981_s26 + $0x4888] sm:$0xff]  ;;  %4587 = vmatpush.msrb.mxu3 %v2858_v56 }
 0x523   : > { %v2726_v60 = vld [vmem:[%s6981_s26 + $0x4aa8] sm:$0xff]  ;;  %4529 = vmatpush.msrb.mxu0 %v2658_v55 }
 0x524   : > { %v2786_v1 = vld [vmem:[%s6981_s26 + $0x4c88] sm:$0xff]  ;;  %4548 = vmatpush.msrb.mxu1 %v2726_v60  ;;  %v4096_v60 = vadd.f32 %v4095_v2, %v4076_v36  ;;  %v399_v2 = vld [vmem:[%s6981_s26 + $0x1f0] sm:$0xff] }
 0x525   : > { %v2854_v13 = vld [vmem:[%s6981_s26 + $0x4ea8] sm:$0xff]  ;;  %4569 = vmatpush.msrb.mxu2 %v2786_v1 }
 0x526   : > { %v2654_v40 = vld [vmem:[%s6981_s26 + $0x4868] sm:$0xff]  ;;  %4588 = vmatpush.msrb.mxu3 %v2854_v13 }
 0x527   : > { %v2722_v44 = vld [vmem:[%s6981_s26 + $0x4a88] sm:$0xff]  ;;  %4530 = vmatpush.msrb.mxu0 %v2654_v40 }
 0x528   : > { %v2782_v22 = vld [vmem:[%s6981_s26 + $0x4c68] sm:$0xff]  ;;  %4549 = vmatpush.msrb.mxu1 %v2722_v44 }
 0x529   : > { %v2850_v33 = vld [vmem:[%s6981_s26 + $0x4e88] sm:$0xff]  ;;  %4570 = vmatpush.msrb.mxu2 %v2782_v22  ;;  %v4135_v22 = vpop.f32.mrf.mxu0 }
 0x52a   : > { %v2650_v7 = vld [vmem:[%s6981_s26 + $0x4848] sm:$0xff]  ;;  %4589 = vmatpush.msrb.mxu3 %v2850_v33  ;;  %v4116_v33 = vadd.f32 %v4115_v24, %v4096_v60  ;;  %v4155_v24 = vpop.f32.mrf.mxu1  ;;  %v463_v60 = vld [vmem:[%s6981_s26 + $0x3f0] sm:$0xff] }
 0x52b   : > { %v2718_v35 = vld [vmem:[%s6981_s26 + $0x4a68] sm:$0xff]  ;;  %4531 = vmatpush.msrb.mxu0 %v2650_v7  ;;  %v527_v7 = vld [vmem:[%s6981_s26 + $0x5f0] sm:$0xff] }
 0x52c   : > { %v2778_v17 = vld [vmem:[%s6981_s26 + $0x4c48] sm:$0xff]  ;;  %4550 = vmatpush.msrb.mxu1 %v2718_v35 }
 0x52d   : > { %v2846_v30 = vld [vmem:[%s6981_s26 + $0x4e68] sm:$0xff]  ;;  %4571 = vmatpush.msrb.mxu2 %v2778_v17  ;;  %v4136_v17 = vadd.f32 %v4135_v22, %v4116_v33  ;;  %v459_v22 = vld [vmem:[%s6981_s26 + $0x3d0] sm:$0xff] }
 0x52e   : > { %v2646_v56 = vld [vmem:[%s6981_s26 + $0x4828] sm:$0xff]  ;;  %4590 = vmatpush.msrb.mxu3 %v2846_v30  ;;  %v6646_v30 = vld.sshfl [vmem:[#allocation1 + $0x20] sm:$0xff pattern:$0x73625140] }
 0x52f   : > { %v2714_v55 = vld [vmem:[%s6981_s26 + $0x4a48] sm:$0xff]  ;;  %4532 = vmatpush.msrb.mxu0 %v2646_v56  ;;  %v6647_v56 = vld.sshfl [vmem:[#allocation1 + $0x30] sm:$0xff pattern:$0x73625140]  ;;  %v4156_v33 = vadd.f32 %v4155_v24, %v4136_v17  ;;  %v4195_v17 = vpop.f32.mrf.mxu3  ;;  %v383_v24 = vld [vmem:[%s6981_s26 + $0x170] sm:$0xff] }
 0x530   : > { %v2774_v1 = vld [vmem:[%s6981_s26 + $0x4c28] sm:$0xff]  ;;  %4551 = vmatpush.msrb.mxu1 %v2714_v55  ;;  %v395_v55 = vld [vmem:[%s6981_s26 + $0x1d0] sm:$0xff] }
 0x531   : > { %v2842_v13 = vld [vmem:[%s6981_s26 + $0x4e48] sm:$0xff]  ;;  %4572 = vmatpush.msrb.mxu2 %v2774_v1  ;;  %v523_v1 = vld [vmem:[%s6981_s26 + $0x5d0] sm:$0xff] }
 0x532   : > { %v2642_v51 = vld [vmem:[%s6981_s26 + $0x4808] sm:$0xff]  ;;  %4591 = vmatpush.msrb.mxu3 %v2842_v13  ;;  %v591_v13 = vld [vmem:[%s6981_s26 + $0x7f0] sm:$0xff] }
 0x533   : > { %v2710_v5 = vld [vmem:[%s6981_s26 + $0x4a28] sm:$0xff]  ;;  %4533 = vmatpush.msrb.mxu0 %v2642_v51  ;;  %v4175_v51 = vpop.f32.mrf.mxu2 }
 0x534   : > { %v2770_v40 = vld [vmem:[%s6981_s26 + $0x4c08] sm:$0xff]  ;;  %4552 = vmatpush.msrb.mxu1 %v2710_v5  ;;  %4534 = vmatmul.f32.vlgmr.msrb.gmra.mxu0 %v6646_v30  ;;  %v6648_v5 = vld.sshfl [vmem:[#allocation1 + $0x28] sm:$0xff pattern:$0x73625140]  ;;  %v4176_v30 = vadd.f32 %v4175_v51, %v4156_v33  ;;  %v379_v51 = vld [vmem:[%s6981_s26 + $0x150] sm:$0xff] }
 0x535   : > { %v2838_v44 = vld [vmem:[%s6981_s26 + $0x4e28] sm:$0xff]  ;;  %4573 = vmatpush.msrb.mxu2 %v2770_v40  ;;  %4598 = vmatpush.msra.mxu0 %v399_v2  ;;  %v519_v2 = vld [vmem:[%s6981_s26 + $0x5b0] sm:$0xff] }
 0x536   : > { %4592 = vmatpush.msrb.mxu3 %v2838_v44  ;;  %v2706_v35 = vld [vmem:[%s6981_s26 + $0x4a08] sm:$0xff]  ;;  %4574 = vmatmul.f32.vlgmr.msrb.gmra.mxu2 %v6647_v56  ;;  %v391_v44 = vld [vmem:[%s6981_s26 + $0x1b0] sm:$0xff] }
 0x537   : > { %v2834_v36 = vld [vmem:[%s6981_s26 + $0x4e08] sm:$0xff]  ;;  %4638 = vmatpush.msra.mxu2 %v527_v7  ;;  %4553 = vmatpush.msrb.mxu1 %v2706_v35  ;;  %v587_v7 = vld [vmem:[%s6981_s26 + $0x7d0] sm:$0xff] }
 0x538   : > { %4593 = vmatpush.msrb.mxu3 %v2834_v36  ;;  %4554 = vmatmul.f32.vlgmr.msrb.gmra.mxu1 %v6648_v5  ;;  %v6649_v40 = vld.sshfl [vmem:[#allocation1 + $0x38] sm:$0xff pattern:$0x73625140]  ;;  %v387_v35 = vld [vmem:[%s6981_s26 + $0x190] sm:$0xff] }
 0x539   : > { %4594 = vmatmul.f32.vlgmr.msrb.gmra.mxu3 %v6649_v40  ;;  %4599 = vmatpush.msra.mxu0 %v395_v55  ;;  %v455_v36 = vld [vmem:[%s6981_s26 + $0x3b0] sm:$0xff] }
 0x53a   : > { %4618 = vmatpush.msra.mxu1 %v463_v60  ;;  %4639 = vmatpush.msra.mxu2 %v523_v1  ;;  %v515_v56 = vld [vmem:[%s6981_s26 + $0x590] sm:$0xff] }
 0x53b   : > { %4658 = vmatpush.msra.mxu3 %v591_v13  ;;  %4600 = vmatpush.msra.mxu0 %v391_v44  ;;  %v583_v5 = vld [vmem:[%s6981_s26 + $0x7b0] sm:$0xff]  ;;  %v4215_v13 = vpop.f32.mrf.mxu0  ;;  %v4196_v44 = vadd.f32 %v4195_v17, %v4176_v30  ;;  %v4235_v30 = vpop.f32.mrf.mxu1 }
 0x53c   : > { %4619 = vmatpush.msra.mxu1 %v459_v22  ;;  %4640 = vmatpush.msra.mxu2 %v519_v2  ;;  %v451_v55 = vld [vmem:[%s6981_s26 + $0x390] sm:$0xff] }
 0x53d   : > { %4659 = vmatpush.msra.mxu3 %v587_v7  ;;  %4601 = vmatpush.msra.mxu0 %v387_v35  ;;  %v511_v60 = vld [vmem:[%s6981_s26 + $0x570] sm:$0xff]  ;;  %v4216_v35 = vadd.f32 %v4215_v13, %v4196_v44 }
 0x53e   : > { %4620 = vmatpush.msra.mxu1 %v455_v36  ;;  %v579_v1 = vld [vmem:[%s6981_s26 + $0x790] sm:$0xff]  ;;  %4641 = vmatpush.msra.mxu2 %v515_v56 }
 0x53f   : > { %4660 = vmatpush.msra.mxu3 %v583_v5  ;;  %v447_v40 = vld [vmem:[%s6981_s26 + $0x370] sm:$0xff]  ;;  %4602 = vmatpush.msra.mxu0 %v383_v24 }
 0x540   : > { %4621 = vmatpush.msra.mxu1 %v451_v55  ;;  %v507_v22 = vld [vmem:[%s6981_s26 + $0x550] sm:$0xff]  ;;  %4642 = vmatpush.msra.mxu2 %v511_v60  ;;  %v4255_v60 = vpop.f32.mrf.mxu2 }
 0x541   : > { %v575_v33 = vld [vmem:[%s6981_s26 + $0x770] sm:$0xff]  ;;  %4661 = vmatpush.msra.mxu3 %v579_v1  ;;  %4603 = vmatpush.msra.mxu0 %v379_v51  ;;  %v4236_v51 = vadd.f32 %v4235_v30, %v4216_v35  ;;  %v4275_v35 = vpop.f32.mrf.mxu3 }
 0x542   : > { %v375_v2 = vld [vmem:[%s6981_s26 + $0x130] sm:$0xff]  ;;  %4622 = vmatpush.msra.mxu1 %v447_v40  ;;  %4643 = vmatpush.msra.mxu2 %v507_v22 }
 0x543   : > { %v443_v7 = vld [vmem:[%s6981_s26 + $0x350] sm:$0xff]  ;;  %4662 = vmatpush.msra.mxu3 %v575_v33  ;;  %4604 = vmatpush.msra.mxu0 %v375_v2  ;;  %v4256_v2 = vadd.f32 %v4255_v60, %v4236_v51 }
 0x544   : > { %v503_v36 = vld [vmem:[%s6981_s26 + $0x530] sm:$0xff]  ;;  %4623 = vmatpush.msra.mxu1 %v443_v7 }
 0x545   : > { %v571_v56 = vld [vmem:[%s6981_s26 + $0x750] sm:$0xff]  ;;  %4644 = vmatpush.msra.mxu2 %v503_v36  ;;  %v4276_v60 = vadd.f32 %v4275_v35, %v4256_v2 }
 0x546   : > { %v371_v5 = vld [vmem:[%s6981_s26 + $0x110] sm:$0xff]  ;;  %4663 = vmatpush.msra.mxu3 %v571_v56 }
 0x547   : > { %v439_v17 = vld [vmem:[%s6981_s26 + $0x330] sm:$0xff]  ;;  %4605 = vmatpush.msra.mxu0 %v371_v5 }
 0x548   : > { %v499_v24 = vld [vmem:[%s6981_s26 + $0x510] sm:$0xff]  ;;  %4624 = vmatpush.msra.mxu1 %v439_v17 }
 0x549   : > { %v567_v55 = vld [vmem:[%s6981_s26 + $0x730] sm:$0xff]  ;;  %4645 = vmatpush.msra.mxu2 %v499_v24 }
 0x54a   : > { %v367_v1 = vld [vmem:[%s6981_s26 + $0xf0] sm:$0xff]  ;;  %4664 = vmatpush.msra.mxu3 %v567_v55 }
 0x54b   : > { %v435_v13 = vld [vmem:[%s6981_s26 + $0x310] sm:$0xff]  ;;  %4606 = vmatpush.msra.mxu0 %v367_v1 }
 0x54c   : > { %v495_v40 = vld [vmem:[%s6981_s26 + $0x4f0] sm:$0xff]  ;;  %4625 = vmatpush.msra.mxu1 %v435_v13 }
 0x54d   : > { %v563_v44 = vld [vmem:[%s6981_s26 + $0x710] sm:$0xff]  ;;  %4646 = vmatpush.msra.mxu2 %v495_v40 }
 0x54e   : > { %v363_v22 = vld [vmem:[%s6981_s26 + $0xd0] sm:$0xff]  ;;  %4665 = vmatpush.msra.mxu3 %v563_v44  ;;  %v4295_v44 = vpop.f32.mrf.mxu0 }
 0x54f   : > { %v431_v33 = vld [vmem:[%s6981_s26 + $0x2f0] sm:$0xff]  ;;  %4607 = vmatpush.msra.mxu0 %v363_v22  ;;  %v4296_v2 = vadd.f32 %v4295_v44, %v4276_v60 }
 0x550   : > { %v491_v7 = vld [vmem:[%s6981_s26 + $0x4d0] sm:$0xff]  ;;  %4626 = vmatpush.msra.mxu1 %v431_v33 }
 0x551   : > { %v559_v36 = vld [vmem:[%s6981_s26 + $0x6f0] sm:$0xff]  ;;  %4647 = vmatpush.msra.mxu2 %v491_v7 }
 0x552   : > { %v359_v56 = vld [vmem:[%s6981_s26 + $0xb0] sm:$0xff]  ;;  %4666 = vmatpush.msra.mxu3 %v559_v36 }
 0x553   : > { %v427_v30 = vld [vmem:[%s6981_s26 + $0x2d0] sm:$0xff]  ;;  %4608 = vmatpush.msra.mxu0 %v359_v56 }
 0x554   : > { %v487_v5 = vld [vmem:[%s6981_s26 + $0x4b0] sm:$0xff]  ;;  %4627 = vmatpush.msra.mxu1 %v427_v30  ;;  %v4315_v30 = vpop.f32.mrf.mxu1 }
 0x555   : > { %v555_v17 = vld [vmem:[%s6981_s26 + $0x6d0] sm:$0xff]  ;;  %4648 = vmatpush.msra.mxu2 %v487_v5 }
 0x556   : > { %v355_v24 = vld [vmem:[%s6981_s26 + $0x90] sm:$0xff]  ;;  %4667 = vmatpush.msra.mxu3 %v555_v17 }
 0x557   : > { %v423_v55 = vld [vmem:[%s6981_s26 + $0x2b0] sm:$0xff]  ;;  %4609 = vmatpush.msra.mxu0 %v355_v24  ;;  %v4316_v24 = vadd.f32 %v4315_v30, %v4296_v2 }
 0x558   : > { %v483_v1 = vld [vmem:[%s6981_s26 + $0x490] sm:$0xff]  ;;  %4628 = vmatpush.msra.mxu1 %v423_v55 }
 0x559   : > { %v551_v13 = vld [vmem:[%s6981_s26 + $0x6b0] sm:$0xff]  ;;  %4649 = vmatpush.msra.mxu2 %v483_v1 }
 0x55a   : > { %v351_v51 = vld [vmem:[%s6981_s26 + $0x70] sm:$0xff]  ;;  %4668 = vmatpush.msra.mxu3 %v551_v13 }
 0x55b   : > { %v419_v40 = vld [vmem:[%s6981_s26 + $0x290] sm:$0xff]  ;;  %4610 = vmatpush.msra.mxu0 %v351_v51  ;;  %v4335_v51 = vpop.f32.mrf.mxu2 }
 0x55c   : > { %v479_v22 = vld [vmem:[%s6981_s26 + $0x470] sm:$0xff]  ;;  %4629 = vmatpush.msra.mxu1 %v419_v40 }
 0x55d   : > { %v547_v33 = vld [vmem:[%s6981_s26 + $0x690] sm:$0xff]  ;;  %4650 = vmatpush.msra.mxu2 %v479_v22  ;;  %v4336_v22 = vadd.f32 %v4335_v51, %v4316_v24 }
 0x55e   : > { %v347_v7 = vld [vmem:[%s6981_s26 + $0x50] sm:$0xff]  ;;  %4669 = vmatpush.msra.mxu3 %v547_v33 }
 0x55f   : > { %v415_v36 = vld [vmem:[%s6981_s26 + $0x270] sm:$0xff]  ;;  %4611 = vmatpush.msra.mxu0 %v347_v7 }
 0x560   : > { %v475_v35 = vld [vmem:[%s6981_s26 + $0x450] sm:$0xff]  ;;  %4630 = vmatpush.msra.mxu1 %v415_v36 }
 0x561   : > { %v543_v56 = vld [vmem:[%s6981_s26 + $0x670] sm:$0xff]  ;;  %4651 = vmatpush.msra.mxu2 %v475_v35  ;;  %v4355_v35 = vpop.f32.mrf.mxu3 }
 0x562   : > { %v343_v5 = vld [vmem:[%s6981_s26 + $0x30] sm:$0xff]  ;;  %4670 = vmatpush.msra.mxu3 %v543_v56 }
 0x563   : > { %v411_v17 = vld [vmem:[%s6981_s26 + $0x250] sm:$0xff]  ;;  %4612 = vmatpush.msra.mxu0 %v343_v5  ;;  %v8581_v5 = vadd.f32 %v4355_v35, %v4336_v22 }
 0x564   : > { %v471_v55 = vld [vmem:[%s6981_s26 + $0x430] sm:$0xff]  ;;  %4631 = vmatpush.msra.mxu1 %v411_v17 }
 0x565   : > { %v539_v60 = vld [vmem:[%s6981_s26 + $0x650] sm:$0xff]  ;;  %4652 = vmatpush.msra.mxu2 %v471_v55 }
 0x566   : > { %v339_v1 = vld [vmem:[%s6981_s26 + $0x10] sm:$0xff]  ;;  %4671 = vmatpush.msra.mxu3 %v539_v60 }
 0x567   : > { %v407_v13 = vld [vmem:[%s6981_s26 + $0x230] sm:$0xff]  ;;  %4613 = vmatpush.msra.mxu0 %v339_v1 }
 0x568   : > { %v467_v40 = vld [vmem:[%s6981_s26 + $0x410] sm:$0xff]  ;;  %4632 = vmatpush.msra.mxu1 %v407_v13  ;;  %4614 = vmatmul.f32.vlgmr.msra.gmra.mxu0 %v7125_v46 }
 0x569   : > { %v535_v44 = vld [vmem:[%s6981_s26 + $0x630] sm:$0xff]  ;;  %4653 = vmatpush.msra.mxu2 %v467_v40 }
 0x56a   : > { %v655_v33 = vld [vmem:[%s6981_s26 + $0x9f0] sm:$0xff]  ;;  %4672 = vmatpush.msra.mxu3 %v535_v44  ;;  %4654 = vmatmul.f32.vlgmr.msra.gmra.mxu2 %v7123_v45 }
 0x56b   : > { %v783_v2 = vld [vmem:[%s6981_s26 + $0xdf0] sm:$0xff]  ;;  %4678 = vmatpush.msrb.mxu0 %v655_v33 }
 0x56c   : > { %v403_v7 = vld [vmem:[%s6981_s26 + $0x210] sm:$0xff]  ;;  %4718 = vmatpush.msrb.mxu2 %v783_v2 }
 0x56d   : > { %v531_v36 = vld [vmem:[%s6981_s26 + $0x610] sm:$0xff]  ;;  %4633 = vmatpush.msra.mxu1 %v403_v7 }
 0x56e   : > { %v651_v56 = vld [vmem:[%s6981_s26 + $0x9d0] sm:$0xff]  ;;  %4673 = vmatpush.msra.mxu3 %v531_v36  ;;  %4634 = vmatmul.f32.vlgmr.msra.gmra.mxu1 %v7129_v48 }
 0x56f   : > { %v719_v30 = vld [vmem:[%s6981_s26 + $0xbf0] sm:$0xff]  ;;  %4679 = vmatpush.msrb.mxu0 %v651_v56  ;;  %4674 = vmatmul.f32.vlgmr.msra.gmra.mxu3 %v7127_v47 }
 0x570   : > { %v779_v17 = vld [vmem:[%s6981_s26 + $0xdd0] sm:$0xff]  ;;  %4698 = vmatpush.msrb.mxu1 %v719_v30 }
 0x571   : > { %v847_v24 = vld [vmem:[%s6981_s26 + $0xff0] sm:$0xff]  ;;  %4719 = vmatpush.msrb.mxu2 %v779_v17 }
 0x572   : > { %v647_v55 = vld [vmem:[%s6981_s26 + $0x9b0] sm:$0xff]  ;;  %4738 = vmatpush.msrb.mxu3 %v847_v24 }
 0x573   : > { %v715_v60 = vld [vmem:[%s6981_s26 + $0xbd0] sm:$0xff]  ;;  %4680 = vmatpush.msrb.mxu0 %v647_v55 }
 0x574   : > { %v775_v1 = vld [vmem:[%s6981_s26 + $0xdb0] sm:$0xff]  ;;  %4699 = vmatpush.msrb.mxu1 %v715_v60 }
 0x575   : > { %v843_v13 = vld [vmem:[%s6981_s26 + $0xfd0] sm:$0xff]  ;;  %4720 = vmatpush.msrb.mxu2 %v775_v1 }
 0x576   : > { %v643_v51 = vld [vmem:[%s6981_s26 + $0x990] sm:$0xff]  ;;  %4739 = vmatpush.msrb.mxu3 %v843_v13 }
 0x577   : > { %v711_v40 = vld [vmem:[%s6981_s26 + $0xbb0] sm:$0xff]  ;;  %4681 = vmatpush.msrb.mxu0 %v643_v51 }
 0x578   : > { %v771_v44 = vld [vmem:[%s6981_s26 + $0xd90] sm:$0xff]  ;;  %4700 = vmatpush.msrb.mxu1 %v711_v40 }
 0x579   : > { %v839_v22 = vld [vmem:[%s6981_s26 + $0xfb0] sm:$0xff]  ;;  %4721 = vmatpush.msrb.mxu2 %v771_v44 }
 0x57a   : > { %v639_v33 = vld [vmem:[%s6981_s26 + $0x970] sm:$0xff]  ;;  %4740 = vmatpush.msrb.mxu3 %v839_v22 }
 0x57b   : > { %v707_v2 = vld [vmem:[%s6981_s26 + $0xb90] sm:$0xff]  ;;  %4682 = vmatpush.msrb.mxu0 %v639_v33 }
 0x57c   : > { %v767_v7 = vld [vmem:[%s6981_s26 + $0xd70] sm:$0xff]  ;;  %4701 = vmatpush.msrb.mxu1 %v707_v2 }
 0x57d   : > { %v835_v36 = vld [vmem:[%s6981_s26 + $0xf90] sm:$0xff]  ;;  %4722 = vmatpush.msrb.mxu2 %v767_v7 }
 0x57e   : > { %v635_v35 = vld [vmem:[%s6981_s26 + $0x950] sm:$0xff]  ;;  %4741 = vmatpush.msrb.mxu3 %v835_v36 }
 0x57f   : > { %v703_v56 = vld [vmem:[%s6981_s26 + $0xb70] sm:$0xff]  ;;  %4683 = vmatpush.msrb.mxu0 %v635_v35 }
 0x580   : > { %v763_v30 = vld [vmem:[%s6981_s26 + $0xd50] sm:$0xff]  ;;  %4702 = vmatpush.msrb.mxu1 %v703_v56 }
 0x581   : > { %v831_v17 = vld [vmem:[%s6981_s26 + $0xf70] sm:$0xff]  ;;  %4723 = vmatpush.msrb.mxu2 %v763_v30 }
 0x582   : > { %v631_v24 = vld [vmem:[%s6981_s26 + $0x930] sm:$0xff]  ;;  %4742 = vmatpush.msrb.mxu3 %v831_v17 }
 0x583   : > { %v699_v55 = vld [vmem:[%s6981_s26 + $0xb50] sm:$0xff]  ;;  %4684 = vmatpush.msrb.mxu0 %v631_v24 }
 0x584   : > { %v759_v60 = vld [vmem:[%s6981_s26 + $0xd30] sm:$0xff]  ;;  %4703 = vmatpush.msrb.mxu1 %v699_v55 }
 0x585   : > { %v827_v1 = vld [vmem:[%s6981_s26 + $0xf50] sm:$0xff]  ;;  %4724 = vmatpush.msrb.mxu2 %v759_v60 }
 0x586   : > { %v627_v13 = vld [vmem:[%s6981_s26 + $0x910] sm:$0xff]  ;;  %4743 = vmatpush.msrb.mxu3 %v827_v1 }
 0x587   : > { %v695_v51 = vld [vmem:[%s6981_s26 + $0xb30] sm:$0xff]  ;;  %4685 = vmatpush.msrb.mxu0 %v627_v13 }
 0x588   : > { %v755_v40 = vld [vmem:[%s6981_s26 + $0xd10] sm:$0xff]  ;;  %4704 = vmatpush.msrb.mxu1 %v695_v51 }
 0x589   : > { %v823_v44 = vld [vmem:[%s6981_s26 + $0xf30] sm:$0xff]  ;;  %4725 = vmatpush.msrb.mxu2 %v755_v40 }
 0x58a   : > { %v623_v22 = vld [vmem:[%s6981_s26 + $0x8f0] sm:$0xff]  ;;  %4744 = vmatpush.msrb.mxu3 %v823_v44 }
 0x58b   : > { %v691_v33 = vld [vmem:[%s6981_s26 + $0xb10] sm:$0xff]  ;;  %4686 = vmatpush.msrb.mxu0 %v623_v22 }
 0x58c   : > { %v751_v2 = vld [vmem:[%s6981_s26 + $0xcf0] sm:$0xff]  ;;  %4705 = vmatpush.msrb.mxu1 %v691_v33 }
 0x58d   : > { %v819_v7 = vld [vmem:[%s6981_s26 + $0xf10] sm:$0xff]  ;;  %4726 = vmatpush.msrb.mxu2 %v751_v2 }
 0x58e   : > { %v619_v36 = vld [vmem:[%s6981_s26 + $0x8d0] sm:$0xff]  ;;  %4745 = vmatpush.msrb.mxu3 %v819_v7 }
 0x58f   : > { %v687_v35 = vld [vmem:[%s6981_s26 + $0xaf0] sm:$0xff]  ;;  %4687 = vmatpush.msrb.mxu0 %v619_v36 }
 0x590   : > { %v747_v56 = vld [vmem:[%s6981_s26 + $0xcd0] sm:$0xff]  ;;  %4706 = vmatpush.msrb.mxu1 %v687_v35  ;;  %v4375_v35 = vpop.f32.mrf.mxu0 }
 0x591   : > { %v815_v30 = vld [vmem:[%s6981_s26 + $0xef0] sm:$0xff]  ;;  %4727 = vmatpush.msrb.mxu2 %v747_v56 }
 0x592   : > { %v615_v17 = vld [vmem:[%s6981_s26 + $0x8b0] sm:$0xff]  ;;  %4746 = vmatpush.msrb.mxu3 %v815_v30 }
 0x593   : > { %v683_v24 = vld [vmem:[%s6981_s26 + $0xad0] sm:$0xff]  ;;  %4688 = vmatpush.msrb.mxu0 %v615_v17  ;;  %v4376_v17 = vadd.f32 %v4375_v35, %v8581_v5 }
 0x594   : > { %v743_v55 = vld [vmem:[%s6981_s26 + $0xcb0] sm:$0xff]  ;;  %4707 = vmatpush.msrb.mxu1 %v683_v24 }
 0x595   : > { %v811_v60 = vld [vmem:[%s6981_s26 + $0xed0] sm:$0xff]  ;;  %4728 = vmatpush.msrb.mxu2 %v743_v55 }
 0x596   : > { %v611_v1 = vld [vmem:[%s6981_s26 + $0x890] sm:$0xff]  ;;  %4747 = vmatpush.msrb.mxu3 %v811_v60 }
 0x597   : > { %v679_v13 = vld [vmem:[%s6981_s26 + $0xab0] sm:$0xff]  ;;  %4689 = vmatpush.msrb.mxu0 %v611_v1 }
 0x598   : > { %v739_v51 = vld [vmem:[%s6981_s26 + $0xc90] sm:$0xff]  ;;  %4708 = vmatpush.msrb.mxu1 %v679_v13  ;;  %v4395_v13 = vpop.f32.mrf.mxu1 }
 0x599   : > { %v807_v40 = vld [vmem:[%s6981_s26 + $0xeb0] sm:$0xff]  ;;  %4729 = vmatpush.msrb.mxu2 %v739_v51 }
 0x59a   : > { %v607_v44 = vld [vmem:[%s6981_s26 + $0x870] sm:$0xff]  ;;  %4748 = vmatpush.msrb.mxu3 %v807_v40  ;;  %v4396_v40 = vadd.f32 %v4395_v13, %v4376_v17 }
 0x59b   : > { %v675_v22 = vld [vmem:[%s6981_s26 + $0xa90] sm:$0xff]  ;;  %4690 = vmatpush.msrb.mxu0 %v607_v44 }
 0x59c   : > { %v735_v33 = vld [vmem:[%s6981_s26 + $0xc70] sm:$0xff]  ;;  %4709 = vmatpush.msrb.mxu1 %v675_v22 }
 0x59d   : > { %v803_v2 = vld [vmem:[%s6981_s26 + $0xe90] sm:$0xff]  ;;  %4730 = vmatpush.msrb.mxu2 %v735_v33  ;;  %v4415_v33 = vpop.f32.mrf.mxu2 }
 0x59e   : > { %v603_v7 = vld [vmem:[%s6981_s26 + $0x850] sm:$0xff]  ;;  %4749 = vmatpush.msrb.mxu3 %v803_v2 }
 0x59f   : > { %v671_v36 = vld [vmem:[%s6981_s26 + $0xa70] sm:$0xff]  ;;  %4691 = vmatpush.msrb.mxu0 %v603_v7  ;;  %v4416_v7 = vadd.f32 %v4415_v33, %v4396_v40 }
 0x5a0   : > { %v731_v56 = vld [vmem:[%s6981_s26 + $0xc50] sm:$0xff]  ;;  %4710 = vmatpush.msrb.mxu1 %v671_v36 }
 0x5a1   : > { %v799_v30 = vld [vmem:[%s6981_s26 + $0xe70] sm:$0xff]  ;;  %4731 = vmatpush.msrb.mxu2 %v731_v56 }
 0x5a2   : > { %v599_v24 = vld [vmem:[%s6981_s26 + $0x830] sm:$0xff]  ;;  %4750 = vmatpush.msrb.mxu3 %v799_v30  ;;  %v4435_v30 = vpop.f32.mrf.mxu3 }
 0x5a3   : > { %v667_v55 = vld [vmem:[%s6981_s26 + $0xa50] sm:$0xff]  ;;  %4692 = vmatpush.msrb.mxu0 %v599_v24 }
 0x5a4   : > { %v727_v60 = vld [vmem:[%s6981_s26 + $0xc30] sm:$0xff]  ;;  %4711 = vmatpush.msrb.mxu1 %v667_v55  ;;  %v8651_v55 = vadd.f32 %v4435_v30, %v4416_v7 }
 0x5a5   : > { %v795_v1 = vld [vmem:[%s6981_s26 + $0xe50] sm:$0xff]  ;;  %4732 = vmatpush.msrb.mxu2 %v727_v60 }
 0x5a6   : > { %v595_v51 = vld [vmem:[%s6981_s26 + $0x810] sm:$0xff]  ;;  %4751 = vmatpush.msrb.mxu3 %v795_v1 }
 0x5a7   : > { %v663_v5 = vld [vmem:[%s6981_s26 + $0xa30] sm:$0xff]  ;;  %4693 = vmatpush.msrb.mxu0 %v595_v51 }
 0x5a8   : > { %v723_v44 = vld [vmem:[%s6981_s26 + $0xc10] sm:$0xff]  ;;  %4712 = vmatpush.msrb.mxu1 %v663_v5  ;;  %4694 = vmatmul.f32.vlgmr.msrb.gmra.mxu0 %v7145_v62 }
 0x5a9   : > { %v791_v22 = vld [vmem:[%s6981_s26 + $0xe30] sm:$0xff]  ;;  %4733 = vmatpush.msrb.mxu2 %v723_v44 }
 0x5aa   : > { %v911_v2 = vld [vmem:[%s6981_s26 + $0x11f0] sm:$0xff]  ;;  %4752 = vmatpush.msrb.mxu3 %v791_v22  ;;  %4734 = vmatmul.f32.vlgmr.msrb.gmra.mxu2 %v7143_v61 }
 0x5ab   : > { %v1039_v36 = vld [vmem:[%s6981_s26 + $0x15f0] sm:$0xff]  ;;  %4758 = vmatpush.msra.mxu0 %v911_v2 }
 0x5ac   : > { %v659_v35 = vld [vmem:[%s6981_s26 + $0xa10] sm:$0xff]  ;;  %4798 = vmatpush.msra.mxu2 %v1039_v36 }
 0x5ad   : > { %v787_v56 = vld [vmem:[%s6981_s26 + $0xe10] sm:$0xff]  ;;  %4713 = vmatpush.msrb.mxu1 %v659_v35 }
 0x5ae   : > { %v907_v17 = vld [vmem:[%s6981_s26 + $0x11d0] sm:$0xff]  ;;  %4753 = vmatpush.msrb.mxu3 %v787_v56  ;;  %4714 = vmatmul.f32.vlgmr.msrb.gmra.mxu1 %v7149_v0 }
 0x5af   : > { %v975_v24 = vld [vmem:[%s6981_s26 + $0x13f0] sm:$0xff]  ;;  %4759 = vmatpush.msra.mxu0 %v907_v17  ;;  %4754 = vmatmul.f32.vlgmr.msrb.gmra.mxu3 %v7147_v63 }
 0x5b0   : > { %v1035_v60 = vld [vmem:[%s6981_s26 + $0x15d0] sm:$0xff]  ;;  %4778 = vmatpush.msra.mxu1 %v975_v24 }
 0x5b1   : > { %v1103_v1 = vld [vmem:[%s6981_s26 + $0x17f0] sm:$0xff]  ;;  %4799 = vmatpush.msra.mxu2 %v1035_v60 }
 0x5b2   : > { %v903_v13 = vld [vmem:[%s6981_s26 + $0x11b0] sm:$0xff]  ;;  %4818 = vmatpush.msra.mxu3 %v1103_v1 }
 0x5b3   : > { %v971_v51 = vld [vmem:[%s6981_s26 + $0x13d0] sm:$0xff]  ;;  %4760 = vmatpush.msra.mxu0 %v903_v13 }
 0x5b4   : > { %v1031_v40 = vld [vmem:[%s6981_s26 + $0x15b0] sm:$0xff]  ;;  %4779 = vmatpush.msra.mxu1 %v971_v51 }
 0x5b5   : > { %v1099_v5 = vld [vmem:[%s6981_s26 + $0x17d0] sm:$0xff]  ;;  %4800 = vmatpush.msra.mxu2 %v1031_v40 }
 0x5b6   : > { %v899_v44 = vld [vmem:[%s6981_s26 + $0x1190] sm:$0xff]  ;;  %4819 = vmatpush.msra.mxu3 %v1099_v5 }
 0x5b7   : > { %v967_v22 = vld [vmem:[%s6981_s26 + $0x13b0] sm:$0xff]  ;;  %4761 = vmatpush.msra.mxu0 %v899_v44 }
 0x5b8   : > { %v1027_v33 = vld [vmem:[%s6981_s26 + $0x1590] sm:$0xff]  ;;  %4780 = vmatpush.msra.mxu1 %v967_v22 }
 0x5b9   : > { %v1095_v2 = vld [vmem:[%s6981_s26 + $0x17b0] sm:$0xff]  ;;  %4801 = vmatpush.msra.mxu2 %v1027_v33 }
 0x5ba   : > { %v895_v7 = vld [vmem:[%s6981_s26 + $0x1170] sm:$0xff]  ;;  %4820 = vmatpush.msra.mxu3 %v1095_v2 }
 0x5bb   : > { %v963_v36 = vld [vmem:[%s6981_s26 + $0x1390] sm:$0xff]  ;;  %4762 = vmatpush.msra.mxu0 %v895_v7 }
 0x5bc   : > { %v1023_v35 = vld [vmem:[%s6981_s26 + $0x1570] sm:$0xff]  ;;  %4781 = vmatpush.msra.mxu1 %v963_v36 }
 0x5bd   : > { %v1091_v56 = vld [vmem:[%s6981_s26 + $0x1790] sm:$0xff]  ;;  %4802 = vmatpush.msra.mxu2 %v1023_v35 }
 0x5be   : > { %v891_v30 = vld [vmem:[%s6981_s26 + $0x1150] sm:$0xff]  ;;  %4821 = vmatpush.msra.mxu3 %v1091_v56 }
 0x5bf   : > { %v959_v17 = vld [vmem:[%s6981_s26 + $0x1370] sm:$0xff]  ;;  %4763 = vmatpush.msra.mxu0 %v891_v30 }
 0x5c0   : > { %v1019_v24 = vld [vmem:[%s6981_s26 + $0x1550] sm:$0xff]  ;;  %4782 = vmatpush.msra.mxu1 %v959_v17 }
 0x5c1   : > { %v1087_v60 = vld [vmem:[%s6981_s26 + $0x1770] sm:$0xff]  ;;  %4803 = vmatpush.msra.mxu2 %v1019_v24 }
 0x5c2   : > { %v887_v1 = vld [vmem:[%s6981_s26 + $0x1130] sm:$0xff]  ;;  %4822 = vmatpush.msra.mxu3 %v1087_v60 }
 0x5c3   : > { %v955_v13 = vld [vmem:[%s6981_s26 + $0x1350] sm:$0xff]  ;;  %4764 = vmatpush.msra.mxu0 %v887_v1 }
 0x5c4   : > { %v1015_v51 = vld [vmem:[%s6981_s26 + $0x1530] sm:$0xff]  ;;  %4783 = vmatpush.msra.mxu1 %v955_v13 }
 0x5c5   : > { %v1083_v40 = vld [vmem:[%s6981_s26 + $0x1750] sm:$0xff]  ;;  %4804 = vmatpush.msra.mxu2 %v1015_v51 }
 0x5c6   : > { %v883_v5 = vld [vmem:[%s6981_s26 + $0x1110] sm:$0xff]  ;;  %4823 = vmatpush.msra.mxu3 %v1083_v40 }
 0x5c7   : > { %v951_v44 = vld [vmem:[%s6981_s26 + $0x1330] sm:$0xff]  ;;  %4765 = vmatpush.msra.mxu0 %v883_v5 }
 0x5c8   : > { %v1011_v22 = vld [vmem:[%s6981_s26 + $0x1510] sm:$0xff]  ;;  %4784 = vmatpush.msra.mxu1 %v951_v44 }
 0x5c9   : > { %v1079_v33 = vld [vmem:[%s6981_s26 + $0x1730] sm:$0xff]  ;;  %4805 = vmatpush.msra.mxu2 %v1011_v22 }
 0x5ca   : > { %v879_v2 = vld [vmem:[%s6981_s26 + $0x10f0] sm:$0xff]  ;;  %4824 = vmatpush.msra.mxu3 %v1079_v33 }
 0x5cb   : > { %v947_v7 = vld [vmem:[%s6981_s26 + $0x1310] sm:$0xff]  ;;  %4766 = vmatpush.msra.mxu0 %v879_v2 }
 0x5cc   : > { %v1007_v36 = vld [vmem:[%s6981_s26 + $0x14f0] sm:$0xff]  ;;  %4785 = vmatpush.msra.mxu1 %v947_v7  ;;  %v4455_v7 = vpop.f32.mrf.mxu0 }
 0x5cd   : > { %v1075_v35 = vld [vmem:[%s6981_s26 + $0x1710] sm:$0xff]  ;;  %4806 = vmatpush.msra.mxu2 %v1007_v36 }
 0x5ce   : > { %v875_v56 = vld [vmem:[%s6981_s26 + $0x10d0] sm:$0xff]  ;;  %4825 = vmatpush.msra.mxu3 %v1075_v35 }
 0x5cf   : > { %v943_v30 = vld [vmem:[%s6981_s26 + $0x12f0] sm:$0xff]  ;;  %4767 = vmatpush.msra.mxu0 %v875_v56  ;;  %v4456_v56 = vadd.f32 %v4455_v7, %v8651_v55 }
 0x5d0   : > { %v1003_v17 = vld [vmem:[%s6981_s26 + $0x14d0] sm:$0xff]  ;;  %4786 = vmatpush.msra.mxu1 %v943_v30 }
 0x5d1   : > { %v1071_v24 = vld [vmem:[%s6981_s26 + $0x16f0] sm:$0xff]  ;;  %4807 = vmatpush.msra.mxu2 %v1003_v17 }
 0x5d2   : > { %v871_v60 = vld [vmem:[%s6981_s26 + $0x10b0] sm:$0xff]  ;;  %4826 = vmatpush.msra.mxu3 %v1071_v24 }
 0x5d3   : > { %v939_v1 = vld [vmem:[%s6981_s26 + $0x12d0] sm:$0xff]  ;;  %4768 = vmatpush.msra.mxu0 %v871_v60 }
 0x5d4   : > { %v999_v13 = vld [vmem:[%s6981_s26 + $0x14b0] sm:$0xff]  ;;  %4787 = vmatpush.msra.mxu1 %v939_v1  ;;  %v4475_v1 = vpop.f32.mrf.mxu1 }
 0x5d5   : > { %v1067_v51 = vld [vmem:[%s6981_s26 + $0x16d0] sm:$0xff]  ;;  %4808 = vmatpush.msra.mxu2 %v999_v13  ;;  %v4476_v55 = vadd.f32 %v4475_v1, %v4456_v56 }
 0x5d6   : > { %v867_v40 = vld [vmem:[%s6981_s26 + $0x1090] sm:$0xff]  ;;  %4827 = vmatpush.msra.mxu3 %v1067_v51 }
 0x5d7   : > { %v935_v5 = vld [vmem:[%s6981_s26 + $0x12b0] sm:$0xff]  ;;  %4769 = vmatpush.msra.mxu0 %v867_v40 }
 0x5d8   : > { %v995_v44 = vld [vmem:[%s6981_s26 + $0x1490] sm:$0xff]  ;;  %4788 = vmatpush.msra.mxu1 %v935_v5 }
 0x5d9   : > { %v1063_v22 = vld [vmem:[%s6981_s26 + $0x16b0] sm:$0xff]  ;;  %4809 = vmatpush.msra.mxu2 %v995_v44 }
 0x5da   : > { %v863_v33 = vld [vmem:[%s6981_s26 + $0x1070] sm:$0xff]  ;;  %4828 = vmatpush.msra.mxu3 %v1063_v22 }
 0x5db   : > { %v931_v2 = vld [vmem:[%s6981_s26 + $0x1290] sm:$0xff]  ;;  %4770 = vmatpush.msra.mxu0 %v863_v33  ;;  %v4495_v33 = vpop.f32.mrf.mxu2 }
 0x5dc   : > { %v991_v36 = vld [vmem:[%s6981_s26 + $0x1470] sm:$0xff]  ;;  %4789 = vmatpush.msra.mxu1 %v931_v2 }
 0x5dd   : > { %v1059_v35 = vld [vmem:[%s6981_s26 + $0x1690] sm:$0xff]  ;;  %4810 = vmatpush.msra.mxu2 %v991_v36  ;;  %v4496_v36 = vadd.f32 %v4495_v33, %v4476_v55 }
 0x5de   : > { %v859_v30 = vld [vmem:[%s6981_s26 + $0x1050] sm:$0xff]  ;;  %4829 = vmatpush.msra.mxu3 %v1059_v35 }
 0x5df   : > { %v927_v17 = vld [vmem:[%s6981_s26 + $0x1270] sm:$0xff]  ;;  %4771 = vmatpush.msra.mxu0 %v859_v30  ;;  %v4515_v30 = vpop.f32.mrf.mxu3 }
 0x5e0   : > { %v987_v24 = vld [vmem:[%s6981_s26 + $0x1450] sm:$0xff]  ;;  %4790 = vmatpush.msra.mxu1 %v927_v17 }
 0x5e1   : > { %v1055_v60 = vld [vmem:[%s6981_s26 + $0x1670] sm:$0xff]  ;;  %4811 = vmatpush.msra.mxu2 %v987_v24 }
 0x5e2   : > { %v855_v13 = vld [vmem:[%s6981_s26 + $0x1030] sm:$0xff]  ;;  %4830 = vmatpush.msra.mxu3 %v1055_v60  ;;  %v8721_v60 = vadd.f32 %v4515_v30, %v4496_v36 }
 0x5e3   : > { %v923_v51 = vld [vmem:[%s6981_s26 + $0x1250] sm:$0xff]  ;;  %4772 = vmatpush.msra.mxu0 %v855_v13 }
 0x5e4   : > { %v983_v40 = vld [vmem:[%s6981_s26 + $0x1430] sm:$0xff]  ;;  %4791 = vmatpush.msra.mxu1 %v923_v51 }
 0x5e5   : > { %v1051_v5 = vld [vmem:[%s6981_s26 + $0x1650] sm:$0xff]  ;;  %4812 = vmatpush.msra.mxu2 %v983_v40 }
 0x5e6   : > { %v851_v44 = vld [vmem:[%s6981_s26 + $0x1010] sm:$0xff]  ;;  %4831 = vmatpush.msra.mxu3 %v1051_v5 }
 0x5e7   : > { %v919_v22 = vld [vmem:[%s6981_s26 + $0x1230] sm:$0xff]  ;;  %4773 = vmatpush.msra.mxu0 %v851_v44 }
 0x5e8   : > { %v979_v2 = vld [vmem:[%s6981_s26 + $0x1410] sm:$0xff]  ;;  %4792 = vmatpush.msra.mxu1 %v919_v22  ;;  %4774 = vmatmul.f32.vlgmr.msra.gmra.mxu0 %v7180_v26 }
 0x5e9   : > { %v1047_v7 = vld [vmem:[%s6981_s26 + $0x1630] sm:$0xff]  ;;  %4813 = vmatpush.msra.mxu2 %v979_v2 }
 0x5ea   : > { %v1167_v35 = vld [vmem:[%s6981_s26 + $0x19f0] sm:$0xff]  ;;  %4832 = vmatpush.msra.mxu3 %v1047_v7  ;;  %4814 = vmatmul.f32.vlgmr.msra.gmra.mxu2 %v7182_v27 }
 0x5eb   : > { %v1295_v56 = vld [vmem:[%s6981_s26 + $0x1df0] sm:$0xff]  ;;  %4838 = vmatpush.msrb.mxu0 %v1167_v35 }
 0x5ec   : > { %v915_v17 = vld [vmem:[%s6981_s26 + $0x1210] sm:$0xff]  ;;  %4878 = vmatpush.msrb.mxu2 %v1295_v56 }
 0x5ed   : > { %v1043_v24 = vld [vmem:[%s6981_s26 + $0x1610] sm:$0xff]  ;;  %4793 = vmatpush.msra.mxu1 %v915_v17 }
 0x5ee   : > { %v1163_v1 = vld [vmem:[%s6981_s26 + $0x19d0] sm:$0xff]  ;;  %4833 = vmatpush.msra.mxu3 %v1043_v24  ;;  %4794 = vmatmul.f32.vlgmr.msra.gmra.mxu1 %v7184_v28 }
 0x5ef   : > { %v1231_v13 = vld [vmem:[%s6981_s26 + $0x1bf0] sm:$0xff]  ;;  %4834 = vmatmul.f32.vlgmr.msra.gmra.mxu3 %v7188_v31  ;;  %4839 = vmatpush.msrb.mxu0 %v1163_v1 }
 0x5f0   : > { %v1291_v51 = vld [vmem:[%s6981_s26 + $0x1dd0] sm:$0xff]  ;;  %4858 = vmatpush.msrb.mxu1 %v1231_v13 }
 0x5f1   : > { %v1359_v55 = vld [vmem:[%s6981_s26 + $0x1ff0] sm:$0xff]  ;;  %4879 = vmatpush.msrb.mxu2 %v1291_v51 }
 0x5f2   : > { %v1159_v40 = vld [vmem:[%s6981_s26 + $0x19b0] sm:$0xff]  ;;  %4898 = vmatpush.msrb.mxu3 %v1359_v55 }
 0x5f3   : > { %v1227_v5 = vld [vmem:[%s6981_s26 + $0x1bd0] sm:$0xff]  ;;  %4840 = vmatpush.msrb.mxu0 %v1159_v40 }
 0x5f4   : > { %v1287_v44 = vld [vmem:[%s6981_s26 + $0x1db0] sm:$0xff]  ;;  %4859 = vmatpush.msrb.mxu1 %v1227_v5 }
 0x5f5   : > { %v1355_v22 = vld [vmem:[%s6981_s26 + $0x1fd0] sm:$0xff]  ;;  %4880 = vmatpush.msrb.mxu2 %v1287_v44 }
 0x5f6   : > { %v1155_v33 = vld [vmem:[%s6981_s26 + $0x1990] sm:$0xff]  ;;  %4899 = vmatpush.msrb.mxu3 %v1355_v22 }
 0x5f7   : > { %v1223_v2 = vld [vmem:[%s6981_s26 + $0x1bb0] sm:$0xff]  ;;  %4841 = vmatpush.msrb.mxu0 %v1155_v33 }
 0x5f8   : > { %v1283_v7 = vld [vmem:[%s6981_s26 + $0x1d90] sm:$0xff]  ;;  %4860 = vmatpush.msrb.mxu1 %v1223_v2 }
 0x5f9   : > { %v1351_v36 = vld [vmem:[%s6981_s26 + $0x1fb0] sm:$0xff]  ;;  %4881 = vmatpush.msrb.mxu2 %v1283_v7 }
 0x5fa   : > { %v1151_v35 = vld [vmem:[%s6981_s26 + $0x1970] sm:$0xff]  ;;  %4900 = vmatpush.msrb.mxu3 %v1351_v36 }
 0x5fb   : > { %v1219_v56 = vld [vmem:[%s6981_s26 + $0x1b90] sm:$0xff]  ;;  %4842 = vmatpush.msrb.mxu0 %v1151_v35 }
 0x5fc   : > { %v1279_v30 = vld [vmem:[%s6981_s26 + $0x1d70] sm:$0xff]  ;;  %4861 = vmatpush.msrb.mxu1 %v1219_v56 }
 0x5fd   : > { %v1347_v17 = vld [vmem:[%s6981_s26 + $0x1f90] sm:$0xff]  ;;  %4882 = vmatpush.msrb.mxu2 %v1279_v30 }
 0x5fe   : > { %v1147_v24 = vld [vmem:[%s6981_s26 + $0x1950] sm:$0xff]  ;;  %4901 = vmatpush.msrb.mxu3 %v1347_v17 }
 0x5ff   : > { %v1215_v1 = vld [vmem:[%s6981_s26 + $0x1b70] sm:$0xff]  ;;  %4843 = vmatpush.msrb.mxu0 %v1147_v24 }
 0x600   : > { %v1275_v13 = vld [vmem:[%s6981_s26 + $0x1d50] sm:$0xff]  ;;  %4862 = vmatpush.msrb.mxu1 %v1215_v1 }
 0x601   : > { %v1343_v51 = vld [vmem:[%s6981_s26 + $0x1f70] sm:$0xff]  ;;  %4883 = vmatpush.msrb.mxu2 %v1275_v13 }
 0x602   : > { %v1143_v55 = vld [vmem:[%s6981_s26 + $0x1930] sm:$0xff]  ;;  %4902 = vmatpush.msrb.mxu3 %v1343_v51 }
 0x603   : > { %v1211_v40 = vld [vmem:[%s6981_s26 + $0x1b50] sm:$0xff]  ;;  %4844 = vmatpush.msrb.mxu0 %v1143_v55 }
 0x604   : > { %v1271_v5 = vld [vmem:[%s6981_s26 + $0x1d30] sm:$0xff]  ;;  %4863 = vmatpush.msrb.mxu1 %v1211_v40 }
 0x605   : > { %v1339_v44 = vld [vmem:[%s6981_s26 + $0x1f50] sm:$0xff]  ;;  %4884 = vmatpush.msrb.mxu2 %v1271_v5 }
 0x606   : > { %v1139_v22 = vld [vmem:[%s6981_s26 + $0x1910] sm:$0xff]  ;;  %4903 = vmatpush.msrb.mxu3 %v1339_v44 }
 0x607   : > { %v1207_v33 = vld [vmem:[%s6981_s26 + $0x1b30] sm:$0xff]  ;;  %4845 = vmatpush.msrb.mxu0 %v1139_v22 }
 0x608   : > { %v1267_v2 = vld [vmem:[%s6981_s26 + $0x1d10] sm:$0xff]  ;;  %4864 = vmatpush.msrb.mxu1 %v1207_v33 }
 0x609   : > { %v1335_v7 = vld [vmem:[%s6981_s26 + $0x1f30] sm:$0xff]  ;;  %4885 = vmatpush.msrb.mxu2 %v1267_v2 }
 0x60a   : > { %v1135_v36 = vld [vmem:[%s6981_s26 + $0x18f0] sm:$0xff]  ;;  %4904 = vmatpush.msrb.mxu3 %v1335_v7 }
 0x60b   : > { %v1203_v35 = vld [vmem:[%s6981_s26 + $0x1b10] sm:$0xff]  ;;  %4846 = vmatpush.msrb.mxu0 %v1135_v36 }
 0x60c   : > { %v1263_v56 = vld [vmem:[%s6981_s26 + $0x1cf0] sm:$0xff]  ;;  %4865 = vmatpush.msrb.mxu1 %v1203_v35  ;;  %v4535_v35 = vpop.f32.mrf.mxu0 }
 0x60d   : > { %v1331_v30 = vld [vmem:[%s6981_s26 + $0x1f10] sm:$0xff]  ;;  %4886 = vmatpush.msrb.mxu2 %v1263_v56 }
 0x60e   : > { %v1131_v17 = vld [vmem:[%s6981_s26 + $0x18d0] sm:$0xff]  ;;  %4905 = vmatpush.msrb.mxu3 %v1331_v30 }
 0x60f   : > { %v1199_v24 = vld [vmem:[%s6981_s26 + $0x1af0] sm:$0xff]  ;;  %4847 = vmatpush.msrb.mxu0 %v1131_v17  ;;  %v4536_v17 = vadd.f32 %v4535_v35, %v8721_v60 }
 0x610   : > { %v1259_v1 = vld [vmem:[%s6981_s26 + $0x1cd0] sm:$0xff]  ;;  %4866 = vmatpush.msrb.mxu1 %v1199_v24 }
 0x611   : > { %v1327_v13 = vld [vmem:[%s6981_s26 + $0x1ef0] sm:$0xff]  ;;  %4887 = vmatpush.msrb.mxu2 %v1259_v1 }
 0x612   : > { %v1127_v51 = vld [vmem:[%s6981_s26 + $0x18b0] sm:$0xff]  ;;  %4906 = vmatpush.msrb.mxu3 %v1327_v13 }
 0x613   : > { %v1195_v55 = vld [vmem:[%s6981_s26 + $0x1ad0] sm:$0xff]  ;;  %4848 = vmatpush.msrb.mxu0 %v1127_v51 }
 0x614   : > { %v1255_v40 = vld [vmem:[%s6981_s26 + $0x1cb0] sm:$0xff]  ;;  %4867 = vmatpush.msrb.mxu1 %v1195_v55  ;;  %v4555_v55 = vpop.f32.mrf.mxu1 }
 0x615   : > { %v1323_v5 = vld [vmem:[%s6981_s26 + $0x1ed0] sm:$0xff]  ;;  %4888 = vmatpush.msrb.mxu2 %v1255_v40 }
 0x616   : > { %v1123_v44 = vld [vmem:[%s6981_s26 + $0x1890] sm:$0xff]  ;;  %4907 = vmatpush.msrb.mxu3 %v1323_v5 }
 0x617   : > { %v1191_v22 = vld [vmem:[%s6981_s26 + $0x1ab0] sm:$0xff]  ;;  %4849 = vmatpush.msrb.mxu0 %v1123_v44 }
 0x618   : > { %v1251_v33 = vld [vmem:[%s6981_s26 + $0x1c90] sm:$0xff]  ;;  %4868 = vmatpush.msrb.mxu1 %v1191_v22  ;;  %v4556_v22 = vadd.f32 %v4555_v55, %v4536_v17 }
 0x619   : > { %v1319_v2 = vld [vmem:[%s6981_s26 + $0x1eb0] sm:$0xff]  ;;  %4889 = vmatpush.msrb.mxu2 %v1251_v33 }
 0x61a   : > { %v1119_v7 = vld [vmem:[%s6981_s26 + $0x1870] sm:$0xff]  ;;  %4908 = vmatpush.msrb.mxu3 %v1319_v2 }
 0x61b   : > { %v1187_v36 = vld [vmem:[%s6981_s26 + $0x1a90] sm:$0xff]  ;;  %4850 = vmatpush.msrb.mxu0 %v1119_v7  ;;  %v4575_v7 = vpop.f32.mrf.mxu2 }
 0x61c   : > { %v1247_v56 = vld [vmem:[%s6981_s26 + $0x1c70] sm:$0xff]  ;;  %4869 = vmatpush.msrb.mxu1 %v1187_v36 }
 0x61d   : > { %v1315_v30 = vld [vmem:[%s6981_s26 + $0x1e90] sm:$0xff]  ;;  %4890 = vmatpush.msrb.mxu2 %v1247_v56  ;;  %v4576_v56 = vadd.f32 %v4575_v7, %v4556_v22 }
 0x61e   : > { %v1115_v24 = vld [vmem:[%s6981_s26 + $0x1850] sm:$0xff]  ;;  %4909 = vmatpush.msrb.mxu3 %v1315_v30 }
 0x61f   : > { %v1183_v1 = vld [vmem:[%s6981_s26 + $0x1a70] sm:$0xff]  ;;  %4851 = vmatpush.msrb.mxu0 %v1115_v24  ;;  %v4595_v24 = vpop.f32.mrf.mxu3 }
 0x620   : > { %v1243_v13 = vld [vmem:[%s6981_s26 + $0x1c50] sm:$0xff]  ;;  %4870 = vmatpush.msrb.mxu1 %v1183_v1 }
 0x621   : > { %v1311_v51 = vld [vmem:[%s6981_s26 + $0x1e70] sm:$0xff]  ;;  %4891 = vmatpush.msrb.mxu2 %v1243_v13 }
 0x622   : > { %v1111_v40 = vld [vmem:[%s6981_s26 + $0x1830] sm:$0xff]  ;;  %4910 = vmatpush.msrb.mxu3 %v1311_v51  ;;  %v8792_v51 = vadd.f32 %v4595_v24, %v4576_v56 }
 0x623   : > { %v1179_v5 = vld [vmem:[%s6981_s26 + $0x1a50] sm:$0xff]  ;;  %4852 = vmatpush.msrb.mxu0 %v1111_v40 }
 0x624   : > { %v1239_v60 = vld [vmem:[%s6981_s26 + $0x1c30] sm:$0xff]  ;;  %4871 = vmatpush.msrb.mxu1 %v1179_v5 }
 0x625   : > { %v1307_v44 = vld [vmem:[%s6981_s26 + $0x1e50] sm:$0xff]  ;;  %4892 = vmatpush.msrb.mxu2 %v1239_v60 }
 0x626   : > { %v1107_v33 = vld [vmem:[%s6981_s26 + $0x1810] sm:$0xff]  ;;  %4911 = vmatpush.msrb.mxu3 %v1307_v44 }
 0x627   : > { %v1175_v2 = vld [vmem:[%s6981_s26 + $0x1a30] sm:$0xff]  ;;  %4853 = vmatpush.msrb.mxu0 %v1107_v33 }
 0x628   : > { %v1235_v36 = vld [vmem:[%s6981_s26 + $0x1c10] sm:$0xff]  ;;  %4872 = vmatpush.msrb.mxu1 %v1175_v2  ;;  %4854 = vmatmul.f32.vlgmr.msrb.gmra.mxu0 %v7259_v41 }
 0x629   : > { %v1303_v35 = vld [vmem:[%s6981_s26 + $0x1e30] sm:$0xff]  ;;  %4893 = vmatpush.msrb.mxu2 %v1235_v36 }
 0x62a   : > { %v1423_v30 = vld [vmem:[%s6981_s26 + $0x21f0] sm:$0xff]  ;;  %4912 = vmatpush.msrb.mxu3 %v1303_v35  ;;  %4894 = vmatmul.f32.vlgmr.msrb.gmra.mxu2 %v7261_v42 }
 0x62b   : > { %v1551_v17 = vld [vmem:[%s6981_s26 + $0x25f0] sm:$0xff]  ;;  %4918 = vmatpush.msra.mxu0 %v1423_v30 }
 0x62c   : > { %v1171_v1 = vld [vmem:[%s6981_s26 + $0x1a10] sm:$0xff]  ;;  %4958 = vmatpush.msra.mxu2 %v1551_v17 }
 0x62d   : > { %v1299_v13 = vld [vmem:[%s6981_s26 + $0x1e10] sm:$0xff]  ;;  %4873 = vmatpush.msrb.mxu1 %v1171_v1 }
 0x62e   : > { %v1419_v55 = vld [vmem:[%s6981_s26 + $0x21d0] sm:$0xff]  ;;  %4913 = vmatpush.msrb.mxu3 %v1299_v13  ;;  %4874 = vmatmul.f32.vlgmr.msrb.gmra.mxu1 %v7263_v43 }
 0x62f   : > { %v1487_v40 = vld [vmem:[%s6981_s26 + $0x23f0] sm:$0xff]  ;;  %4914 = vmatmul.f32.vlgmr.msrb.gmra.mxu3 %v7267_v50  ;;  %4919 = vmatpush.msra.mxu0 %v1419_v55 }
 0x630   : > { %v1547_v5 = vld [vmem:[%s6981_s26 + $0x25d0] sm:$0xff]  ;;  %4938 = vmatpush.msra.mxu1 %v1487_v40 }
 0x631   : > { %v1615_v60 = vld [vmem:[%s6981_s26 + $0x27f0] sm:$0xff]  ;;  %4959 = vmatpush.msra.mxu2 %v1547_v5 }
 0x632   : > { %v1415_v44 = vld [vmem:[%s6981_s26 + $0x21b0] sm:$0xff]  ;;  %4978 = vmatpush.msra.mxu3 %v1615_v60 }
 0x633   : > { %v1483_v22 = vld [vmem:[%s6981_s26 + $0x23d0] sm:$0xff]  ;;  %4920 = vmatpush.msra.mxu0 %v1415_v44 }
 0x634   : > { %v1543_v33 = vld [vmem:[%s6981_s26 + $0x25b0] sm:$0xff]  ;;  %4939 = vmatpush.msra.mxu1 %v1483_v22 }
 0x635   : > { %v1611_v2 = vld [vmem:[%s6981_s26 + $0x27d0] sm:$0xff]  ;;  %4960 = vmatpush.msra.mxu2 %v1543_v33 }
 0x636   : > { %v1411_v7 = vld [vmem:[%s6981_s26 + $0x2190] sm:$0xff]  ;;  %4979 = vmatpush.msra.mxu3 %v1611_v2 }
 0x637   : > { %v1479_v36 = vld [vmem:[%s6981_s26 + $0x23b0] sm:$0xff]  ;;  %4921 = vmatpush.msra.mxu0 %v1411_v7 }
 0x638   : > { %v1539_v35 = vld [vmem:[%s6981_s26 + $0x2590] sm:$0xff]  ;;  %4940 = vmatpush.msra.mxu1 %v1479_v36 }
 0x639   : > { %v1607_v56 = vld [vmem:[%s6981_s26 + $0x27b0] sm:$0xff]  ;;  %4961 = vmatpush.msra.mxu2 %v1539_v35 }
 0x63a   : > { %v1407_v30 = vld [vmem:[%s6981_s26 + $0x2170] sm:$0xff]  ;;  %4980 = vmatpush.msra.mxu3 %v1607_v56 }
 0x63b   : > { %v1475_v17 = vld [vmem:[%s6981_s26 + $0x2390] sm:$0xff]  ;;  %4922 = vmatpush.msra.mxu0 %v1407_v30 }
 0x63c   : > { %v1535_v24 = vld [vmem:[%s6981_s26 + $0x2570] sm:$0xff]  ;;  %4941 = vmatpush.msra.mxu1 %v1475_v17 }
 0x63d   : > { %v1603_v1 = vld [vmem:[%s6981_s26 + $0x2790] sm:$0xff]  ;;  %4962 = vmatpush.msra.mxu2 %v1535_v24 }
 0x63e   : > { %v1403_v13 = vld [vmem:[%s6981_s26 + $0x2150] sm:$0xff]  ;;  %4981 = vmatpush.msra.mxu3 %v1603_v1 }
 0x63f   : > { %v1471_v55 = vld [vmem:[%s6981_s26 + $0x2370] sm:$0xff]  ;;  %4923 = vmatpush.msra.mxu0 %v1403_v13 }
 0x640   : > { %v1531_v40 = vld [vmem:[%s6981_s26 + $0x2550] sm:$0xff]  ;;  %4942 = vmatpush.msra.mxu1 %v1471_v55 }
 0x641   : > { %v1599_v5 = vld [vmem:[%s6981_s26 + $0x2770] sm:$0xff]  ;;  %4963 = vmatpush.msra.mxu2 %v1531_v40 }
 0x642   : > { %v1399_v60 = vld [vmem:[%s6981_s26 + $0x2130] sm:$0xff]  ;;  %4982 = vmatpush.msra.mxu3 %v1599_v5 }
 0x643   : > { %v1467_v44 = vld [vmem:[%s6981_s26 + $0x2350] sm:$0xff]  ;;  %4924 = vmatpush.msra.mxu0 %v1399_v60 }
 0x644   : > { %v1527_v22 = vld [vmem:[%s6981_s26 + $0x2530] sm:$0xff]  ;;  %4943 = vmatpush.msra.mxu1 %v1467_v44 }
 0x645   : > { %v1595_v33 = vld [vmem:[%s6981_s26 + $0x2750] sm:$0xff]  ;;  %4964 = vmatpush.msra.mxu2 %v1527_v22 }
 0x646   : > { %v1395_v2 = vld [vmem:[%s6981_s26 + $0x2110] sm:$0xff]  ;;  %4983 = vmatpush.msra.mxu3 %v1595_v33 }
 0x647   : > { %v1463_v7 = vld [vmem:[%s6981_s26 + $0x2330] sm:$0xff]  ;;  %4925 = vmatpush.msra.mxu0 %v1395_v2 }
 0x648   : > { %v1523_v36 = vld [vmem:[%s6981_s26 + $0x2510] sm:$0xff]  ;;  %4944 = vmatpush.msra.mxu1 %v1463_v7 }
 0x649   : > { %v1591_v35 = vld [vmem:[%s6981_s26 + $0x2730] sm:$0xff]  ;;  %4965 = vmatpush.msra.mxu2 %v1523_v36 }
 0x64a   : > { %v1391_v56 = vld [vmem:[%s6981_s26 + $0x20f0] sm:$0xff]  ;;  %4984 = vmatpush.msra.mxu3 %v1591_v35 }
 0x64b   : > { %v1459_v30 = vld [vmem:[%s6981_s26 + $0x2310] sm:$0xff]  ;;  %4926 = vmatpush.msra.mxu0 %v1391_v56 }
 0x64c   : > { %v1519_v17 = vld [vmem:[%s6981_s26 + $0x24f0] sm:$0xff]  ;;  %4945 = vmatpush.msra.mxu1 %v1459_v30 }
 0x64d   : > { %v1587_v24 = vld [vmem:[%s6981_s26 + $0x2710] sm:$0xff]  ;;  %4966 = vmatpush.msra.mxu2 %v1519_v17 }
 0x64e   : > { %v1387_v1 = vld [vmem:[%s6981_s26 + $0x20d0] sm:$0xff]  ;;  %4985 = vmatpush.msra.mxu3 %v1587_v24 }
 0x64f   : > { %v1455_v13 = vld [vmem:[%s6981_s26 + $0x22f0] sm:$0xff]  ;;  %4927 = vmatpush.msra.mxu0 %v1387_v1 }
 0x650   : > { %v1515_v55 = vld [vmem:[%s6981_s26 + $0x24d0] sm:$0xff]  ;;  %4946 = vmatpush.msra.mxu1 %v1455_v13 }
 0x651   : > { %v1583_v40 = vld [vmem:[%s6981_s26 + $0x26f0] sm:$0xff]  ;;  %4967 = vmatpush.msra.mxu2 %v1515_v55 }
 0x652   : > { %v1383_v5 = vld [vmem:[%s6981_s26 + $0x20b0] sm:$0xff]  ;;  %4986 = vmatpush.msra.mxu3 %v1583_v40 }
 0x653   : > { %v1451_v60 = vld [vmem:[%s6981_s26 + $0x22d0] sm:$0xff]  ;;  %4928 = vmatpush.msra.mxu0 %v1383_v5 }
 0x654   : > { %v1511_v44 = vld [vmem:[%s6981_s26 + $0x24b0] sm:$0xff]  ;;  %4947 = vmatpush.msra.mxu1 %v1451_v60 }
 0x655   : > { %v1579_v22 = vld [vmem:[%s6981_s26 + $0x26d0] sm:$0xff]  ;;  %4968 = vmatpush.msra.mxu2 %v1511_v44 }
 0x656   : > { %v1379_v33 = vld [vmem:[%s6981_s26 + $0x2090] sm:$0xff]  ;;  %4987 = vmatpush.msra.mxu3 %v1579_v22 }
 0x657   : > { %v1447_v2 = vld [vmem:[%s6981_s26 + $0x22b0] sm:$0xff]  ;;  %4929 = vmatpush.msra.mxu0 %v1379_v33 }
 0x658   : > { %v1507_v7 = vld [vmem:[%s6981_s26 + $0x2490] sm:$0xff]  ;;  %4948 = vmatpush.msra.mxu1 %v1447_v2 }
 0x659   : > { %v1575_v36 = vld [vmem:[%s6981_s26 + $0x26b0] sm:$0xff]  ;;  %4969 = vmatpush.msra.mxu2 %v1507_v7 }
 0x65a   : > { %v1375_v35 = vld [vmem:[%s6981_s26 + $0x2070] sm:$0xff]  ;;  %4988 = vmatpush.msra.mxu3 %v1575_v36 }
 0x65b   : > { %v1443_v56 = vld [vmem:[%s6981_s26 + $0x2290] sm:$0xff]  ;;  %4930 = vmatpush.msra.mxu0 %v1375_v35 }
 0x65c   : > { %v1503_v30 = vld [vmem:[%s6981_s26 + $0x2470] sm:$0xff]  ;;  %4949 = vmatpush.msra.mxu1 %v1443_v56 }
 0x65d   : > { %v1571_v17 = vld [vmem:[%s6981_s26 + $0x2690] sm:$0xff]  ;;  %4970 = vmatpush.msra.mxu2 %v1503_v30 }
 0x65e   : > { %v1371_v24 = vld [vmem:[%s6981_s26 + $0x2050] sm:$0xff]  ;;  %4989 = vmatpush.msra.mxu3 %v1571_v17 }
 0x65f   : > { %v1439_v1 = vld [vmem:[%s6981_s26 + $0x2270] sm:$0xff]  ;;  %4931 = vmatpush.msra.mxu0 %v1371_v24 }
 0x660   : > { %v1499_v13 = vld [vmem:[%s6981_s26 + $0x2450] sm:$0xff]  ;;  %4950 = vmatpush.msra.mxu1 %v1439_v1 }
 0x661   : > { %v1567_v55 = vld [vmem:[%s6981_s26 + $0x2670] sm:$0xff]  ;;  %4971 = vmatpush.msra.mxu2 %v1499_v13 }
 0x662   : > { %v1367_v40 = vld [vmem:[%s6981_s26 + $0x2030] sm:$0xff]  ;;  %4990 = vmatpush.msra.mxu3 %v1567_v55 }
 0x663   : > { %v1435_v5 = vld [vmem:[%s6981_s26 + $0x2250] sm:$0xff]  ;;  %4932 = vmatpush.msra.mxu0 %v1367_v40 }
 0x664   : > { %v1495_v60 = vld [vmem:[%s6981_s26 + $0x2430] sm:$0xff]  ;;  %4951 = vmatpush.msra.mxu1 %v1435_v5 }
 0x665   : > { %v1563_v44 = vld [vmem:[%s6981_s26 + $0x2650] sm:$0xff]  ;;  %4972 = vmatpush.msra.mxu2 %v1495_v60 }
 0x666   : > { %v1363_v22 = vld [vmem:[%s6981_s26 + $0x2010] sm:$0xff]  ;;  %4991 = vmatpush.msra.mxu3 %v1563_v44 }
 0x667   : > { %v1431_v33 = vld [vmem:[%s6981_s26 + $0x2230] sm:$0xff]  ;;  %4933 = vmatpush.msra.mxu0 %v1363_v22 }
 0x668   : > { %v1491_v2 = vld [vmem:[%s6981_s26 + $0x2410] sm:$0xff]  ;;  %4952 = vmatpush.msra.mxu1 %v1431_v33  ;;  %4934 = vmatmul.f32.vlgmr.msra.gmra.mxu0 %v7387_v9 }
 0x669   : > { %v1559_v7 = vld [vmem:[%s6981_s26 + $0x2630] sm:$0xff]  ;;  %4973 = vmatpush.msra.mxu2 %v1491_v2 }
 0x66a   : > { %v1679_v36 = vld [vmem:[%s6981_s26 + $0x29f0] sm:$0xff]  ;;  %4992 = vmatpush.msra.mxu3 %v1559_v7  ;;  %4974 = vmatmul.f32.vlgmr.msra.gmra.mxu2 %v7389_v10 }
 0x66b   : > { %v1807_v35 = vld [vmem:[%s6981_s26 + $0x2df0] sm:$0xff]  ;;  %4998 = vmatpush.msrb.mxu0 %v1679_v36 }
 0x66c   : > { %v1427_v56 = vld [vmem:[%s6981_s26 + $0x2210] sm:$0xff]  ;;  %5038 = vmatpush.msrb.mxu2 %v1807_v35 }
 0x66d   : > { %v1555_v30 = vld [vmem:[%s6981_s26 + $0x2610] sm:$0xff]  ;;  %4953 = vmatpush.msra.mxu1 %v1427_v56 }
 0x66e   : > { %v1675_v17 = vld [vmem:[%s6981_s26 + $0x29d0] sm:$0xff]  ;;  %4993 = vmatpush.msra.mxu3 %v1555_v30  ;;  %4954 = vmatmul.f32.vlgmr.msra.gmra.mxu1 %v7397_v15 }
 0x66f   : > { %v1743_v24 = vld [vmem:[%s6981_s26 + $0x2bf0] sm:$0xff]  ;;  %4994 = vmatmul.f32.vlgmr.msra.gmra.mxu3 %v7399_v16  ;;  %4999 = vmatpush.msrb.mxu0 %v1675_v17 }
 0x670   : > { %v1803_v1 = vld [vmem:[%s6981_s26 + $0x2dd0] sm:$0xff]  ;;  %5018 = vmatpush.msrb.mxu1 %v1743_v24 }
 0x671   : > { %v1871_v13 = vld [vmem:[%s6981_s26 + $0x2ff0] sm:$0xff]  ;;  %5039 = vmatpush.msrb.mxu2 %v1803_v1 }
 0x672   : > { %v1671_v55 = vld [vmem:[%s6981_s26 + $0x29b0] sm:$0xff]  ;;  %5058 = vmatpush.msrb.mxu3 %v1871_v13 }
 0x673   : > { %v1739_v40 = vld [vmem:[%s6981_s26 + $0x2bd0] sm:$0xff]  ;;  %5000 = vmatpush.msrb.mxu0 %v1671_v55 }
 0x674   : > { %v1799_v5 = vld [vmem:[%s6981_s26 + $0x2db0] sm:$0xff]  ;;  %5019 = vmatpush.msrb.mxu1 %v1739_v40 }
 0x675   : > { %v1867_v60 = vld [vmem:[%s6981_s26 + $0x2fd0] sm:$0xff]  ;;  %5040 = vmatpush.msrb.mxu2 %v1799_v5 }
 0x676   : > { %v1667_v44 = vld [vmem:[%s6981_s26 + $0x2990] sm:$0xff]  ;;  %5059 = vmatpush.msrb.mxu3 %v1867_v60 }
 0x677   : > { %v1735_v22 = vld [vmem:[%s6981_s26 + $0x2bb0] sm:$0xff]  ;;  %5001 = vmatpush.msrb.mxu0 %v1667_v44 }
 0x678   : > { %v1795_v33 = vld [vmem:[%s6981_s26 + $0x2d90] sm:$0xff]  ;;  %5020 = vmatpush.msrb.mxu1 %v1735_v22 }
 0x679   : > { %v1863_v2 = vld [vmem:[%s6981_s26 + $0x2fb0] sm:$0xff]  ;;  %5041 = vmatpush.msrb.mxu2 %v1795_v33 }
 0x67a   : > { %v1663_v7 = vld [vmem:[%s6981_s26 + $0x2970] sm:$0xff]  ;;  %5060 = vmatpush.msrb.mxu3 %v1863_v2 }
 0x67b   : > { %v1731_v36 = vld [vmem:[%s6981_s26 + $0x2b90] sm:$0xff]  ;;  %5002 = vmatpush.msrb.mxu0 %v1663_v7 }
 0x67c   : > { %v1791_v35 = vld [vmem:[%s6981_s26 + $0x2d70] sm:$0xff]  ;;  %5021 = vmatpush.msrb.mxu1 %v1731_v36 }
 0x67d   : > { %v1859_v56 = vld [vmem:[%s6981_s26 + $0x2f90] sm:$0xff]  ;;  %5042 = vmatpush.msrb.mxu2 %v1791_v35 }
 0x67e   : > { %v1659_v30 = vld [vmem:[%s6981_s26 + $0x2950] sm:$0xff]  ;;  %5061 = vmatpush.msrb.mxu3 %v1859_v56 }
 0x67f   : > { %v1727_v17 = vld [vmem:[%s6981_s26 + $0x2b70] sm:$0xff]  ;;  %5003 = vmatpush.msrb.mxu0 %v1659_v30 }
 0x680   : > { %v1787_v24 = vld [vmem:[%s6981_s26 + $0x2d50] sm:$0xff]  ;;  %5022 = vmatpush.msrb.mxu1 %v1727_v17 }
 0x681   : > { %v1855_v1 = vld [vmem:[%s6981_s26 + $0x2f70] sm:$0xff]  ;;  %5043 = vmatpush.msrb.mxu2 %v1787_v24 }
 0x682   : > { %v1655_v13 = vld [vmem:[%s6981_s26 + $0x2930] sm:$0xff]  ;;  %5062 = vmatpush.msrb.mxu3 %v1855_v1 }
 0x683   : > { %v1723_v55 = vld [vmem:[%s6981_s26 + $0x2b50] sm:$0xff]  ;;  %5004 = vmatpush.msrb.mxu0 %v1655_v13 }
 0x684   : > { %v1783_v40 = vld [vmem:[%s6981_s26 + $0x2d30] sm:$0xff]  ;;  %5023 = vmatpush.msrb.mxu1 %v1723_v55 }
 0x685   : > { %v1851_v5 = vld [vmem:[%s6981_s26 + $0x2f50] sm:$0xff]  ;;  %5044 = vmatpush.msrb.mxu2 %v1783_v40 }
 0x686   : > { %v1651_v60 = vld [vmem:[%s6981_s26 + $0x2910] sm:$0xff]  ;;  %5063 = vmatpush.msrb.mxu3 %v1851_v5 }
 0x687   : > { %v1719_v44 = vld [vmem:[%s6981_s26 + $0x2b30] sm:$0xff]  ;;  %5005 = vmatpush.msrb.mxu0 %v1651_v60 }
 0x688   : > { %v1779_v22 = vld [vmem:[%s6981_s26 + $0x2d10] sm:$0xff]  ;;  %5024 = vmatpush.msrb.mxu1 %v1719_v44  ;;  %v4615_v44 = vpop.f32.mrf.mxu0 }
 0x689   : > { %v1847_v33 = vld [vmem:[%s6981_s26 + $0x2f30] sm:$0xff]  ;;  %5045 = vmatpush.msrb.mxu2 %v1779_v22 }
 0x68a   : > { %v1647_v2 = vld [vmem:[%s6981_s26 + $0x28f0] sm:$0xff]  ;;  %5064 = vmatpush.msrb.mxu3 %v1847_v33 }
 0x68b   : > { %v1715_v7 = vld [vmem:[%s6981_s26 + $0x2b10] sm:$0xff]  ;;  %5006 = vmatpush.msrb.mxu0 %v1647_v2 }
 0x68c   : > { %v1775_v36 = vld [vmem:[%s6981_s26 + $0x2cf0] sm:$0xff]  ;;  %5025 = vmatpush.msrb.mxu1 %v1715_v7 }
 0x68d   : > { %v1843_v35 = vld [vmem:[%s6981_s26 + $0x2f10] sm:$0xff]  ;;  %5046 = vmatpush.msrb.mxu2 %v1775_v36 }
 0x68e   : > { %v1643_v56 = vld [vmem:[%s6981_s26 + $0x28d0] sm:$0xff]  ;;  %5065 = vmatpush.msrb.mxu3 %v1843_v35 }
 0x68f   : > { %v1711_v30 = vld [vmem:[%s6981_s26 + $0x2af0] sm:$0xff]  ;;  %5007 = vmatpush.msrb.mxu0 %v1643_v56  ;;  %v4635_v56 = vpop.f32.mrf.mxu1 }
 0x690   : > { %v1771_v17 = vld [vmem:[%s6981_s26 + $0x2cd0] sm:$0xff]  ;;  %5026 = vmatpush.msrb.mxu1 %v1711_v30 }
 0x691   : > { %v1839_v24 = vld [vmem:[%s6981_s26 + $0x2ef0] sm:$0xff]  ;;  %5047 = vmatpush.msrb.mxu2 %v1771_v17 }
 0x692   : > { %v1639_v1 = vld [vmem:[%s6981_s26 + $0x28b0] sm:$0xff]  ;;  %5066 = vmatpush.msrb.mxu3 %v1839_v24  ;;  %v4636_v24 = vadd.f32 %v4635_v56, %v4615_v44  ;;  %v4675_v44 = vpop.f32.mrf.mxu3 }
 0x693   : > { %v1707_v13 = vld [vmem:[%s6981_s26 + $0x2ad0] sm:$0xff]  ;;  %5008 = vmatpush.msrb.mxu0 %v1639_v1  ;;  %v4655_v1 = vpop.f32.mrf.mxu2 }
 0x694   : > { %v1767_v55 = vld [vmem:[%s6981_s26 + $0x2cb0] sm:$0xff]  ;;  %5027 = vmatpush.msrb.mxu1 %v1707_v13 }
 0x695   : > { %v1835_v40 = vld [vmem:[%s6981_s26 + $0x2ed0] sm:$0xff]  ;;  %5048 = vmatpush.msrb.mxu2 %v1767_v55 }
 0x696   : > { %v1635_v5 = vld [vmem:[%s6981_s26 + $0x2890] sm:$0xff]  ;;  %5067 = vmatpush.msrb.mxu3 %v1835_v40 }
 0x697   : > { %v1703_v60 = vld [vmem:[%s6981_s26 + $0x2ab0] sm:$0xff]  ;;  %5009 = vmatpush.msrb.mxu0 %v1635_v5 }
 0x698   : > { %v1763_v22 = vld [vmem:[%s6981_s26 + $0x2c90] sm:$0xff]  ;;  %5028 = vmatpush.msrb.mxu1 %v1703_v60  ;;  %v4656_v60 = vadd.f32 %v4655_v1, %v4636_v24 }
 0x699   : > { %v1831_v33 = vld [vmem:[%s6981_s26 + $0x2eb0] sm:$0xff]  ;;  %5049 = vmatpush.msrb.mxu2 %v1763_v22 }
 0x69a   : > { %v1631_v2 = vld [vmem:[%s6981_s26 + $0x2870] sm:$0xff]  ;;  %5068 = vmatpush.msrb.mxu3 %v1831_v33  ;;  %v4676_v56 = vadd.f32 %v4675_v44, %v4656_v60 }
 0x69b   : > { %v1699_v7 = vld [vmem:[%s6981_s26 + $0x2a90] sm:$0xff]  ;;  %5010 = vmatpush.msrb.mxu0 %v1631_v2 }
 0x69c   : > { %v1759_v36 = vld [vmem:[%s6981_s26 + $0x2c70] sm:$0xff]  ;;  %5029 = vmatpush.msrb.mxu1 %v1699_v7 }
 0x69d   : > { %v1827_v35 = vld [vmem:[%s6981_s26 + $0x2e90] sm:$0xff]  ;;  %5050 = vmatpush.msrb.mxu2 %v1759_v36 }
 0x69e   : > { %v1627_v30 = vld [vmem:[%s6981_s26 + $0x2850] sm:$0xff]  ;;  %5069 = vmatpush.msrb.mxu3 %v1827_v35 }
 0x69f   : > { %v1695_v17 = vld [vmem:[%s6981_s26 + $0x2a70] sm:$0xff]  ;;  %5011 = vmatpush.msrb.mxu0 %v1627_v30  ;;  %v4695_v30 = vpop.f32.mrf.mxu0 }
 0x6a0   : > { %v1755_v13 = vld [vmem:[%s6981_s26 + $0x2c50] sm:$0xff]  ;;  %5030 = vmatpush.msrb.mxu1 %v1695_v17  ;;  %v4696_v1 = vadd.f32 %v4695_v30, %v4676_v56 }
 0x6a1   : > { %v1823_v55 = vld [vmem:[%s6981_s26 + $0x2e70] sm:$0xff]  ;;  %5051 = vmatpush.msrb.mxu2 %v1755_v13 }
 0x6a2   : > { %v1623_v40 = vld [vmem:[%s6981_s26 + $0x2830] sm:$0xff]  ;;  %5070 = vmatpush.msrb.mxu3 %v1823_v55 }
 0x6a3   : > { %v1691_v5 = vld [vmem:[%s6981_s26 + $0x2a50] sm:$0xff]  ;;  %5012 = vmatpush.msrb.mxu0 %v1623_v40  ;;  %v4715_v40 = vpop.f32.mrf.mxu1 }
 0x6a4   : > { %v1751_v22 = vld [vmem:[%s6981_s26 + $0x2c30] sm:$0xff]  ;;  %5031 = vmatpush.msrb.mxu1 %v1691_v5 }
 0x6a5   : > { %v1819_v33 = vld [vmem:[%s6981_s26 + $0x2e50] sm:$0xff]  ;;  %5052 = vmatpush.msrb.mxu2 %v1751_v22  ;;  %v4716_v22 = vadd.f32 %v4715_v40, %v4696_v1 }
 0x6a6   : > { %v1619_v2 = vld [vmem:[%s6981_s26 + $0x2810] sm:$0xff]  ;;  %5071 = vmatpush.msrb.mxu3 %v1819_v33  ;;  %v4735_v33 = vpop.f32.mrf.mxu2 }
 0x6a7   : > { %v1687_v7 = vld [vmem:[%s6981_s26 + $0x2a30] sm:$0xff]  ;;  %5013 = vmatpush.msrb.mxu0 %v1619_v2 }
 0x6a8   : > { %v1747_v36 = vld [vmem:[%s6981_s26 + $0x2c10] sm:$0xff]  ;;  %5032 = vmatpush.msrb.mxu1 %v1687_v7  ;;  %5014 = vmatmul.f32.vlgmr.msrb.gmra.mxu0 %v7464_v38 }
 0x6a9   : > { %v1815_v35 = vld [vmem:[%s6981_s26 + $0x2e30] sm:$0xff]  ;;  %5053 = vmatpush.msrb.mxu2 %v1747_v36  ;;  %v4736_v36 = vadd.f32 %v4735_v33, %v4716_v22 }
 0x6aa   : > { %v1935_v17 = vld [vmem:[%s6981_s26 + $0x31f0] sm:$0xff]  ;;  %5072 = vmatpush.msrb.mxu3 %v1815_v35  ;;  %5054 = vmatmul.f32.vlgmr.msrb.gmra.mxu2 %v7466_v39 }
 0x6ab   : > { %v2063_v24 = vld [vmem:[%s6981_s26 + $0x35f0] sm:$0xff]  ;;  %5078 = vmatpush.msra.mxu0 %v1935_v17  ;;  %v4755_v17 = vpop.f32.mrf.mxu3 }
 0x6ac   : > { %v1683_v13 = vld [vmem:[%s6981_s26 + $0x2a10] sm:$0xff]  ;;  %5118 = vmatpush.msra.mxu2 %v2063_v24 }
 0x6ad   : > { %v1811_v55 = vld [vmem:[%s6981_s26 + $0x2e10] sm:$0xff]  ;;  %5033 = vmatpush.msrb.mxu1 %v1683_v13  ;;  %v8944_v13 = vadd.f32 %v4755_v17, %v4736_v36 }
 0x6ae   : > { %v1931_v5 = vld [vmem:[%s6981_s26 + $0x31d0] sm:$0xff]  ;;  %5073 = vmatpush.msrb.mxu3 %v1811_v55  ;;  %5034 = vmatmul.f32.vlgmr.msrb.gmra.mxu1 %v7474_v52 }
 0x6af   : > { %v1999_v60 = vld [vmem:[%s6981_s26 + $0x33f0] sm:$0xff]  ;;  %5074 = vmatmul.f32.vlgmr.msrb.gmra.mxu3 %v7476_v53  ;;  %5079 = vmatpush.msra.mxu0 %v1931_v5 }
 0x6b0   : > { %v2059_v44 = vld [vmem:[%s6981_s26 + $0x35d0] sm:$0xff]  ;;  %5098 = vmatpush.msra.mxu1 %v1999_v60 }
 0x6b1   : > { %v2127_v2 = vld [vmem:[%s6981_s26 + $0x37f0] sm:$0xff]  ;;  %5119 = vmatpush.msra.mxu2 %v2059_v44 }
 0x6b2   : > { %v1927_v7 = vld [vmem:[%s6981_s26 + $0x31b0] sm:$0xff]  ;;  %5138 = vmatpush.msra.mxu3 %v2127_v2 }
 0x6b3   : > { %v1995_v56 = vld [vmem:[%s6981_s26 + $0x33d0] sm:$0xff]  ;;  %5080 = vmatpush.msra.mxu0 %v1927_v7 }
 0x6b4   : > { %v2055_v35 = vld [vmem:[%s6981_s26 + $0x35b0] sm:$0xff]  ;;  %5099 = vmatpush.msra.mxu1 %v1995_v56 }
 0x6b5   : > { %v2123_v30 = vld [vmem:[%s6981_s26 + $0x37d0] sm:$0xff]  ;;  %5120 = vmatpush.msra.mxu2 %v2055_v35 }
 0x6b6   : > { %v1923_v24 = vld [vmem:[%s6981_s26 + $0x3190] sm:$0xff]  ;;  %5139 = vmatpush.msra.mxu3 %v2123_v30 }
 0x6b7   : > { %v1991_v1 = vld [vmem:[%s6981_s26 + $0x33b0] sm:$0xff]  ;;  %5081 = vmatpush.msra.mxu0 %v1923_v24 }
 0x6b8   : > { %v2051_v55 = vld [vmem:[%s6981_s26 + $0x3590] sm:$0xff]  ;;  %5100 = vmatpush.msra.mxu1 %v1991_v1 }
 0x6b9   : > { %v2119_v40 = vld [vmem:[%s6981_s26 + $0x37b0] sm:$0xff]  ;;  %5121 = vmatpush.msra.mxu2 %v2051_v55 }
 0x6ba   : > { %v1919_v5 = vld [vmem:[%s6981_s26 + $0x3170] sm:$0xff]  ;;  %5140 = vmatpush.msra.mxu3 %v2119_v40 }
 0x6bb   : > { %v1987_v60 = vld [vmem:[%s6981_s26 + $0x3390] sm:$0xff]  ;;  %5082 = vmatpush.msra.mxu0 %v1919_v5 }
 0x6bc   : > { %v2047_v22 = vld [vmem:[%s6981_s26 + $0x3570] sm:$0xff]  ;;  %5101 = vmatpush.msra.mxu1 %v1987_v60 }
 0x6bd   : > { %v2115_v33 = vld [vmem:[%s6981_s26 + $0x3790] sm:$0xff]  ;;  %5122 = vmatpush.msra.mxu2 %v2047_v22 }
 0x6be   : > { %v1915_v44 = vld [vmem:[%s6981_s26 + $0x3150] sm:$0xff]  ;;  %5141 = vmatpush.msra.mxu3 %v2115_v33 }
 0x6bf   : > { %v1983_v2 = vld [vmem:[%s6981_s26 + $0x3370] sm:$0xff]  ;;  %5083 = vmatpush.msra.mxu0 %v1915_v44 }
 0x6c0   : > { %v2043_v7 = vld [vmem:[%s6981_s26 + $0x3550] sm:$0xff]  ;;  %5102 = vmatpush.msra.mxu1 %v1983_v2 }
 0x6c1   : > { %v2111_v56 = vld [vmem:[%s6981_s26 + $0x3770] sm:$0xff]  ;;  %5123 = vmatpush.msra.mxu2 %v2043_v7 }
 0x6c2   : > { %v1911_v36 = vld [vmem:[%s6981_s26 + $0x3130] sm:$0xff]  ;;  %5142 = vmatpush.msra.mxu3 %v2111_v56 }
 0x6c3   : > { %v1979_v35 = vld [vmem:[%s6981_s26 + $0x3350] sm:$0xff]  ;;  %5084 = vmatpush.msra.mxu0 %v1911_v36 }
 0x6c4   : > { %v2039_v30 = vld [vmem:[%s6981_s26 + $0x3530] sm:$0xff]  ;;  %5103 = vmatpush.msra.mxu1 %v1979_v35 }
 0x6c5   : > { %v2107_v17 = vld [vmem:[%s6981_s26 + $0x3750] sm:$0xff]  ;;  %5124 = vmatpush.msra.mxu2 %v2039_v30 }
 0x6c6   : > { %v1907_v24 = vld [vmem:[%s6981_s26 + $0x3110] sm:$0xff]  ;;  %5143 = vmatpush.msra.mxu3 %v2107_v17 }
 0x6c7   : > { %v1975_v1 = vld [vmem:[%s6981_s26 + $0x3330] sm:$0xff]  ;;  %5085 = vmatpush.msra.mxu0 %v1907_v24 }
 0x6c8   : > { %v2035_v55 = vld [vmem:[%s6981_s26 + $0x3510] sm:$0xff]  ;;  %5104 = vmatpush.msra.mxu1 %v1975_v1 }
 0x6c9   : > { %v2103_v40 = vld [vmem:[%s6981_s26 + $0x3730] sm:$0xff]  ;;  %5125 = vmatpush.msra.mxu2 %v2035_v55 }
 0x6ca   : > { %v1903_v5 = vld [vmem:[%s6981_s26 + $0x30f0] sm:$0xff]  ;;  %5144 = vmatpush.msra.mxu3 %v2103_v40 }
 0x6cb   : > { %v1971_v60 = vld [vmem:[%s6981_s26 + $0x3310] sm:$0xff]  ;;  %5086 = vmatpush.msra.mxu0 %v1903_v5 }
 0x6cc   : > { %v2031_v22 = vld [vmem:[%s6981_s26 + $0x34f0] sm:$0xff]  ;;  %5105 = vmatpush.msra.mxu1 %v1971_v60 }
 0x6cd   : > { %v2099_v33 = vld [vmem:[%s6981_s26 + $0x3710] sm:$0xff]  ;;  %5126 = vmatpush.msra.mxu2 %v2031_v22  ;;  %v4775_v22 = vpop.f32.mrf.mxu0 }
 0x6ce   : > { %v1899_v44 = vld [vmem:[%s6981_s26 + $0x30d0] sm:$0xff]  ;;  %5145 = vmatpush.msra.mxu3 %v2099_v33 }
 0x6cf   : > { %v1967_v2 = vld [vmem:[%s6981_s26 + $0x32f0] sm:$0xff]  ;;  %5087 = vmatpush.msra.mxu0 %v1899_v44 }
 0x6d0   : > { %v2027_v7 = vld [vmem:[%s6981_s26 + $0x34d0] sm:$0xff]  ;;  %5106 = vmatpush.msra.mxu1 %v1967_v2  ;;  %v4776_v2 = vadd.f32 %v4775_v22, %v8944_v13 }
 0x6d1   : > { %v2095_v56 = vld [vmem:[%s6981_s26 + $0x36f0] sm:$0xff]  ;;  %5127 = vmatpush.msra.mxu2 %v2027_v7 }
 0x6d2   : > { %v1895_v36 = vld [vmem:[%s6981_s26 + $0x30b0] sm:$0xff]  ;;  %5146 = vmatpush.msra.mxu3 %v2095_v56 }
 0x6d3   : > { %v1963_v35 = vld [vmem:[%s6981_s26 + $0x32d0] sm:$0xff]  ;;  %5088 = vmatpush.msra.mxu0 %v1895_v36 }
 0x6d4   : > { %v2023_v30 = vld [vmem:[%s6981_s26 + $0x34b0] sm:$0xff]  ;;  %5107 = vmatpush.msra.mxu1 %v1963_v35 }
 0x6d5   : > { %v2091_v17 = vld [vmem:[%s6981_s26 + $0x36d0] sm:$0xff]  ;;  %5128 = vmatpush.msra.mxu2 %v2023_v30  ;;  %v4795_v30 = vpop.f32.mrf.mxu1 }
 0x6d6   : > { %v1891_v24 = vld [vmem:[%s6981_s26 + $0x3090] sm:$0xff]  ;;  %5147 = vmatpush.msra.mxu3 %v2091_v17  ;;  %v4796_v13 = vadd.f32 %v4795_v30, %v4776_v2 }
 0x6d7   : > { %v1959_v1 = vld [vmem:[%s6981_s26 + $0x32b0] sm:$0xff]  ;;  %5089 = vmatpush.msra.mxu0 %v1891_v24 }
 0x6d8   : > { %v2019_v55 = vld [vmem:[%s6981_s26 + $0x3490] sm:$0xff]  ;;  %5108 = vmatpush.msra.mxu1 %v1959_v1 }
 0x6d9   : > { %v2087_v40 = vld [vmem:[%s6981_s26 + $0x36b0] sm:$0xff]  ;;  %5129 = vmatpush.msra.mxu2 %v2019_v55 }
 0x6da   : > { %v1887_v5 = vld [vmem:[%s6981_s26 + $0x3070] sm:$0xff]  ;;  %5148 = vmatpush.msra.mxu3 %v2087_v40 }
 0x6db   : > { %v1955_v60 = vld [vmem:[%s6981_s26 + $0x3290] sm:$0xff]  ;;  %5090 = vmatpush.msra.mxu0 %v1887_v5 }
 0x6dc   : > { %v2015_v33 = vld [vmem:[%s6981_s26 + $0x3470] sm:$0xff]  ;;  %5109 = vmatpush.msra.mxu1 %v1955_v60  ;;  %v4815_v60 = vpop.f32.mrf.mxu2 }
 0x6dd   : > { %v2083_v44 = vld [vmem:[%s6981_s26 + $0x3690] sm:$0xff]  ;;  %5130 = vmatpush.msra.mxu2 %v2015_v33 }
 0x6de   : > { %v1883_v7 = vld [vmem:[%s6981_s26 + $0x3050] sm:$0xff]  ;;  %5149 = vmatpush.msra.mxu3 %v2083_v44  ;;  %v4816_v44 = vadd.f32 %v4815_v60, %v4796_v13 }
 0x6df   : > { %v1951_v56 = vld [vmem:[%s6981_s26 + $0x3270] sm:$0xff]  ;;  %5091 = vmatpush.msra.mxu0 %v1883_v7 }
 0x6e0   : > { %v2011_v36 = vld [vmem:[%s6981_s26 + $0x3450] sm:$0xff]  ;;  %5110 = vmatpush.msra.mxu1 %v1951_v56  ;;  %v4835_v56 = vpop.f32.mrf.mxu3 }
 0x6e1   : > { %v2079_v35 = vld [vmem:[%s6981_s26 + $0x3670] sm:$0xff]  ;;  %5131 = vmatpush.msra.mxu2 %v2011_v36  ;;  %v9001_v30 = vadd.f32 %v4835_v56, %v4816_v44 }
 0x6e2   : > { %v1879_v17 = vld [vmem:[%s6981_s26 + $0x3030] sm:$0xff]  ;;  %5150 = vmatpush.msra.mxu3 %v2079_v35 }
 0x6e3   : > { %v1947_v24 = vld [vmem:[%s6981_s26 + $0x3250] sm:$0xff]  ;;  %5092 = vmatpush.msra.mxu0 %v1879_v17 }
 0x6e4   : > { %v2007_v1 = vld [vmem:[%s6981_s26 + $0x3430] sm:$0xff]  ;;  %5111 = vmatpush.msra.mxu1 %v1947_v24 }
 0x6e5   : > { %v2075_v55 = vld [vmem:[%s6981_s26 + $0x3650] sm:$0xff]  ;;  %5132 = vmatpush.msra.mxu2 %v2007_v1 }
 0x6e6   : > { %v1875_v40 = vld [vmem:[%s6981_s26 + $0x3010] sm:$0xff]  ;;  %5151 = vmatpush.msra.mxu3 %v2075_v55 }
 0x6e7   : > { %v1943_v5 = vld [vmem:[%s6981_s26 + $0x3230] sm:$0xff]  ;;  %5093 = vmatpush.msra.mxu0 %v1875_v40 }
 0x6e8   : > { %v2003_v22 = vld [vmem:[%s6981_s26 + $0x3410] sm:$0xff]  ;;  %5112 = vmatpush.msra.mxu1 %v1943_v5  ;;  %5094 = vmatmul.f32.vlgmr.msra.gmra.mxu0 %v7541_v19 }
 0x6e9   : > { %v2071_v33 = vld [vmem:[%s6981_s26 + $0x3630] sm:$0xff]  ;;  %5133 = vmatpush.msra.mxu2 %v2003_v22 }
 0x6ea   : > { %v2191_v2 = vld [vmem:[%s6981_s26 + $0x39f0] sm:$0xff]  ;;  %5152 = vmatpush.msra.mxu3 %v2071_v33  ;;  %5134 = vmatmul.f32.vlgmr.msra.gmra.mxu2 %v7543_v20 }
 0x6eb   : > { %v2319_v7 = vld [vmem:[%s6981_s26 + $0x3df0] sm:$0xff]  ;;  %5158 = vmatpush.msrb.mxu0 %v2191_v2 }
 0x6ec   : > { %v1939_v36 = vld [vmem:[%s6981_s26 + $0x3210] sm:$0xff]  ;;  %5198 = vmatpush.msrb.mxu2 %v2319_v7 }
 0x6ed   : > { %v2067_v35 = vld [vmem:[%s6981_s26 + $0x3610] sm:$0xff]  ;;  %5113 = vmatpush.msra.mxu1 %v1939_v36 }
 0x6ee   : > { %v2187_v17 = vld [vmem:[%s6981_s26 + $0x39d0] sm:$0xff]  ;;  %5153 = vmatpush.msra.mxu3 %v2067_v35  ;;  %5114 = vmatmul.f32.vlgmr.msra.gmra.mxu1 %v7551_v25 }
 0x6ef   : > { %v2255_v24 = vld [vmem:[%s6981_s26 + $0x3bf0] sm:$0xff]  ;;  %5154 = vmatmul.f32.vlgmr.msra.gmra.mxu3 %v7553_v29  ;;  %5159 = vmatpush.msrb.mxu0 %v2187_v17 }
 0x6f0   : > { %v2315_v13 = vld [vmem:[%s6981_s26 + $0x3dd0] sm:$0xff]  ;;  %5178 = vmatpush.msrb.mxu1 %v2255_v24 }
 0x6f1   : > { %v2383_v1 = vld [vmem:[%s6981_s26 + $0x3ff0] sm:$0xff]  ;;  %5199 = vmatpush.msrb.mxu2 %v2315_v13 }
 0x6f2   : > { %v2183_v55 = vld [vmem:[%s6981_s26 + $0x39b0] sm:$0xff]  ;;  %5218 = vmatpush.msrb.mxu3 %v2383_v1 }
 0x6f3   : > { %v2251_v40 = vld [vmem:[%s6981_s26 + $0x3bd0] sm:$0xff]  ;;  %5160 = vmatpush.msrb.mxu0 %v2183_v55 }
 0x6f4   : > { %v2311_v5 = vld [vmem:[%s6981_s26 + $0x3db0] sm:$0xff]  ;;  %5179 = vmatpush.msrb.mxu1 %v2251_v40 }
 0x6f5   : > { %v2379_v60 = vld [vmem:[%s6981_s26 + $0x3fd0] sm:$0xff]  ;;  %5200 = vmatpush.msrb.mxu2 %v2311_v5 }
 0x6f6   : > { %v2179_v22 = vld [vmem:[%s6981_s26 + $0x3990] sm:$0xff]  ;;  %5219 = vmatpush.msrb.mxu3 %v2379_v60 }
 0x6f7   : > { %v2247_v33 = vld [vmem:[%s6981_s26 + $0x3bb0] sm:$0xff]  ;;  %5161 = vmatpush.msrb.mxu0 %v2179_v22 }
 0x6f8   : > { %v2307_v44 = vld [vmem:[%s6981_s26 + $0x3d90] sm:$0xff]  ;;  %5180 = vmatpush.msrb.mxu1 %v2247_v33 }
 0x6f9   : > { %v2375_v2 = vld [vmem:[%s6981_s26 + $0x3fb0] sm:$0xff]  ;;  %5201 = vmatpush.msrb.mxu2 %v2307_v44 }
 0x6fa   : > { %v2175_v7 = vld [vmem:[%s6981_s26 + $0x3970] sm:$0xff]  ;;  %5220 = vmatpush.msrb.mxu3 %v2375_v2 }
 0x6fb   : > { %v2243_v56 = vld [vmem:[%s6981_s26 + $0x3b90] sm:$0xff]  ;;  %5162 = vmatpush.msrb.mxu0 %v2175_v7 }
 0x6fc   : > { %v2303_v36 = vld [vmem:[%s6981_s26 + $0x3d70] sm:$0xff]  ;;  %5181 = vmatpush.msrb.mxu1 %v2243_v56 }
 0x6fd   : > { %v2371_v35 = vld [vmem:[%s6981_s26 + $0x3f90] sm:$0xff]  ;;  %5202 = vmatpush.msrb.mxu2 %v2303_v36 }
 0x6fe   : > { %v2171_v17 = vld [vmem:[%s6981_s26 + $0x3950] sm:$0xff]  ;;  %5221 = vmatpush.msrb.mxu3 %v2371_v35 }
 0x6ff   : > { %v2239_v24 = vld [vmem:[%s6981_s26 + $0x3b70] sm:$0xff]  ;;  %5163 = vmatpush.msrb.mxu0 %v2171_v17 }
 0x700   : > { %v2299_v13 = vld [vmem:[%s6981_s26 + $0x3d50] sm:$0xff]  ;;  %5182 = vmatpush.msrb.mxu1 %v2239_v24 }
 0x701   : > { %v2367_v1 = vld [vmem:[%s6981_s26 + $0x3f70] sm:$0xff]  ;;  %5203 = vmatpush.msrb.mxu2 %v2299_v13 }
 0x702   : > { %v2167_v55 = vld [vmem:[%s6981_s26 + $0x3930] sm:$0xff]  ;;  %5222 = vmatpush.msrb.mxu3 %v2367_v1 }
 0x703   : > { %v2235_v40 = vld [vmem:[%s6981_s26 + $0x3b50] sm:$0xff]  ;;  %5164 = vmatpush.msrb.mxu0 %v2167_v55 }
 0x704   : > { %v2295_v5 = vld [vmem:[%s6981_s26 + $0x3d30] sm:$0xff]  ;;  %5183 = vmatpush.msrb.mxu1 %v2235_v40 }
 0x705   : > { %v2363_v60 = vld [vmem:[%s6981_s26 + $0x3f50] sm:$0xff]  ;;  %5204 = vmatpush.msrb.mxu2 %v2295_v5 }
 0x706   : > { %v2163_v22 = vld [vmem:[%s6981_s26 + $0x3910] sm:$0xff]  ;;  %5223 = vmatpush.msrb.mxu3 %v2363_v60 }
 0x707   : > { %v2231_v33 = vld [vmem:[%s6981_s26 + $0x3b30] sm:$0xff]  ;;  %5165 = vmatpush.msrb.mxu0 %v2163_v22 }
 0x708   : > { %v2291_v44 = vld [vmem:[%s6981_s26 + $0x3d10] sm:$0xff]  ;;  %5184 = vmatpush.msrb.mxu1 %v2231_v33 }
 0x709   : > { %v2359_v2 = vld [vmem:[%s6981_s26 + $0x3f30] sm:$0xff]  ;;  %5205 = vmatpush.msrb.mxu2 %v2291_v44 }
 0x70a   : > { %v2159_v7 = vld [vmem:[%s6981_s26 + $0x38f0] sm:$0xff]  ;;  %5224 = vmatpush.msrb.mxu3 %v2359_v2 }
 0x70b   : > { %v2227_v56 = vld [vmem:[%s6981_s26 + $0x3b10] sm:$0xff]  ;;  %5166 = vmatpush.msrb.mxu0 %v2159_v7 }
 0x70c   : > { %v2287_v36 = vld [vmem:[%s6981_s26 + $0x3cf0] sm:$0xff]  ;;  %5185 = vmatpush.msrb.mxu1 %v2227_v56 }
 0x70d   : > { %v2355_v35 = vld [vmem:[%s6981_s26 + $0x3f10] sm:$0xff]  ;;  %5206 = vmatpush.msrb.mxu2 %v2287_v36  ;;  %v4855_v36 = vpop.f32.mrf.mxu0 }
 0x70e   : > { %v2155_v17 = vld [vmem:[%s6981_s26 + $0x38d0] sm:$0xff]  ;;  %5225 = vmatpush.msrb.mxu3 %v2355_v35 }
 0x70f   : > { %v2223_v24 = vld [vmem:[%s6981_s26 + $0x3af0] sm:$0xff]  ;;  %5167 = vmatpush.msrb.mxu0 %v2155_v17 }
 0x710   : > { %v2283_v13 = vld [vmem:[%s6981_s26 + $0x3cd0] sm:$0xff]  ;;  %5186 = vmatpush.msrb.mxu1 %v2223_v24  ;;  %v4856_v24 = vadd.f32 %v4855_v36, %v9001_v30 }
 0x711   : > { %v2351_v1 = vld [vmem:[%s6981_s26 + $0x3ef0] sm:$0xff]  ;;  %5207 = vmatpush.msrb.mxu2 %v2283_v13 }
 0x712   : > { %v2151_v55 = vld [vmem:[%s6981_s26 + $0x38b0] sm:$0xff]  ;;  %5226 = vmatpush.msrb.mxu3 %v2351_v1 }
 0x713   : > { %v2219_v40 = vld [vmem:[%s6981_s26 + $0x3ad0] sm:$0xff]  ;;  %5168 = vmatpush.msrb.mxu0 %v2151_v55 }
 0x714   : > { %v2279_v5 = vld [vmem:[%s6981_s26 + $0x3cb0] sm:$0xff]  ;;  %5187 = vmatpush.msrb.mxu1 %v2219_v40 }
 0x715   : > { %v2347_v60 = vld [vmem:[%s6981_s26 + $0x3ed0] sm:$0xff]  ;;  %5208 = vmatpush.msrb.mxu2 %v2279_v5  ;;  %v4875_v5 = vpop.f32.mrf.mxu1 }
 0x716   : > { %v2147_v22 = vld [vmem:[%s6981_s26 + $0x3890] sm:$0xff]  ;;  %5227 = vmatpush.msrb.mxu3 %v2347_v60  ;;  %v4876_v30 = vadd.f32 %v4875_v5, %v4856_v24 }
 0x717   : > { %v2215_v33 = vld [vmem:[%s6981_s26 + $0x3ab0] sm:$0xff]  ;;  %5169 = vmatpush.msrb.mxu0 %v2147_v22 }
 0x718   : > { %v2275_v44 = vld [vmem:[%s6981_s26 + $0x3c90] sm:$0xff]  ;;  %5188 = vmatpush.msrb.mxu1 %v2215_v33 }
 0x719   : > { %v2343_v2 = vld [vmem:[%s6981_s26 + $0x3eb0] sm:$0xff]  ;;  %5209 = vmatpush.msrb.mxu2 %v2275_v44 }
 0x71a   : > { %v2143_v7 = vld [vmem:[%s6981_s26 + $0x3870] sm:$0xff]  ;;  %5228 = vmatpush.msrb.mxu3 %v2343_v2 }
 0x71b   : > { %v2211_v56 = vld [vmem:[%s6981_s26 + $0x3a90] sm:$0xff]  ;;  %5170 = vmatpush.msrb.mxu0 %v2143_v7 }
 0x71c   : > { %v2271_v35 = vld [vmem:[%s6981_s26 + $0x3c70] sm:$0xff]  ;;  %5189 = vmatpush.msrb.mxu1 %v2211_v56  ;;  %v4895_v56 = vpop.f32.mrf.mxu2 }
 0x71d   : > { %v2339_v17 = vld [vmem:[%s6981_s26 + $0x3e90] sm:$0xff]  ;;  %5210 = vmatpush.msrb.mxu2 %v2271_v35 }
 0x71e   : > { %v2139_v13 = vld [vmem:[%s6981_s26 + $0x3850] sm:$0xff]  ;;  %5229 = vmatpush.msrb.mxu3 %v2339_v17  ;;  %v4896_v17 = vadd.f32 %v4895_v56, %v4876_v30 }
 0x71f   : > { %v2207_v1 = vld [vmem:[%s6981_s26 + $0x3a70] sm:$0xff]  ;;  %5171 = vmatpush.msrb.mxu0 %v2139_v13 }
 0x720   : > { %v2267_v55 = vld [vmem:[%s6981_s26 + $0x3c50] sm:$0xff]  ;;  %5190 = vmatpush.msrb.mxu1 %v2207_v1  ;;  %v4915_v1 = vpop.f32.mrf.mxu3 }
 0x721   : > { %v2335_v40 = vld [vmem:[%s6981_s26 + $0x3e70] sm:$0xff]  ;;  %5211 = vmatpush.msrb.mxu2 %v2267_v55  ;;  %v9072_v5 = vadd.f32 %v4915_v1, %v4896_v17 }
 0x722   : > { %v2135_v60 = vld [vmem:[%s6981_s26 + $0x3830] sm:$0xff]  ;;  %5230 = vmatpush.msrb.mxu3 %v2335_v40 }
 0x723   : > { %v2203_v22 = vld [vmem:[%s6981_s26 + $0x3a50] sm:$0xff]  ;;  %5172 = vmatpush.msrb.mxu0 %v2135_v60 }
 0x724   : > { %v2263_v33 = vld [vmem:[%s6981_s26 + $0x3c30] sm:$0xff]  ;;  %5191 = vmatpush.msrb.mxu1 %v2203_v22 }
 0x725   : > { %v2331_v44 = vld [vmem:[%s6981_s26 + $0x3e50] sm:$0xff]  ;;  %5212 = vmatpush.msrb.mxu2 %v2263_v33 }
 0x726   : > { %v2131_v2 = vld [vmem:[%s6981_s26 + $0x3810] sm:$0xff]  ;;  %5231 = vmatpush.msrb.mxu3 %v2331_v44 }
 0x727   : > { %v2199_v7 = vld [vmem:[%s6981_s26 + $0x3a30] sm:$0xff]  ;;  %5173 = vmatpush.msrb.mxu0 %v2131_v2 }
 0x728   : > { %v2259_v36 = vld [vmem:[%s6981_s26 + $0x3c10] sm:$0xff]  ;;  %5192 = vmatpush.msrb.mxu1 %v2199_v7  ;;  %5174 = vmatmul.f32.vlgmr.msrb.gmra.mxu0 %v7618_v8 }
 0x729   : > { %v2327_v35 = vld [vmem:[%s6981_s26 + $0x3e30] sm:$0xff]  ;;  %5213 = vmatpush.msrb.mxu2 %v2259_v36 }
 0x72a   : > { %v2447_v24 = vld [vmem:[%s6981_s26 + $0x41f0] sm:$0xff]  ;;  %5232 = vmatpush.msrb.mxu3 %v2327_v35  ;;  %5214 = vmatmul.f32.vlgmr.msrb.gmra.mxu2 %v7620_v11 }
 0x72b   : > { %v2575_v13 = vld [vmem:[%s6981_s26 + $0x45f0] sm:$0xff]  ;;  %5238 = vmatpush.msra.mxu0 %v2447_v24 }
 0x72c   : > { %v2195_v55 = vld [vmem:[%s6981_s26 + $0x3a10] sm:$0xff]  ;;  %5278 = vmatpush.msra.mxu2 %v2575_v13 }
 0x72d   : > { %v2323_v40 = vld [vmem:[%s6981_s26 + $0x3e10] sm:$0xff]  ;;  %5193 = vmatpush.msrb.mxu1 %v2195_v55 }
 0x72e   : > { %v2443_v60 = vld [vmem:[%s6981_s26 + $0x41d0] sm:$0xff]  ;;  %5233 = vmatpush.msrb.mxu3 %v2323_v40  ;;  %5194 = vmatmul.f32.vlgmr.msrb.gmra.mxu1 %v7628_v18 }
 0x72f   : > { %v2511_v22 = vld [vmem:[%s6981_s26 + $0x43f0] sm:$0xff]  ;;  %5234 = vmatmul.f32.vlgmr.msrb.gmra.mxu3 %v7630_v21  ;;  %5239 = vmatpush.msra.mxu0 %v2443_v60 }
 0x730   : > { %v2571_v30 = vld [vmem:[%s6981_s26 + $0x45d0] sm:$0xff]  ;;  %5258 = vmatpush.msra.mxu1 %v2511_v22 }
 0x731   : > { %v2639_v33 = vld [vmem:[%s6981_s26 + $0x47f0] sm:$0xff]  ;;  %5279 = vmatpush.msra.mxu2 %v2571_v30 }
 0x732   : > { %v2439_v44 = vld [vmem:[%s6981_s26 + $0x41b0] sm:$0xff]  ;;  %5298 = vmatpush.msra.mxu3 %v2639_v33 }
 0x733   : > { %v2507_v2 = vld [vmem:[%s6981_s26 + $0x43d0] sm:$0xff]  ;;  %5240 = vmatpush.msra.mxu0 %v2439_v44 }
 0x734   : > { %v2567_v7 = vld [vmem:[%s6981_s26 + $0x45b0] sm:$0xff]  ;;  %5259 = vmatpush.msra.mxu1 %v2507_v2 }
 0x735   : > { %v2635_v56 = vld [vmem:[%s6981_s26 + $0x47d0] sm:$0xff]  ;;  %5280 = vmatpush.msra.mxu2 %v2567_v7 }
 0x736   : > { %v2435_v36 = vld [vmem:[%s6981_s26 + $0x4190] sm:$0xff]  ;;  %5299 = vmatpush.msra.mxu3 %v2635_v56 }
 0x737   : > { %v2503_v35 = vld [vmem:[%s6981_s26 + $0x43b0] sm:$0xff]  ;;  %5241 = vmatpush.msra.mxu0 %v2435_v36 }
 0x738   : > { %v2563_v17 = vld [vmem:[%s6981_s26 + $0x4590] sm:$0xff]  ;;  %5260 = vmatpush.msra.mxu1 %v2503_v35 }
 0x739   : > { %v2631_v24 = vld [vmem:[%s6981_s26 + $0x47b0] sm:$0xff]  ;;  %5281 = vmatpush.msra.mxu2 %v2563_v17 }
 0x73a   : > { %v2431_v13 = vld [vmem:[%s6981_s26 + $0x4170] sm:$0xff]  ;;  %5300 = vmatpush.msra.mxu3 %v2631_v24 }
 0x73b   : > { %v2499_v1 = vld [vmem:[%s6981_s26 + $0x4390] sm:$0xff]  ;;  %5242 = vmatpush.msra.mxu0 %v2431_v13 }
 0x73c   : > { %v2559_v55 = vld [vmem:[%s6981_s26 + $0x4570] sm:$0xff]  ;;  %5261 = vmatpush.msra.mxu1 %v2499_v1 }
 0x73d   : > { %v2627_v40 = vld [vmem:[%s6981_s26 + $0x4790] sm:$0xff]  ;;  %5282 = vmatpush.msra.mxu2 %v2559_v55 }
 0x73e   : > { %v2427_v60 = vld [vmem:[%s6981_s26 + $0x4150] sm:$0xff]  ;;  %5301 = vmatpush.msra.mxu3 %v2627_v40 }
 0x73f   : > { %v2495_v22 = vld [vmem:[%s6981_s26 + $0x4370] sm:$0xff]  ;;  %5243 = vmatpush.msra.mxu0 %v2427_v60 }
 0x740   : > { %v2555_v30 = vld [vmem:[%s6981_s26 + $0x4550] sm:$0xff]  ;;  %5262 = vmatpush.msra.mxu1 %v2495_v22 }
 0x741   : > { %v2623_v33 = vld [vmem:[%s6981_s26 + $0x4770] sm:$0xff]  ;;  %5283 = vmatpush.msra.mxu2 %v2555_v30 }
 0x742   : > { %v2423_v44 = vld [vmem:[%s6981_s26 + $0x4130] sm:$0xff]  ;;  %5302 = vmatpush.msra.mxu3 %v2623_v33 }
 0x743   : > { %v2491_v2 = vld [vmem:[%s6981_s26 + $0x4350] sm:$0xff]  ;;  %5244 = vmatpush.msra.mxu0 %v2423_v44 }
 0x744   : > { %v2551_v7 = vld [vmem:[%s6981_s26 + $0x4530] sm:$0xff]  ;;  %5263 = vmatpush.msra.mxu1 %v2491_v2 }
 0x745   : > { %v2619_v56 = vld [vmem:[%s6981_s26 + $0x4750] sm:$0xff]  ;;  %5284 = vmatpush.msra.mxu2 %v2551_v7 }
 0x746   : > { %v2419_v36 = vld [vmem:[%s6981_s26 + $0x4110] sm:$0xff]  ;;  %5303 = vmatpush.msra.mxu3 %v2619_v56 }
 0x747   : > { %v2487_v35 = vld [vmem:[%s6981_s26 + $0x4330] sm:$0xff]  ;;  %5245 = vmatpush.msra.mxu0 %v2419_v36 }
 0x748   : > { %v2547_v17 = vld [vmem:[%s6981_s26 + $0x4510] sm:$0xff]  ;;  %5264 = vmatpush.msra.mxu1 %v2487_v35 }
 0x749   : > { %v2615_v24 = vld [vmem:[%s6981_s26 + $0x4730] sm:$0xff]  ;;  %5285 = vmatpush.msra.mxu2 %v2547_v17 }
 0x74a   : > { %v2415_v13 = vld [vmem:[%s6981_s26 + $0x40f0] sm:$0xff]  ;;  %5304 = vmatpush.msra.mxu3 %v2615_v24 }
 0x74b   : > { %v2483_v1 = vld [vmem:[%s6981_s26 + $0x4310] sm:$0xff]  ;;  %5246 = vmatpush.msra.mxu0 %v2415_v13 }
 0x74c   : > { %v2543_v55 = vld [vmem:[%s6981_s26 + $0x44f0] sm:$0xff]  ;;  %5265 = vmatpush.msra.mxu1 %v2483_v1 }
 0x74d   : > { %v2611_v40 = vld [vmem:[%s6981_s26 + $0x4710] sm:$0xff]  ;;  %5286 = vmatpush.msra.mxu2 %v2543_v55  ;;  %v4935_v55 = vpop.f32.mrf.mxu0 }
 0x74e   : > { %v2411_v60 = vld [vmem:[%s6981_s26 + $0x40d0] sm:$0xff]  ;;  %5305 = vmatpush.msra.mxu3 %v2611_v40 }
 0x74f   : > { %v2479_v22 = vld [vmem:[%s6981_s26 + $0x42f0] sm:$0xff]  ;;  %5247 = vmatpush.msra.mxu0 %v2411_v60 }
 0x750   : > { %v2539_v30 = vld [vmem:[%s6981_s26 + $0x44d0] sm:$0xff]  ;;  %5266 = vmatpush.msra.mxu1 %v2479_v22  ;;  %v4936_v22 = vadd.f32 %v4935_v55, %v9072_v5 }
 0x751   : > { %v2607_v33 = vld [vmem:[%s6981_s26 + $0x46f0] sm:$0xff]  ;;  %5287 = vmatpush.msra.mxu2 %v2539_v30 }
 0x752   : > { %v2407_v44 = vld [vmem:[%s6981_s26 + $0x40b0] sm:$0xff]  ;;  %5306 = vmatpush.msra.mxu3 %v2607_v33 }
 0x753   : > { %v2475_v2 = vld [vmem:[%s6981_s26 + $0x42d0] sm:$0xff]  ;;  %5248 = vmatpush.msra.mxu0 %v2407_v44 }
 0x754   : > { %v2535_v7 = vld [vmem:[%s6981_s26 + $0x44b0] sm:$0xff]  ;;  %5267 = vmatpush.msra.mxu1 %v2475_v2 }
 0x755   : > { %v2603_v56 = vld [vmem:[%s6981_s26 + $0x46d0] sm:$0xff]  ;;  %5288 = vmatpush.msra.mxu2 %v2535_v7  ;;  %v4955_v7 = vpop.f32.mrf.mxu1 }
 0x756   : > { %v2403_v36 = vld [vmem:[%s6981_s26 + $0x4090] sm:$0xff]  ;;  %5307 = vmatpush.msra.mxu3 %v2603_v56  ;;  %v4956_v5 = vadd.f32 %v4955_v7, %v4936_v22 }
 0x757   : > { %v2471_v35 = vld [vmem:[%s6981_s26 + $0x42b0] sm:$0xff]  ;;  %5249 = vmatpush.msra.mxu0 %v2403_v36 }
 0x758   : > { %v2531_v17 = vld [vmem:[%s6981_s26 + $0x4490] sm:$0xff]  ;;  %5268 = vmatpush.msra.mxu1 %v2471_v35 }
 0x759   : > { %v2599_v24 = vld [vmem:[%s6981_s26 + $0x46b0] sm:$0xff]  ;;  %5289 = vmatpush.msra.mxu2 %v2531_v17 }
 0x75a   : > { %v2399_v13 = vld [vmem:[%s6981_s26 + $0x4070] sm:$0xff]  ;;  %5308 = vmatpush.msra.mxu3 %v2599_v24 }
 0x75b   : > { %v2467_v1 = vld [vmem:[%s6981_s26 + $0x4290] sm:$0xff]  ;;  %5250 = vmatpush.msra.mxu0 %v2399_v13 }
 0x75c   : > { %v2527_v40 = vld [vmem:[%s6981_s26 + $0x4470] sm:$0xff]  ;;  %5269 = vmatpush.msra.mxu1 %v2467_v1  ;;  %v4975_v1 = vpop.f32.mrf.mxu2 }
 0x75d   : > { %v2595_v60 = vld [vmem:[%s6981_s26 + $0x4690] sm:$0xff]  ;;  %5290 = vmatpush.msra.mxu2 %v2527_v40 }
 0x75e   : > { %v2395_v30 = vld [vmem:[%s6981_s26 + $0x4050] sm:$0xff]  ;;  %5309 = vmatpush.msra.mxu3 %v2595_v60  ;;  %v4976_v60 = vadd.f32 %v4975_v1, %v4956_v5  ;;  %v6653_v1 = vld.sshfl [vmem:[#allocation1 + $0x18] sm:$0xff pattern:$0x73625140] }
 0x75f   : > { %v2463_v33 = vld [vmem:[%s6981_s26 + $0x4270] sm:$0xff]  ;;  %5251 = vmatpush.msra.mxu0 %v2395_v30 }
 0x760   : > { %v2523_v44 = vld [vmem:[%s6981_s26 + $0x4450] sm:$0xff]  ;;  %5270 = vmatpush.msra.mxu1 %v2463_v33  ;;  %v4995_v33 = vpop.f32.mrf.mxu3 }
 0x761   : > { %v2591_v2 = vld [vmem:[%s6981_s26 + $0x4670] sm:$0xff]  ;;  %5291 = vmatpush.msra.mxu2 %v2523_v44  ;;  %v9143_v7 = vadd.f32 %v4995_v33, %v4976_v60 }
 0x762   : > { %v2391_v56 = vld [vmem:[%s6981_s26 + $0x4030] sm:$0xff]  ;;  %5310 = vmatpush.msra.mxu3 %v2591_v2 }
 0x763   : > { %v2459_v36 = vld [vmem:[%s6981_s26 + $0x4250] sm:$0xff]  ;;  %5252 = vmatpush.msra.mxu0 %v2391_v56 }
 0x764   : > { %v2519_v35 = vld [vmem:[%s6981_s26 + $0x4430] sm:$0xff]  ;;  %5271 = vmatpush.msra.mxu1 %v2459_v36  ;;  %v6651_v36 = vld.sshfl [vmem:[#allocation1 + $0x10] sm:$0xff pattern:$0x73625140] }
 0x765   : > { %v2587_v17 = vld [vmem:[%s6981_s26 + $0x4650] sm:$0xff]  ;;  %5292 = vmatpush.msra.mxu2 %v2519_v35 }
 0x766   : > { %v2387_v24 = vld [vmem:[%s6981_s26 + $0x4010] sm:$0xff]  ;;  %5311 = vmatpush.msra.mxu3 %v2587_v17 }
 0x767   : > { %v2455_v13 = vld [vmem:[%s6981_s26 + $0x4230] sm:$0xff]  ;;  %5253 = vmatpush.msra.mxu0 %v2387_v24 }
 0x768   : > { %v2515_v55 = vld [vmem:[%s6981_s26 + $0x4410] sm:$0xff]  ;;  %5272 = vmatpush.msra.mxu1 %v2455_v13  ;;  %v6652_v13 = vld.sshfl [vmem:[#allocation1 + $0x8] sm:$0xff pattern:$0x73625140] }
 0x769   : > { %v2583_v40 = vld [vmem:[%s6981_s26 + $0x4630] sm:$0xff]  ;;  %5293 = vmatpush.msra.mxu2 %v2515_v55 }
 0x76a   : > { %v2703_v22 = vld [vmem:[%s6981_s26 + $0x49f0] sm:$0xff]  ;;  %5312 = vmatpush.msra.mxu3 %v2583_v40  ;;  %5294 = vmatmul.f32.vlgmr.msra.gmra.mxu2 %v6651_v36 }
 0x76b   : > { %v2831_v30 = vld [vmem:[%s6981_s26 + $0x4df0] sm:$0xff]  ;;  %5318 = vmatpush.msrb.mxu0 %v2703_v22 }
 0x76c   : > { %v2451_v44 = vld [vmem:[%s6981_s26 + $0x4210] sm:$0xff]  ;;  %5358 = vmatpush.msrb.mxu2 %v2831_v30 }
 0x76d   : > { %v2579_v2 = vld [vmem:[%s6981_s26 + $0x4610] sm:$0xff]  ;;  %5273 = vmatpush.msra.mxu1 %v2451_v44 }
 0x76e   : > { %v6650_v56 = vld.sshfl [vmem:[#allocation1] sm:$0xff pattern:$0x73625140]  ;;  %5313 = vmatpush.msra.mxu3 %v2579_v2  ;;  %5274 = vmatmul.f32.vlgmr.msra.gmra.mxu1 %v6652_v13 }
 0x76f   : > { %5254 = vmatmul.f32.vlgmr.msra.gmra.mxu0 %v6650_v56  ;;  %v2699_v5 = vld [vmem:[%s6981_s26 + $0x49d0] sm:$0xff]  ;;  %5314 = vmatmul.f32.vlgmr.msra.gmra.mxu3 %v6653_v1 }
 0x770   : > { %v2767_v35 = vld [vmem:[%s6981_s26 + $0x4bf0] sm:$0xff]  ;;  %5319 = vmatpush.msrb.mxu0 %v2699_v5 }
 0x771   : > { %v2827_v17 = vld [vmem:[%s6981_s26 + $0x4dd0] sm:$0xff]  ;;  %5338 = vmatpush.msrb.mxu1 %v2767_v35 }
 0x772   : > { %v2895_v24 = vld [vmem:[%s6981_s26 + $0x4ff0] sm:$0xff]  ;;  %5359 = vmatpush.msrb.mxu2 %v2827_v17 }
 0x773   : > { %v2695_v55 = vld [vmem:[%s6981_s26 + $0x49b0] sm:$0xff]  ;;  %5378 = vmatpush.msrb.mxu3 %v2895_v24 }
 0x774   : > { %v2763_v40 = vld [vmem:[%s6981_s26 + $0x4bd0] sm:$0xff]  ;;  %5320 = vmatpush.msrb.mxu0 %v2695_v55 }
 0x775   : > { %v2823_v60 = vld [vmem:[%s6981_s26 + $0x4db0] sm:$0xff]  ;;  %5339 = vmatpush.msrb.mxu1 %v2763_v40 }
 0x776   : > { %v2891_v22 = vld [vmem:[%s6981_s26 + $0x4fd0] sm:$0xff]  ;;  %5360 = vmatpush.msrb.mxu2 %v2823_v60 }
 0x777   : > { %v2691_v30 = vld [vmem:[%s6981_s26 + $0x4990] sm:$0xff]  ;;  %5379 = vmatpush.msrb.mxu3 %v2891_v22 }
 0x778   : > { %v2759_v33 = vld [vmem:[%s6981_s26 + $0x4bb0] sm:$0xff]  ;;  %5321 = vmatpush.msrb.mxu0 %v2691_v30 }
 0x779   : > { %v2819_v44 = vld [vmem:[%s6981_s26 + $0x4d90] sm:$0xff]  ;;  %5340 = vmatpush.msrb.mxu1 %v2759_v33 }
 0x77a   : > { %v2887_v2 = vld [vmem:[%s6981_s26 + $0x4fb0] sm:$0xff]  ;;  %5361 = vmatpush.msrb.mxu2 %v2819_v44 }
 0x77b   : > { %v2687_v56 = vld [vmem:[%s6981_s26 + $0x4970] sm:$0xff]  ;;  %5380 = vmatpush.msrb.mxu3 %v2887_v2 }
 0x77c   : > { %v2755_v36 = vld [vmem:[%s6981_s26 + $0x4b90] sm:$0xff]  ;;  %5322 = vmatpush.msrb.mxu0 %v2687_v56 }
 0x77d   : > { %v2815_v5 = vld [vmem:[%s6981_s26 + $0x4d70] sm:$0xff]  ;;  %5341 = vmatpush.msrb.mxu1 %v2755_v36 }
 0x77e   : > { %v2883_v35 = vld [vmem:[%s6981_s26 + $0x4f90] sm:$0xff]  ;;  %5362 = vmatpush.msrb.mxu2 %v2815_v5 }
 0x77f   : > { %v2683_v17 = vld [vmem:[%s6981_s26 + $0x4950] sm:$0xff]  ;;  %5381 = vmatpush.msrb.mxu3 %v2883_v35 }
 0x780   : > { %v2751_v24 = vld [vmem:[%s6981_s26 + $0x4b70] sm:$0xff]  ;;  %5323 = vmatpush.msrb.mxu0 %v2683_v17 }
 0x781   : > { %v2811_v13 = vld [vmem:[%s6981_s26 + $0x4d50] sm:$0xff]  ;;  %5342 = vmatpush.msrb.mxu1 %v2751_v24 }
 0x782   : > { %v2879_v1 = vld [vmem:[%s6981_s26 + $0x4f70] sm:$0xff]  ;;  %5363 = vmatpush.msrb.mxu2 %v2811_v13 }
 0x783   : > { %v2679_v55 = vld [vmem:[%s6981_s26 + $0x4930] sm:$0xff]  ;;  %5382 = vmatpush.msrb.mxu3 %v2879_v1 }
 0x784   : > { %v2747_v40 = vld [vmem:[%s6981_s26 + $0x4b50] sm:$0xff]  ;;  %5324 = vmatpush.msrb.mxu0 %v2679_v55 }
 0x785   : > { %v2807_v60 = vld [vmem:[%s6981_s26 + $0x4d30] sm:$0xff]  ;;  %5343 = vmatpush.msrb.mxu1 %v2747_v40 }
 0x786   : > { %v2875_v22 = vld [vmem:[%s6981_s26 + $0x4f50] sm:$0xff]  ;;  %5364 = vmatpush.msrb.mxu2 %v2807_v60 }
 0x787   : > { %v2675_v30 = vld [vmem:[%s6981_s26 + $0x4910] sm:$0xff]  ;;  %5383 = vmatpush.msrb.mxu3 %v2875_v22 }
 0x788   : > { %v2743_v33 = vld [vmem:[%s6981_s26 + $0x4b30] sm:$0xff]  ;;  %5325 = vmatpush.msrb.mxu0 %v2675_v30 }
 0x789   : > { %v2803_v44 = vld [vmem:[%s6981_s26 + $0x4d10] sm:$0xff]  ;;  %5344 = vmatpush.msrb.mxu1 %v2743_v33 }
 0x78a   : > { %v2871_v2 = vld [vmem:[%s6981_s26 + $0x4f30] sm:$0xff]  ;;  %5365 = vmatpush.msrb.mxu2 %v2803_v44 }
 0x78b   : > { %v2671_v56 = vld [vmem:[%s6981_s26 + $0x48f0] sm:$0xff]  ;;  %5384 = vmatpush.msrb.mxu3 %v2871_v2 }
 0x78c   : > { %v2739_v36 = vld [vmem:[%s6981_s26 + $0x4b10] sm:$0xff]  ;;  %5326 = vmatpush.msrb.mxu0 %v2671_v56 }
 0x78d   : > { %v2799_v5 = vld [vmem:[%s6981_s26 + $0x4cf0] sm:$0xff]  ;;  %5345 = vmatpush.msrb.mxu1 %v2739_v36 }
 0x78e   : > { %v2867_v35 = vld [vmem:[%s6981_s26 + $0x4f10] sm:$0xff]  ;;  %5366 = vmatpush.msrb.mxu2 %v2799_v5  ;;  %v5015_v5 = vpop.f32.mrf.mxu0 }
 0x78f   : > { %v2667_v17 = vld [vmem:[%s6981_s26 + $0x48d0] sm:$0xff]  ;;  %5385 = vmatpush.msrb.mxu3 %v2867_v35 }
 0x790   : > { %v2735_v24 = vld [vmem:[%s6981_s26 + $0x4af0] sm:$0xff]  ;;  %5327 = vmatpush.msrb.mxu0 %v2667_v17 }
 0x791   : > { %v2795_v13 = vld [vmem:[%s6981_s26 + $0x4cd0] sm:$0xff]  ;;  %5346 = vmatpush.msrb.mxu1 %v2735_v24  ;;  %v5016_v24 = vadd.f32 %v5015_v5, %v9143_v7 }
 0x792   : > { %v2863_v1 = vld [vmem:[%s6981_s26 + $0x4ef0] sm:$0xff]  ;;  %5367 = vmatpush.msrb.mxu2 %v2795_v13 }
 0x793   : > { %v2663_v55 = vld [vmem:[%s6981_s26 + $0x48b0] sm:$0xff]  ;;  %5386 = vmatpush.msrb.mxu3 %v2863_v1 }
 0x794   : > { %v2731_v40 = vld [vmem:[%s6981_s26 + $0x4ad0] sm:$0xff]  ;;  %5328 = vmatpush.msrb.mxu0 %v2663_v55 }
 0x795   : > { %v2791_v60 = vld [vmem:[%s6981_s26 + $0x4cb0] sm:$0xff]  ;;  %5347 = vmatpush.msrb.mxu1 %v2731_v40 }
 0x796   : > { %v2859_v22 = vld [vmem:[%s6981_s26 + $0x4ed0] sm:$0xff]  ;;  %5368 = vmatpush.msrb.mxu2 %v2791_v60  ;;  %v5035_v60 = vpop.f32.mrf.mxu1 }
 0x797   : > { %v2659_v30 = vld [vmem:[%s6981_s26 + $0x4890] sm:$0xff]  ;;  %5387 = vmatpush.msrb.mxu3 %v2859_v22  ;;  %v5036_v7 = vadd.f32 %v5035_v60, %v5016_v24  ;;  %v400_v24 = vld [vmem:[%s6981_s26 + $0x1f8] sm:$0xff] }
 0x798   : > { %v2727_v33 = vld [vmem:[%s6981_s26 + $0x4ab0] sm:$0xff]  ;;  %5329 = vmatpush.msrb.mxu0 %v2659_v30 }
 0x799   : > { %v2787_v44 = vld [vmem:[%s6981_s26 + $0x4c90] sm:$0xff]  ;;  %5348 = vmatpush.msrb.mxu1 %v2727_v33 }
 0x79a   : > { %v2855_v2 = vld [vmem:[%s6981_s26 + $0x4eb0] sm:$0xff]  ;;  %5369 = vmatpush.msrb.mxu2 %v2787_v44 }
 0x79b   : > { %v2655_v56 = vld [vmem:[%s6981_s26 + $0x4870] sm:$0xff]  ;;  %5388 = vmatpush.msrb.mxu3 %v2855_v2 }
 0x79c   : > { %v2723_v36 = vld [vmem:[%s6981_s26 + $0x4a90] sm:$0xff]  ;;  %5330 = vmatpush.msrb.mxu0 %v2655_v56 }
 0x79d   : > { %v2783_v35 = vld [vmem:[%s6981_s26 + $0x4c70] sm:$0xff]  ;;  %5349 = vmatpush.msrb.mxu1 %v2723_v36  ;;  %v5055_v36 = vpop.f32.mrf.mxu2 }
 0x79e   : > { %v2851_v17 = vld [vmem:[%s6981_s26 + $0x4e90] sm:$0xff]  ;;  %5370 = vmatpush.msrb.mxu2 %v2783_v35 }
 0x79f   : > { %v2651_v13 = vld [vmem:[%s6981_s26 + $0x4850] sm:$0xff]  ;;  %5389 = vmatpush.msrb.mxu3 %v2851_v17  ;;  %v5056_v17 = vadd.f32 %v5055_v36, %v5036_v7  ;;  %v396_v7 = vld [vmem:[%s6981_s26 + $0x1d8] sm:$0xff]  ;;  %v6657_v36 = vld.sshfl [vmem:[#allocation1 + $0x38] sm:$0xff pattern:$0x73625140] }
 0x7a0   : > { %v2719_v1 = vld [vmem:[%s6981_s26 + $0x4a70] sm:$0xff]  ;;  %5331 = vmatpush.msrb.mxu0 %v2651_v13  ;;  %v528_v13 = vld [vmem:[%s6981_s26 + $0x5f8] sm:$0xff] }
 0x7a1   : > { %v2779_v55 = vld [vmem:[%s6981_s26 + $0x4c50] sm:$0xff]  ;;  %5350 = vmatpush.msrb.mxu1 %v2719_v1  ;;  %v5075_v1 = vpop.f32.mrf.mxu3 }
 0x7a2   : > { %v2847_v40 = vld [vmem:[%s6981_s26 + $0x4e70] sm:$0xff]  ;;  %5371 = vmatpush.msrb.mxu2 %v2779_v55  ;;  %v9210_v60 = vadd.f32 %v5075_v1, %v5056_v17  ;;  %v520_v17 = vld [vmem:[%s6981_s26 + $0x5b8] sm:$0xff] }
 0x7a3   : > { %v2647_v22 = vld [vmem:[%s6981_s26 + $0x4830] sm:$0xff]  ;;  %5390 = vmatpush.msrb.mxu3 %v2847_v40  ;;  %v456_v1 = vld [vmem:[%s6981_s26 + $0x3b8] sm:$0xff] }
 0x7a4   : > { %v2715_v30 = vld [vmem:[%s6981_s26 + $0x4a50] sm:$0xff]  ;;  %5332 = vmatpush.msrb.mxu0 %v2647_v22 }
 0x7a5   : > { %v2775_v33 = vld [vmem:[%s6981_s26 + $0x4c30] sm:$0xff]  ;;  %5351 = vmatpush.msrb.mxu1 %v2715_v30  ;;  %v6655_v30 = vld.sshfl [vmem:[#allocation1 + $0x30] sm:$0xff pattern:$0x73625140] }
 0x7a6   : > { %v2843_v44 = vld [vmem:[%s6981_s26 + $0x4e50] sm:$0xff]  ;;  %5372 = vmatpush.msrb.mxu2 %v2775_v33  ;;  %v464_v33 = vld [vmem:[%s6981_s26 + $0x3f8] sm:$0xff] }
 0x7a7   : > { %v2643_v2 = vld [vmem:[%s6981_s26 + $0x4810] sm:$0xff]  ;;  %5391 = vmatpush.msrb.mxu3 %v2843_v44  ;;  %v524_v44 = vld [vmem:[%s6981_s26 + $0x5d8] sm:$0xff] }
 0x7a8   : > { %v2711_v56 = vld [vmem:[%s6981_s26 + $0x4a30] sm:$0xff]  ;;  %5333 = vmatpush.msrb.mxu0 %v2643_v2  ;;  %v592_v2 = vld [vmem:[%s6981_s26 + $0x7f8] sm:$0xff] }
 0x7a9   : > { %v2771_v5 = vld [vmem:[%s6981_s26 + $0x4c10] sm:$0xff]  ;;  %5352 = vmatpush.msrb.mxu1 %v2711_v56  ;;  %v6656_v56 = vld.sshfl [vmem:[#allocation1 + $0x28] sm:$0xff pattern:$0x73625140] }
 0x7aa   : > { %v2839_v35 = vld [vmem:[%s6981_s26 + $0x4e30] sm:$0xff]  ;;  %5373 = vmatpush.msrb.mxu2 %v2771_v5  ;;  %5398 = vmatpush.msra.mxu0 %v400_v24  ;;  %v392_v5 = vld [vmem:[%s6981_s26 + $0x1b8] sm:$0xff] }
 0x7ab   : > { %5392 = vmatpush.msrb.mxu3 %v2839_v35  ;;  %v2707_v55 = vld [vmem:[%s6981_s26 + $0x4a10] sm:$0xff]  ;;  %5374 = vmatmul.f32.vlgmr.msrb.gmra.mxu2 %v6655_v30  ;;  %v460_v35 = vld [vmem:[%s6981_s26 + $0x3d8] sm:$0xff] }
 0x7ac   : > { %v2835_v40 = vld [vmem:[%s6981_s26 + $0x4e10] sm:$0xff]  ;;  %5438 = vmatpush.msra.mxu2 %v528_v13  ;;  %5353 = vmatpush.msrb.mxu1 %v2707_v55  ;;  %v588_v24 = vld [vmem:[%s6981_s26 + $0x7d8] sm:$0xff] }
 0x7ad   : > { %v6654_v22 = vld.sshfl [vmem:[#allocation1 + $0x20] sm:$0xff pattern:$0x73625140]  ;;  %5393 = vmatpush.msrb.mxu3 %v2835_v40  ;;  %5354 = vmatmul.f32.vlgmr.msrb.gmra.mxu1 %v6656_v56  ;;  %v388_v13 = vld [vmem:[%s6981_s26 + $0x198] sm:$0xff] }
 0x7ae   : > { %5334 = vmatmul.f32.vlgmr.msrb.gmra.mxu0 %v6654_v22  ;;  %5394 = vmatmul.f32.vlgmr.msrb.gmra.mxu3 %v6657_v36  ;;  %v516_v55 = vld [vmem:[%s6981_s26 + $0x598] sm:$0xff] }
 0x7af   : > { %5399 = vmatpush.msra.mxu0 %v396_v7  ;;  %5418 = vmatpush.msra.mxu1 %v464_v33  ;;  %v584_v40 = vld [vmem:[%s6981_s26 + $0x7b8] sm:$0xff] }
 0x7b0   : > { %5439 = vmatpush.msra.mxu2 %v524_v44  ;;  %5458 = vmatpush.msra.mxu3 %v592_v2  ;;  %v384_v22 = vld [vmem:[%s6981_s26 + $0x178] sm:$0xff] }
 0x7b1   : > { %5400 = vmatpush.msra.mxu0 %v392_v5  ;;  %5419 = vmatpush.msra.mxu1 %v460_v35  ;;  %v452_v30 = vld [vmem:[%s6981_s26 + $0x398] sm:$0xff] }
 0x7b2   : > { %5440 = vmatpush.msra.mxu2 %v520_v17  ;;  %5459 = vmatpush.msra.mxu3 %v588_v24  ;;  %v512_v7 = vld [vmem:[%s6981_s26 + $0x578] sm:$0xff] }
 0x7b3   : > { %5401 = vmatpush.msra.mxu0 %v388_v13  ;;  %5420 = vmatpush.msra.mxu1 %v456_v1  ;;  %v580_v33 = vld [vmem:[%s6981_s26 + $0x798] sm:$0xff] }
 0x7b4   : > { %5441 = vmatpush.msra.mxu2 %v516_v55  ;;  %5460 = vmatpush.msra.mxu3 %v584_v40  ;;  %v380_v44 = vld [vmem:[%s6981_s26 + $0x158] sm:$0xff] }
 0x7b5   : > { %v448_v2 = vld [vmem:[%s6981_s26 + $0x378] sm:$0xff]  ;;  %5402 = vmatpush.msra.mxu0 %v384_v22  ;;  %5421 = vmatpush.msra.mxu1 %v452_v30 }
 0x7b6   : > { %v508_v56 = vld [vmem:[%s6981_s26 + $0x558] sm:$0xff]  ;;  %5442 = vmatpush.msra.mxu2 %v512_v7  ;;  %5461 = vmatpush.msra.mxu3 %v580_v33 }
 0x7b7   : > { %v576_v36 = vld [vmem:[%s6981_s26 + $0x778] sm:$0xff]  ;;  %5403 = vmatpush.msra.mxu0 %v380_v44  ;;  %5422 = vmatpush.msra.mxu1 %v448_v2 }
 0x7b8   : > { %v376_v5 = vld [vmem:[%s6981_s26 + $0x138] sm:$0xff]  ;;  %5443 = vmatpush.msra.mxu2 %v508_v56  ;;  %5462 = vmatpush.msra.mxu3 %v576_v36 }
 0x7b9   : > { %v444_v35 = vld [vmem:[%s6981_s26 + $0x358] sm:$0xff]  ;;  %5404 = vmatpush.msra.mxu0 %v376_v5 }
 0x7ba   : > { %v504_v17 = vld [vmem:[%s6981_s26 + $0x538] sm:$0xff]  ;;  %5423 = vmatpush.msra.mxu1 %v444_v35 }
 0x7bb   : > { %v572_v24 = vld [vmem:[%s6981_s26 + $0x758] sm:$0xff]  ;;  %5444 = vmatpush.msra.mxu2 %v504_v17 }
 0x7bc   : > { %v372_v13 = vld [vmem:[%s6981_s26 + $0x118] sm:$0xff]  ;;  %5463 = vmatpush.msra.mxu3 %v572_v24 }
 0x7bd   : > { %v440_v1 = vld [vmem:[%s6981_s26 + $0x338] sm:$0xff]  ;;  %5405 = vmatpush.msra.mxu0 %v372_v13 }
 0x7be   : > { %v500_v55 = vld [vmem:[%s6981_s26 + $0x518] sm:$0xff]  ;;  %5424 = vmatpush.msra.mxu1 %v440_v1 }
 0x7bf   : > { %v568_v40 = vld [vmem:[%s6981_s26 + $0x738] sm:$0xff]  ;;  %5445 = vmatpush.msra.mxu2 %v500_v55 }
 0x7c0   : > { %v368_v22 = vld [vmem:[%s6981_s26 + $0xf8] sm:$0xff]  ;;  %5464 = vmatpush.msra.mxu3 %v568_v40 }
 0x7c1   : > { %v436_v30 = vld [vmem:[%s6981_s26 + $0x318] sm:$0xff]  ;;  %5406 = vmatpush.msra.mxu0 %v368_v22 }
 0x7c2   : > { %v496_v7 = vld [vmem:[%s6981_s26 + $0x4f8] sm:$0xff]  ;;  %5425 = vmatpush.msra.mxu1 %v436_v30 }
 0x7c3   : > { %v564_v33 = vld [vmem:[%s6981_s26 + $0x718] sm:$0xff]  ;;  %5446 = vmatpush.msra.mxu2 %v496_v7  ;;  %v5095_v7 = vpop.f32.mrf.mxu0 }
 0x7c4   : > { %v364_v44 = vld [vmem:[%s6981_s26 + $0xd8] sm:$0xff]  ;;  %5465 = vmatpush.msra.mxu3 %v564_v33 }
 0x7c5   : > { %v432_v2 = vld [vmem:[%s6981_s26 + $0x2f8] sm:$0xff]  ;;  %5407 = vmatpush.msra.mxu0 %v364_v44 }
 0x7c6   : > { %v492_v56 = vld [vmem:[%s6981_s26 + $0x4d8] sm:$0xff]  ;;  %5426 = vmatpush.msra.mxu1 %v432_v2  ;;  %v5096_v2 = vadd.f32 %v5095_v7, %v9210_v60 }
 0x7c7   : > { %v560_v36 = vld [vmem:[%s6981_s26 + $0x6f8] sm:$0xff]  ;;  %5447 = vmatpush.msra.mxu2 %v492_v56 }
 0x7c8   : > { %v360_v5 = vld [vmem:[%s6981_s26 + $0xb8] sm:$0xff]  ;;  %5466 = vmatpush.msra.mxu3 %v560_v36 }
 0x7c9   : > { %v428_v35 = vld [vmem:[%s6981_s26 + $0x2d8] sm:$0xff]  ;;  %5408 = vmatpush.msra.mxu0 %v360_v5 }
 0x7ca   : > { %v488_v17 = vld [vmem:[%s6981_s26 + $0x4b8] sm:$0xff]  ;;  %5427 = vmatpush.msra.mxu1 %v428_v35 }
 0x7cb   : > { %v556_v24 = vld [vmem:[%s6981_s26 + $0x6d8] sm:$0xff]  ;;  %5448 = vmatpush.msra.mxu2 %v488_v17  ;;  %v5115_v17 = vpop.f32.mrf.mxu1 }
 0x7cc   : > { %v356_v13 = vld [vmem:[%s6981_s26 + $0x98] sm:$0xff]  ;;  %5467 = vmatpush.msra.mxu3 %v556_v24  ;;  %v5116_v60 = vadd.f32 %v5115_v17, %v5096_v2 }
 0x7cd   : > { %v424_v1 = vld [vmem:[%s6981_s26 + $0x2b8] sm:$0xff]  ;;  %5409 = vmatpush.msra.mxu0 %v356_v13 }
 0x7ce   : > { %v484_v55 = vld [vmem:[%s6981_s26 + $0x498] sm:$0xff]  ;;  %5428 = vmatpush.msra.mxu1 %v424_v1 }
 0x7cf   : > { %v552_v40 = vld [vmem:[%s6981_s26 + $0x6b8] sm:$0xff]  ;;  %5449 = vmatpush.msra.mxu2 %v484_v55 }
 0x7d0   : > { %v352_v22 = vld [vmem:[%s6981_s26 + $0x78] sm:$0xff]  ;;  %5468 = vmatpush.msra.mxu3 %v552_v40 }
 0x7d1   : > { %v420_v30 = vld [vmem:[%s6981_s26 + $0x298] sm:$0xff]  ;;  %5410 = vmatpush.msra.mxu0 %v352_v22 }
 0x7d2   : > { %v480_v33 = vld [vmem:[%s6981_s26 + $0x478] sm:$0xff]  ;;  %5429 = vmatpush.msra.mxu1 %v420_v30  ;;  %v5135_v30 = vpop.f32.mrf.mxu2 }
 0x7d3   : > { %v548_v44 = vld [vmem:[%s6981_s26 + $0x698] sm:$0xff]  ;;  %5450 = vmatpush.msra.mxu2 %v480_v33 }
 0x7d4   : > { %v348_v56 = vld [vmem:[%s6981_s26 + $0x58] sm:$0xff]  ;;  %5469 = vmatpush.msra.mxu3 %v548_v44  ;;  %v5136_v44 = vadd.f32 %v5135_v30, %v5116_v60 }
 0x7d5   : > { %v416_v36 = vld [vmem:[%s6981_s26 + $0x278] sm:$0xff]  ;;  %5411 = vmatpush.msra.mxu0 %v348_v56 }
 0x7d6   : > { %v476_v5 = vld [vmem:[%s6981_s26 + $0x458] sm:$0xff]  ;;  %5430 = vmatpush.msra.mxu1 %v416_v36 }
 0x7d7   : > { %v544_v35 = vld [vmem:[%s6981_s26 + $0x678] sm:$0xff]  ;;  %5451 = vmatpush.msra.mxu2 %v476_v5 }
 0x7d8   : > { %v344_v24 = vld [vmem:[%s6981_s26 + $0x38] sm:$0xff]  ;;  %5470 = vmatpush.msra.mxu3 %v544_v35  ;;  %v5155_v35 = vpop.f32.mrf.mxu3 }
 0x7d9   : > { %v412_v13 = vld [vmem:[%s6981_s26 + $0x258] sm:$0xff]  ;;  %5412 = vmatpush.msra.mxu0 %v344_v24 }
 0x7da   : > { %v472_v1 = vld [vmem:[%s6981_s26 + $0x438] sm:$0xff]  ;;  %5431 = vmatpush.msra.mxu1 %v412_v13  ;;  %v9279_v13 = vadd.f32 %v5155_v35, %v5136_v44 }
 0x7db   : > { %v540_v55 = vld [vmem:[%s6981_s26 + $0x658] sm:$0xff]  ;;  %5452 = vmatpush.msra.mxu2 %v472_v1 }
 0x7dc   : > { %v340_v40 = vld [vmem:[%s6981_s26 + $0x18] sm:$0xff]  ;;  %5471 = vmatpush.msra.mxu3 %v540_v55 }
 0x7dd   : > { %v408_v22 = vld [vmem:[%s6981_s26 + $0x238] sm:$0xff]  ;;  %5413 = vmatpush.msra.mxu0 %v340_v40 }
 0x7de   : > { %v468_v7 = vld [vmem:[%s6981_s26 + $0x418] sm:$0xff]  ;;  %5432 = vmatpush.msra.mxu1 %v408_v22  ;;  %5414 = vmatmul.f32.vlgmr.msra.gmra.mxu0 %v7125_v46 }
 0x7df   : > { %v536_v33 = vld [vmem:[%s6981_s26 + $0x638] sm:$0xff]  ;;  %5453 = vmatpush.msra.mxu2 %v468_v7 }
 0x7e0   : > { %v656_v2 = vld [vmem:[%s6981_s26 + $0x9f8] sm:$0xff]  ;;  %5472 = vmatpush.msra.mxu3 %v536_v33  ;;  %5454 = vmatmul.f32.vlgmr.msra.gmra.mxu2 %v7123_v45 }
 0x7e1   : > { %v784_v56 = vld [vmem:[%s6981_s26 + $0xdf8] sm:$0xff]  ;;  %5478 = vmatpush.msrb.mxu0 %v656_v2 }
 0x7e2   : > { %v404_v36 = vld [vmem:[%s6981_s26 + $0x218] sm:$0xff]  ;;  %5518 = vmatpush.msrb.mxu2 %v784_v56 }
 0x7e3   : > { %v532_v5 = vld [vmem:[%s6981_s26 + $0x618] sm:$0xff]  ;;  %5433 = vmatpush.msra.mxu1 %v404_v36 }
 0x7e4   : > { %v652_v17 = vld [vmem:[%s6981_s26 + $0x9d8] sm:$0xff]  ;;  %5473 = vmatpush.msra.mxu3 %v532_v5  ;;  %5434 = vmatmul.f32.vlgmr.msra.gmra.mxu1 %v7129_v48 }
 0x7e5   : > { %v720_v24 = vld [vmem:[%s6981_s26 + $0xbf8] sm:$0xff]  ;;  %5479 = vmatpush.msrb.mxu0 %v652_v17  ;;  %5474 = vmatmul.f32.vlgmr.msra.gmra.mxu3 %v7127_v47 }
 0x7e6   : > { %v780_v60 = vld [vmem:[%s6981_s26 + $0xdd8] sm:$0xff]  ;;  %5498 = vmatpush.msrb.mxu1 %v720_v24 }
 0x7e7   : > { %v848_v1 = vld [vmem:[%s6981_s26 + $0xff8] sm:$0xff]  ;;  %5519 = vmatpush.msrb.mxu2 %v780_v60 }
 0x7e8   : > { %v648_v55 = vld [vmem:[%s6981_s26 + $0x9b8] sm:$0xff]  ;;  %5538 = vmatpush.msrb.mxu3 %v848_v1 }
 0x7e9   : > { %v716_v40 = vld [vmem:[%s6981_s26 + $0xbd8] sm:$0xff]  ;;  %5480 = vmatpush.msrb.mxu0 %v648_v55 }
 0x7ea   : > { %v776_v22 = vld [vmem:[%s6981_s26 + $0xdb8] sm:$0xff]  ;;  %5499 = vmatpush.msrb.mxu1 %v716_v40 }
 0x7eb   : > { %v844_v30 = vld [vmem:[%s6981_s26 + $0xfd8] sm:$0xff]  ;;  %5520 = vmatpush.msrb.mxu2 %v776_v22 }
 0x7ec   : > { %v644_v7 = vld [vmem:[%s6981_s26 + $0x998] sm:$0xff]  ;;  %5539 = vmatpush.msrb.mxu3 %v844_v30 }
 0x7ed   : > { %v712_v33 = vld [vmem:[%s6981_s26 + $0xbb8] sm:$0xff]  ;;  %5481 = vmatpush.msrb.mxu0 %v644_v7 }
 0x7ee   : > { %v772_v44 = vld [vmem:[%s6981_s26 + $0xd98] sm:$0xff]  ;;  %5500 = vmatpush.msrb.mxu1 %v712_v33 }
 0x7ef   : > { %v840_v2 = vld [vmem:[%s6981_s26 + $0xfb8] sm:$0xff]  ;;  %5521 = vmatpush.msrb.mxu2 %v772_v44 }
 0x7f0   : > { %v640_v56 = vld [vmem:[%s6981_s26 + $0x978] sm:$0xff]  ;;  %5540 = vmatpush.msrb.mxu3 %v840_v2 }
 0x7f1   : > { %v708_v36 = vld [vmem:[%s6981_s26 + $0xb98] sm:$0xff]  ;;  %5482 = vmatpush.msrb.mxu0 %v640_v56 }
 0x7f2   : > { %v768_v5 = vld [vmem:[%s6981_s26 + $0xd78] sm:$0xff]  ;;  %5501 = vmatpush.msrb.mxu1 %v708_v36 }
 0x7f3   : > { %v836_v35 = vld [vmem:[%s6981_s26 + $0xf98] sm:$0xff]  ;;  %5522 = vmatpush.msrb.mxu2 %v768_v5 }
 0x7f4   : > { %v636_v17 = vld [vmem:[%s6981_s26 + $0x958] sm:$0xff]  ;;  %5541 = vmatpush.msrb.mxu3 %v836_v35 }
 0x7f5   : > { %v704_v24 = vld [vmem:[%s6981_s26 + $0xb78] sm:$0xff]  ;;  %5483 = vmatpush.msrb.mxu0 %v636_v17 }
 0x7f6   : > { %v764_v60 = vld [vmem:[%s6981_s26 + $0xd58] sm:$0xff]  ;;  %5502 = vmatpush.msrb.mxu1 %v704_v24 }
 0x7f7   : > { %v832_v1 = vld [vmem:[%s6981_s26 + $0xf78] sm:$0xff]  ;;  %5523 = vmatpush.msrb.mxu2 %v764_v60 }
 0x7f8   : > { %v632_v55 = vld [vmem:[%s6981_s26 + $0x938] sm:$0xff]  ;;  %5542 = vmatpush.msrb.mxu3 %v832_v1 }
 0x7f9   : > { %v700_v40 = vld [vmem:[%s6981_s26 + $0xb58] sm:$0xff]  ;;  %5484 = vmatpush.msrb.mxu0 %v632_v55 }
 0x7fa   : > { %v760_v22 = vld [vmem:[%s6981_s26 + $0xd38] sm:$0xff]  ;;  %5503 = vmatpush.msrb.mxu1 %v700_v40 }
 0x7fb   : > { %v828_v30 = vld [vmem:[%s6981_s26 + $0xf58] sm:$0xff]  ;;  %5524 = vmatpush.msrb.mxu2 %v760_v22 }
 0x7fc   : > { %v628_v7 = vld [vmem:[%s6981_s26 + $0x918] sm:$0xff]  ;;  %5543 = vmatpush.msrb.mxu3 %v828_v30 }
 0x7fd   : > { %v696_v33 = vld [vmem:[%s6981_s26 + $0xb38] sm:$0xff]  ;;  %5485 = vmatpush.msrb.mxu0 %v628_v7 }
 0x7fe   : > { %v756_v44 = vld [vmem:[%s6981_s26 + $0xd18] sm:$0xff]  ;;  %5504 = vmatpush.msrb.mxu1 %v696_v33 }
 0x7ff   : > { %v824_v2 = vld [vmem:[%s6981_s26 + $0xf38] sm:$0xff]  ;;  %5525 = vmatpush.msrb.mxu2 %v756_v44 }
 0x800   : > { %v624_v56 = vld [vmem:[%s6981_s26 + $0x8f8] sm:$0xff]  ;;  %5544 = vmatpush.msrb.mxu3 %v824_v2 }
 0x801   : > { %v692_v36 = vld [vmem:[%s6981_s26 + $0xb18] sm:$0xff]  ;;  %5486 = vmatpush.msrb.mxu0 %v624_v56 }
 0x802   : > { %v752_v5 = vld [vmem:[%s6981_s26 + $0xcf8] sm:$0xff]  ;;  %5505 = vmatpush.msrb.mxu1 %v692_v36 }
 0x803   : > { %v820_v35 = vld [vmem:[%s6981_s26 + $0xf18] sm:$0xff]  ;;  %5526 = vmatpush.msrb.mxu2 %v752_v5 }
 0x804   : > { %v620_v17 = vld [vmem:[%s6981_s26 + $0x8d8] sm:$0xff]  ;;  %5545 = vmatpush.msrb.mxu3 %v820_v35 }
 0x805   : > { %v688_v24 = vld [vmem:[%s6981_s26 + $0xaf8] sm:$0xff]  ;;  %5487 = vmatpush.msrb.mxu0 %v620_v17 }
 0x806   : > { %v748_v60 = vld [vmem:[%s6981_s26 + $0xcd8] sm:$0xff]  ;;  %5506 = vmatpush.msrb.mxu1 %v688_v24 }
 0x807   : > { %v816_v1 = vld [vmem:[%s6981_s26 + $0xef8] sm:$0xff]  ;;  %5527 = vmatpush.msrb.mxu2 %v748_v60  ;;  %v5175_v60 = vpop.f32.mrf.mxu0 }
 0x808   : > { %v616_v55 = vld [vmem:[%s6981_s26 + $0x8b8] sm:$0xff]  ;;  %5546 = vmatpush.msrb.mxu3 %v816_v1 }
 0x809   : > { %v684_v40 = vld [vmem:[%s6981_s26 + $0xad8] sm:$0xff]  ;;  %5488 = vmatpush.msrb.mxu0 %v616_v55 }
 0x80a   : > { %v744_v22 = vld [vmem:[%s6981_s26 + $0xcb8] sm:$0xff]  ;;  %5507 = vmatpush.msrb.mxu1 %v684_v40  ;;  %v5176_v40 = vadd.f32 %v5175_v60, %v9279_v13 }
 0x80b   : > { %v812_v30 = vld [vmem:[%s6981_s26 + $0xed8] sm:$0xff]  ;;  %5528 = vmatpush.msrb.mxu2 %v744_v22 }
 0x80c   : > { %v612_v7 = vld [vmem:[%s6981_s26 + $0x898] sm:$0xff]  ;;  %5547 = vmatpush.msrb.mxu3 %v812_v30 }
 0x80d   : > { %v680_v33 = vld [vmem:[%s6981_s26 + $0xab8] sm:$0xff]  ;;  %5489 = vmatpush.msrb.mxu0 %v612_v7 }
 0x80e   : > { %v740_v44 = vld [vmem:[%s6981_s26 + $0xc98] sm:$0xff]  ;;  %5508 = vmatpush.msrb.mxu1 %v680_v33 }
 0x80f   : > { %v808_v2 = vld [vmem:[%s6981_s26 + $0xeb8] sm:$0xff]  ;;  %5529 = vmatpush.msrb.mxu2 %v740_v44  ;;  %v5195_v44 = vpop.f32.mrf.mxu1 }
 0x810   : > { %v608_v56 = vld [vmem:[%s6981_s26 + $0x878] sm:$0xff]  ;;  %5548 = vmatpush.msrb.mxu3 %v808_v2 }
 0x811   : > { %v676_v36 = vld [vmem:[%s6981_s26 + $0xa98] sm:$0xff]  ;;  %5490 = vmatpush.msrb.mxu0 %v608_v56  ;;  %v5196_v56 = vadd.f32 %v5195_v44, %v5176_v40  ;;  %v5235_v40 = vpop.f32.mrf.mxu3 }
 0x812   : > { %v736_v5 = vld [vmem:[%s6981_s26 + $0xc78] sm:$0xff]  ;;  %5509 = vmatpush.msrb.mxu1 %v676_v36 }
 0x813   : > { %v804_v35 = vld [vmem:[%s6981_s26 + $0xe98] sm:$0xff]  ;;  %5530 = vmatpush.msrb.mxu2 %v736_v5 }
 0x814   : > { %v604_v17 = vld [vmem:[%s6981_s26 + $0x858] sm:$0xff]  ;;  %5549 = vmatpush.msrb.mxu3 %v804_v35  ;;  %v5215_v35 = vpop.f32.mrf.mxu2 }
 0x815   : > { %v672_v24 = vld [vmem:[%s6981_s26 + $0xa78] sm:$0xff]  ;;  %5491 = vmatpush.msrb.mxu0 %v604_v17 }
 0x816   : > { %v732_v1 = vld [vmem:[%s6981_s26 + $0xc58] sm:$0xff]  ;;  %5510 = vmatpush.msrb.mxu1 %v672_v24  ;;  %v5216_v24 = vadd.f32 %v5215_v35, %v5196_v56 }
 0x817   : > { %v800_v55 = vld [vmem:[%s6981_s26 + $0xe78] sm:$0xff]  ;;  %5531 = vmatpush.msrb.mxu2 %v732_v1 }
 0x818   : > { %v600_v22 = vld [vmem:[%s6981_s26 + $0x838] sm:$0xff]  ;;  %5550 = vmatpush.msrb.mxu3 %v800_v55 }
 0x819   : > { %v668_v30 = vld [vmem:[%s6981_s26 + $0xa58] sm:$0xff]  ;;  %5492 = vmatpush.msrb.mxu0 %v600_v22 }
 0x81a   : > { %v728_v7 = vld [vmem:[%s6981_s26 + $0xc38] sm:$0xff]  ;;  %5511 = vmatpush.msrb.mxu1 %v668_v30  ;;  %v9349_v30 = vadd.f32 %v5235_v40, %v5216_v24 }
 0x81b   : > { %v796_v33 = vld [vmem:[%s6981_s26 + $0xe58] sm:$0xff]  ;;  %5532 = vmatpush.msrb.mxu2 %v728_v7 }
 0x81c   : > { %v596_v2 = vld [vmem:[%s6981_s26 + $0x818] sm:$0xff]  ;;  %5551 = vmatpush.msrb.mxu3 %v796_v33 }
 0x81d   : > { %v664_v13 = vld [vmem:[%s6981_s26 + $0xa38] sm:$0xff]  ;;  %5493 = vmatpush.msrb.mxu0 %v596_v2 }
 0x81e   : > { %v724_v36 = vld [vmem:[%s6981_s26 + $0xc18] sm:$0xff]  ;;  %5512 = vmatpush.msrb.mxu1 %v664_v13  ;;  %5494 = vmatmul.f32.vlgmr.msrb.gmra.mxu0 %v7145_v62 }
 0x81f   : > { %v792_v5 = vld [vmem:[%s6981_s26 + $0xe38] sm:$0xff]  ;;  %5533 = vmatpush.msrb.mxu2 %v724_v36 }
 0x820   : > { %v912_v17 = vld [vmem:[%s6981_s26 + $0x11f8] sm:$0xff]  ;;  %5552 = vmatpush.msrb.mxu3 %v792_v5  ;;  %5534 = vmatmul.f32.vlgmr.msrb.gmra.mxu2 %v7143_v61 }
 0x821   : > { %v1040_v60 = vld [vmem:[%s6981_s26 + $0x15f8] sm:$0xff]  ;;  %5558 = vmatpush.msra.mxu0 %v912_v17 }
 0x822   : > { %v660_v1 = vld [vmem:[%s6981_s26 + $0xa18] sm:$0xff]  ;;  %5598 = vmatpush.msra.mxu2 %v1040_v60 }
 0x823   : > { %v788_v55 = vld [vmem:[%s6981_s26 + $0xe18] sm:$0xff]  ;;  %5513 = vmatpush.msrb.mxu1 %v660_v1 }
 0x824   : > { %v908_v45 = vld [vmem:[%s6981_s26 + $0x11d8] sm:$0xff]  ;;  %5553 = vmatpush.msrb.mxu3 %v788_v55  ;;  %5514 = vmatmul.f32.vlgmr.msrb.gmra.mxu1 %v7149_v0 }
 0x825   : > { %v976_v22 = vld [vmem:[%s6981_s26 + $0x13f8] sm:$0xff]  ;;  %5559 = vmatpush.msra.mxu0 %v908_v45  ;;  %5554 = vmatmul.f32.vlgmr.msrb.gmra.mxu3 %v7147_v63 }
 0x826   : > { %v1036_v7 = vld [vmem:[%s6981_s26 + $0x15d8] sm:$0xff]  ;;  %5578 = vmatpush.msra.mxu1 %v976_v22 }
 0x827   : > { %v1104_v33 = vld [vmem:[%s6981_s26 + $0x17f8] sm:$0xff]  ;;  %5599 = vmatpush.msra.mxu2 %v1036_v7 }
 0x828   : > { %v904_v46 = vld [vmem:[%s6981_s26 + $0x11b8] sm:$0xff]  ;;  %5618 = vmatpush.msra.mxu3 %v1104_v33 }
 0x829   : > { %v972_v44 = vld [vmem:[%s6981_s26 + $0x13d8] sm:$0xff]  ;;  %5560 = vmatpush.msra.mxu0 %v904_v46 }
 0x82a   : > { %v1032_v47 = vld [vmem:[%s6981_s26 + $0x15b8] sm:$0xff]  ;;  %5579 = vmatpush.msra.mxu1 %v972_v44 }
 0x82b   : > { %v1100_v2 = vld [vmem:[%s6981_s26 + $0x17d8] sm:$0xff]  ;;  %5600 = vmatpush.msra.mxu2 %v1032_v47 }
 0x82c   : > { %v900_v56 = vld [vmem:[%s6981_s26 + $0x1198] sm:$0xff]  ;;  %5619 = vmatpush.msra.mxu3 %v1100_v2 }
 0x82d   : > { %v968_v13 = vld [vmem:[%s6981_s26 + $0x13b8] sm:$0xff]  ;;  %5561 = vmatpush.msra.mxu0 %v900_v56 }
 0x82e   : > { %v1028_v36 = vld [vmem:[%s6981_s26 + $0x1598] sm:$0xff]  ;;  %5580 = vmatpush.msra.mxu1 %v968_v13 }
 0x82f   : > { %v1096_v48 = vld [vmem:[%s6981_s26 + $0x17b8] sm:$0xff]  ;;  %5601 = vmatpush.msra.mxu2 %v1028_v36 }
 0x830   : > { %v896_v5 = vld [vmem:[%s6981_s26 + $0x1178] sm:$0xff]  ;;  %5620 = vmatpush.msra.mxu3 %v1096_v48 }
 0x831   : > { %v964_v35 = vld [vmem:[%s6981_s26 + $0x1398] sm:$0xff]  ;;  %5562 = vmatpush.msra.mxu0 %v896_v5 }
 0x832   : > { %v1024_v17 = vld [vmem:[%s6981_s26 + $0x1578] sm:$0xff]  ;;  %5581 = vmatpush.msra.mxu1 %v964_v35 }
 0x833   : > { %v1092_v24 = vld [vmem:[%s6981_s26 + $0x1798] sm:$0xff]  ;;  %5602 = vmatpush.msra.mxu2 %v1024_v17 }
 0x834   : > { %v892_v61 = vld [vmem:[%s6981_s26 + $0x1158] sm:$0xff]  ;;  %5621 = vmatpush.msra.mxu3 %v1092_v24 }
 0x835   : > { %v960_v60 = vld [vmem:[%s6981_s26 + $0x1378] sm:$0xff]  ;;  %5563 = vmatpush.msra.mxu0 %v892_v61 }
 0x836   : > { %v1020_v1 = vld [vmem:[%s6981_s26 + $0x1558] sm:$0xff]  ;;  %5582 = vmatpush.msra.mxu1 %v960_v60 }
 0x837   : > { %v1088_v55 = vld [vmem:[%s6981_s26 + $0x1778] sm:$0xff]  ;;  %5603 = vmatpush.msra.mxu2 %v1020_v1 }
 0x838   : > { %v888_v62 = vld [vmem:[%s6981_s26 + $0x1138] sm:$0xff]  ;;  %5622 = vmatpush.msra.mxu3 %v1088_v55 }
 0x839   : > { %v956_v40 = vld [vmem:[%s6981_s26 + $0x1358] sm:$0xff]  ;;  %5564 = vmatpush.msra.mxu0 %v888_v62 }
 0x83a   : > { %v1016_v63 = vld [vmem:[%s6981_s26 + $0x1538] sm:$0xff]  ;;  %5583 = vmatpush.msra.mxu1 %v956_v40 }
 0x83b   : > { %v1084_v45 = vld [vmem:[%s6981_s26 + $0x1758] sm:$0xff]  ;;  %5604 = vmatpush.msra.mxu2 %v1016_v63  ;;  %v5255_v63 = vpop.f32.mrf.mxu0 }
 0x83c   : > { %v884_v22 = vld [vmem:[%s6981_s26 + $0x1118] sm:$0xff]  ;;  %5623 = vmatpush.msra.mxu3 %v1084_v45 }
 0x83d   : > { %v952_v7 = vld [vmem:[%s6981_s26 + $0x1338] sm:$0xff]  ;;  %5565 = vmatpush.msra.mxu0 %v884_v22 }
 0x83e   : > { %v1012_v33 = vld [vmem:[%s6981_s26 + $0x1518] sm:$0xff]  ;;  %5584 = vmatpush.msra.mxu1 %v952_v7  ;;  %v5256_v7 = vadd.f32 %v5255_v63, %v9349_v30 }
 0x83f   : > { %v1080_v0 = vld [vmem:[%s6981_s26 + $0x1738] sm:$0xff]  ;;  %5605 = vmatpush.msra.mxu2 %v1012_v33 }
 0x840   : > { %v880_v46 = vld [vmem:[%s6981_s26 + $0x10f8] sm:$0xff]  ;;  %5624 = vmatpush.msra.mxu3 %v1080_v0 }
 0x841   : > { %v948_v44 = vld [vmem:[%s6981_s26 + $0x1318] sm:$0xff]  ;;  %5566 = vmatpush.msra.mxu0 %v880_v46 }
 0x842   : > { %v1008_v47 = vld [vmem:[%s6981_s26 + $0x14f8] sm:$0xff]  ;;  %5585 = vmatpush.msra.mxu1 %v948_v44 }
 0x843   : > { %v1076_v2 = vld [vmem:[%s6981_s26 + $0x1718] sm:$0xff]  ;;  %5606 = vmatpush.msra.mxu2 %v1008_v47  ;;  %v5275_v47 = vpop.f32.mrf.mxu1 }
 0x844   : > { %v876_v56 = vld [vmem:[%s6981_s26 + $0x10d8] sm:$0xff]  ;;  %5625 = vmatpush.msra.mxu3 %v1076_v2  ;;  %v5276_v30 = vadd.f32 %v5275_v47, %v5256_v7 }
 0x845   : > { %v944_v13 = vld [vmem:[%s6981_s26 + $0x12f8] sm:$0xff]  ;;  %5567 = vmatpush.msra.mxu0 %v876_v56 }
 0x846   : > { %v1004_v36 = vld [vmem:[%s6981_s26 + $0x14d8] sm:$0xff]  ;;  %5586 = vmatpush.msra.mxu1 %v944_v13 }
 0x847   : > { %v1072_v48 = vld [vmem:[%s6981_s26 + $0x16f8] sm:$0xff]  ;;  %5607 = vmatpush.msra.mxu2 %v1004_v36 }
 0x848   : > { %v872_v5 = vld [vmem:[%s6981_s26 + $0x10b8] sm:$0xff]  ;;  %5626 = vmatpush.msra.mxu3 %v1072_v48 }
 0x849   : > { %v940_v35 = vld [vmem:[%s6981_s26 + $0x12d8] sm:$0xff]  ;;  %5568 = vmatpush.msra.mxu0 %v872_v5 }
 0x84a   : > { %v1000_v17 = vld [vmem:[%s6981_s26 + $0x14b8] sm:$0xff]  ;;  %5587 = vmatpush.msra.mxu1 %v940_v35  ;;  %v5295_v35 = vpop.f32.mrf.mxu2 }
 0x84b   : > { %v1068_v24 = vld [vmem:[%s6981_s26 + $0x16d8] sm:$0xff]  ;;  %5608 = vmatpush.msra.mxu2 %v1000_v17 }
 0x84c   : > { %v868_v61 = vld [vmem:[%s6981_s26 + $0x1098] sm:$0xff]  ;;  %5627 = vmatpush.msra.mxu3 %v1068_v24 }
 0x84d   : > { %v936_v60 = vld [vmem:[%s6981_s26 + $0x12b8] sm:$0xff]  ;;  %5569 = vmatpush.msra.mxu0 %v868_v61  ;;  %v5296_v61 = vadd.f32 %v5295_v35, %v5276_v30 }
 0x84e   : > { %v996_v1 = vld [vmem:[%s6981_s26 + $0x1498] sm:$0xff]  ;;  %5588 = vmatpush.msra.mxu1 %v936_v60 }
 0x84f   : > { %v1064_v55 = vld [vmem:[%s6981_s26 + $0x16b8] sm:$0xff]  ;;  %5609 = vmatpush.msra.mxu2 %v996_v1 }
 0x850   : > { %v864_v62 = vld [vmem:[%s6981_s26 + $0x1078] sm:$0xff]  ;;  %5628 = vmatpush.msra.mxu3 %v1064_v55  ;;  %v5315_v55 = vpop.f32.mrf.mxu3 }
 0x851   : > { %v932_v40 = vld [vmem:[%s6981_s26 + $0x1298] sm:$0xff]  ;;  %5570 = vmatpush.msra.mxu0 %v864_v62  ;;  %v9419_v63 = vadd.f32 %v5315_v55, %v5296_v61 }
 0x852   : > { %v992_v45 = vld [vmem:[%s6981_s26 + $0x1478] sm:$0xff]  ;;  %5589 = vmatpush.msra.mxu1 %v932_v40 }
 0x853   : > { %v1060_v22 = vld [vmem:[%s6981_s26 + $0x1698] sm:$0xff]  ;;  %5610 = vmatpush.msra.mxu2 %v992_v45 }
 0x854   : > { %v860_v33 = vld [vmem:[%s6981_s26 + $0x1058] sm:$0xff]  ;;  %5629 = vmatpush.msra.mxu3 %v1060_v22 }
 0x855   : > { %v928_v0 = vld [vmem:[%s6981_s26 + $0x1278] sm:$0xff]  ;;  %5571 = vmatpush.msra.mxu0 %v860_v33 }
 0x856   : > { %v988_v46 = vld [vmem:[%s6981_s26 + $0x1458] sm:$0xff]  ;;  %5590 = vmatpush.msra.mxu1 %v928_v0 }
 0x857   : > { %v1056_v44 = vld [vmem:[%s6981_s26 + $0x1678] sm:$0xff]  ;;  %5611 = vmatpush.msra.mxu2 %v988_v46 }
 0x858   : > { %v856_v2 = vld [vmem:[%s6981_s26 + $0x1038] sm:$0xff]  ;;  %5630 = vmatpush.msra.mxu3 %v1056_v44 }
 0x859   : > { %v924_v56 = vld [vmem:[%s6981_s26 + $0x1258] sm:$0xff]  ;;  %5572 = vmatpush.msra.mxu0 %v856_v2 }
 0x85a   : > { %v984_v13 = vld [vmem:[%s6981_s26 + $0x1438] sm:$0xff]  ;;  %5591 = vmatpush.msra.mxu1 %v924_v56 }
 0x85b   : > { %v1052_v36 = vld [vmem:[%s6981_s26 + $0x1658] sm:$0xff]  ;;  %5612 = vmatpush.msra.mxu2 %v984_v13 }
 0x85c   : > { %v852_v48 = vld [vmem:[%s6981_s26 + $0x1018] sm:$0xff]  ;;  %5631 = vmatpush.msra.mxu3 %v1052_v36 }
 0x85d   : > { %v920_v5 = vld [vmem:[%s6981_s26 + $0x1238] sm:$0xff]  ;;  %5573 = vmatpush.msra.mxu0 %v852_v48 }
 0x85e   : > { %v980_v17 = vld [vmem:[%s6981_s26 + $0x1418] sm:$0xff]  ;;  %5592 = vmatpush.msra.mxu1 %v920_v5  ;;  %5574 = vmatmul.f32.vlgmr.msra.gmra.mxu0 %v7180_v26 }
 0x85f   : > { %v1048_v24 = vld [vmem:[%s6981_s26 + $0x1638] sm:$0xff]  ;;  %5613 = vmatpush.msra.mxu2 %v980_v17 }
 0x860   : > { %v1168_v60 = vld [vmem:[%s6981_s26 + $0x19f8] sm:$0xff]  ;;  %5632 = vmatpush.msra.mxu3 %v1048_v24  ;;  %5614 = vmatmul.f32.vlgmr.msra.gmra.mxu2 %v7182_v27 }
 0x861   : > { %v1296_v1 = vld [vmem:[%s6981_s26 + $0x1df8] sm:$0xff]  ;;  %5638 = vmatpush.msrb.mxu0 %v1168_v60 }
 0x862   : > { %v916_v62 = vld [vmem:[%s6981_s26 + $0x1218] sm:$0xff]  ;;  %5678 = vmatpush.msrb.mxu2 %v1296_v1 }
 0x863   : > { %v1044_v40 = vld [vmem:[%s6981_s26 + $0x1618] sm:$0xff]  ;;  %5593 = vmatpush.msra.mxu1 %v916_v62 }
 0x864   : > { %v1164_v45 = vld [vmem:[%s6981_s26 + $0x19d8] sm:$0xff]  ;;  %5633 = vmatpush.msra.mxu3 %v1044_v40  ;;  %5594 = vmatmul.f32.vlgmr.msra.gmra.mxu1 %v7184_v28 }
 0x865   : > { %v1232_v22 = vld [vmem:[%s6981_s26 + $0x1bf8] sm:$0xff]  ;;  %5634 = vmatmul.f32.vlgmr.msra.gmra.mxu3 %v7188_v31  ;;  %5639 = vmatpush.msrb.mxu0 %v1164_v45 }
 0x866   : > { %v1292_v7 = vld [vmem:[%s6981_s26 + $0x1dd8] sm:$0xff]  ;;  %5658 = vmatpush.msrb.mxu1 %v1232_v22 }
 0x867   : > { %v1360_v33 = vld [vmem:[%s6981_s26 + $0x1ff8] sm:$0xff]  ;;  %5679 = vmatpush.msrb.mxu2 %v1292_v7 }
 0x868   : > { %v1160_v26 = vld [vmem:[%s6981_s26 + $0x19b8] sm:$0xff]  ;;  %5698 = vmatpush.msrb.mxu3 %v1360_v33 }
 0x869   : > { %v1228_v27 = vld [vmem:[%s6981_s26 + $0x1bd8] sm:$0xff]  ;;  %5640 = vmatpush.msrb.mxu0 %v1160_v26 }
 0x86a   : > { %v1288_v0 = vld [vmem:[%s6981_s26 + $0x1db8] sm:$0xff]  ;;  %5659 = vmatpush.msrb.mxu1 %v1228_v27 }
 0x86b   : > { %v1356_v46 = vld [vmem:[%s6981_s26 + $0x1fd8] sm:$0xff]  ;;  %5680 = vmatpush.msrb.mxu2 %v1288_v0 }
 0x86c   : > { %v1156_v44 = vld [vmem:[%s6981_s26 + $0x1998] sm:$0xff]  ;;  %5699 = vmatpush.msrb.mxu3 %v1356_v46 }
 0x86d   : > { %v1224_v47 = vld [vmem:[%s6981_s26 + $0x1bb8] sm:$0xff]  ;;  %5641 = vmatpush.msrb.mxu0 %v1156_v44 }
 0x86e   : > { %v1284_v28 = vld [vmem:[%s6981_s26 + $0x1d98] sm:$0xff]  ;;  %5660 = vmatpush.msrb.mxu1 %v1224_v47 }
 0x86f   : > { %v1352_v31 = vld [vmem:[%s6981_s26 + $0x1fb8] sm:$0xff]  ;;  %5681 = vmatpush.msrb.mxu2 %v1284_v28 }
 0x870   : > { %v1152_v2 = vld [vmem:[%s6981_s26 + $0x1978] sm:$0xff]  ;;  %5700 = vmatpush.msrb.mxu3 %v1352_v31 }
 0x871   : > { %v1220_v56 = vld [vmem:[%s6981_s26 + $0x1b98] sm:$0xff]  ;;  %5642 = vmatpush.msrb.mxu0 %v1152_v2 }
 0x872   : > { %v1280_v30 = vld [vmem:[%s6981_s26 + $0x1d78] sm:$0xff]  ;;  %5661 = vmatpush.msrb.mxu1 %v1220_v56 }
 0x873   : > { %v1348_v13 = vld [vmem:[%s6981_s26 + $0x1f98] sm:$0xff]  ;;  %5682 = vmatpush.msrb.mxu2 %v1280_v30 }
 0x874   : > { %v1148_v36 = vld [vmem:[%s6981_s26 + $0x1958] sm:$0xff]  ;;  %5701 = vmatpush.msrb.mxu3 %v1348_v13 }
 0x875   : > { %v1216_v48 = vld [vmem:[%s6981_s26 + $0x1b78] sm:$0xff]  ;;  %5643 = vmatpush.msrb.mxu0 %v1148_v36 }
 0x876   : > { %v1276_v5 = vld [vmem:[%s6981_s26 + $0x1d58] sm:$0xff]  ;;  %5662 = vmatpush.msrb.mxu1 %v1216_v48 }
 0x877   : > { %v1344_v35 = vld [vmem:[%s6981_s26 + $0x1f78] sm:$0xff]  ;;  %5683 = vmatpush.msrb.mxu2 %v1276_v5  ;;  %v5335_v5 = vpop.f32.mrf.mxu0 }
 0x878   : > { %v1144_v17 = vld [vmem:[%s6981_s26 + $0x1938] sm:$0xff]  ;;  %5702 = vmatpush.msrb.mxu3 %v1344_v35 }
 0x879   : > { %v1212_v24 = vld [vmem:[%s6981_s26 + $0x1b58] sm:$0xff]  ;;  %5644 = vmatpush.msrb.mxu0 %v1144_v17 }
 0x87a   : > { %v1272_v61 = vld [vmem:[%s6981_s26 + $0x1d38] sm:$0xff]  ;;  %5663 = vmatpush.msrb.mxu1 %v1212_v24  ;;  %v5336_v24 = vadd.f32 %v5335_v5, %v9419_v63 }
 0x87b   : > { %v1340_v60 = vld [vmem:[%s6981_s26 + $0x1f58] sm:$0xff]  ;;  %5684 = vmatpush.msrb.mxu2 %v1272_v61 }
 0x87c   : > { %v1140_v1 = vld [vmem:[%s6981_s26 + $0x1918] sm:$0xff]  ;;  %5703 = vmatpush.msrb.mxu3 %v1340_v60 }
 0x87d   : > { %v1208_v55 = vld [vmem:[%s6981_s26 + $0x1b38] sm:$0xff]  ;;  %5645 = vmatpush.msrb.mxu0 %v1140_v1 }
 0x87e   : > { %v1268_v62 = vld [vmem:[%s6981_s26 + $0x1d18] sm:$0xff]  ;;  %5664 = vmatpush.msrb.mxu1 %v1208_v55 }
 0x87f   : > { %v1336_v40 = vld [vmem:[%s6981_s26 + $0x1f38] sm:$0xff]  ;;  %5685 = vmatpush.msrb.mxu2 %v1268_v62  ;;  %v5355_v62 = vpop.f32.mrf.mxu1 }
 0x880   : > { %v1136_v45 = vld [vmem:[%s6981_s26 + $0x18f8] sm:$0xff]  ;;  %5704 = vmatpush.msrb.mxu3 %v1336_v40 }
 0x881   : > { %v1204_v22 = vld [vmem:[%s6981_s26 + $0x1b18] sm:$0xff]  ;;  %5646 = vmatpush.msrb.mxu0 %v1136_v45 }
 0x882   : > { %v1264_v7 = vld [vmem:[%s6981_s26 + $0x1cf8] sm:$0xff]  ;;  %5665 = vmatpush.msrb.mxu1 %v1204_v22 }
 0x883   : > { %v1332_v33 = vld [vmem:[%s6981_s26 + $0x1f18] sm:$0xff]  ;;  %5686 = vmatpush.msrb.mxu2 %v1264_v7  ;;  %v5356_v7 = vadd.f32 %v5355_v62, %v5336_v24 }
 0x884   : > { %v1132_v26 = vld [vmem:[%s6981_s26 + $0x18d8] sm:$0xff]  ;;  %5705 = vmatpush.msrb.mxu3 %v1332_v33 }
 0x885   : > { %v1200_v27 = vld [vmem:[%s6981_s26 + $0x1af8] sm:$0xff]  ;;  %5647 = vmatpush.msrb.mxu0 %v1132_v26 }
 0x886   : > { %v1260_v0 = vld [vmem:[%s6981_s26 + $0x1cd8] sm:$0xff]  ;;  %5666 = vmatpush.msrb.mxu1 %v1200_v27  ;;  %v5375_v27 = vpop.f32.mrf.mxu2 }
 0x887   : > { %v1328_v46 = vld [vmem:[%s6981_s26 + $0x1ef8] sm:$0xff]  ;;  %5687 = vmatpush.msrb.mxu2 %v1260_v0 }
 0x888   : > { %v1128_v44 = vld [vmem:[%s6981_s26 + $0x18b8] sm:$0xff]  ;;  %5706 = vmatpush.msrb.mxu3 %v1328_v46 }
 0x889   : > { %v1196_v47 = vld [vmem:[%s6981_s26 + $0x1ad8] sm:$0xff]  ;;  %5648 = vmatpush.msrb.mxu0 %v1128_v44  ;;  %v5376_v44 = vadd.f32 %v5375_v27, %v5356_v7 }
 0x88a   : > { %v1256_v28 = vld [vmem:[%s6981_s26 + $0x1cb8] sm:$0xff]  ;;  %5667 = vmatpush.msrb.mxu1 %v1196_v47 }
 0x88b   : > { %v1324_v31 = vld [vmem:[%s6981_s26 + $0x1ed8] sm:$0xff]  ;;  %5688 = vmatpush.msrb.mxu2 %v1256_v28 }
 0x88c   : > { %v1124_v2 = vld [vmem:[%s6981_s26 + $0x1898] sm:$0xff]  ;;  %5707 = vmatpush.msrb.mxu3 %v1324_v31  ;;  %v5395_v31 = vpop.f32.mrf.mxu3 }
 0x88d   : > { %v1192_v56 = vld [vmem:[%s6981_s26 + $0x1ab8] sm:$0xff]  ;;  %5649 = vmatpush.msrb.mxu0 %v1124_v2 }
 0x88e   : > { %v1252_v30 = vld [vmem:[%s6981_s26 + $0x1c98] sm:$0xff]  ;;  %5668 = vmatpush.msrb.mxu1 %v1192_v56 }
 0x88f   : > { %v1320_v13 = vld [vmem:[%s6981_s26 + $0x1eb8] sm:$0xff]  ;;  %5689 = vmatpush.msrb.mxu2 %v1252_v30  ;;  %v9490_v30 = vadd.f32 %v5395_v31, %v5376_v44 }
 0x890   : > { %v1120_v36 = vld [vmem:[%s6981_s26 + $0x1878] sm:$0xff]  ;;  %5708 = vmatpush.msrb.mxu3 %v1320_v13 }
 0x891   : > { %v1188_v48 = vld [vmem:[%s6981_s26 + $0x1a98] sm:$0xff]  ;;  %5650 = vmatpush.msrb.mxu0 %v1120_v36 }
 0x892   : > { %v1248_v35 = vld [vmem:[%s6981_s26 + $0x1c78] sm:$0xff]  ;;  %5669 = vmatpush.msrb.mxu1 %v1188_v48 }
 0x893   : > { %v1316_v17 = vld [vmem:[%s6981_s26 + $0x1e98] sm:$0xff]  ;;  %5690 = vmatpush.msrb.mxu2 %v1248_v35 }
 0x894   : > { %v1116_v61 = vld [vmem:[%s6981_s26 + $0x1858] sm:$0xff]  ;;  %5709 = vmatpush.msrb.mxu3 %v1316_v17 }
 0x895   : > { %v1184_v60 = vld [vmem:[%s6981_s26 + $0x1a78] sm:$0xff]  ;;  %5651 = vmatpush.msrb.mxu0 %v1116_v61 }
 0x896   : > { %v1244_v1 = vld [vmem:[%s6981_s26 + $0x1c58] sm:$0xff]  ;;  %5670 = vmatpush.msrb.mxu1 %v1184_v60 }
 0x897   : > { %v1312_v55 = vld [vmem:[%s6981_s26 + $0x1e78] sm:$0xff]  ;;  %5691 = vmatpush.msrb.mxu2 %v1244_v1 }
 0x898   : > { %v1112_v40 = vld [vmem:[%s6981_s26 + $0x1838] sm:$0xff]  ;;  %5710 = vmatpush.msrb.mxu3 %v1312_v55 }
 0x899   : > { %v1180_v45 = vld [vmem:[%s6981_s26 + $0x1a58] sm:$0xff]  ;;  %5652 = vmatpush.msrb.mxu0 %v1112_v40 }
 0x89a   : > { %v1240_v63 = vld [vmem:[%s6981_s26 + $0x1c38] sm:$0xff]  ;;  %5671 = vmatpush.msrb.mxu1 %v1180_v45 }
 0x89b   : > { %v1308_v22 = vld [vmem:[%s6981_s26 + $0x1e58] sm:$0xff]  ;;  %5692 = vmatpush.msrb.mxu2 %v1240_v63 }
 0x89c   : > { %v1108_v33 = vld [vmem:[%s6981_s26 + $0x1818] sm:$0xff]  ;;  %5711 = vmatpush.msrb.mxu3 %v1308_v22 }
 0x89d   : > { %v1176_v26 = vld [vmem:[%s6981_s26 + $0x1a38] sm:$0xff]  ;;  %5653 = vmatpush.msrb.mxu0 %v1108_v33 }
 0x89e   : > { %v1236_v0 = vld [vmem:[%s6981_s26 + $0x1c18] sm:$0xff]  ;;  %5672 = vmatpush.msrb.mxu1 %v1176_v26  ;;  %5654 = vmatmul.f32.vlgmr.msrb.gmra.mxu0 %v7259_v41 }
 0x89f   : > { %v1304_v46 = vld [vmem:[%s6981_s26 + $0x1e38] sm:$0xff]  ;;  %5693 = vmatpush.msrb.mxu2 %v1236_v0 }
 0x8a0   : > { %v1424_v47 = vld [vmem:[%s6981_s26 + $0x21f8] sm:$0xff]  ;;  %5712 = vmatpush.msrb.mxu3 %v1304_v46  ;;  %5694 = vmatmul.f32.vlgmr.msrb.gmra.mxu2 %v7261_v42 }
 0x8a1   : > { %v1552_v28 = vld [vmem:[%s6981_s26 + $0x25f8] sm:$0xff]  ;;  %5718 = vmatpush.msra.mxu0 %v1424_v47 }
 0x8a2   : > { %v1172_v2 = vld [vmem:[%s6981_s26 + $0x1a18] sm:$0xff]  ;;  %5758 = vmatpush.msra.mxu2 %v1552_v28 }
 0x8a3   : > { %v1300_v56 = vld [vmem:[%s6981_s26 + $0x1e18] sm:$0xff]  ;;  %5673 = vmatpush.msrb.mxu1 %v1172_v2 }
 0x8a4   : > { %v1420_v13 = vld [vmem:[%s6981_s26 + $0x21d8] sm:$0xff]  ;;  %5713 = vmatpush.msrb.mxu3 %v1300_v56  ;;  %5674 = vmatmul.f32.vlgmr.msrb.gmra.mxu1 %v7263_v43 }
 0x8a5   : > { %v1488_v36 = vld [vmem:[%s6981_s26 + $0x23f8] sm:$0xff]  ;;  %5714 = vmatmul.f32.vlgmr.msrb.gmra.mxu3 %v7267_v50  ;;  %5719 = vmatpush.msra.mxu0 %v1420_v13 }
 0x8a6   : > { %v1548_v48 = vld [vmem:[%s6981_s26 + $0x25d8] sm:$0xff]  ;;  %5738 = vmatpush.msra.mxu1 %v1488_v36 }
 0x8a7   : > { %v1616_v5 = vld [vmem:[%s6981_s26 + $0x27f8] sm:$0xff]  ;;  %5759 = vmatpush.msra.mxu2 %v1548_v48 }
 0x8a8   : > { %v1416_v41 = vld [vmem:[%s6981_s26 + $0x21b8] sm:$0xff]  ;;  %5778 = vmatpush.msra.mxu3 %v1616_v5 }
 0x8a9   : > { %v1484_v42 = vld [vmem:[%s6981_s26 + $0x23d8] sm:$0xff]  ;;  %5720 = vmatpush.msra.mxu0 %v1416_v41 }
 0x8aa   : > { %v1544_v35 = vld [vmem:[%s6981_s26 + $0x25b8] sm:$0xff]  ;;  %5739 = vmatpush.msra.mxu1 %v1484_v42 }
 0x8ab   : > { %v1612_v17 = vld [vmem:[%s6981_s26 + $0x27d8] sm:$0xff]  ;;  %5760 = vmatpush.msra.mxu2 %v1544_v35 }
 0x8ac   : > { %v1412_v24 = vld [vmem:[%s6981_s26 + $0x2198] sm:$0xff]  ;;  %5779 = vmatpush.msra.mxu3 %v1612_v17 }
 0x8ad   : > { %v1480_v61 = vld [vmem:[%s6981_s26 + $0x23b8] sm:$0xff]  ;;  %5721 = vmatpush.msra.mxu0 %v1412_v24 }
 0x8ae   : > { %v1540_v43 = vld [vmem:[%s6981_s26 + $0x2598] sm:$0xff]  ;;  %5740 = vmatpush.msra.mxu1 %v1480_v61 }
 0x8af   : > { %v1608_v50 = vld [vmem:[%s6981_s26 + $0x27b8] sm:$0xff]  ;;  %5761 = vmatpush.msra.mxu2 %v1540_v43 }
 0x8b0   : > { %v1408_v60 = vld [vmem:[%s6981_s26 + $0x2178] sm:$0xff]  ;;  %5780 = vmatpush.msra.mxu3 %v1608_v50 }
 0x8b1   : > { %v1476_v1 = vld [vmem:[%s6981_s26 + $0x2398] sm:$0xff]  ;;  %5722 = vmatpush.msra.mxu0 %v1408_v60 }
 0x8b2   : > { %v1536_v55 = vld [vmem:[%s6981_s26 + $0x2578] sm:$0xff]  ;;  %5741 = vmatpush.msra.mxu1 %v1476_v1 }
 0x8b3   : > { %v1604_v62 = vld [vmem:[%s6981_s26 + $0x2798] sm:$0xff]  ;;  %5762 = vmatpush.msra.mxu2 %v1536_v55 }
 0x8b4   : > { %v1404_v40 = vld [vmem:[%s6981_s26 + $0x2158] sm:$0xff]  ;;  %5781 = vmatpush.msra.mxu3 %v1604_v62 }
 0x8b5   : > { %v1472_v45 = vld [vmem:[%s6981_s26 + $0x2378] sm:$0xff]  ;;  %5723 = vmatpush.msra.mxu0 %v1404_v40 }
 0x8b6   : > { %v1532_v63 = vld [vmem:[%s6981_s26 + $0x2558] sm:$0xff]  ;;  %5742 = vmatpush.msra.mxu1 %v1472_v45 }
 0x8b7   : > { %v1600_v22 = vld [vmem:[%s6981_s26 + $0x2778] sm:$0xff]  ;;  %5763 = vmatpush.msra.mxu2 %v1532_v63 }
 0x8b8   : > { %v1400_v7 = vld [vmem:[%s6981_s26 + $0x2138] sm:$0xff]  ;;  %5782 = vmatpush.msra.mxu3 %v1600_v22 }
 0x8b9   : > { %v1468_v33 = vld [vmem:[%s6981_s26 + $0x2358] sm:$0xff]  ;;  %5724 = vmatpush.msra.mxu0 %v1400_v7 }
 0x8ba   : > { %v1528_v26 = vld [vmem:[%s6981_s26 + $0x2538] sm:$0xff]  ;;  %5743 = vmatpush.msra.mxu1 %v1468_v33 }
 0x8bb   : > { %v1596_v27 = vld [vmem:[%s6981_s26 + $0x2758] sm:$0xff]  ;;  %5764 = vmatpush.msra.mxu2 %v1528_v26 }
 0x8bc   : > { %v1396_v0 = vld [vmem:[%s6981_s26 + $0x2118] sm:$0xff]  ;;  %5783 = vmatpush.msra.mxu3 %v1596_v27 }
 0x8bd   : > { %v1464_v46 = vld [vmem:[%s6981_s26 + $0x2338] sm:$0xff]  ;;  %5725 = vmatpush.msra.mxu0 %v1396_v0 }
 0x8be   : > { %v1524_v44 = vld [vmem:[%s6981_s26 + $0x2518] sm:$0xff]  ;;  %5744 = vmatpush.msra.mxu1 %v1464_v46 }
 0x8bf   : > { %v1592_v47 = vld [vmem:[%s6981_s26 + $0x2738] sm:$0xff]  ;;  %5765 = vmatpush.msra.mxu2 %v1524_v44 }
 0x8c0   : > { %v1392_v28 = vld [vmem:[%s6981_s26 + $0x20f8] sm:$0xff]  ;;  %5784 = vmatpush.msra.mxu3 %v1592_v47 }
 0x8c1   : > { %v1460_v31 = vld [vmem:[%s6981_s26 + $0x2318] sm:$0xff]  ;;  %5726 = vmatpush.msra.mxu0 %v1392_v28 }
 0x8c2   : > { %v1520_v2 = vld [vmem:[%s6981_s26 + $0x24f8] sm:$0xff]  ;;  %5745 = vmatpush.msra.mxu1 %v1460_v31 }
 0x8c3   : > { %v1588_v56 = vld [vmem:[%s6981_s26 + $0x2718] sm:$0xff]  ;;  %5766 = vmatpush.msra.mxu2 %v1520_v2 }
 0x8c4   : > { %v1388_v13 = vld [vmem:[%s6981_s26 + $0x20d8] sm:$0xff]  ;;  %5785 = vmatpush.msra.mxu3 %v1588_v56 }
 0x8c5   : > { %v1456_v36 = vld [vmem:[%s6981_s26 + $0x22f8] sm:$0xff]  ;;  %5727 = vmatpush.msra.mxu0 %v1388_v13 }
 0x8c6   : > { %v1516_v48 = vld [vmem:[%s6981_s26 + $0x24d8] sm:$0xff]  ;;  %5746 = vmatpush.msra.mxu1 %v1456_v36 }
 0x8c7   : > { %v1584_v5 = vld [vmem:[%s6981_s26 + $0x26f8] sm:$0xff]  ;;  %5767 = vmatpush.msra.mxu2 %v1516_v48 }
 0x8c8   : > { %v1384_v41 = vld [vmem:[%s6981_s26 + $0x20b8] sm:$0xff]  ;;  %5786 = vmatpush.msra.mxu3 %v1584_v5 }
 0x8c9   : > { %v1452_v42 = vld [vmem:[%s6981_s26 + $0x22d8] sm:$0xff]  ;;  %5728 = vmatpush.msra.mxu0 %v1384_v41 }
 0x8ca   : > { %v1512_v35 = vld [vmem:[%s6981_s26 + $0x24b8] sm:$0xff]  ;;  %5747 = vmatpush.msra.mxu1 %v1452_v42 }
 0x8cb   : > { %v1580_v17 = vld [vmem:[%s6981_s26 + $0x26d8] sm:$0xff]  ;;  %5768 = vmatpush.msra.mxu2 %v1512_v35 }
 0x8cc   : > { %v1380_v24 = vld [vmem:[%s6981_s26 + $0x2098] sm:$0xff]  ;;  %5787 = vmatpush.msra.mxu3 %v1580_v17 }
 0x8cd   : > { %v1448_v61 = vld [vmem:[%s6981_s26 + $0x22b8] sm:$0xff]  ;;  %5729 = vmatpush.msra.mxu0 %v1380_v24 }
 0x8ce   : > { %v1508_v43 = vld [vmem:[%s6981_s26 + $0x2498] sm:$0xff]  ;;  %5748 = vmatpush.msra.mxu1 %v1448_v61 }
 0x8cf   : > { %v1576_v50 = vld [vmem:[%s6981_s26 + $0x26b8] sm:$0xff]  ;;  %5769 = vmatpush.msra.mxu2 %v1508_v43 }
 0x8d0   : > { %v1376_v60 = vld [vmem:[%s6981_s26 + $0x2078] sm:$0xff]  ;;  %5788 = vmatpush.msra.mxu3 %v1576_v50 }
 0x8d1   : > { %v1444_v1 = vld [vmem:[%s6981_s26 + $0x2298] sm:$0xff]  ;;  %5730 = vmatpush.msra.mxu0 %v1376_v60 }
 0x8d2   : > { %v1504_v55 = vld [vmem:[%s6981_s26 + $0x2478] sm:$0xff]  ;;  %5749 = vmatpush.msra.mxu1 %v1444_v1 }
 0x8d3   : > { %v1572_v62 = vld [vmem:[%s6981_s26 + $0x2698] sm:$0xff]  ;;  %5770 = vmatpush.msra.mxu2 %v1504_v55 }
 0x8d4   : > { %v1372_v40 = vld [vmem:[%s6981_s26 + $0x2058] sm:$0xff]  ;;  %5789 = vmatpush.msra.mxu3 %v1572_v62 }
 0x8d5   : > { %v1440_v45 = vld [vmem:[%s6981_s26 + $0x2278] sm:$0xff]  ;;  %5731 = vmatpush.msra.mxu0 %v1372_v40 }
 0x8d6   : > { %v1500_v63 = vld [vmem:[%s6981_s26 + $0x2458] sm:$0xff]  ;;  %5750 = vmatpush.msra.mxu1 %v1440_v45 }
 0x8d7   : > { %v1568_v22 = vld [vmem:[%s6981_s26 + $0x2678] sm:$0xff]  ;;  %5771 = vmatpush.msra.mxu2 %v1500_v63 }
 0x8d8   : > { %v1368_v7 = vld [vmem:[%s6981_s26 + $0x2038] sm:$0xff]  ;;  %5790 = vmatpush.msra.mxu3 %v1568_v22 }
 0x8d9   : > { %v1436_v33 = vld [vmem:[%s6981_s26 + $0x2258] sm:$0xff]  ;;  %5732 = vmatpush.msra.mxu0 %v1368_v7 }
 0x8da   : > { %v1496_v26 = vld [vmem:[%s6981_s26 + $0x2438] sm:$0xff]  ;;  %5751 = vmatpush.msra.mxu1 %v1436_v33 }
 0x8db   : > { %v1564_v27 = vld [vmem:[%s6981_s26 + $0x2658] sm:$0xff]  ;;  %5772 = vmatpush.msra.mxu2 %v1496_v26 }
 0x8dc   : > { %v1364_v0 = vld [vmem:[%s6981_s26 + $0x2018] sm:$0xff]  ;;  %5791 = vmatpush.msra.mxu3 %v1564_v27 }
 0x8dd   : > { %v1432_v46 = vld [vmem:[%s6981_s26 + $0x2238] sm:$0xff]  ;;  %5733 = vmatpush.msra.mxu0 %v1364_v0 }
 0x8de   : > { %v1492_v44 = vld [vmem:[%s6981_s26 + $0x2418] sm:$0xff]  ;;  %5752 = vmatpush.msra.mxu1 %v1432_v46  ;;  %5734 = vmatmul.f32.vlgmr.msra.gmra.mxu0 %v7387_v9 }
 0x8df   : > { %v1560_v47 = vld [vmem:[%s6981_s26 + $0x2638] sm:$0xff]  ;;  %5773 = vmatpush.msra.mxu2 %v1492_v44 }
 0x8e0   : > { %v1680_v28 = vld [vmem:[%s6981_s26 + $0x29f8] sm:$0xff]  ;;  %5792 = vmatpush.msra.mxu3 %v1560_v47  ;;  %5774 = vmatmul.f32.vlgmr.msra.gmra.mxu2 %v7389_v10 }
 0x8e1   : > { %v1808_v31 = vld [vmem:[%s6981_s26 + $0x2df8] sm:$0xff]  ;;  %5798 = vmatpush.msrb.mxu0 %v1680_v28 }
 0x8e2   : > { %v1428_v2 = vld [vmem:[%s6981_s26 + $0x2218] sm:$0xff]  ;;  %5838 = vmatpush.msrb.mxu2 %v1808_v31 }
 0x8e3   : > { %v1556_v56 = vld [vmem:[%s6981_s26 + $0x2618] sm:$0xff]  ;;  %5753 = vmatpush.msra.mxu1 %v1428_v2 }
 0x8e4   : > { %v1676_v13 = vld [vmem:[%s6981_s26 + $0x29d8] sm:$0xff]  ;;  %5793 = vmatpush.msra.mxu3 %v1556_v56  ;;  %5754 = vmatmul.f32.vlgmr.msra.gmra.mxu1 %v7397_v15 }
 0x8e5   : > { %v1744_v36 = vld [vmem:[%s6981_s26 + $0x2bf8] sm:$0xff]  ;;  %5794 = vmatmul.f32.vlgmr.msra.gmra.mxu3 %v7399_v16  ;;  %5799 = vmatpush.msrb.mxu0 %v1676_v13 }
 0x8e6   : > { %v1804_v48 = vld [vmem:[%s6981_s26 + $0x2dd8] sm:$0xff]  ;;  %5818 = vmatpush.msrb.mxu1 %v1744_v36 }
 0x8e7   : > { %v1872_v5 = vld [vmem:[%s6981_s26 + $0x2ff8] sm:$0xff]  ;;  %5839 = vmatpush.msrb.mxu2 %v1804_v48 }
 0x8e8   : > { %v1672_v9 = vld [vmem:[%s6981_s26 + $0x29b8] sm:$0xff]  ;;  %5858 = vmatpush.msrb.mxu3 %v1872_v5 }
 0x8e9   : > { %v1740_v10 = vld [vmem:[%s6981_s26 + $0x2bd8] sm:$0xff]  ;;  %5800 = vmatpush.msrb.mxu0 %v1672_v9 }
 0x8ea   : > { %v1800_v41 = vld [vmem:[%s6981_s26 + $0x2db8] sm:$0xff]  ;;  %5819 = vmatpush.msrb.mxu1 %v1740_v10 }
 0x8eb   : > { %v1868_v42 = vld [vmem:[%s6981_s26 + $0x2fd8] sm:$0xff]  ;;  %5840 = vmatpush.msrb.mxu2 %v1800_v41 }
 0x8ec   : > { %v1668_v35 = vld [vmem:[%s6981_s26 + $0x2998] sm:$0xff]  ;;  %5859 = vmatpush.msrb.mxu3 %v1868_v42 }
 0x8ed   : > { %v1736_v17 = vld [vmem:[%s6981_s26 + $0x2bb8] sm:$0xff]  ;;  %5801 = vmatpush.msrb.mxu0 %v1668_v35 }
 0x8ee   : > { %v1796_v15 = vld [vmem:[%s6981_s26 + $0x2d98] sm:$0xff]  ;;  %5820 = vmatpush.msrb.mxu1 %v1736_v17 }
 0x8ef   : > { %v1864_v16 = vld [vmem:[%s6981_s26 + $0x2fb8] sm:$0xff]  ;;  %5841 = vmatpush.msrb.mxu2 %v1796_v15 }
 0x8f0   : > { %v1664_v24 = vld [vmem:[%s6981_s26 + $0x2978] sm:$0xff]  ;;  %5860 = vmatpush.msrb.mxu3 %v1864_v16 }
 0x8f1   : > { %v1732_v61 = vld [vmem:[%s6981_s26 + $0x2b98] sm:$0xff]  ;;  %5802 = vmatpush.msrb.mxu0 %v1664_v24 }
 0x8f2   : > { %v1792_v43 = vld [vmem:[%s6981_s26 + $0x2d78] sm:$0xff]  ;;  %5821 = vmatpush.msrb.mxu1 %v1732_v61 }
 0x8f3   : > { %v1860_v50 = vld [vmem:[%s6981_s26 + $0x2f98] sm:$0xff]  ;;  %5842 = vmatpush.msrb.mxu2 %v1792_v43 }
 0x8f4   : > { %v1660_v60 = vld [vmem:[%s6981_s26 + $0x2958] sm:$0xff]  ;;  %5861 = vmatpush.msrb.mxu3 %v1860_v50 }
 0x8f5   : > { %v1728_v1 = vld [vmem:[%s6981_s26 + $0x2b78] sm:$0xff]  ;;  %5803 = vmatpush.msrb.mxu0 %v1660_v60 }
 0x8f6   : > { %v1788_v55 = vld [vmem:[%s6981_s26 + $0x2d58] sm:$0xff]  ;;  %5822 = vmatpush.msrb.mxu1 %v1728_v1 }
 0x8f7   : > { %v1856_v62 = vld [vmem:[%s6981_s26 + $0x2f78] sm:$0xff]  ;;  %5843 = vmatpush.msrb.mxu2 %v1788_v55 }
 0x8f8   : > { %v1656_v40 = vld [vmem:[%s6981_s26 + $0x2938] sm:$0xff]  ;;  %5862 = vmatpush.msrb.mxu3 %v1856_v62 }
 0x8f9   : > { %v1724_v45 = vld [vmem:[%s6981_s26 + $0x2b58] sm:$0xff]  ;;  %5804 = vmatpush.msrb.mxu0 %v1656_v40 }
 0x8fa   : > { %v1784_v63 = vld [vmem:[%s6981_s26 + $0x2d38] sm:$0xff]  ;;  %5823 = vmatpush.msrb.mxu1 %v1724_v45 }
 0x8fb   : > { %v1852_v22 = vld [vmem:[%s6981_s26 + $0x2f58] sm:$0xff]  ;;  %5844 = vmatpush.msrb.mxu2 %v1784_v63 }
 0x8fc   : > { %v1652_v7 = vld [vmem:[%s6981_s26 + $0x2918] sm:$0xff]  ;;  %5863 = vmatpush.msrb.mxu3 %v1852_v22 }
 0x8fd   : > { %v1720_v33 = vld [vmem:[%s6981_s26 + $0x2b38] sm:$0xff]  ;;  %5805 = vmatpush.msrb.mxu0 %v1652_v7 }
 0x8fe   : > { %v1780_v26 = vld [vmem:[%s6981_s26 + $0x2d18] sm:$0xff]  ;;  %5824 = vmatpush.msrb.mxu1 %v1720_v33 }
 0x8ff   : > { %v1848_v27 = vld [vmem:[%s6981_s26 + $0x2f38] sm:$0xff]  ;;  %5845 = vmatpush.msrb.mxu2 %v1780_v26 }
 0x900   : > { %v1648_v0 = vld [vmem:[%s6981_s26 + $0x28f8] sm:$0xff]  ;;  %5864 = vmatpush.msrb.mxu3 %v1848_v27 }
 0x901   : > { %v1716_v46 = vld [vmem:[%s6981_s26 + $0x2b18] sm:$0xff]  ;;  %5806 = vmatpush.msrb.mxu0 %v1648_v0 }
 0x902   : > { %v1776_v44 = vld [vmem:[%s6981_s26 + $0x2cf8] sm:$0xff]  ;;  %5825 = vmatpush.msrb.mxu1 %v1716_v46 }
 0x903   : > { %v1844_v47 = vld [vmem:[%s6981_s26 + $0x2f18] sm:$0xff]  ;;  %5846 = vmatpush.msrb.mxu2 %v1776_v44 }
 0x904   : > { %v1644_v28 = vld [vmem:[%s6981_s26 + $0x28d8] sm:$0xff]  ;;  %5865 = vmatpush.msrb.mxu3 %v1844_v47 }
 0x905   : > { %v1712_v31 = vld [vmem:[%s6981_s26 + $0x2af8] sm:$0xff]  ;;  %5807 = vmatpush.msrb.mxu0 %v1644_v28 }
 0x906   : > { %v1772_v2 = vld [vmem:[%s6981_s26 + $0x2cd8] sm:$0xff]  ;;  %5826 = vmatpush.msrb.mxu1 %v1712_v31 }
 0x907   : > { %v1840_v56 = vld [vmem:[%s6981_s26 + $0x2ef8] sm:$0xff]  ;;  %5847 = vmatpush.msrb.mxu2 %v1772_v2 }
 0x908   : > { %v1640_v13 = vld [vmem:[%s6981_s26 + $0x28b8] sm:$0xff]  ;;  %5866 = vmatpush.msrb.mxu3 %v1840_v56 }
 0x909   : > { %v1708_v36 = vld [vmem:[%s6981_s26 + $0x2ad8] sm:$0xff]  ;;  %5808 = vmatpush.msrb.mxu0 %v1640_v13 }
 0x90a   : > { %v1768_v48 = vld [vmem:[%s6981_s26 + $0x2cb8] sm:$0xff]  ;;  %5827 = vmatpush.msrb.mxu1 %v1708_v36 }
 0x90b   : > { %v1836_v5 = vld [vmem:[%s6981_s26 + $0x2ed8] sm:$0xff]  ;;  %5848 = vmatpush.msrb.mxu2 %v1768_v48 }
 0x90c   : > { %v1636_v9 = vld [vmem:[%s6981_s26 + $0x2898] sm:$0xff]  ;;  %5867 = vmatpush.msrb.mxu3 %v1836_v5 }
 0x90d   : > { %v1704_v10 = vld [vmem:[%s6981_s26 + $0x2ab8] sm:$0xff]  ;;  %5809 = vmatpush.msrb.mxu0 %v1636_v9 }
 0x90e   : > { %v1764_v41 = vld [vmem:[%s6981_s26 + $0x2c98] sm:$0xff]  ;;  %5828 = vmatpush.msrb.mxu1 %v1704_v10 }
 0x90f   : > { %v1832_v42 = vld [vmem:[%s6981_s26 + $0x2eb8] sm:$0xff]  ;;  %5849 = vmatpush.msrb.mxu2 %v1764_v41 }
 0x910   : > { %v1632_v35 = vld [vmem:[%s6981_s26 + $0x2878] sm:$0xff]  ;;  %5868 = vmatpush.msrb.mxu3 %v1832_v42 }
 0x911   : > { %v1700_v17 = vld [vmem:[%s6981_s26 + $0x2a98] sm:$0xff]  ;;  %5810 = vmatpush.msrb.mxu0 %v1632_v35 }
 0x912   : > { %v1760_v15 = vld [vmem:[%s6981_s26 + $0x2c78] sm:$0xff]  ;;  %5829 = vmatpush.msrb.mxu1 %v1700_v17 }
 0x913   : > { %v1828_v16 = vld [vmem:[%s6981_s26 + $0x2e98] sm:$0xff]  ;;  %5850 = vmatpush.msrb.mxu2 %v1760_v15 }
 0x914   : > { %v1628_v24 = vld [vmem:[%s6981_s26 + $0x2858] sm:$0xff]  ;;  %5869 = vmatpush.msrb.mxu3 %v1828_v16 }
 0x915   : > { %v1696_v61 = vld [vmem:[%s6981_s26 + $0x2a78] sm:$0xff]  ;;  %5811 = vmatpush.msrb.mxu0 %v1628_v24 }
 0x916   : > { %v1756_v43 = vld [vmem:[%s6981_s26 + $0x2c58] sm:$0xff]  ;;  %5830 = vmatpush.msrb.mxu1 %v1696_v61 }
 0x917   : > { %v1824_v50 = vld [vmem:[%s6981_s26 + $0x2e78] sm:$0xff]  ;;  %5851 = vmatpush.msrb.mxu2 %v1756_v43 }
 0x918   : > { %v1624_v60 = vld [vmem:[%s6981_s26 + $0x2838] sm:$0xff]  ;;  %5870 = vmatpush.msrb.mxu3 %v1824_v50 }
 0x919   : > { %v1692_v1 = vld [vmem:[%s6981_s26 + $0x2a58] sm:$0xff]  ;;  %5812 = vmatpush.msrb.mxu0 %v1624_v60 }
 0x91a   : > { %v1752_v55 = vld [vmem:[%s6981_s26 + $0x2c38] sm:$0xff]  ;;  %5831 = vmatpush.msrb.mxu1 %v1692_v1 }
 0x91b   : > { %v1820_v62 = vld [vmem:[%s6981_s26 + $0x2e58] sm:$0xff]  ;;  %5852 = vmatpush.msrb.mxu2 %v1752_v55 }
 0x91c   : > { %v1620_v40 = vld [vmem:[%s6981_s26 + $0x2818] sm:$0xff]  ;;  %5871 = vmatpush.msrb.mxu3 %v1820_v62 }
 0x91d   : > { %v1688_v45 = vld [vmem:[%s6981_s26 + $0x2a38] sm:$0xff]  ;;  %5813 = vmatpush.msrb.mxu0 %v1620_v40 }
 0x91e   : > { %v1748_v63 = vld [vmem:[%s6981_s26 + $0x2c18] sm:$0xff]  ;;  %5832 = vmatpush.msrb.mxu1 %v1688_v45  ;;  %5814 = vmatmul.f32.vlgmr.msrb.gmra.mxu0 %v7464_v38 }
 0x91f   : > { %v1816_v22 = vld [vmem:[%s6981_s26 + $0x2e38] sm:$0xff]  ;;  %5853 = vmatpush.msrb.mxu2 %v1748_v63 }
 0x920   : > { %v1936_v7 = vld [vmem:[%s6981_s26 + $0x31f8] sm:$0xff]  ;;  %5872 = vmatpush.msrb.mxu3 %v1816_v22  ;;  %5854 = vmatmul.f32.vlgmr.msrb.gmra.mxu2 %v7466_v39 }
 0x921   : > { %v2064_v33 = vld [vmem:[%s6981_s26 + $0x35f8] sm:$0xff]  ;;  %5878 = vmatpush.msra.mxu0 %v1936_v7 }
 0x922   : > { %v1684_v26 = vld [vmem:[%s6981_s26 + $0x2a18] sm:$0xff]  ;;  %5918 = vmatpush.msra.mxu2 %v2064_v33 }
 0x923   : > { %v1812_v27 = vld [vmem:[%s6981_s26 + $0x2e18] sm:$0xff]  ;;  %5833 = vmatpush.msrb.mxu1 %v1684_v26 }
 0x924   : > { %v1932_v0 = vld [vmem:[%s6981_s26 + $0x31d8] sm:$0xff]  ;;  %5873 = vmatpush.msrb.mxu3 %v1812_v27  ;;  %5834 = vmatmul.f32.vlgmr.msrb.gmra.mxu1 %v7474_v52 }
 0x925   : > { %v2000_v46 = vld [vmem:[%s6981_s26 + $0x33f8] sm:$0xff]  ;;  %5874 = vmatmul.f32.vlgmr.msrb.gmra.mxu3 %v7476_v53  ;;  %5879 = vmatpush.msra.mxu0 %v1932_v0 }
 0x926   : > { %v2060_v44 = vld [vmem:[%s6981_s26 + $0x35d8] sm:$0xff]  ;;  %5898 = vmatpush.msra.mxu1 %v2000_v46 }
 0x927   : > { %v2128_v47 = vld [vmem:[%s6981_s26 + $0x37f8] sm:$0xff]  ;;  %5919 = vmatpush.msra.mxu2 %v2060_v44 }
 0x928   : > { %v1928_v38 = vld [vmem:[%s6981_s26 + $0x31b8] sm:$0xff]  ;;  %5938 = vmatpush.msra.mxu3 %v2128_v47 }
 0x929   : > { %v1996_v39 = vld [vmem:[%s6981_s26 + $0x33d8] sm:$0xff]  ;;  %5880 = vmatpush.msra.mxu0 %v1928_v38 }
 0x92a   : > { %v2056_v28 = vld [vmem:[%s6981_s26 + $0x35b8] sm:$0xff]  ;;  %5899 = vmatpush.msra.mxu1 %v1996_v39 }
 0x92b   : > { %v2124_v31 = vld [vmem:[%s6981_s26 + $0x37d8] sm:$0xff]  ;;  %5920 = vmatpush.msra.mxu2 %v2056_v28 }
 0x92c   : > { %v1924_v2 = vld [vmem:[%s6981_s26 + $0x3198] sm:$0xff]  ;;  %5939 = vmatpush.msra.mxu3 %v2124_v31 }
 0x92d   : > { %v1992_v56 = vld [vmem:[%s6981_s26 + $0x33b8] sm:$0xff]  ;;  %5881 = vmatpush.msra.mxu0 %v1924_v2 }
 0x92e   : > { %v2052_v52 = vld [vmem:[%s6981_s26 + $0x3598] sm:$0xff]  ;;  %5900 = vmatpush.msra.mxu1 %v1992_v56 }
 0x92f   : > { %v2120_v53 = vld [vmem:[%s6981_s26 + $0x37b8] sm:$0xff]  ;;  %5921 = vmatpush.msra.mxu2 %v2052_v52 }
 0x930   : > { %v1920_v13 = vld [vmem:[%s6981_s26 + $0x3178] sm:$0xff]  ;;  %5940 = vmatpush.msra.mxu3 %v2120_v53 }
 0x931   : > { %v1988_v36 = vld [vmem:[%s6981_s26 + $0x3398] sm:$0xff]  ;;  %5882 = vmatpush.msra.mxu0 %v1920_v13 }
 0x932   : > { %v2048_v48 = vld [vmem:[%s6981_s26 + $0x3578] sm:$0xff]  ;;  %5901 = vmatpush.msra.mxu1 %v1988_v36 }
 0x933   : > { %v2116_v5 = vld [vmem:[%s6981_s26 + $0x3798] sm:$0xff]  ;;  %5922 = vmatpush.msra.mxu2 %v2048_v48 }
 0x934   : > { %v1916_v9 = vld [vmem:[%s6981_s26 + $0x3158] sm:$0xff]  ;;  %5941 = vmatpush.msra.mxu3 %v2116_v5 }
 0x935   : > { %v1984_v10 = vld [vmem:[%s6981_s26 + $0x3378] sm:$0xff]  ;;  %5883 = vmatpush.msra.mxu0 %v1916_v9 }
 0x936   : > { %v2044_v41 = vld [vmem:[%s6981_s26 + $0x3558] sm:$0xff]  ;;  %5902 = vmatpush.msra.mxu1 %v1984_v10 }
 0x937   : > { %v2112_v42 = vld [vmem:[%s6981_s26 + $0x3778] sm:$0xff]  ;;  %5923 = vmatpush.msra.mxu2 %v2044_v41 }
 0x938   : > { %v1912_v35 = vld [vmem:[%s6981_s26 + $0x3138] sm:$0xff]  ;;  %5942 = vmatpush.msra.mxu3 %v2112_v42 }
 0x939   : > { %v1980_v17 = vld [vmem:[%s6981_s26 + $0x3358] sm:$0xff]  ;;  %5884 = vmatpush.msra.mxu0 %v1912_v35 }
 0x93a   : > { %v2040_v15 = vld [vmem:[%s6981_s26 + $0x3538] sm:$0xff]  ;;  %5903 = vmatpush.msra.mxu1 %v1980_v17 }
 0x93b   : > { %v2108_v16 = vld [vmem:[%s6981_s26 + $0x3758] sm:$0xff]  ;;  %5924 = vmatpush.msra.mxu2 %v2040_v15 }
 0x93c   : > { %v1908_v24 = vld [vmem:[%s6981_s26 + $0x3118] sm:$0xff]  ;;  %5943 = vmatpush.msra.mxu3 %v2108_v16 }
 0x93d   : > { %v1976_v61 = vld [vmem:[%s6981_s26 + $0x3338] sm:$0xff]  ;;  %5885 = vmatpush.msra.mxu0 %v1908_v24 }
 0x93e   : > { %v2036_v43 = vld [vmem:[%s6981_s26 + $0x3518] sm:$0xff]  ;;  %5904 = vmatpush.msra.mxu1 %v1976_v61 }
 0x93f   : > { %v2104_v50 = vld [vmem:[%s6981_s26 + $0x3738] sm:$0xff]  ;;  %5925 = vmatpush.msra.mxu2 %v2036_v43 }
 0x940   : > { %v1904_v60 = vld [vmem:[%s6981_s26 + $0x30f8] sm:$0xff]  ;;  %5944 = vmatpush.msra.mxu3 %v2104_v50 }
 0x941   : > { %v1972_v1 = vld [vmem:[%s6981_s26 + $0x3318] sm:$0xff]  ;;  %5886 = vmatpush.msra.mxu0 %v1904_v60 }
 0x942   : > { %v2032_v55 = vld [vmem:[%s6981_s26 + $0x34f8] sm:$0xff]  ;;  %5905 = vmatpush.msra.mxu1 %v1972_v1 }
 0x943   : > { %v2100_v62 = vld [vmem:[%s6981_s26 + $0x3718] sm:$0xff]  ;;  %5926 = vmatpush.msra.mxu2 %v2032_v55 }
 0x944   : > { %v1900_v40 = vld [vmem:[%s6981_s26 + $0x30d8] sm:$0xff]  ;;  %5945 = vmatpush.msra.mxu3 %v2100_v62 }
 0x945   : > { %v1968_v45 = vld [vmem:[%s6981_s26 + $0x32f8] sm:$0xff]  ;;  %5887 = vmatpush.msra.mxu0 %v1900_v40 }
 0x946   : > { %v2028_v63 = vld [vmem:[%s6981_s26 + $0x34d8] sm:$0xff]  ;;  %5906 = vmatpush.msra.mxu1 %v1968_v45 }
 0x947   : > { %v2096_v22 = vld [vmem:[%s6981_s26 + $0x36f8] sm:$0xff]  ;;  %5927 = vmatpush.msra.mxu2 %v2028_v63 }
 0x948   : > { %v1896_v7 = vld [vmem:[%s6981_s26 + $0x30b8] sm:$0xff]  ;;  %5946 = vmatpush.msra.mxu3 %v2096_v22 }
 0x949   : > { %v1964_v33 = vld [vmem:[%s6981_s26 + $0x32d8] sm:$0xff]  ;;  %5888 = vmatpush.msra.mxu0 %v1896_v7 }
 0x94a   : > { %v2024_v26 = vld [vmem:[%s6981_s26 + $0x34b8] sm:$0xff]  ;;  %5907 = vmatpush.msra.mxu1 %v1964_v33 }
 0x94b   : > { %v2092_v27 = vld [vmem:[%s6981_s26 + $0x36d8] sm:$0xff]  ;;  %5928 = vmatpush.msra.mxu2 %v2024_v26 }
 0x94c   : > { %v1892_v0 = vld [vmem:[%s6981_s26 + $0x3098] sm:$0xff]  ;;  %5947 = vmatpush.msra.mxu3 %v2092_v27 }
 0x94d   : > { %v1960_v46 = vld [vmem:[%s6981_s26 + $0x32b8] sm:$0xff]  ;;  %5889 = vmatpush.msra.mxu0 %v1892_v0 }
 0x94e   : > { %v2020_v44 = vld [vmem:[%s6981_s26 + $0x3498] sm:$0xff]  ;;  %5908 = vmatpush.msra.mxu1 %v1960_v46 }
 0x94f   : > { %v2088_v47 = vld [vmem:[%s6981_s26 + $0x36b8] sm:$0xff]  ;;  %5929 = vmatpush.msra.mxu2 %v2020_v44 }
 0x950   : > { %v1888_v38 = vld [vmem:[%s6981_s26 + $0x3078] sm:$0xff]  ;;  %5948 = vmatpush.msra.mxu3 %v2088_v47 }
 0x951   : > { %v1956_v39 = vld [vmem:[%s6981_s26 + $0x3298] sm:$0xff]  ;;  %5890 = vmatpush.msra.mxu0 %v1888_v38 }
 0x952   : > { %v2016_v28 = vld [vmem:[%s6981_s26 + $0x3478] sm:$0xff]  ;;  %5909 = vmatpush.msra.mxu1 %v1956_v39 }
 0x953   : > { %v2084_v31 = vld [vmem:[%s6981_s26 + $0x3698] sm:$0xff]  ;;  %5930 = vmatpush.msra.mxu2 %v2016_v28 }
 0x954   : > { %v1884_v2 = vld [vmem:[%s6981_s26 + $0x3058] sm:$0xff]  ;;  %5949 = vmatpush.msra.mxu3 %v2084_v31 }
 0x955   : > { %v1952_v56 = vld [vmem:[%s6981_s26 + $0x3278] sm:$0xff]  ;;  %5891 = vmatpush.msra.mxu0 %v1884_v2 }
 0x956   : > { %v2012_v52 = vld [vmem:[%s6981_s26 + $0x3458] sm:$0xff]  ;;  %5910 = vmatpush.msra.mxu1 %v1952_v56 }
 0x957   : > { %v2080_v53 = vld [vmem:[%s6981_s26 + $0x3678] sm:$0xff]  ;;  %5931 = vmatpush.msra.mxu2 %v2012_v52 }
 0x958   : > { %v1880_v13 = vld [vmem:[%s6981_s26 + $0x3038] sm:$0xff]  ;;  %5950 = vmatpush.msra.mxu3 %v2080_v53 }
 0x959   : > { %v1948_v36 = vld [vmem:[%s6981_s26 + $0x3258] sm:$0xff]  ;;  %5892 = vmatpush.msra.mxu0 %v1880_v13 }
 0x95a   : > { %v2008_v48 = vld [vmem:[%s6981_s26 + $0x3438] sm:$0xff]  ;;  %5911 = vmatpush.msra.mxu1 %v1948_v36 }
 0x95b   : > { %v2076_v5 = vld [vmem:[%s6981_s26 + $0x3658] sm:$0xff]  ;;  %5932 = vmatpush.msra.mxu2 %v2008_v48 }
 0x95c   : > { %v1876_v9 = vld [vmem:[%s6981_s26 + $0x3018] sm:$0xff]  ;;  %5951 = vmatpush.msra.mxu3 %v2076_v5 }
 0x95d   : > { %v1944_v10 = vld [vmem:[%s6981_s26 + $0x3238] sm:$0xff]  ;;  %5893 = vmatpush.msra.mxu0 %v1876_v9 }
 0x95e   : > { %v2004_v41 = vld [vmem:[%s6981_s26 + $0x3418] sm:$0xff]  ;;  %5912 = vmatpush.msra.mxu1 %v1944_v10  ;;  %5894 = vmatmul.f32.vlgmr.msra.gmra.mxu0 %v7541_v19 }
 0x95f   : > { %v2072_v42 = vld [vmem:[%s6981_s26 + $0x3638] sm:$0xff]  ;;  %5933 = vmatpush.msra.mxu2 %v2004_v41 }
 0x960   : > { %v2192_v35 = vld [vmem:[%s6981_s26 + $0x39f8] sm:$0xff]  ;;  %5952 = vmatpush.msra.mxu3 %v2072_v42  ;;  %5934 = vmatmul.f32.vlgmr.msra.gmra.mxu2 %v7543_v20 }
 0x961   : > { %v2320_v17 = vld [vmem:[%s6981_s26 + $0x3df8] sm:$0xff]  ;;  %5958 = vmatpush.msrb.mxu0 %v2192_v35 }
 0x962   : > { %v1940_v15 = vld [vmem:[%s6981_s26 + $0x3218] sm:$0xff]  ;;  %5998 = vmatpush.msrb.mxu2 %v2320_v17 }
 0x963   : > { %v2068_v16 = vld [vmem:[%s6981_s26 + $0x3618] sm:$0xff]  ;;  %5913 = vmatpush.msra.mxu1 %v1940_v15 }
 0x964   : > { %v2188_v24 = vld [vmem:[%s6981_s26 + $0x39d8] sm:$0xff]  ;;  %5953 = vmatpush.msra.mxu3 %v2068_v16  ;;  %5914 = vmatmul.f32.vlgmr.msra.gmra.mxu1 %v7551_v25 }
 0x965   : > { %v2256_v61 = vld [vmem:[%s6981_s26 + $0x3bf8] sm:$0xff]  ;;  %5954 = vmatmul.f32.vlgmr.msra.gmra.mxu3 %v7553_v29  ;;  %5959 = vmatpush.msrb.mxu0 %v2188_v24 }
 0x966   : > { %v2316_v43 = vld [vmem:[%s6981_s26 + $0x3dd8] sm:$0xff]  ;;  %5978 = vmatpush.msrb.mxu1 %v2256_v61 }
 0x967   : > { %v2384_v50 = vld [vmem:[%s6981_s26 + $0x3ff8] sm:$0xff]  ;;  %5999 = vmatpush.msrb.mxu2 %v2316_v43 }
 0x968   : > { %v2184_v19 = vld [vmem:[%s6981_s26 + $0x39b8] sm:$0xff]  ;;  %6018 = vmatpush.msrb.mxu3 %v2384_v50 }
 0x969   : > { %v2252_v20 = vld [vmem:[%s6981_s26 + $0x3bd8] sm:$0xff]  ;;  %5960 = vmatpush.msrb.mxu0 %v2184_v19 }
 0x96a   : > { %v2312_v60 = vld [vmem:[%s6981_s26 + $0x3db8] sm:$0xff]  ;;  %5979 = vmatpush.msrb.mxu1 %v2252_v20 }
 0x96b   : > { %v2380_v1 = vld [vmem:[%s6981_s26 + $0x3fd8] sm:$0xff]  ;;  %6000 = vmatpush.msrb.mxu2 %v2312_v60 }
 0x96c   : > { %v2180_v55 = vld [vmem:[%s6981_s26 + $0x3998] sm:$0xff]  ;;  %6019 = vmatpush.msrb.mxu3 %v2380_v1 }
 0x96d   : > { %v2248_v62 = vld [vmem:[%s6981_s26 + $0x3bb8] sm:$0xff]  ;;  %5961 = vmatpush.msrb.mxu0 %v2180_v55 }
 0x96e   : > { %v2308_v25 = vld [vmem:[%s6981_s26 + $0x3d98] sm:$0xff]  ;;  %5980 = vmatpush.msrb.mxu1 %v2248_v62 }
 0x96f   : > { %v2376_v29 = vld [vmem:[%s6981_s26 + $0x3fb8] sm:$0xff]  ;;  %6001 = vmatpush.msrb.mxu2 %v2308_v25 }
 0x970   : > { %v2176_v40 = vld [vmem:[%s6981_s26 + $0x3978] sm:$0xff]  ;;  %6020 = vmatpush.msrb.mxu3 %v2376_v29 }
 0x971   : > { %v2244_v45 = vld [vmem:[%s6981_s26 + $0x3b98] sm:$0xff]  ;;  %5962 = vmatpush.msrb.mxu0 %v2176_v40 }
 0x972   : > { %v2304_v63 = vld [vmem:[%s6981_s26 + $0x3d78] sm:$0xff]  ;;  %5981 = vmatpush.msrb.mxu1 %v2244_v45 }
 0x973   : > { %v2372_v22 = vld [vmem:[%s6981_s26 + $0x3f98] sm:$0xff]  ;;  %6002 = vmatpush.msrb.mxu2 %v2304_v63 }
 0x974   : > { %v2172_v7 = vld [vmem:[%s6981_s26 + $0x3958] sm:$0xff]  ;;  %6021 = vmatpush.msrb.mxu3 %v2372_v22 }
 0x975   : > { %v2240_v33 = vld [vmem:[%s6981_s26 + $0x3b78] sm:$0xff]  ;;  %5963 = vmatpush.msrb.mxu0 %v2172_v7 }
 0x976   : > { %v2300_v26 = vld [vmem:[%s6981_s26 + $0x3d58] sm:$0xff]  ;;  %5982 = vmatpush.msrb.mxu1 %v2240_v33 }
 0x977   : > { %v2368_v27 = vld [vmem:[%s6981_s26 + $0x3f78] sm:$0xff]  ;;  %6003 = vmatpush.msrb.mxu2 %v2300_v26 }
 0x978   : > { %v2168_v0 = vld [vmem:[%s6981_s26 + $0x3938] sm:$0xff]  ;;  %6022 = vmatpush.msrb.mxu3 %v2368_v27 }
 0x979   : > { %v2236_v46 = vld [vmem:[%s6981_s26 + $0x3b58] sm:$0xff]  ;;  %5964 = vmatpush.msrb.mxu0 %v2168_v0 }
 0x97a   : > { %v2296_v44 = vld [vmem:[%s6981_s26 + $0x3d38] sm:$0xff]  ;;  %5983 = vmatpush.msrb.mxu1 %v2236_v46 }
 0x97b   : > { %v2364_v47 = vld [vmem:[%s6981_s26 + $0x3f58] sm:$0xff]  ;;  %6004 = vmatpush.msrb.mxu2 %v2296_v44 }
 0x97c   : > { %v2164_v38 = vld [vmem:[%s6981_s26 + $0x3918] sm:$0xff]  ;;  %6023 = vmatpush.msrb.mxu3 %v2364_v47 }
 0x97d   : > { %v2232_v39 = vld [vmem:[%s6981_s26 + $0x3b38] sm:$0xff]  ;;  %5965 = vmatpush.msrb.mxu0 %v2164_v38 }
 0x97e   : > { %v2292_v28 = vld [vmem:[%s6981_s26 + $0x3d18] sm:$0xff]  ;;  %5984 = vmatpush.msrb.mxu1 %v2232_v39 }
 0x97f   : > { %v2360_v31 = vld [vmem:[%s6981_s26 + $0x3f38] sm:$0xff]  ;;  %6005 = vmatpush.msrb.mxu2 %v2292_v28 }
 0x980   : > { %v2160_v2 = vld [vmem:[%s6981_s26 + $0x38f8] sm:$0xff]  ;;  %6024 = vmatpush.msrb.mxu3 %v2360_v31 }
 0x981   : > { %v2228_v56 = vld [vmem:[%s6981_s26 + $0x3b18] sm:$0xff]  ;;  %5966 = vmatpush.msrb.mxu0 %v2160_v2 }
 0x982   : > { %v2288_v52 = vld [vmem:[%s6981_s26 + $0x3cf8] sm:$0xff]  ;;  %5985 = vmatpush.msrb.mxu1 %v2228_v56 }
 0x983   : > { %v2356_v53 = vld [vmem:[%s6981_s26 + $0x3f18] sm:$0xff]  ;;  %6006 = vmatpush.msrb.mxu2 %v2288_v52 }
 0x984   : > { %v2156_v13 = vld [vmem:[%s6981_s26 + $0x38d8] sm:$0xff]  ;;  %6025 = vmatpush.msrb.mxu3 %v2356_v53 }
 0x985   : > { %v2224_v36 = vld [vmem:[%s6981_s26 + $0x3af8] sm:$0xff]  ;;  %5967 = vmatpush.msrb.mxu0 %v2156_v13 }
 0x986   : > { %v2284_v48 = vld [vmem:[%s6981_s26 + $0x3cd8] sm:$0xff]  ;;  %5986 = vmatpush.msrb.mxu1 %v2224_v36 }
 0x987   : > { %v2352_v5 = vld [vmem:[%s6981_s26 + $0x3ef8] sm:$0xff]  ;;  %6007 = vmatpush.msrb.mxu2 %v2284_v48 }
 0x988   : > { %v2152_v9 = vld [vmem:[%s6981_s26 + $0x38b8] sm:$0xff]  ;;  %6026 = vmatpush.msrb.mxu3 %v2352_v5 }
 0x989   : > { %v2220_v10 = vld [vmem:[%s6981_s26 + $0x3ad8] sm:$0xff]  ;;  %5968 = vmatpush.msrb.mxu0 %v2152_v9 }
 0x98a   : > { %v2280_v41 = vld [vmem:[%s6981_s26 + $0x3cb8] sm:$0xff]  ;;  %5987 = vmatpush.msrb.mxu1 %v2220_v10 }
 0x98b   : > { %v2348_v42 = vld [vmem:[%s6981_s26 + $0x3ed8] sm:$0xff]  ;;  %6008 = vmatpush.msrb.mxu2 %v2280_v41 }
 0x98c   : > { %v2148_v35 = vld [vmem:[%s6981_s26 + $0x3898] sm:$0xff]  ;;  %6027 = vmatpush.msrb.mxu3 %v2348_v42 }
 0x98d   : > { %v2216_v17 = vld [vmem:[%s6981_s26 + $0x3ab8] sm:$0xff]  ;;  %5969 = vmatpush.msrb.mxu0 %v2148_v35 }
 0x98e   : > { %v2276_v15 = vld [vmem:[%s6981_s26 + $0x3c98] sm:$0xff]  ;;  %5988 = vmatpush.msrb.mxu1 %v2216_v17 }
 0x98f   : > { %v2344_v16 = vld [vmem:[%s6981_s26 + $0x3eb8] sm:$0xff]  ;;  %6009 = vmatpush.msrb.mxu2 %v2276_v15 }
 0x990   : > { %v2144_v24 = vld [vmem:[%s6981_s26 + $0x3878] sm:$0xff]  ;;  %6028 = vmatpush.msrb.mxu3 %v2344_v16 }
 0x991   : > { %v2212_v61 = vld [vmem:[%s6981_s26 + $0x3a98] sm:$0xff]  ;;  %5970 = vmatpush.msrb.mxu0 %v2144_v24 }
 0x992   : > { %v2272_v43 = vld [vmem:[%s6981_s26 + $0x3c78] sm:$0xff]  ;;  %5989 = vmatpush.msrb.mxu1 %v2212_v61 }
 0x993   : > { %v2340_v50 = vld [vmem:[%s6981_s26 + $0x3e98] sm:$0xff]  ;;  %6010 = vmatpush.msrb.mxu2 %v2272_v43 }
 0x994   : > { %v2140_v19 = vld [vmem:[%s6981_s26 + $0x3858] sm:$0xff]  ;;  %6029 = vmatpush.msrb.mxu3 %v2340_v50 }
 0x995   : > { %v2208_v20 = vld [vmem:[%s6981_s26 + $0x3a78] sm:$0xff]  ;;  %5971 = vmatpush.msrb.mxu0 %v2140_v19 }
 0x996   : > { %v2268_v60 = vld [vmem:[%s6981_s26 + $0x3c58] sm:$0xff]  ;;  %5990 = vmatpush.msrb.mxu1 %v2208_v20 }
 0x997   : > { %v2336_v1 = vld [vmem:[%s6981_s26 + $0x3e78] sm:$0xff]  ;;  %6011 = vmatpush.msrb.mxu2 %v2268_v60 }
 0x998   : > { %v2136_v55 = vld [vmem:[%s6981_s26 + $0x3838] sm:$0xff]  ;;  %6030 = vmatpush.msrb.mxu3 %v2336_v1 }
 0x999   : > { %v2204_v62 = vld [vmem:[%s6981_s26 + $0x3a58] sm:$0xff]  ;;  %5972 = vmatpush.msrb.mxu0 %v2136_v55 }
 0x99a   : > { %v2264_v25 = vld [vmem:[%s6981_s26 + $0x3c38] sm:$0xff]  ;;  %5991 = vmatpush.msrb.mxu1 %v2204_v62 }
 0x99b   : > { %v2332_v29 = vld [vmem:[%s6981_s26 + $0x3e58] sm:$0xff]  ;;  %6012 = vmatpush.msrb.mxu2 %v2264_v25 }
 0x99c   : > { %v2132_v40 = vld [vmem:[%s6981_s26 + $0x3818] sm:$0xff]  ;;  %6031 = vmatpush.msrb.mxu3 %v2332_v29 }
 0x99d   : > { %v2200_v45 = vld [vmem:[%s6981_s26 + $0x3a38] sm:$0xff]  ;;  %5973 = vmatpush.msrb.mxu0 %v2132_v40 }
 0x99e   : > { %v2260_v63 = vld [vmem:[%s6981_s26 + $0x3c18] sm:$0xff]  ;;  %5992 = vmatpush.msrb.mxu1 %v2200_v45  ;;  %5974 = vmatmul.f32.vlgmr.msrb.gmra.mxu0 %v7618_v8 }
 0x99f   : > { %v2328_v22 = vld [vmem:[%s6981_s26 + $0x3e38] sm:$0xff]  ;;  %6013 = vmatpush.msrb.mxu2 %v2260_v63 }
 0x9a0   : > { %v2448_v7 = vld [vmem:[%s6981_s26 + $0x41f8] sm:$0xff]  ;;  %6032 = vmatpush.msrb.mxu3 %v2328_v22  ;;  %6014 = vmatmul.f32.vlgmr.msrb.gmra.mxu2 %v7620_v11 }
 0x9a1   : > { %v2576_v33 = vld [vmem:[%s6981_s26 + $0x45f8] sm:$0xff]  ;;  %6038 = vmatpush.msra.mxu0 %v2448_v7 }
 0x9a2   : > { %v2196_v26 = vld [vmem:[%s6981_s26 + $0x3a18] sm:$0xff]  ;;  %6078 = vmatpush.msra.mxu2 %v2576_v33 }
 0x9a3   : > { %v2324_v27 = vld [vmem:[%s6981_s26 + $0x3e18] sm:$0xff]  ;;  %5993 = vmatpush.msrb.mxu1 %v2196_v26 }
 0x9a4   : > { %v2444_v0 = vld [vmem:[%s6981_s26 + $0x41d8] sm:$0xff]  ;;  %6033 = vmatpush.msrb.mxu3 %v2324_v27  ;;  %5994 = vmatmul.f32.vlgmr.msrb.gmra.mxu1 %v7628_v18 }
 0x9a5   : > { %v2512_v46 = vld [vmem:[%s6981_s26 + $0x43f8] sm:$0xff]  ;;  %6034 = vmatmul.f32.vlgmr.msrb.gmra.mxu3 %v7630_v21  ;;  %6039 = vmatpush.msra.mxu0 %v2444_v0 }
 0x9a6   : > { %v2572_v44 = vld [vmem:[%s6981_s26 + $0x45d8] sm:$0xff]  ;;  %6058 = vmatpush.msra.mxu1 %v2512_v46 }
 0x9a7   : > { %v2640_v47 = vld [vmem:[%s6981_s26 + $0x47f8] sm:$0xff]  ;;  %6079 = vmatpush.msra.mxu2 %v2572_v44 }
 0x9a8   : > { %v2440_v8 = vld [vmem:[%s6981_s26 + $0x41b8] sm:$0xff]  ;;  %6098 = vmatpush.msra.mxu3 %v2640_v47 }
 0x9a9   : > { %v2508_v11 = vld [vmem:[%s6981_s26 + $0x43d8] sm:$0xff]  ;;  %6040 = vmatpush.msra.mxu0 %v2440_v8 }
 0x9aa   : > { %v2568_v38 = vld [vmem:[%s6981_s26 + $0x45b8] sm:$0xff]  ;;  %6059 = vmatpush.msra.mxu1 %v2508_v11 }
 0x9ab   : > { %v2636_v39 = vld [vmem:[%s6981_s26 + $0x47d8] sm:$0xff]  ;;  %6080 = vmatpush.msra.mxu2 %v2568_v38 }
 0x9ac   : > { %v2436_v28 = vld [vmem:[%s6981_s26 + $0x4198] sm:$0xff]  ;;  %6099 = vmatpush.msra.mxu3 %v2636_v39 }
 0x9ad   : > { %v2504_v31 = vld [vmem:[%s6981_s26 + $0x43b8] sm:$0xff]  ;;  %6041 = vmatpush.msra.mxu0 %v2436_v28 }
 0x9ae   : > { %v2564_v18 = vld [vmem:[%s6981_s26 + $0x4598] sm:$0xff]  ;;  %6060 = vmatpush.msra.mxu1 %v2504_v31 }
 0x9af   : > { %v2632_v21 = vld [vmem:[%s6981_s26 + $0x47b8] sm:$0xff]  ;;  %6081 = vmatpush.msra.mxu2 %v2564_v18 }
 0x9b0   : > { %v2432_v2 = vld [vmem:[%s6981_s26 + $0x4178] sm:$0xff]  ;;  %6100 = vmatpush.msra.mxu3 %v2632_v21 }
 0x9b1   : > { %v2500_v56 = vld [vmem:[%s6981_s26 + $0x4398] sm:$0xff]  ;;  %6042 = vmatpush.msra.mxu0 %v2432_v2 }
 0x9b2   : > { %v2560_v52 = vld [vmem:[%s6981_s26 + $0x4578] sm:$0xff]  ;;  %6061 = vmatpush.msra.mxu1 %v2500_v56 }
 0x9b3   : > { %v2628_v53 = vld [vmem:[%s6981_s26 + $0x4798] sm:$0xff]  ;;  %6082 = vmatpush.msra.mxu2 %v2560_v52 }
 0x9b4   : > { %v2428_v13 = vld [vmem:[%s6981_s26 + $0x4158] sm:$0xff]  ;;  %6101 = vmatpush.msra.mxu3 %v2628_v53 }
 0x9b5   : > { %v2496_v36 = vld [vmem:[%s6981_s26 + $0x4378] sm:$0xff]  ;;  %6043 = vmatpush.msra.mxu0 %v2428_v13  ;;  %v6658_v13 = vld.sshfl [vmem:[#allocation1] sm:$0xff pattern:$0x73625140] }
 0x9b6   : > { %v2556_v48 = vld [vmem:[%s6981_s26 + $0x4558] sm:$0xff]  ;;  %6062 = vmatpush.msra.mxu1 %v2496_v36  ;;  %v6659_v36 = vld.sshfl [vmem:[#allocation1 + $0x10] sm:$0xff pattern:$0x73625140] }
 0x9b7   : > { %v2624_v5 = vld [vmem:[%s6981_s26 + $0x4778] sm:$0xff]  ;;  %6083 = vmatpush.msra.mxu2 %v2556_v48 }
 0x9b8   : > { %v2424_v9 = vld [vmem:[%s6981_s26 + $0x4138] sm:$0xff]  ;;  %6102 = vmatpush.msra.mxu3 %v2624_v5 }
 0x9b9   : > { %v2492_v10 = vld [vmem:[%s6981_s26 + $0x4358] sm:$0xff]  ;;  %6044 = vmatpush.msra.mxu0 %v2424_v9 }
 0x9ba   : > { %v2552_v41 = vld [vmem:[%s6981_s26 + $0x4538] sm:$0xff]  ;;  %6063 = vmatpush.msra.mxu1 %v2492_v10 }
 0x9bb   : > { %v2620_v42 = vld [vmem:[%s6981_s26 + $0x4758] sm:$0xff]  ;;  %6084 = vmatpush.msra.mxu2 %v2552_v41 }
 0x9bc   : > { %v2420_v35 = vld [vmem:[%s6981_s26 + $0x4118] sm:$0xff]  ;;  %6103 = vmatpush.msra.mxu3 %v2620_v42  ;;  %v6661_v42 = vld.sshfl [vmem:[#allocation1 + $0x18] sm:$0xff pattern:$0x73625140] }
 0x9bd   : > { %v2488_v17 = vld [vmem:[%s6981_s26 + $0x4338] sm:$0xff]  ;;  %6045 = vmatpush.msra.mxu0 %v2420_v35 }
 0x9be   : > { %v2548_v15 = vld [vmem:[%s6981_s26 + $0x4518] sm:$0xff]  ;;  %6064 = vmatpush.msra.mxu1 %v2488_v17 }
 0x9bf   : > { %v2616_v16 = vld [vmem:[%s6981_s26 + $0x4738] sm:$0xff]  ;;  %6085 = vmatpush.msra.mxu2 %v2548_v15 }
 0x9c0   : > { %v2416_v24 = vld [vmem:[%s6981_s26 + $0x40f8] sm:$0xff]  ;;  %6104 = vmatpush.msra.mxu3 %v2616_v16 }
 0x9c1   : > { %v2484_v61 = vld [vmem:[%s6981_s26 + $0x4318] sm:$0xff]  ;;  %6046 = vmatpush.msra.mxu0 %v2416_v24 }
 0x9c2   : > { %v2544_v43 = vld [vmem:[%s6981_s26 + $0x44f8] sm:$0xff]  ;;  %6065 = vmatpush.msra.mxu1 %v2484_v61 }
 0x9c3   : > { %v2612_v50 = vld [vmem:[%s6981_s26 + $0x4718] sm:$0xff]  ;;  %6086 = vmatpush.msra.mxu2 %v2544_v43 }
 0x9c4   : > { %v2412_v19 = vld [vmem:[%s6981_s26 + $0x40d8] sm:$0xff]  ;;  %6105 = vmatpush.msra.mxu3 %v2612_v50 }
 0x9c5   : > { %v2480_v20 = vld [vmem:[%s6981_s26 + $0x42f8] sm:$0xff]  ;;  %6047 = vmatpush.msra.mxu0 %v2412_v19 }
 0x9c6   : > { %v2540_v60 = vld [vmem:[%s6981_s26 + $0x44d8] sm:$0xff]  ;;  %6066 = vmatpush.msra.mxu1 %v2480_v20 }
 0x9c7   : > { %v2608_v1 = vld [vmem:[%s6981_s26 + $0x46f8] sm:$0xff]  ;;  %6087 = vmatpush.msra.mxu2 %v2540_v60 }
 0x9c8   : > { %v2408_v55 = vld [vmem:[%s6981_s26 + $0x40b8] sm:$0xff]  ;;  %6106 = vmatpush.msra.mxu3 %v2608_v1 }
 0x9c9   : > { %v2476_v62 = vld [vmem:[%s6981_s26 + $0x42d8] sm:$0xff]  ;;  %6048 = vmatpush.msra.mxu0 %v2408_v55 }
 0x9ca   : > { %v2536_v25 = vld [vmem:[%s6981_s26 + $0x44b8] sm:$0xff]  ;;  %6067 = vmatpush.msra.mxu1 %v2476_v62 }
 0x9cb   : > { %v2604_v29 = vld [vmem:[%s6981_s26 + $0x46d8] sm:$0xff]  ;;  %6088 = vmatpush.msra.mxu2 %v2536_v25 }
 0x9cc   : > { %v2404_v40 = vld [vmem:[%s6981_s26 + $0x4098] sm:$0xff]  ;;  %6107 = vmatpush.msra.mxu3 %v2604_v29 }
 0x9cd   : > { %v2472_v45 = vld [vmem:[%s6981_s26 + $0x42b8] sm:$0xff]  ;;  %6049 = vmatpush.msra.mxu0 %v2404_v40 }
 0x9ce   : > { %v2532_v63 = vld [vmem:[%s6981_s26 + $0x4498] sm:$0xff]  ;;  %6068 = vmatpush.msra.mxu1 %v2472_v45 }
 0x9cf   : > { %v2600_v22 = vld [vmem:[%s6981_s26 + $0x46b8] sm:$0xff]  ;;  %6089 = vmatpush.msra.mxu2 %v2532_v63 }
 0x9d0   : > { %v2400_v7 = vld [vmem:[%s6981_s26 + $0x4078] sm:$0xff]  ;;  %6108 = vmatpush.msra.mxu3 %v2600_v22 }
 0x9d1   : > { %v2468_v33 = vld [vmem:[%s6981_s26 + $0x4298] sm:$0xff]  ;;  %6050 = vmatpush.msra.mxu0 %v2400_v7 }
 0x9d2   : > { %v2528_v26 = vld [vmem:[%s6981_s26 + $0x4478] sm:$0xff]  ;;  %6069 = vmatpush.msra.mxu1 %v2468_v33 }
 0x9d3   : > { %v2596_v27 = vld [vmem:[%s6981_s26 + $0x4698] sm:$0xff]  ;;  %6090 = vmatpush.msra.mxu2 %v2528_v26 }
 0x9d4   : > { %v2396_v0 = vld [vmem:[%s6981_s26 + $0x4058] sm:$0xff]  ;;  %6109 = vmatpush.msra.mxu3 %v2596_v27 }
 0x9d5   : > { %v2464_v46 = vld [vmem:[%s6981_s26 + $0x4278] sm:$0xff]  ;;  %6051 = vmatpush.msra.mxu0 %v2396_v0 }
 0x9d6   : > { %v2524_v44 = vld [vmem:[%s6981_s26 + $0x4458] sm:$0xff]  ;;  %6070 = vmatpush.msra.mxu1 %v2464_v46 }
 0x9d7   : > { %v2592_v47 = vld [vmem:[%s6981_s26 + $0x4678] sm:$0xff]  ;;  %6091 = vmatpush.msra.mxu2 %v2524_v44 }
 0x9d8   : > { %v2392_v8 = vld [vmem:[%s6981_s26 + $0x4038] sm:$0xff]  ;;  %6110 = vmatpush.msra.mxu3 %v2592_v47 }
 0x9d9   : > { %v2460_v11 = vld [vmem:[%s6981_s26 + $0x4258] sm:$0xff]  ;;  %6052 = vmatpush.msra.mxu0 %v2392_v8 }
 0x9da   : > { %v2520_v38 = vld [vmem:[%s6981_s26 + $0x4438] sm:$0xff]  ;;  %6071 = vmatpush.msra.mxu1 %v2460_v11 }
 0x9db   : > { %v2588_v39 = vld [vmem:[%s6981_s26 + $0x4658] sm:$0xff]  ;;  %6092 = vmatpush.msra.mxu2 %v2520_v38 }
 0x9dc   : > { %v2388_v28 = vld [vmem:[%s6981_s26 + $0x4018] sm:$0xff]  ;;  %6111 = vmatpush.msra.mxu3 %v2588_v39 }
 0x9dd   : > { %v2456_v31 = vld [vmem:[%s6981_s26 + $0x4238] sm:$0xff]  ;;  %6053 = vmatpush.msra.mxu0 %v2388_v28 }
 0x9de   : > { %v2516_v18 = vld [vmem:[%s6981_s26 + $0x4418] sm:$0xff]  ;;  %6072 = vmatpush.msra.mxu1 %v2456_v31  ;;  %6054 = vmatmul.f32.vlgmr.msra.gmra.mxu0 %v6658_v13 }
 0x9df   : > { %v2584_v21 = vld [vmem:[%s6981_s26 + $0x4638] sm:$0xff]  ;;  %6093 = vmatpush.msra.mxu2 %v2516_v18 }
 0x9e0   : > { %v2704_v2 = vld [vmem:[%s6981_s26 + $0x49f8] sm:$0xff]  ;;  %6112 = vmatpush.msra.mxu3 %v2584_v21  ;;  %6094 = vmatmul.f32.vlgmr.msra.gmra.mxu2 %v6659_v36 }
 0x9e1   : > { %v2832_v56 = vld [vmem:[%s6981_s26 + $0x4df8] sm:$0xff]  ;;  %6118 = vmatpush.msrb.mxu0 %v2704_v2 }
 0x9e2   : > { %v2452_v52 = vld [vmem:[%s6981_s26 + $0x4218] sm:$0xff]  ;;  %6158 = vmatpush.msrb.mxu2 %v2832_v56 }
 0x9e3   : > { %v2580_v53 = vld [vmem:[%s6981_s26 + $0x4618] sm:$0xff]  ;;  %6073 = vmatpush.msra.mxu1 %v2452_v52 }
 0x9e4   : > { %v2700_v48 = vld [vmem:[%s6981_s26 + $0x49d8] sm:$0xff]  ;;  %6113 = vmatpush.msra.mxu3 %v2580_v53 }
 0x9e5   : > { %v2768_v5 = vld [vmem:[%s6981_s26 + $0x4bf8] sm:$0xff]  ;;  %6114 = vmatmul.f32.vlgmr.msra.gmra.mxu3 %v6661_v42  ;;  %6119 = vmatpush.msrb.mxu0 %v2700_v48 }
 0x9e6   : > { %v2828_v9 = vld [vmem:[%s6981_s26 + $0x4dd8] sm:$0xff]  ;;  %6138 = vmatpush.msrb.mxu1 %v2768_v5 }
 0x9e7   : > { %v2896_v10 = vld [vmem:[%s6981_s26 + $0x4ff8] sm:$0xff]  ;;  %6159 = vmatpush.msrb.mxu2 %v2828_v9 }
 0x9e8   : > { %v6660_v41 = vld.sshfl [vmem:[#allocation1 + $0x8] sm:$0xff pattern:$0x73625140]  ;;  %6178 = vmatpush.msrb.mxu3 %v2896_v10 }
 0x9e9   : > { %6074 = vmatmul.f32.vlgmr.msra.gmra.mxu1 %v6660_v41  ;;  %v2696_v35 = vld [vmem:[%s6981_s26 + $0x49b8] sm:$0xff] }
 0x9ea   : > { %v2764_v17 = vld [vmem:[%s6981_s26 + $0x4bd8] sm:$0xff]  ;;  %6120 = vmatpush.msrb.mxu0 %v2696_v35 }
 0x9eb   : > { %v2824_v15 = vld [vmem:[%s6981_s26 + $0x4db8] sm:$0xff]  ;;  %6139 = vmatpush.msrb.mxu1 %v2764_v17 }
 0x9ec   : > { %v2892_v16 = vld [vmem:[%s6981_s26 + $0x4fd8] sm:$0xff]  ;;  %6160 = vmatpush.msrb.mxu2 %v2824_v15 }
 0x9ed   : > { %v2692_v24 = vld [vmem:[%s6981_s26 + $0x4998] sm:$0xff]  ;;  %6179 = vmatpush.msrb.mxu3 %v2892_v16 }
 0x9ee   : > { %v2760_v61 = vld [vmem:[%s6981_s26 + $0x4bb8] sm:$0xff]  ;;  %6121 = vmatpush.msrb.mxu0 %v2692_v24 }
 0x9ef   : > { %v2820_v43 = vld [vmem:[%s6981_s26 + $0x4d98] sm:$0xff]  ;;  %6140 = vmatpush.msrb.mxu1 %v2760_v61 }
 0x9f0   : > { %v2888_v50 = vld [vmem:[%s6981_s26 + $0x4fb8] sm:$0xff]  ;;  %6161 = vmatpush.msrb.mxu2 %v2820_v43 }
 0x9f1   : > { %v2688_v19 = vld [vmem:[%s6981_s26 + $0x4978] sm:$0xff]  ;;  %6180 = vmatpush.msrb.mxu3 %v2888_v50 }
 0x9f2   : > { %v2756_v20 = vld [vmem:[%s6981_s26 + $0x4b98] sm:$0xff]  ;;  %6122 = vmatpush.msrb.mxu0 %v2688_v19 }
 0x9f3   : > { %v2816_v60 = vld [vmem:[%s6981_s26 + $0x4d78] sm:$0xff]  ;;  %6141 = vmatpush.msrb.mxu1 %v2756_v20 }
 0x9f4   : > { %v2884_v1 = vld [vmem:[%s6981_s26 + $0x4f98] sm:$0xff]  ;;  %6162 = vmatpush.msrb.mxu2 %v2816_v60  ;;  %v6662_v60 = vld.sshfl [vmem:[#allocation1 + $0x20] sm:$0xff pattern:$0x73625140] }
 0x9f5   : > { %v2684_v55 = vld [vmem:[%s6981_s26 + $0x4958] sm:$0xff]  ;;  %6181 = vmatpush.msrb.mxu3 %v2884_v1  ;;  %v6663_v1 = vld.sshfl [vmem:[#allocation1 + $0x30] sm:$0xff pattern:$0x73625140] }
 0x9f6   : > { %v2752_v62 = vld [vmem:[%s6981_s26 + $0x4b78] sm:$0xff]  ;;  %6123 = vmatpush.msrb.mxu0 %v2684_v55 }
 0x9f7   : > { %v2812_v25 = vld [vmem:[%s6981_s26 + $0x4d58] sm:$0xff]  ;;  %6142 = vmatpush.msrb.mxu1 %v2752_v62  ;;  %v6665_v62 = vld.sshfl [vmem:[#allocation1 + $0x38] sm:$0xff pattern:$0x73625140] }
 0x9f8   : > { %v2880_v29 = vld [vmem:[%s6981_s26 + $0x4f78] sm:$0xff]  ;;  %6163 = vmatpush.msrb.mxu2 %v2812_v25  ;;  %v5435_v25 = vpop.f32.mrf.mxu1 }
 0x9f9   : > { %v2680_v40 = vld [vmem:[%s6981_s26 + $0x4938] sm:$0xff]  ;;  %6182 = vmatpush.msrb.mxu3 %v2880_v29  ;;  %v5415_v29 = vpop.f32.mrf.mxu0 }
 0x9fa   : > { %v2748_v45 = vld [vmem:[%s6981_s26 + $0x4b58] sm:$0xff]  ;;  %6124 = vmatpush.msrb.mxu0 %v2680_v40  ;;  %v3036_v40 = vadd.f32 %v8169_v37, %v8175_v54 }
 0x9fb   : > { %v2808_v63 = vld [vmem:[%s6981_s26 + $0x4d38] sm:$0xff]  ;;  %6143 = vmatpush.msrb.mxu1 %v2748_v45  ;;  %v5436_v45 = vadd.f32 %v5435_v25, %v5415_v29  ;;  %v10091_v25 = vld [vmem:[#allocation16_spill] sm:$0xff] }
 0x9fc   : > { %v2876_v22 = vld [vmem:[%s6981_s26 + $0x4f58] sm:$0xff]  ;;  %6164 = vmatpush.msrb.mxu2 %v2808_v63  ;;  %v5455_v63 = vpop.f32.mrf.mxu2 }
 0x9fd   : > { %v2676_v7 = vld [vmem:[%s6981_s26 + $0x4918] sm:$0xff]  ;;  %6183 = vmatpush.msrb.mxu3 %v2876_v22  ;;  %v3056_v22 = vadd.f32 %v8183_v59, %v3036_v40 }
 0x9fe   : > { %v2744_v33 = vld [vmem:[%s6981_s26 + $0x4b38] sm:$0xff]  ;;  %6125 = vmatpush.msrb.mxu0 %v2676_v7  ;;  %v5456_v7 = vadd.f32 %v5455_v63, %v5436_v45  ;;  %v10092_v45 = vld [vmem:[#allocation18_spill] sm:$0xff] }
 0x9ff   : > { %v2804_v26 = vld [vmem:[%s6981_s26 + $0x4d18] sm:$0xff]  ;;  %6144 = vmatpush.msrb.mxu1 %v2744_v33  ;;  %v5475_v33 = vpop.f32.mrf.mxu3 }
 0xa00   : > { %v2872_v27 = vld [vmem:[%s6981_s26 + $0x4f38] sm:$0xff]  ;;  %6165 = vmatpush.msrb.mxu2 %v2804_v26  ;;  %v3076_v26 = vadd.f32 %v8193_v12, %v3056_v22 }
 0xa01   : > { %v2672_v0 = vld [vmem:[%s6981_s26 + $0x48f8] sm:$0xff]  ;;  %6184 = vmatpush.msrb.mxu3 %v2872_v27  ;;  %v5476_v27 = vadd.f32 %v5475_v33, %v5456_v7 }
 0xa02   : > { %v2740_v46 = vld [vmem:[%s6981_s26 + $0x4b18] sm:$0xff]  ;;  %6126 = vmatpush.msrb.mxu0 %v2672_v0  ;;  %v5495_v0 = vpop.f32.mrf.mxu0 }
 0xa03   : > { %v2800_v44 = vld [vmem:[%s6981_s26 + $0x4cf8] sm:$0xff]  ;;  %6145 = vmatpush.msrb.mxu1 %v2740_v46  ;;  %v3096_v46 = vadd.f32 %v8205_v34, %v3076_v26 }
 0xa04   : > { %v2868_v47 = vld [vmem:[%s6981_s26 + $0x4f18] sm:$0xff]  ;;  %6166 = vmatpush.msrb.mxu2 %v2800_v44  ;;  %v5496_v44 = vadd.f32 %v5495_v0, %v5476_v27 }
 0xa05   : > { %v2668_v8 = vld [vmem:[%s6981_s26 + $0x48d8] sm:$0xff]  ;;  %6185 = vmatpush.msrb.mxu3 %v2868_v47  ;;  %v5515_v47 = vpop.f32.mrf.mxu1 }
 0xa06   : > { %v2736_v11 = vld [vmem:[%s6981_s26 + $0x4af8] sm:$0xff]  ;;  %6127 = vmatpush.msrb.mxu0 %v2668_v8  ;;  %v3116_v8 = vadd.f32 %v8199_v23, %v3096_v46  ;;  %v10094_v46 = vld [vmem:[#allocation19_spill] sm:$0xff] }
 0xa07   : > { %v2796_v38 = vld [vmem:[%s6981_s26 + $0x4cd8] sm:$0xff]  ;;  %6146 = vmatpush.msrb.mxu1 %v2736_v11  ;;  %v5516_v11 = vadd.f32 %v5515_v47, %v5496_v44 }
 0xa08   : > { %v2864_v39 = vld [vmem:[%s6981_s26 + $0x4ef8] sm:$0xff]  ;;  %6167 = vmatpush.msrb.mxu2 %v2796_v38  ;;  %v5535_v38 = vpop.f32.mrf.mxu2  ;;  %v3136_v37 = vadd.f32 %v8211_v49, %v3116_v8 }
 0xa09   : > { %v2664_v28 = vld [vmem:[%s6981_s26 + $0x48b8] sm:$0xff]  ;;  %6186 = vmatpush.msrb.mxu3 %v2864_v39  ;;  %v5536_v54 = vadd.f32 %v5535_v38, %v5516_v11  ;;  %v5555_v39 = vpop.f32.mrf.mxu3  ;;  %v10095_v38 = vld [vmem:[#allocation20_spill] sm:$0xff] }
 0xa0a   : > { %v2732_v31 = vld [vmem:[%s6981_s26 + $0x4ad8] sm:$0xff]  ;;  %6128 = vmatpush.msrb.mxu0 %v2664_v28  ;;  %v5575_v28 = vpop.f32.mrf.mxu0  ;;  %v3156_v59 = vadd.f32 %v8221_v3, %v3136_v37 }
 0xa0b   : > { %v2792_v18 = vld [vmem:[%s6981_s26 + $0x4cb8] sm:$0xff]  ;;  %6147 = vmatpush.msrb.mxu1 %v2732_v31  ;;  %v5556_v31 = vadd.f32 %v5555_v39, %v5536_v54  ;;  %v10096_v39 = vld [vmem:[#allocation22_spill] sm:$0xff] }
 0xa0c   : > { %v2860_v21 = vld [vmem:[%s6981_s26 + $0x4ed8] sm:$0xff]  ;;  %6168 = vmatpush.msrb.mxu2 %v2792_v18  ;;  %v3176_v12 = vadd.f32 %v8229_v14, %v3156_v59 }
 0xa0d   : > { %v2660_v2 = vld [vmem:[%s6981_s26 + $0x4898] sm:$0xff]  ;;  %6187 = vmatpush.msrb.mxu3 %v2860_v21  ;;  %v5576_v18 = vadd.f32 %v5575_v28, %v5556_v31  ;;  %v5595_v21 = vpop.f32.mrf.mxu1 }
 0xa0e   : > { %v2728_v56 = vld [vmem:[%s6981_s26 + $0x4ab8] sm:$0xff]  ;;  %6129 = vmatpush.msrb.mxu0 %v2660_v2  ;;  %v3196_v34 = vadd.f32 %v8223_v4, %v3176_v12 }
 0xa0f   : > { %v2788_v52 = vld [vmem:[%s6981_s26 + $0x4c98] sm:$0xff]  ;;  %6148 = vmatpush.msrb.mxu1 %v2728_v56  ;;  %v5596_v56 = vadd.f32 %v5595_v21, %v5576_v18 }
 0xa10   : > { %v2856_v53 = vld [vmem:[%s6981_s26 + $0x4eb8] sm:$0xff]  ;;  %6169 = vmatpush.msrb.mxu2 %v2788_v52  ;;  %v5615_v2 = vpop.f32.mrf.mxu2  ;;  %v3216_v23 = vadd.f32 %v8235_v32, %v3196_v34  ;;  %v10087_v32 = vld [vmem:[#allocation12_spill] sm:$0xff]  ;;  %v10098_v34 = vld [vmem:[#allocation23_spill] sm:$0xff] }
 0xa11   : > { %v2656_v13 = vld [vmem:[%s6981_s26 + $0x4878] sm:$0xff]  ;;  %6188 = vmatpush.msrb.mxu3 %v2856_v53  ;;  %v5616_v52 = vadd.f32 %v5615_v2, %v5596_v56  ;;  %v5635_v53 = vpop.f32.mrf.mxu3 }
 0xa12   : > { %v2724_v36 = vld [vmem:[%s6981_s26 + $0x4a98] sm:$0xff]  ;;  %6130 = vmatpush.msrb.mxu0 %v2656_v13  ;;  %v5655_v13 = vpop.f32.mrf.mxu0  ;;  %v3236_v49 = vadd.f32 %v8245_v57, %v3216_v23 }
 0xa13   : > { %v2784_v48 = vld [vmem:[%s6981_s26 + $0x4c78] sm:$0xff]  ;;  %6149 = vmatpush.msrb.mxu1 %v2724_v36  ;;  %v5636_v36 = vadd.f32 %v5635_v53, %v5616_v52 }
 0xa14   : > { %v2852_v5 = vld [vmem:[%s6981_s26 + $0x4e98] sm:$0xff]  ;;  %6170 = vmatpush.msrb.mxu2 %v2784_v48  ;;  %v3256_v48 = vadd.f32 %v8253_v6, %v3236_v49 }
 0xa15   : > { %v2652_v9 = vld [vmem:[%s6981_s26 + $0x4858] sm:$0xff]  ;;  %6189 = vmatpush.msrb.mxu3 %v2852_v5  ;;  %v5656_v3 = vadd.f32 %v5655_v13, %v5636_v36  ;;  %v5675_v5 = vpop.f32.mrf.mxu1  ;;  %v10099_v13 = vld [vmem:[#allocation24_spill] sm:$0xff] }
 0xa16   : > { %v2720_v10 = vld [vmem:[%s6981_s26 + $0x4a78] sm:$0xff]  ;;  %6131 = vmatpush.msrb.mxu0 %v2652_v9  ;;  %v3276_v14 = vadd.f32 %v8247_v58, %v3256_v48  ;;  %v10100_v48 = vld [vmem:[#allocation26_spill] sm:$0xff] }
 0xa17   : > { %v2780_v41 = vld [vmem:[%s6981_s26 + $0x4c58] sm:$0xff]  ;;  %6150 = vmatpush.msrb.mxu1 %v2720_v10  ;;  %v5676_v10 = vadd.f32 %v5675_v5, %v5656_v3 }
 0xa18   : > { %v2848_v42 = vld [vmem:[%s6981_s26 + $0x4e78] sm:$0xff]  ;;  %6171 = vmatpush.msrb.mxu2 %v2780_v41  ;;  %v5695_v9 = vpop.f32.mrf.mxu2  ;;  %v10086_v41 = vld [vmem:[#allocation11_spill] sm:$0xff] }
 0xa19   : > { %v2648_v35 = vld [vmem:[%s6981_s26 + $0x4838] sm:$0xff]  ;;  %6190 = vmatpush.msrb.mxu3 %v2848_v42  ;;  %v3296_v42 = vadd.f32 %v10086_v41, %v3276_v14  ;;  %v5696_v4 = vadd.f32 %v5695_v9, %v5676_v10 }
 0xa1a   : > { %v2716_v17 = vld [vmem:[%s6981_s26 + $0x4a58] sm:$0xff]  ;;  %6132 = vmatpush.msrb.mxu0 %v2648_v35  ;;  %v5715_v35 = vpop.f32.mrf.mxu3 }
 0xa1b   : > { %v2776_v15 = vld [vmem:[%s6981_s26 + $0x4c38] sm:$0xff]  ;;  %6151 = vmatpush.msrb.mxu1 %v2716_v17  ;;  %v5735_v17 = vpop.f32.mrf.mxu0 }
 0xa1c   : > { %v2844_v16 = vld [vmem:[%s6981_s26 + $0x4e58] sm:$0xff]  ;;  %6172 = vmatpush.msrb.mxu2 %v2776_v15  ;;  %v3316_v15 = vadd.f32 %v10087_v32, %v3296_v42 }
 0xa1d   : > { %v2644_v24 = vld [vmem:[%s6981_s26 + $0x4818] sm:$0xff]  ;;  %6191 = vmatpush.msrb.mxu3 %v2844_v16  ;;  %v5716_v16 = vadd.f32 %v5715_v35, %v5696_v4  ;;  %v10102_v4 = vld [vmem:[#allocation27_spill] sm:$0xff] }
 0xa1e   : > { %v2712_v61 = vld [vmem:[%s6981_s26 + $0x4a38] sm:$0xff]  ;;  %6133 = vmatpush.msrb.mxu0 %v2644_v24  ;;  %v10088_v24 = vld [vmem:[#allocation14_spill] sm:$0xff] }
 0xa1f   : > { %v2772_v43 = vld [vmem:[%s6981_s26 + $0x4c18] sm:$0xff]  ;;  %6152 = vmatpush.msrb.mxu1 %v2712_v61  ;;  %6134 = vmatmul.f32.vlgmr.msrb.gmra.mxu0 %v6662_v60  ;;  %v3336_v61 = vadd.f32 %v10088_v24, %v3316_v15  ;;  %v5736_v57 = vadd.f32 %v5735_v17, %v5716_v16  ;;  %v10090_v60 = vld [vmem:[#allocation15_spill] sm:$0xff]  ;;  %v10103_v16 = vld [vmem:[#allocation28_spill] sm:$0xff] }
 0xa20   : > { %v2840_v50 = vld [vmem:[%s6981_s26 + $0x4e38] sm:$0xff]  ;;  %6173 = vmatpush.msrb.mxu2 %v2772_v43  ;;  %v5755_v43 = vpop.f32.mrf.mxu1 }
 0xa21   : > { %v2708_v19 = vld [vmem:[%s6981_s26 + $0x4a18] sm:$0xff]  ;;  %6192 = vmatpush.msrb.mxu3 %v2840_v50  ;;  %6174 = vmatmul.f32.vlgmr.msrb.gmra.mxu2 %v6663_v1  ;;  %v5775_v50 = vpop.f32.mrf.mxu2 }
 0xa22   : > { %v2836_v20 = vld [vmem:[%s6981_s26 + $0x4e18] sm:$0xff]  ;;  %6153 = vmatpush.msrb.mxu1 %v2708_v19 }
 0xa23   : > { %6193 = vmatpush.msrb.mxu3 %v2836_v20  ;;  %v6664_v55 = vld.sshfl [vmem:[#allocation1 + $0x28] sm:$0xff pattern:$0x73625140]  ;;  %v5756_v20 = vadd.f32 %v5755_v43, %v5736_v57  ;;  %v10104_v57 = vld [vmem:[#allocation30_spill] sm:$0xff] }
 0xa24   : > { %6154 = vmatmul.f32.vlgmr.msrb.gmra.mxu1 %v6664_v55  ;;  %6194 = vmatmul.f32.vlgmr.msrb.gmra.mxu3 %v6665_v62  ;;  %v10089_v6 = vld [vmem:[#allocation13_spill] sm:$0xff]  ;;  %v5795_v55 = vpop.f32.mrf.mxu3  ;;  %v5815_v62 = vpop.f32.mrf.mxu0 }
 0xa25   : > { %v3356_v19 = vadd.f32 %v10089_v6, %v3336_v61  ;;  %v5776_v58 = vadd.f32 %v5775_v50, %v5756_v20  ;;  %v10093_v26 = vld [vmem:[#allocation17_spill] sm:$0xff] }
 0xa26   : > { %v10097_v18 = vld [vmem:[#allocation21_spill] sm:$0xff] }
 0xa27   : > { %v3376_v1 = vadd.f32 %v10090_v60, %v3356_v19  ;;  %v5796_v40 = vadd.f32 %v5795_v55, %v5776_v58  ;;  %v10101_v10 = vld [vmem:[#allocation25_spill] sm:$0xff]  ;;  %v10106_v58 = vld [vmem:[#allocation31_spill] sm:$0xff] }
 0xa28   : > { %v5835_v7 = vpop.f32.mrf.mxu1  ;;  %v10105_v20 = vld [vmem:[#allocation29_spill] sm:$0xff] }
 0xa29   : > { %v3396_v29 = vadd.f32 %v10091_v25, %v3376_v1  ;;  %v5816_v22 = vadd.f32 %v5815_v62, %v5796_v40  ;;  %v5855_v33 = vpop.f32.mrf.mxu2 }
 0xa2b   : > { %v3416_v63 = vadd.f32 %v10092_v45, %v3396_v29  ;;  %v5836_v0 = vadd.f32 %v5835_v7, %v5816_v22  ;;  %v10107_v29 = vld [vmem:[#allocation32_spill] sm:$0xff]  ;;  %v10108_v22 = vld [vmem:[#allocation34_spill] sm:$0xff] }
 0xa2c   : > { %v5875_v8 = vpop.f32.mrf.mxu3  ;;  %v5895_v11 = vpop.f32.mrf.mxu0 }
 0xa2d   : > { %v3436_v27 = vadd.f32 %v10093_v26, %v3416_v63  ;;  %v5856_v47 = vadd.f32 %v5855_v33, %v5836_v0 }
 0xa2f   : > { %v3456_v44 = vadd.f32 %v10094_v46, %v3436_v27  ;;  %v5876_v54 = vadd.f32 %v5875_v8, %v5856_v47  ;;  %v10109_v27 = vld [vmem:[#allocation33_spill] sm:$0xff]  ;;  %v10110_v47 = vld [vmem:[#allocation35_spill] sm:$0xff] }
 0xa30   : > { %v5915_v31 = vpop.f32.mrf.mxu1 }
 0xa31   : > { %v3476_v37 = vadd.f32 %v10095_v38, %v3456_v44  ;;  %v5896_v59 = vadd.f32 %v5895_v11, %v5876_v54  ;;  %v5935_v12 = vpop.f32.mrf.mxu2 }
 0xa33   : > { %v3496_v28 = vadd.f32 %v10096_v39, %v3476_v37  ;;  %v5916_v2 = vadd.f32 %v5915_v31, %v5896_v59  ;;  %v6202_v37 = vrot.slane %v8792_v51, 6  ;;  %v10111_v39 = vld [vmem:[#allocation36_spill] sm:$0xff]  ;;  %v6203_v59 = vrot.slane %v9490_v30, 4 }
 0xa34   : > { %v5955_v52 = vpop.f32.mrf.mxu3  ;;  %v5975_v53 = vpop.f32.mrf.mxu0 }
 0xa35   : > { %v3516_v21 = vadd.f32 %v10097_v18, %v3496_v28  ;;  %v5936_v23 = vadd.f32 %v5935_v12, %v5916_v2  ;;  %v326_v12 = vld [vmem:[#allocation2] sm:$0xff] }
 0xa37   : > { %v3536_v56 = vadd.f32 %v10098_v34, %v3516_v21  ;;  %v5956_v36 = vadd.f32 %v5955_v52, %v5936_v23 }
 0xa38   : > { %v5995_v9 = vpop.f32.mrf.mxu1 }
 0xa39   : > { %v3556_v49 = vadd.f32 %v10099_v13, %v3536_v56  ;;  %v5976_v5 = vadd.f32 %v5975_v53, %v5956_v36  ;;  %v6015_v14 = vpop.f32.mrf.mxu2 }
 0xa3b   : > { %v3576_v3 = vadd.f32 %v10100_v48, %v3556_v49  ;;  %v5996_v42 = vadd.f32 %v5995_v9, %v5976_v5 }
 0xa3c   : > { %v6035_v32 = vpop.f32.mrf.mxu3 }
 0xa3d   : > { %v3596_v41 = vadd.f32 %v10101_v10, %v3576_v3  ;;  %v6016_v17 = vadd.f32 %v6015_v14, %v5996_v42 }
 0xa3f   : > { %v3616_v35 = vadd.f32 %v10102_v4, %v3596_v41  ;;  %v6036_v61 = vadd.f32 %v6035_v32, %v6016_v17 }
 0xa41   : > { %v3636_v24 = vadd.f32 %v10103_v16, %v3616_v35 }
 0xa43   : > { %v3656_v43 = vadd.f32 %v10104_v57, %v3636_v24 }
 0xa45   : > { %v3676_v60 = vadd.f32 %v10105_v20, %v3656_v43 }
 0xa47   : > { %v3696_v55 = vadd.f32 %v10106_v58, %v3676_v60 }
 0xa49   : > { %v3716_v40 = vadd.f32 %v10107_v29, %v3696_v55 }
 0xa4b   : > { %v3736_v7 = vadd.f32 %v10108_v22, %v3716_v40 }
 0xa4d   : > { %v3756_v0 = vadd.f32 %v10109_v27, %v3736_v7 }
 0xa4f   : > { %v3776_v8 = vadd.f32 %v10110_v47, %v3756_v0 }
 0xa51   : > { %v3796_v28 = vadd.f32 %v10111_v39, %v3776_v8 }
 0xa53   : > { %v6206_v18 = vsel %vm6205_vm0, %v3796_v28, %v6202_v37 }
 0xa5b   : > { %v6055_v15 = vpop.f32.mrf.mxu0 }
 0xa5c   : > { %v6056_v50 = vadd.f32 %v6055_v15, %v6036_v61 }
 0xa63   : > { %v6095_v19 = vpop.f32.mrf.mxu2 }
 0xa66   : > { %v6075_v6 = vpop.f32.mrf.mxu1 }
 0xa67   : > { %v6076_v1 = vadd.f32 %v6075_v6, %v6056_v50 }
 0xa68   : > { %v6115_v25 = vpop.f32.mrf.mxu3 }
 0xa69   : > { %v6096_v62 = vadd.f32 %v6095_v19, %v6076_v1 }
 0xa6b   : > { %v6116_v45 = vadd.f32 %v6115_v25, %v6096_v62 }
 0xa9c   : > { %v6135_v63 = vpop.f32.mrf.mxu0 }
 0xa9d   : > { %v6136_v33 = vadd.f32 %v6135_v63, %v6116_v45 }
 0xaa1   : > { %v6155_v26 = vpop.f32.mrf.mxu1 }
 0xaa2   : > { %v6156_v46 = vadd.f32 %v6155_v26, %v6136_v33 }
 0xaa4   : > { %v6175_v44 = vpop.f32.mrf.mxu2 }
 0xaa5   : > { %v6176_v11 = vadd.f32 %v6175_v44, %v6156_v46 }
 0xaa7   : > { %v6195_v38 = vpop.f32.mrf.mxu3 }
 0xaa8   : > { %v6196_v54 = vadd.f32 %v6195_v38, %v6176_v11 }
 0xaaa   : > { %v6204_v31 = vrot.slane %v6196_v54, 2 }
 0xaac   : > { %v6208_v21 = vsel %vm6207_vm1, %v6203_v59, %v6204_v31  ;;  %6217 = sbr.rel (%p6532_p10) target bundleno = 2908 (0xb5c), region = 52 }
 0xaad   : > { %v6210_v2 = vsel %vm6209_vm2, %v6206_v18, %v6208_v21 }
 0xaae   : > { %v6212_v34 = vadd.f32 %v6210_v2, %v326_v12 }
 0xab0   : > { %6213 = vst [vmem:[#allocation2] sm:$0xff] %v6212_v34 }
 0xab1   : > { %v6281_v51 = vld [vmem:[%s7001_s29 + $0x178] sm:$0xff]  ;;  %v6280_v30 = vld [vmem:[%s7001_s29 + $0x170] sm:$0xff]  ;;  %v6279_v53 = vld [vmem:[%s7001_s29 + $0x168] sm:$0xff]  ;;  %vm6388_vm3 = vcmask 25600  }
 0xab2   : > { %v6297_v56 = vld [vmem:[%s7001_s29 + $0x1f8] sm:$0xff]  ;;  %6348 = vmatpush.msra.mxu2 %v6281_v51  ;;  %v6296_v13 = vld [vmem:[%s7001_s29 + $0x1f0] sm:$0xff]  ;;  %v6295_v48 = vld [vmem:[%s7001_s29 + $0x1e8] sm:$0xff] }
 0xab3   : > { %6368 = vmatpush.msra.mxu3 %v6297_v56  ;;  %v6249_v23 = vld [vmem:[%s7001_s29 + $0x78] sm:$0xff]  ;;  %v6248_v49 = vld [vmem:[%s7001_s29 + $0x70] sm:$0xff]  ;;  %v6247_v3 = vld [vmem:[%s7001_s29 + $0x68] sm:$0xff] }
 0xab4   : > { %v6265_v52 = vld [vmem:[%s7001_s29 + $0xf8] sm:$0xff]  ;;  %6308 = vmatpush.msra.mxu0 %v6249_v23  ;;  %v6264_v36 = vld [vmem:[%s7001_s29 + $0xf0] sm:$0xff]  ;;  %6349 = vmatpush.msra.mxu2 %v6280_v30  ;;  %v6278_v5 = vld [vmem:[%s7001_s29 + $0x160] sm:$0xff] }
 0xab5   : > { %6328 = vmatpush.msra.mxu1 %v6265_v52  ;;  %6369 = vmatpush.msra.mxu3 %v6296_v13  ;;  %v6263_v9 = vld [vmem:[%s7001_s29 + $0xe8] sm:$0xff]  ;;  %v6294_v14 = vld [vmem:[%s7001_s29 + $0x1e0] sm:$0xff]  ;;  %v6277_v42 = vld [vmem:[%s7001_s29 + $0x158] sm:$0xff] }
 0xab6   : > { %6309 = vmatpush.msra.mxu0 %v6248_v49  ;;  %6350 = vmatpush.msra.mxu2 %v6279_v53  ;;  %v6246_v10 = vld [vmem:[%s7001_s29 + $0x60] sm:$0xff]  ;;  %v6293_v4 = vld [vmem:[%s7001_s29 + $0x1d8] sm:$0xff]  ;;  %v6276_v32 = vld [vmem:[%s7001_s29 + $0x150] sm:$0xff] }
 0xab7   : > { %6329 = vmatpush.msra.mxu1 %v6264_v36  ;;  %6370 = vmatpush.msra.mxu3 %v6295_v48  ;;  %v6262_v41 = vld [vmem:[%s7001_s29 + $0xe0] sm:$0xff]  ;;  %v6245_v35 = vld [vmem:[%s7001_s29 + $0x58] sm:$0xff]  ;;  %v6292_v15 = vld [vmem:[%s7001_s29 + $0x1d0] sm:$0xff] }
 0xab8   : > { %6310 = vmatpush.msra.mxu0 %v6247_v3  ;;  %6351 = vmatpush.msra.mxu2 %v6278_v5  ;;  %v6261_v17 = vld [vmem:[%s7001_s29 + $0xd8] sm:$0xff]  ;;  %v6244_v16 = vld [vmem:[%s7001_s29 + $0x50] sm:$0xff]  ;;  %v6275_v61 = vld [vmem:[%s7001_s29 + $0x148] sm:$0xff] }
 0xab9   : > { %6330 = vmatpush.msra.mxu1 %v6263_v9  ;;  %6371 = vmatpush.msra.mxu3 %v6294_v14  ;;  %v6260_v24 = vld [vmem:[%s7001_s29 + $0xd0] sm:$0xff]  ;;  %v6291_v57 = vld [vmem:[%s7001_s29 + $0x1c8] sm:$0xff]  ;;  %v6274_v6 = vld [vmem:[%s7001_s29 + $0x140] sm:$0xff] }
 0xaba   : > { %6311 = vmatpush.msra.mxu0 %v6246_v10  ;;  %6352 = vmatpush.msra.mxu2 %v6277_v42  ;;  %v6243_v43 = vld [vmem:[%s7001_s29 + $0x48] sm:$0xff]  ;;  %v6290_v19 = vld [vmem:[%s7001_s29 + $0x1c0] sm:$0xff]  ;;  %v6273_v1 = vld [vmem:[%s7001_s29 + $0x138] sm:$0xff] }
 0xabb   : > { %6331 = vmatpush.msra.mxu1 %v6262_v41  ;;  %6372 = vmatpush.msra.mxu3 %v6293_v4  ;;  %v6259_v50 = vld [vmem:[%s7001_s29 + $0xc8] sm:$0xff]  ;;  %v6242_v20 = vld [vmem:[%s7001_s29 + $0x40] sm:$0xff]  ;;  %v6289_v58 = vld [vmem:[%s7001_s29 + $0x1b8] sm:$0xff] }
 0xabc   : > { %6312 = vmatpush.msra.mxu0 %v6245_v35  ;;  %6353 = vmatpush.msra.mxu2 %v6276_v32  ;;  %v6258_v60 = vld [vmem:[%s7001_s29 + $0xc0] sm:$0xff]  ;;  %v6241_v55 = vld [vmem:[%s7001_s29 + $0x38] sm:$0xff]  ;;  %v6272_v25 = vld [vmem:[%s7001_s29 + $0x130] sm:$0xff] }
 0xabd   : > { %6332 = vmatpush.msra.mxu1 %v6261_v17  ;;  %6373 = vmatpush.msra.mxu3 %v6292_v15  ;;  %v6257_v62 = vld [vmem:[%s7001_s29 + $0xb8] sm:$0xff]  ;;  %v6288_v29 = vld [vmem:[%s7001_s29 + $0x1b0] sm:$0xff]  ;;  %v6271_v63 = vld [vmem:[%s7001_s29 + $0x128] sm:$0xff] }
 0xabe   : > { %6313 = vmatpush.msra.mxu0 %v6244_v16  ;;  %6354 = vmatpush.msra.mxu2 %v6275_v61  ;;  %v6240_v40 = vld [vmem:[%s7001_s29 + $0x30] sm:$0xff]  ;;  %v6287_v22 = vld [vmem:[%s7001_s29 + $0x1a8] sm:$0xff]  ;;  %v6270_v26 = vld [vmem:[%s7001_s29 + $0x120] sm:$0xff] }
 0xabf   : > { %6333 = vmatpush.msra.mxu1 %v6260_v24  ;;  %6374 = vmatpush.msra.mxu3 %v6291_v57  ;;  %v6256_v45 = vld [vmem:[%s7001_s29 + $0xb0] sm:$0xff]  ;;  %v6239_v7 = vld [vmem:[%s7001_s29 + $0x28] sm:$0xff]  ;;  %v6286_v27 = vld [vmem:[%s7001_s29 + $0x1a0] sm:$0xff] }
 0xac0   : > { %6314 = vmatpush.msra.mxu0 %v6243_v43  ;;  %6355 = vmatpush.msra.mxu2 %v6274_v6  ;;  %v6255_v33 = vld [vmem:[%s7001_s29 + $0xa8] sm:$0xff]  ;;  %v6219_v0 = vld [vmem:[%s10112_s21] sm:$0xf]  ;;  %v6238_v46 = vld [vmem:[%s7001_s29 + $0x20] sm:$0xff] }
 0xac1   : > { %6334 = vmatpush.msra.mxu1 %v6259_v50  ;;  %6375 = vmatpush.msra.mxu3 %v6290_v19  ;;  %v6254_v44 = vld [vmem:[%s7001_s29 + $0xa0] sm:$0xff]  ;;  %v6221_v47 = vperm.slane %v6219_v0, 0  ;;  %v6222_v8 = vperm.slane %v6219_v0, 1  ;;  %v6223_v11 = vperm.slane %v6219_v0, 2  ;;  %v6224_v38 = vperm.slane %v6219_v0, 3  ;;  %v6269_v37 = vld [vmem:[%s7001_s29 + $0x118] sm:$0xff] }
 0xac2   : > { %6315 = vmatpush.msra.mxu0 %v6242_v20  ;;  %6356 = vmatpush.msra.mxu2 %v6273_v1  ;;  %v6285_v54 = vld [vmem:[%s7001_s29 + $0x198] sm:$0xff]  ;;  %v6268_v18 = vld [vmem:[%s7001_s29 + $0x110] sm:$0xff]  ;;  %v6218_v2 = vld [vmem:[#allocation2] sm:$0xff] }
 0xac3   : > { %6335 = vmatpush.msra.mxu1 %v6258_v60  ;;  %6376 = vmatpush.msra.mxu3 %v6289_v58  ;;  %v6237_v39 = vld [vmem:[%s7001_s29 + $0x18] sm:$0xff]  ;;  %v6225_v59 = vrot.slane %v6222_v8, 6  ;;  %v6226_v31 = vrot.slane %v6223_v11, 4  ;;  %v6227_v12 = vrot.slane %v6224_v38, 2  ;;  %v6284_v21 = vld [vmem:[%s7001_s29 + $0x190] sm:$0xff]  ;;  %v6267_v23 = vld [vmem:[%s7001_s29 + $0x108] sm:$0xff] }
 0xac4   : > { %6316 = vmatpush.msra.mxu0 %v6241_v55  ;;  %6357 = vmatpush.msra.mxu2 %v6272_v25  ;;  %v6253_v28 = vld [vmem:[%s7001_s29 + $0x98] sm:$0xff]  ;;  %v6236_v34 = vld [vmem:[%s7001_s29 + $0x10] sm:$0xff]  ;;  %v6283_v52 = vld [vmem:[%s7001_s29 + $0x188] sm:$0xff] }
 0xac5   : > { %6336 = vmatpush.msra.mxu1 %v6257_v62  ;;  %6377 = vmatpush.msra.mxu3 %v6288_v29  ;;  %v6252_v51 = vld [vmem:[%s7001_s29 + $0x90] sm:$0xff]  ;;  %v6228_v30 = vsel %vm6205_vm0, %v6221_v47, %v6225_v59  ;;  %v6229_v56 = vsel %vm6207_vm1, %v6226_v31, %v6227_v12  ;;  %v6235_v49 = vld [vmem:[%s7001_s29 + $0x8] sm:$0xff]  ;;  %v6266_v48 = vld [vmem:[%s7001_s29 + $0x100] sm:$0xff] }
 0xac6   : > { %6317 = vmatpush.msra.mxu0 %v6240_v40  ;;  %6358 = vmatpush.msra.mxu2 %v6271_v63  ;;  %v6230_v53 = vsel %vm6209_vm2, %v6228_v30, %v6229_v56  ;;  %v6251_v36 = vld [vmem:[%s7001_s29 + $0x88] sm:$0xff]  ;;  %v6282_v3 = vld [vmem:[%s7001_s29 + $0x180] sm:$0xff] }
 0xac7   : > { %6337 = vmatpush.msra.mxu1 %v6256_v45  ;;  %6378 = vmatpush.msra.mxu3 %v6287_v22  ;;  %v6232_v13 = vadd.f32 %v6230_v53, %v6218_v2  ;;  %v6234_v9 = vld [vmem:[%s7001_s29] sm:$0xff] }
 0xac8   : > { %6318 = vmatpush.msra.mxu0 %v6239_v7  ;;  %6359 = vmatpush.msra.mxu2 %v6270_v26  ;;  %v6250_v14 = vld [vmem:[%s7001_s29 + $0x80] sm:$0xff] }
 0xac9   : > { %6338 = vmatpush.msra.mxu1 %v6255_v33  ;;  %6379 = vmatpush.msra.mxu3 %v6286_v27  ;;  %v6233_v5 = vmax.f32 %v6232_v13, 0.0 }
 0xaca   : > { %6319 = vmatpush.msra.mxu0 %v6238_v46  ;;  %6360 = vmatpush.msra.mxu2 %v6269_v37 }
 0xacb   : > { %6339 = vmatpush.msra.mxu1 %v6254_v44  ;;  %6380 = vmatpush.msra.mxu3 %v6285_v54  ;;  %6299 = vst [vmem:[#allocation1] ss:$4 sm:$0xff] %v6233_v5 }
 0xacc   : > { %6320 = vmatpush.msra.mxu0 %v6237_v39  ;;  %6361 = vmatpush.msra.mxu2 %v6268_v18 }
 0xacd   : > { %6340 = vmatpush.msra.mxu1 %v6253_v28  ;;  %6381 = vmatpush.msra.mxu3 %v6284_v21 }
 0xace   : > { %6321 = vmatpush.msra.mxu0 %v6236_v34  ;;  %6362 = vmatpush.msra.mxu2 %v6267_v23 }
 0xacf   : > { %6341 = vmatpush.msra.mxu1 %v6252_v51  ;;  %6382 = vmatpush.msra.mxu3 %v6283_v52 }
 0xad0   : > { %6322 = vmatpush.msra.mxu0 %v6235_v49  ;;  %6363 = vmatpush.msra.mxu2 %v6266_v48 }
 0xad1   : > { %6342 = vmatpush.msra.mxu1 %v6251_v36  ;;  %6383 = vmatpush.msra.mxu3 %v6282_v3 }
 0xad2   : > { %6323 = vmatpush.msra.mxu0 %v6234_v9  ;;  %v6302_v10 = vld.sshfl [vmem:[#allocation1 + $0x10] sm:$0xff pattern:$0x73625140]  ;;  %v6303_v41 = vld.sshfl [vmem:[#allocation1 + $0x18] sm:$0xff pattern:$0x73625140] }
 0xad3   : > { %6343 = vmatpush.msra.mxu1 %v6250_v14  ;;  %6364 = vmatmul.f32.vlgmr.msra.gmra.mxu2 %v6302_v10  ;;  %v6300_v42 = vld.sshfl [vmem:[#allocation1] sm:$0xff pattern:$0x73625140]  ;;  %v6301_v4 = vld.sshfl [vmem:[#allocation1 + $0x8] sm:$0xff pattern:$0x73625140] }
 0xad4   : > { %6384 = vmatmul.f32.vlgmr.msra.gmra.mxu3 %v6303_v41  ;;  %6324 = vmatmul.f32.vlgmr.msra.gmra.mxu0 %v6300_v42 }
 0xad5   : > { %6344 = vmatmul.f32.vlgmr.msra.gmra.mxu1 %v6301_v4 }
 0xb51   : > { %v6325_v35 = vpop.f32.mrf.mxu0 }
 0xb52   : > { %v6345_v17 = vpop.f32.mrf.mxu1 }
 0xb53   : > { %v6346_v32 = vadd.f32 %v6345_v17, %v6325_v35 }
 0xb56   : > { %v6365_v15 = vpop.f32.mrf.mxu2 }
 0xb57   : > { %v6385_v16 = vpop.f32.mrf.mxu3  ;;  %v6366_v24 = vadd.f32 %v6365_v15, %v6346_v32 }
 0xb59   : > { %v6386_v61 = vadd.f32 %v6385_v16, %v6366_v24 }
 0xb5b   : > { %6389 = vst.msk [vmem:[%s7012_s5] sm:$0x3] %vm6388_vm3, %v6386_v61 }
 0xb5c PF: > { %s20_s25 = sadd.s32 1, %s6820_s25   ;;  %s10113_s26 = sld [smem:[#allocation9_spill]] }
 0xb5d   : > { %p17_p11 = scmp.ge.s32.totalorder %s20_s25, 8   ;;  %s10114_s14 = sld [smem:[#allocation10_spill]] }
 0xb5e   : > { %s10115_s15 = smov %s6784_s16  ;;  %s10116_s16 = smov %s6788_s17 }
 0xb5f   : > { %s10117_s17 = smov %s6957_s11  ;;  %s10118_s18 = smov %s6796_s19 }
 0xb60   : > { %s10119_s19 = smov %s6800_s20  ;;  %s10120_s20 = smov %s6962_s12 }
 0xb61   : > { %s10121_s21 = smov %s6812_s23  ;;  %s10122_s22 = smov %s6816_s24 }
 0xb62   : > { %s10123_s23 = smov %s10113_s26  ;;  %19 = sbr.rel (!%p17_p11) target bundleno = 12 (0xc), region = 104 }
 0xb63   : > { %s10124_s24 = smov %s10114_s14 }
 0xb67   :  { %6409 = vsyncpa [#allocation4], 1 }
 0xb68   :  { %6411 = vsyncpa [#allocation4 + $0x1], 1 }
 0xb69   :  { %6412 = vsyncpa [#allocation6], 1 }
 0xb6a   :  { %6414 = vsyncpa [#allocation6 + $0x1], 1 }

</bundles_post_ra>
